<compile_context>
chip_gen: v7x
topology: tpu7x:2x2x1
jax: 0.10.0
libtpu: 0.0.40
codegen_flags: <defaults>
</compile_context>

<pallas_src>
import functools

import jax
import jax.numpy as jnp
from jax import lax
from jax.experimental import pallas as pl
from jax.experimental.pallas import tpu as pltpu


# ----------------------------------------------------------------------------
# Compiler params (generation-aware VMEM limit, queried per call)
# ----------------------------------------------------------------------------
def _compiler_params(grid_len):
    kw = {"dimension_semantics": ("parallel",) if grid_len > 1 else ("arbitrary",)}
    try:
        cap = pltpu.get_tpu_info().vmem_capacity_bytes
        kw["vmem_limit_bytes"] = min(int(cap * 0.7), 100 * 1024 * 1024)
    except Exception:
        pass  # leave the compiler default if the query is unavailable
    return pltpu.CompilerParams(**kw)


def _pick_bt(batch, ho, wo, cout, acc_cap=32768):
    """Images per grid step: cap the f32 accumulator (~128 KiB) and keep >=2
    grid steps whenever possible so both v7x TensorCores get work."""
    for bt in (8, 4, 2, 1):
        if batch % bt:
            continue
        if bt != 1 and bt * ho * wo * cout > acc_cap:
            continue
        if bt != 1 and batch >= 2 and batch // bt < 2:
            continue
        return bt
    return 1


# ----------------------------------------------------------------------------
# Kernel 1: direct 3x3 conv (stride 1 or 2) + bias [+ residual] [-> ReLU]
#   * merged taps: three K=3*Cin matmuls, patch assembled in VMEM scratch
#   * stride 2 uses a column-phase packed input (2*Cin lanes) so both the row
#     and column subsampling are static slices / leading-dim reshapes only
# ----------------------------------------------------------------------------
def _conv3x3_kernel(x_ref, w_ref, b_ref, *rest, stride, relu, Ho, Wo, Cin,
                    has_res):
    if has_res:
        r_ref, o_ref, patch_ref = rest
    else:
        o_ref, patch_ref = rest
    Bt = o_ref.shape[0]
    Cout = o_ref.shape[-1]
    M = Bt * Ho * Wo

    if stride == 2:
        xv = x_ref[...]                                   # (Bt, H+2, Wp, 2*Cin)
        hp2, wp, c2 = xv.shape[1], xv.shape[2], xv.shape[3]
        xv = xv.reshape(Bt, hp2 // 2, 2, wp, c2)          # leading-dim split only

    acc = jnp.zeros((M, Cout), jnp.float32)
    for dy in range(3):
        if stride == 1:
            for dx in range(3):
                piece = x_ref[:, dy:dy + Ho, dx:dx + Wo, :]       # (Bt,Ho,Wo,Cin)
                patch_ref[:, dx * Cin:(dx + 1) * Cin] = piece.reshape(M, Cin)
        else:
            band = xv[:, dy // 2: dy // 2 + Ho, dy % 2]           # (Bt,Ho,Wp,2Cin)
            patch_ref[:, 0:2 * Cin] = band[:, :, 0:Wo, :].reshape(M, 2 * Cin)
            patch_ref[:, 2 * Cin:3 * Cin] = (
                band[:, :, 1:1 + Wo, 0:Cin].reshape(M, Cin))
        acc = acc + jnp.dot(patch_ref[...], w_ref[dy],
                            preferred_element_type=jnp.float32)

    out = acc + b_ref[...]
    if has_res:
        out = out + r_ref[...].reshape(M, Cout).astype(jnp.float32)
    if relu:
        out = jnp.maximum(out, 0.0)
    o_ref[...] = out.reshape(Bt, Ho * Wo, Cout).astype(o_ref.dtype)


def conv3x3_bn(x, w_hwio, bias, *, stride, relu, residual=None):
    """x: (B,H,W,Cin) NHWC; w_hwio: (3,3,Cin,Cout) with BN scale folded in."""
    B, H, W, Cin = x.shape
    Cout = w_hwio.shape[-1]
    assert stride in (1, 2)
    Ho = (H - 1) // stride + 1
    Wo = (W - 1) // stride + 1

    xp = jnp.pad(x.astype(jnp.bfloat16), ((0, 0), (1, 1), (1, 1), (0, 0)))
    if stride == 2:
        assert H % 2 == 0 and W % 2 == 0, "stride-2 path expects even H, W"
        # Free row-major bitcast: pack column pairs into lanes.
        xk = xp.reshape(B, H + 2, (W + 2) // 2, 2 * Cin)
    else:
        xk = xp
    w3 = w_hwio.reshape(3, 3 * Cin, Cout).astype(jnp.bfloat16)
    b2 = bias.reshape(1, Cout).astype(jnp.float32)

    Bt = _pick_bt(B, Ho, Wo, Cout)
    grid = (B // Bt,)
    nlead = xk.ndim - 1

    in_specs = [
        pl.BlockSpec((Bt,) + xk.shape[1:], lambda n: (n,) + (0,) * nlead),
        pl.BlockSpec(w3.shape, lambda n: (0, 0, 0)),
        pl.BlockSpec((1, Cout), lambda n: (0, 0)),
    ]
    args = [xk, w3, b2]
    has_res = residual is not None
    if has_res:
        r = residual.reshape(B, Ho * Wo, Cout)       # free reshape, keep dtype
        in_specs.append(pl.BlockSpec((Bt, Ho * Wo, Cout), lambda n: (n, 0, 0)))
        args.append(r)

    kernel = functools.partial(_conv3x3_kernel, stride=stride, relu=relu,
                               Ho=Ho, Wo=Wo, Cin=Cin, has_res=has_res)
    out = pl.pallas_call(
        kernel,
        out_shape=jax.ShapeDtypeStruct((B, Ho * Wo, Cout), jnp.bfloat16),
        grid=grid,
        in_specs=in_specs,
        out_specs=pl.BlockSpec((Bt, Ho * Wo, Cout), lambda n: (n, 0, 0)),
        scratch_shapes=[pltpu.VMEM((Bt * Ho * Wo, 3 * Cin), jnp.bfloat16)],
        compiler_params=_compiler_params(grid[0]),
    )(*args)
    return out.reshape(B, Ho, Wo, Cout)


# ----------------------------------------------------------------------------
# Kernel 2: 1x1 shortcut conv + bias, stride folded into the kernel
# (stride-2 subsample done via free column-phase packing + leading reshapes)
# ----------------------------------------------------------------------------
def _conv1x1_kernel(x_ref, w_ref, b_ref, o_ref, *, stride, Ho, Wo, Cin):
    Bt = o_ref.shape[0]
    Cout = o_ref.shape[-1]
    M = Bt * Ho * Wo
    if stride == 1:
        xs = x_ref[...].reshape(M, Cin)
    else:
        xv = x_ref[...]                                    # (Bt, H, W//2, 2*Cin)
        h, whalf, c2 = xv.shape[1], xv.shape[2], xv.shape[3]
        xv = xv.reshape(Bt, h // 2, 2, whalf, c2)          # leading-dim split
        xs = xv[:, :, 0, :, 0:Cin].reshape(M, Cin)         # even rows, even cols
    out = jnp.dot(xs, w_ref[...], preferred_element_type=jnp.float32) + b_ref[...]
    o_ref[...] = out.reshape(Bt, Ho * Wo, Cout).astype(o_ref.dtype)


def conv1x1_bn(x, w_hwio, bias, *, stride):
    B, H, W, Cin = x.shape
    Cout = w_hwio.shape[-1]
    assert stride in (1, 2)
    Ho, Wo = H // stride, W // stride
    if stride == 2:
        assert H % 2 == 0 and W % 2 == 0
        xk = x.astype(jnp.bfloat16).reshape(B, H, W // 2, 2 * Cin)  # free bitcast
    else:
        xk = x.astype(jnp.bfloat16).reshape(B, H * W, Cin)
    w2 = w_hwio.reshape(Cin, Cout).astype(jnp.bfloat16)
    b2 = bias.reshape(1, Cout).astype(jnp.float32)

    Bt = _pick_bt(B, Ho, Wo, Cout)
    grid = (B // Bt,)
    nlead = xk.ndim - 1
    in_specs = [
        pl.BlockSpec((Bt,) + xk.shape[1:], lambda n: (n,) + (0,) * nlead),
        pl.BlockSpec(w2.shape, lambda n: (0, 0)),
        pl.BlockSpec((1, Cout), lambda n: (0, 0)),
    ]
    kernel = functools.partial(_conv1x1_kernel, stride=stride,
                               Ho=Ho, Wo=Wo, Cin=Cin)
    out = pl.pallas_call(
        kernel,
        # shortcut output kept f32 so the residual add matches eval-mode math
        out_shape=jax.ShapeDtypeStruct((B, Ho * Wo, Cout), jnp.float32),
        grid=grid,
        in_specs=in_specs,
        out_specs=pl.BlockSpec((Bt, Ho * Wo, Cout), lambda n: (n, 0, 0)),
        compiler_params=_compiler_params(grid[0]),
    )(xk, w2, b2)
    return out.reshape(B, Ho, Wo, Cout)


# ----------------------------------------------------------------------------
# BasicBlock forward (Pallas) + parameter construction (BN folded)
# ----------------------------------------------------------------------------
def basic_block_forward_nhwc(params, x_nhwc, *, stride):
    """NHWC entry point: use this when chaining blocks so the NCHW<->NHWC
    transposes stay at the network boundary."""
    xb = x_nhwc.astype(jnp.bfloat16)
    # conv1 + bn1 + relu
    y = conv3x3_bn(xb, params["w1_hwio"], params["b1"], stride=stride, relu=True)
    # shortcut
    if "wsc_hwio" in params:
        sc = conv1x1_bn(xb, params["wsc_hwio"], params["bsc"], stride=stride)
    else:
        sc = x_nhwc.astype(jnp.float32)     # identity shortcut added in f32
    # conv2 + bn2 + residual add + relu, fused in one kernel
    return conv3x3_bn(y, params["w2_hwio"], params["b2"],
                      stride=1, relu=True, residual=sc)


def basic_block_forward(params, x_nchw, *, stride):
    x = jnp.transpose(x_nchw, (0, 2, 3, 1))               # NCHW -> NHWC
    out = basic_block_forward_nhwc(params, x, stride=stride)
    return jnp.transpose(out, (0, 3, 1, 2))               # back to NCHW (bf16)


def make_block_params(key, in_planes, planes, stride, eps=1e-5):
    it = iter(jax.random.split(key, 16))

    def conv_w(k, cin, cout, ksz):
        return 0.05 * jax.random.normal(k, (ksz, ksz, cin, cout), jnp.float32)

    def bn_fold(k, c):
        k1, k2, k3, k4 = jax.random.split(k, 4)
        gamma = 1.0 + 0.1 * jax.random.normal(k1, (c,), jnp.float32)
        beta = 0.1 * jax.random.normal(k2, (c,), jnp.float32)
        mean = 0.1 * jax.random.normal(k3, (c,), jnp.float32)
        var = jnp.abs(jax.random.normal(k4, (c,), jnp.float32)) + 0.5
        scale = gamma / jnp.sqrt(var + eps)
        return scale, beta - mean * scale

    p = {}
    w1 = conv_w(next(it), in_planes, planes, 3)
    s1, b1 = bn_fold(next(it), planes)
    p["w1_hwio"] = (w1 * s1).astype(jnp.bfloat16)          # BN scale folded in
    p["b1"] = b1
    w2 = conv_w(next(it), planes, planes, 3)
    s2, b2 = bn_fold(next(it), planes)
    p["w2_hwio"] = (w2 * s2).astype(jnp.bfloat16)
    p["b2"] = b2
    if stride != 1 or in_planes != planes:
        wsc = conv_w(next(it), in_planes, planes, 1)
        ssc, bsc = bn_fold(next(it), planes)
        p["wsc_hwio"] = (wsc * ssc).astype(jnp.bfloat16)
        p["bsc"] = bsc
    return p


# ----------------------------------------------------------------------------
# Pure-JAX reference (XLA conv) for the numerical sanity check
# ----------------------------------------------------------------------------
def ref_basic_block(params, x_nchw, *, stride):
    x = jnp.transpose(x_nchw, (0, 2, 3, 1))

    def conv(h, w_hwio, s, pad):
        return lax.conv_general_dilated(
            h.astype(jnp.bfloat16), w_hwio.astype(jnp.bfloat16),
            window_strides=(s, s), padding=((pad, pad), (pad, pad)),
            dimension_numbers=("NHWC", "HWIO", "NHWC"),
            preferred_element_type=jnp.float32)

    y = jax.nn.relu(conv(x, params["w1_hwio"], stride, 1) + params["b1"])
    if "wsc_hwio" in params:
        sc = conv(x, params["wsc_hwio"], stride, 0) + params["bsc"]
    else:
        sc = x.astype(jnp.float32)
    out = jax.nn.relu(conv(y, params["w2_hwio"], 1, 1) + params["b2"] + sc)
    return jnp.transpose(out, (0, 3, 1, 2))


if __name__ == "__main__":
    key = jax.random.PRNGKey(0)
    k1, k2, k3, k4 = jax.random.split(key, 4)

    fwd = jax.jit(basic_block_forward, static_argnames=("stride",))

    # Block with identity shortcut (stride=1, in_planes == planes).
    pa = make_block_params(k1, 64, 64, 1)
    xa = jax.random.normal(k2, (2, 64, 16, 16), jnp.float32)   # NCHW like PyTorch
    ya = jax.block_until_ready(fwd(pa, xa, stride=1))
    assert ya.shape == (2, 64, 16, 16)

    # Block with 1x1-conv shortcut (stride=2, channel change).
    pb = make_block_params(k3, 32, 64, 2)
    xb = jax.random.normal(k4, (2, 32, 16, 16), jnp.float32)
    yb = jax.block_until_ready(fwd(pb, xb, stride=2))
    assert yb.shape == (2, 64, 8, 8)

    # Numerical check against the plain-JAX reference (bf16 compute, f32 accum).
    for y, p, x, s in ((ya, pa, xa, 1), (yb, pb, xb, 2)):
        ref = ref_basic_block(p, x, stride=s)
        err = float(jnp.max(jnp.abs(y.astype(jnp.float32) - ref)))
        scale = float(jnp.max(jnp.abs(ref))) + 1e-6
        assert err <= 0.05 * scale + 1e-2, f"mismatch: abs err {err}, ref max {scale}"

    print("KERNEL_OK")
</pallas_src>

<mosaic_0001>
module attributes {stable_mosaic.version = 11 : i64} {
  func.func @_conv3x3_kernel(%arg0: i32, %arg1: memref<1x18x18x64xbf16, #tpu.memory_space<vmem>>, %arg2: memref<3x192x64xbf16, #tpu.memory_space<vmem>>, %arg3: memref<1x64xf32, #tpu.memory_space<vmem>>, %arg4: memref<1x256x64xbf16, #tpu.memory_space<vmem>>, %arg5: memref<256x192xbf16, #tpu.memory_space<vmem>>) attributes {dimension_semantics = [#tpu.dimension_semantics<parallel>], iteration_bounds = array<i64: 2>, scalar_prefetch = 0 : i64, scratch_operands = 1 : i64, tpu.core_type = #tpu.core_type<tc>, window_params = [{transform_indices = @transform_0, window_bounds = array<i64: 1, 18, 18, 64>}, {pipeline_mode = #tpu.pipeline_mode<synchronous>, transform_indices = @transform_1, window_bounds = array<i64: 3, 192, 64>}, {pipeline_mode = #tpu.pipeline_mode<synchronous>, transform_indices = @transform_2, window_bounds = array<i64: 1, 64>}, {transform_indices = @transform_3, window_bounds = array<i64: 1, 256, 64>}]} {
    %cst = arith.constant 0.000000e+00 : f32
    %0 = vector.broadcast %cst : f32 to vector<256x64xf32>
    %c0 = arith.constant 0 : index
    %c0_0 = arith.constant 0 : index
    %c0_1 = arith.constant 0 : index
    %c0_2 = arith.constant 0 : index
    %1 = vector.load %arg1[%c0, %c0_0, %c0_1, %c0_2] : memref<1x18x18x64xbf16, #tpu.memory_space<vmem>>, vector<1x16x16x64xbf16>
    %2 = vector.shape_cast %1 : vector<1x16x16x64xbf16> to vector<256x64xbf16>
    %c0_3 = arith.constant 0 : index
    %c0_4 = arith.constant 0 : index
    %3 = vector.load %arg5[%c0_3, %c0_4] : memref<256x192xbf16, #tpu.memory_space<vmem>>, vector<256x64xbf16>
    tpu.vector_store %arg5[%c0_3, %c0_4], %2 {strides = array<i32>} : memref<256x192xbf16, #tpu.memory_space<vmem>>, vector<256x64xbf16>,
    %c0_5 = arith.constant 0 : index
    %c0_6 = arith.constant 0 : index
    %c1 = arith.constant 1 : index
    %c0_7 = arith.constant 0 : index
    %4 = vector.load %arg1[%c0_5, %c0_6, %c1, %c0_7] : memref<1x18x18x64xbf16, #tpu.memory_space<vmem>>, vector<1x16x16x64xbf16>
    %5 = vector.shape_cast %4 : vector<1x16x16x64xbf16> to vector<256x64xbf16>
    %c0_8 = arith.constant 0 : index
    %c64 = arith.constant 64 : index
    %6 = vector.load %arg5[%c0_8, %c64] : memref<256x192xbf16, #tpu.memory_space<vmem>>, vector<256x64xbf16>
    tpu.vector_store %arg5[%c0_8, %c64], %5 {strides = array<i32>} : memref<256x192xbf16, #tpu.memory_space<vmem>>, vector<256x64xbf16>,
    %c0_9 = arith.constant 0 : index
    %c0_10 = arith.constant 0 : index
    %c2 = arith.constant 2 : index
    %c0_11 = arith.constant 0 : index
    %7 = vector.load %arg1[%c0_9, %c0_10, %c2, %c0_11] : memref<1x18x18x64xbf16, #tpu.memory_space<vmem>>, vector<1x16x16x64xbf16>
    %8 = vector.shape_cast %7 : vector<1x16x16x64xbf16> to vector<256x64xbf16>
    %c0_12 = arith.constant 0 : index
    %c128 = arith.constant 128 : index
    %9 = vector.load %arg5[%c0_12, %c128] : memref<256x192xbf16, #tpu.memory_space<vmem>>, vector<256x64xbf16>
    tpu.vector_store %arg5[%c0_12, %c128], %8 {strides = array<i32>} : memref<256x192xbf16, #tpu.memory_space<vmem>>, vector<256x64xbf16>,
    %c0_13 = arith.constant 0 : index
    %c0_14 = arith.constant 0 : index
    %10 = vector.load %arg5[%c0_13, %c0_14] : memref<256x192xbf16, #tpu.memory_space<vmem>>, vector<256x192xbf16>
    %c0_15 = arith.constant 0 : index
    %c0_16 = arith.constant 0 : index
    %c0_17 = arith.constant 0 : index
    %11 = vector.load %arg2[%c0_15, %c0_16, %c0_17] : memref<3x192x64xbf16, #tpu.memory_space<vmem>>, vector<1x192x64xbf16>
    %12 = vector.shape_cast %11 : vector<1x192x64xbf16> to vector<192x64xbf16>
    %cst_18 = arith.constant dense<0.000000e+00> : vector<256x64xf32>
    %13 = tpu.matmul %10, %12, %cst_18 {dimension_numbers = #tpu.dot_dimension_numbers<[1], [0], [0], [1], [0, 0, 1, 1], [], []>} : vector<256x192xbf16>, vector<192x64xbf16>, vector<256x64xf32> -> vector<256x64xf32>
    %14 = arith.addf %0, %13 : vector<256x64xf32>
    %c0_19 = arith.constant 0 : index
    %c1_20 = arith.constant 1 : index
    %c0_21 = arith.constant 0 : index
    %c0_22 = arith.constant 0 : index
    %15 = vector.load %arg1[%c0_19, %c1_20, %c0_21, %c0_22] : memref<1x18x18x64xbf16, #tpu.memory_space<vmem>>, vector<1x16x16x64xbf16>
    %16 = vector.shape_cast %15 : vector<1x16x16x64xbf16> to vector<256x64xbf16>
    %c0_23 = arith.constant 0 : index
    %c0_24 = arith.constant 0 : index
    %17 = vector.load %arg5[%c0_23, %c0_24] : memref<256x192xbf16, #tpu.memory_space<vmem>>, vector<256x64xbf16>
    tpu.vector_store %arg5[%c0_23, %c0_24], %16 {strides = array<i32>} : memref<256x192xbf16, #tpu.memory_space<vmem>>, vector<256x64xbf16>,
    %c0_25 = arith.constant 0 : index
    %c1_26 = arith.constant 1 : index
    %c1_27 = arith.constant 1 : index
    %c0_28 = arith.constant 0 : index
    %18 = vector.load %arg1[%c0_25, %c1_26, %c1_27, %c0_28] : memref<1x18x18x64xbf16, #tpu.memory_space<vmem>>, vector<1x16x16x64xbf16>
    %19 = vector.shape_cast %18 : vector<1x16x16x64xbf16> to vector<256x64xbf16>
    %c0_29 = arith.constant 0 : index
    %c64_30 = arith.constant 64 : index
    %20 = vector.load %arg5[%c0_29, %c64_30] : memref<256x192xbf16, #tpu.memory_space<vmem>>, vector<256x64xbf16>
    tpu.vector_store %arg5[%c0_29, %c64_30], %19 {strides = array<i32>} : memref<256x192xbf16, #tpu.memory_space<vmem>>, vector<256x64xbf16>,
    %c0_31 = arith.constant 0 : index
    %c1_32 = arith.constant 1 : index
    %c2_33 = arith.constant 2 : index
    %c0_34 = arith.constant 0 : index
    %21 = vector.load %arg1[%c0_31, %c1_32, %c2_33, %c0_34] : memref<1x18x18x64xbf16, #tpu.memory_space<vmem>>, vector<1x16x16x64xbf16>
    %22 = vector.shape_cast %21 : vector<1x16x16x64xbf16> to vector<256x64xbf16>
    %c0_35 = arith.constant 0 : index
    %c128_36 = arith.constant 128 : index
    %23 = vector.load %arg5[%c0_35, %c128_36] : memref<256x192xbf16, #tpu.memory_space<vmem>>, vector<256x64xbf16>
    tpu.vector_store %arg5[%c0_35, %c128_36], %22 {strides = array<i32>} : memref<256x192xbf16, #tpu.memory_space<vmem>>, vector<256x64xbf16>,
    %c0_37 = arith.constant 0 : index
    %c0_38 = arith.constant 0 : index
    %24 = vector.load %arg5[%c0_37, %c0_38] : memref<256x192xbf16, #tpu.memory_space<vmem>>, vector<256x192xbf16>
    %c1_39 = arith.constant 1 : index
    %c0_40 = arith.constant 0 : index
    %c0_41 = arith.constant 0 : index
    %25 = vector.load %arg2[%c1_39, %c0_40, %c0_41] : memref<3x192x64xbf16, #tpu.memory_space<vmem>>, vector<1x192x64xbf16>
    %26 = vector.shape_cast %25 : vector<1x192x64xbf16> to vector<192x64xbf16>
    %cst_42 = arith.constant dense<0.000000e+00> : vector<256x64xf32>
    %27 = tpu.matmul %24, %26, %cst_42 {dimension_numbers = #tpu.dot_dimension_numbers<[1], [0], [0], [1], [0, 0, 1, 1], [], []>} : vector<256x192xbf16>, vector<192x64xbf16>, vector<256x64xf32> -> vector<256x64xf32>
    %28 = arith.addf %14, %27 : vector<256x64xf32>
    %c0_43 = arith.constant 0 : index
    %c2_44 = arith.constant 2 : index
    %c0_45 = arith.constant 0 : index
    %c0_46 = arith.constant 0 : index
    %29 = vector.load %arg1[%c0_43, %c2_44, %c0_45, %c0_46] : memref<1x18x18x64xbf16, #tpu.memory_space<vmem>>, vector<1x16x16x64xbf16>
    %30 = vector.shape_cast %29 : vector<1x16x16x64xbf16> to vector<256x64xbf16>
    %c0_47 = arith.constant 0 : index
    %c0_48 = arith.constant 0 : index
    %31 = vector.load %arg5[%c0_47, %c0_48] : memref<256x192xbf16, #tpu.memory_space<vmem>>, vector<256x64xbf16>
    tpu.vector_store %arg5[%c0_47, %c0_48], %30 {strides = array<i32>} : memref<256x192xbf16, #tpu.memory_space<vmem>>, vector<256x64xbf16>,
    %c0_49 = arith.constant 0 : index
    %c2_50 = arith.constant 2 : index
    %c1_51 = arith.constant 1 : index
    %c0_52 = arith.constant 0 : index
    %32 = vector.load %arg1[%c0_49, %c2_50, %c1_51, %c0_52] : memref<1x18x18x64xbf16, #tpu.memory_space<vmem>>, vector<1x16x16x64xbf16>
    %33 = vector.shape_cast %32 : vector<1x16x16x64xbf16> to vector<256x64xbf16>
    %c0_53 = arith.constant 0 : index
    %c64_54 = arith.constant 64 : index
    %34 = vector.load %arg5[%c0_53, %c64_54] : memref<256x192xbf16, #tpu.memory_space<vmem>>, vector<256x64xbf16>
    tpu.vector_store %arg5[%c0_53, %c64_54], %33 {strides = array<i32>} : memref<256x192xbf16, #tpu.memory_space<vmem>>, vector<256x64xbf16>,
    %c0_55 = arith.constant 0 : index
    %c2_56 = arith.constant 2 : index
    %c2_57 = arith.constant 2 : index
    %c0_58 = arith.constant 0 : index
    %35 = vector.load %arg1[%c0_55, %c2_56, %c2_57, %c0_58] : memref<1x18x18x64xbf16, #tpu.memory_space<vmem>>, vector<1x16x16x64xbf16>
    %36 = vector.shape_cast %35 : vector<1x16x16x64xbf16> to vector<256x64xbf16>
    %c0_59 = arith.constant 0 : index
    %c128_60 = arith.constant 128 : index
    %37 = vector.load %arg5[%c0_59, %c128_60] : memref<256x192xbf16, #tpu.memory_space<vmem>>, vector<256x64xbf16>
    tpu.vector_store %arg5[%c0_59, %c128_60], %36 {strides = array<i32>} : memref<256x192xbf16, #tpu.memory_space<vmem>>, vector<256x64xbf16>,
    %c0_61 = arith.constant 0 : index
    %c0_62 = arith.constant 0 : index
    %38 = vector.load %arg5[%c0_61, %c0_62] : memref<256x192xbf16, #tpu.memory_space<vmem>>, vector<256x192xbf16>
    %c2_63 = arith.constant 2 : index
    %c0_64 = arith.constant 0 : index
    %c0_65 = arith.constant 0 : index
    %39 = vector.load %arg2[%c2_63, %c0_64, %c0_65] : memref<3x192x64xbf16, #tpu.memory_space<vmem>>, vector<1x192x64xbf16>
    %40 = vector.shape_cast %39 : vector<1x192x64xbf16> to vector<192x64xbf16>
    %cst_66 = arith.constant dense<0.000000e+00> : vector<256x64xf32>
    %41 = tpu.matmul %38, %40, %cst_66 {dimension_numbers = #tpu.dot_dimension_numbers<[1], [0], [0], [1], [0, 0, 1, 1], [], []>} : vector<256x192xbf16>, vector<192x64xbf16>, vector<256x64xf32> -> vector<256x64xf32>
    %42 = arith.addf %28, %41 : vector<256x64xf32>
    %c0_67 = arith.constant 0 : index
    %c0_68 = arith.constant 0 : index
    %43 = vector.load %arg3[%c0_67, %c0_68] : memref<1x64xf32, #tpu.memory_space<vmem>>, vector<1x64xf32>
    %44 = vector.broadcast %43 : vector<1x64xf32> to vector<256x64xf32>
    %45 = arith.addf %42, %44 : vector<256x64xf32>
    %cst_69 = arith.constant 0.000000e+00 : f32
    %46 = vector.broadcast %cst_69 : f32 to vector<256x64xf32>
    %47 = arith.maximumf %45, %46 : vector<256x64xf32>
    %48 = vector.shape_cast %47 : vector<256x64xf32> to vector<1x256x64xf32>
    %49 = arith.truncf %48 : vector<1x256x64xf32> to vector<1x256x64xbf16>
    %c0_70 = arith.constant 0 : index
    %c0_71 = arith.constant 0 : index
    %c0_72 = arith.constant 0 : index
    %50 = vector.load %arg4[%c0_70, %c0_71, %c0_72] : memref<1x256x64xbf16, #tpu.memory_space<vmem>>, vector<1x256x64xbf16>
    tpu.vector_store %arg4[%c0_70, %c0_71, %c0_72], %49 {strides = array<i32>} : memref<1x256x64xbf16, #tpu.memory_space<vmem>>, vector<1x256x64xbf16>,
    return
  }
  func.func @transform_0(%arg0: i32) -> (i32, i32, i32, i32) {
    %c0_i32 = arith.constant 0 : i32
    %c0_i32_0 = arith.constant 0 : i32
    %c0_i32_1 = arith.constant 0 : i32
    %c0_i32_2 = arith.constant 0 : i32
    return %arg0, %c0_i32, %c0_i32_0, %c0_i32_1 : i32, i32, i32, i32
  }
  func.func @transform_1(%arg0: i32) -> (i32, i32, i32) {
    %c0_i32 = arith.constant 0 : i32
    %c0_i32_0 = arith.constant 0 : i32
    %c0_i32_1 = arith.constant 0 : i32
    %c0_i32_2 = arith.constant 0 : i32
    return %c0_i32, %c0_i32_0, %c0_i32_1 : i32, i32, i32
  }
  func.func @transform_2(%arg0: i32) -> (i32, i32) {
    %c0_i32 = arith.constant 0 : i32
    %c0_i32_0 = arith.constant 0 : i32
    %c0_i32_1 = arith.constant 0 : i32
    return %c0_i32, %c0_i32_0 : i32, i32
  }
  func.func @transform_3(%arg0: i32) -> (i32, i32, i32) {
    %c0_i32 = arith.constant 0 : i32
    %c0_i32_0 = arith.constant 0 : i32
    %c0_i32_1 = arith.constant 0 : i32
    return %arg0, %c0_i32, %c0_i32_0 : i32, i32, i32
  }
}

module attributes {stable_mosaic.version = 11 : i64} {
  func.func @_conv3x3_kernel(%arg0: i32, %arg1: memref<1x18x18x64xbf16, #tpu.memory_space<vmem>>, %arg2: memref<3x192x64xbf16, #tpu.memory_space<vmem>>, %arg3: memref<1x64xf32, #tpu.memory_space<vmem>>, %arg4: memref<1x256x64xf32, #tpu.memory_space<vmem>>, %arg5: memref<1x256x64xbf16, #tpu.memory_space<vmem>>, %arg6: memref<256x192xbf16, #tpu.memory_space<vmem>>) attributes {dimension_semantics = [#tpu.dimension_semantics<parallel>], iteration_bounds = array<i64: 2>, scalar_prefetch = 0 : i64, scratch_operands = 1 : i64, tpu.core_type = #tpu.core_type<tc>, window_params = [{transform_indices = @transform_0, window_bounds = array<i64: 1, 18, 18, 64>}, {pipeline_mode = #tpu.pipeline_mode<synchronous>, transform_indices = @transform_1, window_bounds = array<i64: 3, 192, 64>}, {pipeline_mode = #tpu.pipeline_mode<synchronous>, transform_indices = @transform_2, window_bounds = array<i64: 1, 64>}, {transform_indices = @transform_3, window_bounds = array<i64: 1, 256, 64>}, {transform_indices = @transform_4, window_bounds = array<i64: 1, 256, 64>}]} {
    %cst = arith.constant 0.000000e+00 : f32
    %0 = vector.broadcast %cst : f32 to vector<256x64xf32>
    %c0 = arith.constant 0 : index
    %c0_0 = arith.constant 0 : index
    %c0_1 = arith.constant 0 : index
    %c0_2 = arith.constant 0 : index
    %1 = vector.load %arg1[%c0, %c0_0, %c0_1, %c0_2] : memref<1x18x18x64xbf16, #tpu.memory_space<vmem>>, vector<1x16x16x64xbf16>
    %2 = vector.shape_cast %1 : vector<1x16x16x64xbf16> to vector<256x64xbf16>
    %c0_3 = arith.constant 0 : index
    %c0_4 = arith.constant 0 : index
    %3 = vector.load %arg6[%c0_3, %c0_4] : memref<256x192xbf16, #tpu.memory_space<vmem>>, vector<256x64xbf16>
    tpu.vector_store %arg6[%c0_3, %c0_4], %2 {strides = array<i32>} : memref<256x192xbf16, #tpu.memory_space<vmem>>, vector<256x64xbf16>,
    %c0_5 = arith.constant 0 : index
    %c0_6 = arith.constant 0 : index
    %c1 = arith.constant 1 : index
    %c0_7 = arith.constant 0 : index
    %4 = vector.load %arg1[%c0_5, %c0_6, %c1, %c0_7] : memref<1x18x18x64xbf16, #tpu.memory_space<vmem>>, vector<1x16x16x64xbf16>
    %5 = vector.shape_cast %4 : vector<1x16x16x64xbf16> to vector<256x64xbf16>
    %c0_8 = arith.constant 0 : index
    %c64 = arith.constant 64 : index
    %6 = vector.load %arg6[%c0_8, %c64] : memref<256x192xbf16, #tpu.memory_space<vmem>>, vector<256x64xbf16>
    tpu.vector_store %arg6[%c0_8, %c64], %5 {strides = array<i32>} : memref<256x192xbf16, #tpu.memory_space<vmem>>, vector<256x64xbf16>,
    %c0_9 = arith.constant 0 : index
    %c0_10 = arith.constant 0 : index
    %c2 = arith.constant 2 : index
    %c0_11 = arith.constant 0 : index
    %7 = vector.load %arg1[%c0_9, %c0_10, %c2, %c0_11] : memref<1x18x18x64xbf16, #tpu.memory_space<vmem>>, vector<1x16x16x64xbf16>
    %8 = vector.shape_cast %7 : vector<1x16x16x64xbf16> to vector<256x64xbf16>
    %c0_12 = arith.constant 0 : index
    %c128 = arith.constant 128 : index
    %9 = vector.load %arg6[%c0_12, %c128] : memref<256x192xbf16, #tpu.memory_space<vmem>>, vector<256x64xbf16>
    tpu.vector_store %arg6[%c0_12, %c128], %8 {strides = array<i32>} : memref<256x192xbf16, #tpu.memory_space<vmem>>, vector<256x64xbf16>,
    %c0_13 = arith.constant 0 : index
    %c0_14 = arith.constant 0 : index
    %10 = vector.load %arg6[%c0_13, %c0_14] : memref<256x192xbf16, #tpu.memory_space<vmem>>, vector<256x192xbf16>
    %c0_15 = arith.constant 0 : index
    %c0_16 = arith.constant 0 : index
    %c0_17 = arith.constant 0 : index
    %11 = vector.load %arg2[%c0_15, %c0_16, %c0_17] : memref<3x192x64xbf16, #tpu.memory_space<vmem>>, vector<1x192x64xbf16>
    %12 = vector.shape_cast %11 : vector<1x192x64xbf16> to vector<192x64xbf16>
    %cst_18 = arith.constant dense<0.000000e+00> : vector<256x64xf32>
    %13 = tpu.matmul %10, %12, %cst_18 {dimension_numbers = #tpu.dot_dimension_numbers<[1], [0], [0], [1], [0, 0, 1, 1], [], []>} : vector<256x192xbf16>, vector<192x64xbf16>, vector<256x64xf32> -> vector<256x64xf32>
    %14 = arith.addf %0, %13 : vector<256x64xf32>
    %c0_19 = arith.constant 0 : index
    %c1_20 = arith.constant 1 : index
    %c0_21 = arith.constant 0 : index
    %c0_22 = arith.constant 0 : index
    %15 = vector.load %arg1[%c0_19, %c1_20, %c0_21, %c0_22] : memref<1x18x18x64xbf16, #tpu.memory_space<vmem>>, vector<1x16x16x64xbf16>
    %16 = vector.shape_cast %15 : vector<1x16x16x64xbf16> to vector<256x64xbf16>
    %c0_23 = arith.constant 0 : index
    %c0_24 = arith.constant 0 : index
    %17 = vector.load %arg6[%c0_23, %c0_24] : memref<256x192xbf16, #tpu.memory_space<vmem>>, vector<256x64xbf16>
    tpu.vector_store %arg6[%c0_23, %c0_24], %16 {strides = array<i32>} : memref<256x192xbf16, #tpu.memory_space<vmem>>, vector<256x64xbf16>,
    %c0_25 = arith.constant 0 : index
    %c1_26 = arith.constant 1 : index
    %c1_27 = arith.constant 1 : index
    %c0_28 = arith.constant 0 : index
    %18 = vector.load %arg1[%c0_25, %c1_26, %c1_27, %c0_28] : memref<1x18x18x64xbf16, #tpu.memory_space<vmem>>, vector<1x16x16x64xbf16>
    %19 = vector.shape_cast %18 : vector<1x16x16x64xbf16> to vector<256x64xbf16>
    %c0_29 = arith.constant 0 : index
    %c64_30 = arith.constant 64 : index
    %20 = vector.load %arg6[%c0_29, %c64_30] : memref<256x192xbf16, #tpu.memory_space<vmem>>, vector<256x64xbf16>
    tpu.vector_store %arg6[%c0_29, %c64_30], %19 {strides = array<i32>} : memref<256x192xbf16, #tpu.memory_space<vmem>>, vector<256x64xbf16>,
    %c0_31 = arith.constant 0 : index
    %c1_32 = arith.constant 1 : index
    %c2_33 = arith.constant 2 : index
    %c0_34 = arith.constant 0 : index
    %21 = vector.load %arg1[%c0_31, %c1_32, %c2_33, %c0_34] : memref<1x18x18x64xbf16, #tpu.memory_space<vmem>>, vector<1x16x16x64xbf16>
    %22 = vector.shape_cast %21 : vector<1x16x16x64xbf16> to vector<256x64xbf16>
    %c0_35 = arith.constant 0 : index
    %c128_36 = arith.constant 128 : index
    %23 = vector.load %arg6[%c0_35, %c128_36] : memref<256x192xbf16, #tpu.memory_space<vmem>>, vector<256x64xbf16>
    tpu.vector_store %arg6[%c0_35, %c128_36], %22 {strides = array<i32>} : memref<256x192xbf16, #tpu.memory_space<vmem>>, vector<256x64xbf16>,
    %c0_37 = arith.constant 0 : index
    %c0_38 = arith.constant 0 : index
    %24 = vector.load %arg6[%c0_37, %c0_38] : memref<256x192xbf16, #tpu.memory_space<vmem>>, vector<256x192xbf16>
    %c1_39 = arith.constant 1 : index
    %c0_40 = arith.constant 0 : index
    %c0_41 = arith.constant 0 : index
    %25 = vector.load %arg2[%c1_39, %c0_40, %c0_41] : memref<3x192x64xbf16, #tpu.memory_space<vmem>>, vector<1x192x64xbf16>
    %26 = vector.shape_cast %25 : vector<1x192x64xbf16> to vector<192x64xbf16>
    %cst_42 = arith.constant dense<0.000000e+00> : vector<256x64xf32>
    %27 = tpu.matmul %24, %26, %cst_42 {dimension_numbers = #tpu.dot_dimension_numbers<[1], [0], [0], [1], [0, 0, 1, 1], [], []>} : vector<256x192xbf16>, vector<192x64xbf16>, vector<256x64xf32> -> vector<256x64xf32>
    %28 = arith.addf %14, %27 : vector<256x64xf32>
    %c0_43 = arith.constant 0 : index
    %c2_44 = arith.constant 2 : index
    %c0_45 = arith.constant 0 : index
    %c0_46 = arith.constant 0 : index
    %29 = vector.load %arg1[%c0_43, %c2_44, %c0_45, %c0_46] : memref<1x18x18x64xbf16, #tpu.memory_space<vmem>>, vector<1x16x16x64xbf16>
    %30 = vector.shape_cast %29 : vector<1x16x16x64xbf16> to vector<256x64xbf16>
    %c0_47 = arith.constant 0 : index
    %c0_48 = arith.constant 0 : index
    %31 = vector.load %arg6[%c0_47, %c0_48] : memref<256x192xbf16, #tpu.memory_space<vmem>>, vector<256x64xbf16>
    tpu.vector_store %arg6[%c0_47, %c0_48], %30 {strides = array<i32>} : memref<256x192xbf16, #tpu.memory_space<vmem>>, vector<256x64xbf16>,
    %c0_49 = arith.constant 0 : index
    %c2_50 = arith.constant 2 : index
    %c1_51 = arith.constant 1 : index
    %c0_52 = arith.constant 0 : index
    %32 = vector.load %arg1[%c0_49, %c2_50, %c1_51, %c0_52] : memref<1x18x18x64xbf16, #tpu.memory_space<vmem>>, vector<1x16x16x64xbf16>
    %33 = vector.shape_cast %32 : vector<1x16x16x64xbf16> to vector<256x64xbf16>
    %c0_53 = arith.constant 0 : index
    %c64_54 = arith.constant 64 : index
    %34 = vector.load %arg6[%c0_53, %c64_54] : memref<256x192xbf16, #tpu.memory_space<vmem>>, vector<256x64xbf16>
    tpu.vector_store %arg6[%c0_53, %c64_54], %33 {strides = array<i32>} : memref<256x192xbf16, #tpu.memory_space<vmem>>, vector<256x64xbf16>,
    %c0_55 = arith.constant 0 : index
    %c2_56 = arith.constant 2 : index
    %c2_57 = arith.constant 2 : index
    %c0_58 = arith.constant 0 : index
    %35 = vector.load %arg1[%c0_55, %c2_56, %c2_57, %c0_58] : memref<1x18x18x64xbf16, #tpu.memory_space<vmem>>, vector<1x16x16x64xbf16>
    %36 = vector.shape_cast %35 : vector<1x16x16x64xbf16> to vector<256x64xbf16>
    %c0_59 = arith.constant 0 : index
    %c128_60 = arith.constant 128 : index
    %37 = vector.load %arg6[%c0_59, %c128_60] : memref<256x192xbf16, #tpu.memory_space<vmem>>, vector<256x64xbf16>
    tpu.vector_store %arg6[%c0_59, %c128_60], %36 {strides = array<i32>} : memref<256x192xbf16, #tpu.memory_space<vmem>>, vector<256x64xbf16>,
    %c0_61 = arith.constant 0 : index
    %c0_62 = arith.constant 0 : index
    %38 = vector.load %arg6[%c0_61, %c0_62] : memref<256x192xbf16, #tpu.memory_space<vmem>>, vector<256x192xbf16>
    %c2_63 = arith.constant 2 : index
    %c0_64 = arith.constant 0 : index
    %c0_65 = arith.constant 0 : index
    %39 = vector.load %arg2[%c2_63, %c0_64, %c0_65] : memref<3x192x64xbf16, #tpu.memory_space<vmem>>, vector<1x192x64xbf16>
    %40 = vector.shape_cast %39 : vector<1x192x64xbf16> to vector<192x64xbf16>
    %cst_66 = arith.constant dense<0.000000e+00> : vector<256x64xf32>
    %41 = tpu.matmul %38, %40, %cst_66 {dimension_numbers = #tpu.dot_dimension_numbers<[1], [0], [0], [1], [0, 0, 1, 1], [], []>} : vector<256x192xbf16>, vector<192x64xbf16>, vector<256x64xf32> -> vector<256x64xf32>
    %42 = arith.addf %28, %41 : vector<256x64xf32>
    %c0_67 = arith.constant 0 : index
    %c0_68 = arith.constant 0 : index
    %43 = vector.load %arg3[%c0_67, %c0_68] : memref<1x64xf32, #tpu.memory_space<vmem>>, vector<1x64xf32>
    %44 = vector.broadcast %43 : vector<1x64xf32> to vector<256x64xf32>
    %45 = arith.addf %42, %44 : vector<256x64xf32>
    %c0_69 = arith.constant 0 : index
    %c0_70 = arith.constant 0 : index
    %c0_71 = arith.constant 0 : index
    %46 = vector.load %arg4[%c0_69, %c0_70, %c0_71] : memref<1x256x64xf32, #tpu.memory_space<vmem>>, vector<1x256x64xf32>
    %47 = vector.shape_cast %46 : vector<1x256x64xf32> to vector<256x64xf32>
    %48 = arith.addf %45, %47 : vector<256x64xf32>
    %cst_72 = arith.constant 0.000000e+00 : f32
    %49 = vector.broadcast %cst_72 : f32 to vector<256x64xf32>
    %50 = arith.maximumf %48, %49 : vector<256x64xf32>
    %51 = vector.shape_cast %50 : vector<256x64xf32> to vector<1x256x64xf32>
    %52 = arith.truncf %51 : vector<1x256x64xf32> to vector<1x256x64xbf16>
    %c0_73 = arith.constant 0 : index
    %c0_74 = arith.constant 0 : index
    %c0_75 = arith.constant 0 : index
    %53 = vector.load %arg5[%c0_73, %c0_74, %c0_75] : memref<1x256x64xbf16, #tpu.memory_space<vmem>>, vector<1x256x64xbf16>
    tpu.vector_store %arg5[%c0_73, %c0_74, %c0_75], %52 {strides = array<i32>} : memref<1x256x64xbf16, #tpu.memory_space<vmem>>, vector<1x256x64xbf16>,
    return
  }
  func.func @transform_0(%arg0: i32) -> (i32, i32, i32, i32) {
    %c0_i32 = arith.constant 0 : i32
    %c0_i32_0 = arith.constant 0 : i32
    %c0_i32_1 = arith.constant 0 : i32
    %c0_i32_2 = arith.constant 0 : i32
    return %arg0, %c0_i32, %c0_i32_0, %c0_i32_1 : i32, i32, i32, i32
  }
  func.func @transform_1(%arg0: i32) -> (i32, i32, i32) {
    %c0_i32 = arith.constant 0 : i32
    %c0_i32_0 = arith.constant 0 : i32
    %c0_i32_1 = arith.constant 0 : i32
    %c0_i32_2 = arith.constant 0 : i32
    return %c0_i32, %c0_i32_0, %c0_i32_1 : i32, i32, i32
  }
  func.func @transform_2(%arg0: i32) -> (i32, i32) {
    %c0_i32 = arith.constant 0 : i32
    %c0_i32_0 = arith.constant 0 : i32
    %c0_i32_1 = arith.constant 0 : i32
    return %c0_i32, %c0_i32_0 : i32, i32
  }
  func.func @transform_3(%arg0: i32) -> (i32, i32, i32) {
    %c0_i32 = arith.constant 0 : i32
    %c0_i32_0 = arith.constant 0 : i32
    %c0_i32_1 = arith.constant 0 : i32
    return %arg0, %c0_i32, %c0_i32_0 : i32, i32, i32
  }
  func.func @transform_4(%arg0: i32) -> (i32, i32, i32) {
    %c0_i32 = arith.constant 0 : i32
    %c0_i32_0 = arith.constant 0 : i32
    %c0_i32_1 = arith.constant 0 : i32
    return %arg0, %c0_i32, %c0_i32_0 : i32, i32, i32
  }
}

</mosaic_0001>

<bundles_post_ra>
// kernel: basic_block_forward.2
= control target key start
LH: loop header
LB: loop body
LE: loop exit
PB: predicated region body
PF: predicated region fallthrough
CT: control target
= control target key end

     0   :  { %s5247_s12 = smov 0   ;;  %s7161_s0 = inlined_call_operand.vmem [shape: bf16[2,18,18,64], index: 0, kind: input, shape index: {}]   ;;  %s7162_s1 = inlined_call_operand.vmem [shape: bf16[3,192,64], index: 1, kind: input, shape index: {}]   ;;  %s7163_s2 = inlined_call_operand.vmem [shape: f32[1,64], index: 2, kind: input, shape index: {}]   ;;  %s7164_s3 = inlined_call_operand.vmem [shape: bf16[2,256,64], index: 3, kind: output, shape index: {}]  }
   0x1 LB: > { %s4442_s13 = sadd.s32 4294967295, %s5223_s12   ;;  %p4446_p0 = scmp.ge.s32.totalorder %s5223_s12, 1  ;;  %s5223_s12 = sphi %s5247_s12, %s13_s12  }
   0x2   : > { %p137_p1 = scmp.lt.s32.totalorder %s5223_s12, 3 }
   0x4   : > { %p138_p2 = pnand %p4446_p0, %p137_p1 }
   0x6   : > { %141 = sbr.rel (%p138_p2) target bundleno = 695 (0x2b7), region = 32 }
   0xd   : > { %p161_p3 = scmp.lt.s32.totalorder %s4442_s13, 1  ;;  %vm365_vm0 = vsmask.f32 3328  ;;  %vm366_vm1 = vsmask.f32 7440  ;;  %s5225_s18 = smov 64  }
   0xe   : > { %vm5273_vm2 = vmor %vm365_vm0, %vm366_vm1  ;;  %vm300_vm3 = vcmask 523264   ;;  %vm848_vm4 = vcmask 1048064   ;;  %vm961_vm5 = vcmask 1042432   ;;  %vm962_vm6 = vcmask 1046532  }
   0xf   : > { %s7174_s13 = smov (!%p161_p3, %s4442_s13), 1  ;;  %vm5739_vm7 = vmor %vm961_vm5, %vm962_vm6  ;;  %vm4354_vm8 = vcmask 519168  }
  0x10   : > { %s5122_s14 = smul.u32 216, %s7174_s13  ;;  %s5065_s22 = sshll.u32 %s7174_s13, 7 }
  0x11   : > { %s7034_s25 = scalar_lea.vmem %s7164_s3, %s5065_s22 }
  0x12   : > { %s5261_s17 = scalar_lea.vmem %s7161_s0, %s5122_s14 }
  0x13   : > { %v341_v0 = vld [vmem:[%s5261_s17 + $0x60] sm:$0xf]  ;;  %v342_v1 = vld [vmem:[%s5261_s17 + $0x64] sm:$0xf]  ;;  %v343_v2 = vld [vmem:[%s5261_s17 + $0x68] sm:$0x1] }
  0x14   : > { %v561_v3 = vshrl.u32 %v341_v0, 16  ;;  %v564_v4 = vshll.u32 %v341_v0, 16  ;;  %v570_v5 = vshll.u32 %v342_v1, 16  ;;  %v574_v6 = vshrl.u32 %v342_v1, 16  ;;  %v317_v7 = vld [vmem:[%s5261_s17] sm:$0xf] }
  0x15   : > { %v580_v8 = vshll.u32 %v343_v2, 16  ;;  %v318_v9 = vld [vmem:[%s5261_s17 + $0x4] sm:$0xf]  ;;  %v319_v10 = vld [vmem:[%s5261_s17 + $0x8] sm:$0x1]  ;;  %v369_v11 = vshrl.u32 %v317_v7, 16 }
  0x16   : > { %v563_v12 = vrot.slane %v561_v3, 4  ;;  %v566_v13 = vrot.slane %v564_v4, 5  ;;  %v572_v14 = vrot.slane %v570_v5, 5  ;;  %v576_v15 = vrot.slane %v574_v6, 4  ;;  %v344_v16 = vld [vmem:[%s5261_s17 + $0x6c] sm:$0xf] }
  0x17   : > { %v582_v17 = vrot.slane %v580_v8, 5  ;;  %v371_v18 = vrot.slane %v369_v11, 4  ;;  %v372_v19 = vshll.u32 %v317_v7, 16  ;;  %v378_v20 = vshll.u32 %v318_v9, 16  ;;  %v345_v25 = vld [vmem:[%s5261_s17 + $0x70] sm:$0xf] }
  0x18   : > { %v567_v21 = vor.u32 %v566_v13, %v563_v12  ;;  %v577_v22 = vor.u32 %v576_v15, %v572_v14  ;;  %v382_v23 = vshrl.u32 %v318_v9, 16  ;;  %v388_v24 = vshll.u32 %v319_v10, 16  ;;  %v346_v35 = vld [vmem:[%s5261_s17 + $0x74] sm:$0x1]  ;;  %v4586_v40 = vld [vmem:[%s5261_s17 + $0x6c] sm:$0xf] }
  0x19   : > { %v374_v27 = vrot.slane %v372_v19, 5  ;;  %v380_v28 = vrot.slane %v378_v20, 5  ;;  %v585_v29 = vshrl.u32 %v344_v16, 16  ;;  %v588_v30 = vshll.u32 %v344_v16, 16  ;;  %v4587_v45 = vld [vmem:[%s5261_s17 + $0x70] sm:$0xf] }
  0x1a   : > { %v568_v31 = vrot.slane %v567_v21, 4  ;;  %v578_v32 = vrot.slane %v577_v22, 4  ;;  %v384_v33 = vrot.slane %v382_v23, 4  ;;  %v390_v34 = vrot.slane %v388_v24, 5  ;;  %v4588_v53 = vld [vmem:[%s5261_s17 + $0x74] sm:$0x1] }
  0x1b   : > { %v375_v36 = vor.u32 %v374_v27, %v371_v18  ;;  %v587_v37 = vrot.slane %v585_v29, 4  ;;  %v590_v38 = vrot.slane %v588_v30, 5  ;;  %v594_v39 = vshll.u32 %v345_v25, 16  ;;  %v320_v59 = vld [vmem:[%s5261_s17 + $0xc] sm:$0xf] }
  0x1c   : > { %v573_v41 = vsel %vm5273_vm2, %v568_v31, %v572_v14  ;;  %v583_v42 = vsel %vm5273_vm2, %v578_v32, %v582_v17  ;;  %v385_v43 = vor.u32 %v384_v33, %v380_v28  ;;  %v598_v44 = vshrl.u32 %v345_v25, 16  ;;  %v321_v0 = vld [vmem:[%s5261_s17 + $0x10] sm:$0xf]  ;;  %v322_v8 = vld [vmem:[%s5261_s17 + $0x14] sm:$0x1] }
  0x1d   : > { %v4474_v46 = vcombine.low %v573_v41, %v583_v42  ;;  %v376_v47 = vrot.slane %v375_v36, 4  ;;  %v591_v48 = vor.u32 %v590_v38, %v587_v37  ;;  %v596_v49 = vrot.slane %v594_v39, 5  ;;  %v4562_v14 = vld [vmem:[%s5261_s17 + $0xc] sm:$0xf]  ;;  %v4563_v19 = vld [vmem:[%s5261_s17 + $0x10] sm:$0xf] }
  0x1e   : > { %v386_v50 = vrot.slane %v385_v43, 4  ;;  %v600_v51 = vrot.slane %v598_v44, 4  ;;  %v604_v52 = vshll.u32 %v346_v35, 16  ;;  %v1598_v54 = vshrl.u32 %v4586_v40, 16  ;;  %v4564_v31 = vld [vmem:[%s5261_s17 + $0x14] sm:$0x1] }
  0x1f   : > { %816 = vrot.lane.b32.xlu0 %v4474_v46, %s5225_s18  ;;  %v381_v55 = vsel %vm5273_vm2, %v376_v47, %v380_v28  ;;  %v592_v56 = vrot.slane %v591_v48, 4  ;;  %v1601_v57 = vshll.u32 %v4586_v40, 16  ;;  %v1607_v58 = vshll.u32 %v4587_v45, 16  ;;  %v348_v46 = vld [vmem:[%s5261_s17 + $0x7c] sm:$0xf] }
  0x20   : > { %v391_v60 = vsel %vm5273_vm2, %v386_v50, %v390_v34  ;;  %v601_v61 = vor.u32 %v600_v51, %v596_v49  ;;  %v606_v62 = vrot.slane %v604_v52, 5  ;;  %v1600_v63 = vrot.slane %v1598_v54, 4  ;;  %v347_v34 = vld [vmem:[%s5261_s17 + $0x78] sm:$0xf]  ;;  %v349_v52 = vld [vmem:[%s5261_s17 + $0x80] sm:$0x1] }
  0x21   : > { %v4466_v1 = vcombine.low %v381_v55, %v391_v60  ;;  %v597_v2 = vsel %vm5273_vm2, %v592_v56, %v596_v49  ;;  %v1603_v3 = vrot.slane %v1601_v57, 5  ;;  %v1609_v4 = vrot.slane %v1607_v58, 5 }
  0x22   : > { %v602_v5 = vrot.slane %v601_v61, 4  ;;  %v1611_v6 = vshrl.u32 %v4587_v45, 16  ;;  %v1617_v7 = vshll.u32 %v4588_v53, 16  ;;  %v393_v9 = vshrl.u32 %v320_v59, 16  ;;  %v4589_v53 = vld [vmem:[%s5261_s17 + $0x78] sm:$0xf] }
  0x23   : > { %800 = vrot.lane.b32.xlu0 %v4466_v1, %s5225_s18  ;;  %v1604_v10 = vor.u32 %v1603_v3, %v1600_v63  ;;  %v396_v11 = vshll.u32 %v320_v59, 16  ;;  %v402_v12 = vshll.u32 %v321_v0, 16  ;;  %v406_v13 = vshrl.u32 %v321_v0, 16  ;;  %v4590_v1 = vld [vmem:[%s5261_s17 + $0x7c] sm:$0xf] }
  0x24   : > { %v607_v15 = vsel %vm5273_vm2, %v602_v5, %v606_v62  ;;  %v1613_v16 = vrot.slane %v1611_v6, 4  ;;  %v1619_v17 = vrot.slane %v1617_v7, 5  ;;  %v395_v18 = vrot.slane %v393_v9, 4  ;;  %v4591_v6 = vld [vmem:[%s5261_s17 + $0x80] sm:$0x1] }
  0x25   : > { %v4475_v20 = vcombine.low %v597_v2, %v607_v15  ;;  %v1605_v21 = vrot.slane %v1604_v10, 4  ;;  %v398_v22 = vrot.slane %v396_v11, 5  ;;  %v404_v23 = vrot.slane %v402_v12, 5  ;;  %v323_v12 = vld [vmem:[%s5261_s17 + $0x18] sm:$0xf] }
  0x26   : > { %v1614_v24 = vor.u32 %v1613_v16, %v1609_v4  ;;  %v408_v25 = vrot.slane %v406_v13, 4  ;;  %v412_v27 = vshll.u32 %v322_v8, 16  ;;  %v1406_v28 = vshrl.u32 %v4562_v14, 16 }
  0x27   : > { %818 = vrot.lane.b32.xlu1 %v4475_v20, %s5225_s18  ;;  %v1610_v29 = vsel %vm5273_vm2, %v1605_v21, %v1609_v4  ;;  %v399_v30 = vor.u32 %v398_v22, %v395_v18  ;;  %v1409_v32 = vshll.u32 %v4562_v14, 16  ;;  %v1415_v33 = vshll.u32 %v4563_v19, 16  ;;  %v324_v21 = vld [vmem:[%s5261_s17 + $0x1c] sm:$0xf] }
  0x28   : > { %v1615_v35 = vrot.slane %v1614_v24, 4  ;;  %v409_v36 = vor.u32 %v408_v25, %v404_v23  ;;  %v414_v37 = vrot.slane %v412_v27, 5  ;;  %v1408_v38 = vrot.slane %v1406_v28, 4  ;;  %v325_v25 = vld [vmem:[%s5261_s17 + $0x20] sm:$0x1] }
  0x29   : > { %v400_v39 = vrot.slane %v399_v30, 4  ;;  %v1411_v40 = vrot.slane %v1409_v32, 5  ;;  %v1417_v41 = vrot.slane %v1415_v33, 5  ;;  %v1419_v42 = vshrl.u32 %v4563_v19, 16 }
  0x2a   : > { %v1620_v43 = vsel %vm5273_vm2, %v1615_v35, %v1619_v17  ;;  %v410_v44 = vrot.slane %v409_v36, 4  ;;  %v1425_v45 = vshll.u32 %v4564_v31, 16  ;;  %v609_v47 = vshrl.u32 %v347_v34, 16  ;;  %v4565_v36 = vld [vmem:[%s5261_s17 + $0x18] sm:$0xf] }
  0x2b   : > { %v4618_v48 = vcombine.low %v1610_v29, %v1620_v43  ;;  %v405_v49 = vsel %vm5273_vm2, %v400_v39, %v404_v23  ;;  %v1412_v50 = vor.u32 %v1411_v40, %v1408_v38  ;;  %v1421_v51 = vrot.slane %v1419_v42, 4 }
  0x2c   : > { %v415_v54 = vsel %vm5273_vm2, %v410_v44, %v414_v37  ;;  %v1427_v55 = vrot.slane %v1425_v45, 5  ;;  %v611_v56 = vrot.slane %v609_v47, 4  ;;  %v612_v57 = vshll.u32 %v347_v34, 16 }
  0x2d   : > { %1853 = vrot.lane.b32.xlu1 %v4618_v48, %s5225_s18  ;;  %v4467_v58 = vcombine.low %v405_v49, %v415_v54  ;;  %v1413_v59 = vrot.slane %v1412_v50, 4  ;;  %v1422_v60 = vor.u32 %v1421_v51, %v1417_v41  ;;  %v618_v61 = vshll.u32 %v348_v46, 16  ;;  %v4567_v49 = vld [vmem:[%s5261_s17 + $0x20] sm:$0x1] }
  0x2e   : > { %v614_v62 = vrot.slane %v612_v57, 5  ;;  %v622_v63 = vshrl.u32 %v348_v46, 16  ;;  %v628_v0 = vshll.u32 %v349_v52, 16  ;;  %v1622_v2 = vshrl.u32 %v4589_v53, 16 }
  0x2f   : > { %802 = vrot.lane.b32.xlu0 %v4467_v58, %s5225_s18  ;;  %v1418_v3 = vsel %vm5273_vm2, %v1413_v59, %v1417_v41  ;;  %v1423_v4 = vrot.slane %v1422_v60, 4  ;;  %v620_v5 = vrot.slane %v618_v61, 5  ;;  %v1625_v7 = vshll.u32 %v4589_v53, 16  ;;  %v4566_v41 = vld [vmem:[%s5261_s17 + $0x1c] sm:$0xf] }
  0x30   : > { %v615_v8 = vor.u32 %v614_v62, %v611_v56  ;;  %v624_v9 = vrot.slane %v622_v63, 4  ;;  %v630_v10 = vrot.slane %v628_v0, 5  ;;  %v1624_v11 = vrot.slane %v1622_v2, 4  ;;  %v351_v60 = vld [vmem:[%s5261_s17 + $0x88] sm:$0xf] }
  0x31   : > { %v1428_v13 = vsel %vm5273_vm2, %v1423_v4, %v1427_v55  ;;  %v1627_v14 = vrot.slane %v1625_v7, 5  ;;  %v1631_v15 = vshll.u32 %v4590_v1, 16  ;;  %v1635_v16 = vshrl.u32 %v4590_v1, 16  ;;  %v350_v55 = vld [vmem:[%s5261_s17 + $0x84] sm:$0xf] }
  0x32   : > { %v4610_v17 = vcombine.low %v1418_v3, %v1428_v13  ;;  %v616_v18 = vrot.slane %v615_v8, 4  ;;  %v625_v19 = vor.u32 %v624_v9, %v620_v5  ;;  %v1641_v20 = vshll.u32 %v4591_v6, 16  ;;  %v352_v8 = vld [vmem:[%s5261_s17 + $0x8c] sm:$0x1] }
  0x33   : > { %v1628_v22 = vor.u32 %v1627_v14, %v1624_v11  ;;  %v1633_v23 = vrot.slane %v1631_v15, 5  ;;  %v1637_v24 = vrot.slane %v1635_v16, 4  ;;  %v417_v27 = vshrl.u32 %v323_v12, 16  ;;  %v4593_v15 = vld [vmem:[%s5261_s17 + $0x88] sm:$0xf] }
  0x34   : > { %1837 = vrot.lane.b32.xlu1 %v4610_v17, %s5225_s18  ;;  %v621_v28 = vsel %vm5273_vm2, %v616_v18, %v620_v5  ;;  %v626_v29 = vrot.slane %v625_v19, 4  ;;  %v1643_v30 = vrot.slane %v1641_v20, 5  ;;  %v420_v31 = vshll.u32 %v323_v12, 16 }
  0x35   : > { %v1629_v32 = vrot.slane %v1628_v22, 4  ;;  %v1638_v33 = vor.u32 %v1637_v24, %v1633_v23  ;;  %v419_v34 = vrot.slane %v417_v27, 4  ;;  %v426_v35 = vshll.u32 %v324_v21, 16  ;;  %v4594_v27 = vld [vmem:[%s5261_s17 + $0x8c] sm:$0x1] }
  0x36   : > { %v631_v37 = vsel %vm5273_vm2, %v626_v29, %v630_v10  ;;  %v422_v38 = vrot.slane %v420_v31, 5  ;;  %v430_v39 = vshrl.u32 %v324_v21, 16  ;;  %v436_v40 = vshll.u32 %v325_v25, 16  ;;  %v4592_v10 = vld [vmem:[%s5261_s17 + $0x84] sm:$0xf] }
  0x37   : > { %v4476_v42 = vcombine.low %v621_v28, %v631_v37  ;;  %v1634_v43 = vsel %vm5273_vm2, %v1629_v32, %v1633_v23  ;;  %v1639_v44 = vrot.slane %v1638_v33, 4  ;;  %v428_v45 = vrot.slane %v426_v35, 5  ;;  %v327_v35 = vld [vmem:[%s5261_s17 + $0x28] sm:$0xf] }
  0x38   : > { %v423_v46 = vor.u32 %v422_v38, %v419_v34  ;;  %v432_v47 = vrot.slane %v430_v39, 4  ;;  %v438_v48 = vrot.slane %v436_v40, 5  ;;  %v1430_v50 = vshrl.u32 %v4565_v36, 16 }
  0x39   : > { %820 = vrot.lane.b32.xlu0 %v4476_v42, %s5225_s18  ;;  %v1644_v51 = vsel %vm5273_vm2, %v1639_v44, %v1643_v30  ;;  %v1433_v52 = vshll.u32 %v4565_v36, 16  ;;  %v1439_v53 = vshll.u32 %v4566_v41, 16  ;;  %v1443_v54 = vshrl.u32 %v4566_v41, 16  ;;  %v326_v30 = vld [vmem:[%s5261_s17 + $0x24] sm:$0xf] }
  0x3a   : > { %v4619_v56 = vcombine.low %v1634_v43, %v1644_v51  ;;  %v424_v57 = vrot.slane %v423_v46, 4  ;;  %v433_v58 = vor.u32 %v432_v47, %v428_v45  ;;  %v1432_v59 = vrot.slane %v1430_v50, 4  ;;  %v328_v43 = vld [vmem:[%s5261_s17 + $0x2c] sm:$0x1] }
  0x3b   : > { %v1435_v61 = vrot.slane %v1433_v52, 5  ;;  %v1441_v62 = vrot.slane %v1439_v53, 5  ;;  %v1445_v63 = vrot.slane %v1443_v54, 4  ;;  %v1449_v0 = vshll.u32 %v4567_v49, 16  ;;  %v4568_v49 = vld [vmem:[%s5261_s17 + $0x24] sm:$0xf] }
  0x3c   : > { %1855 = vrot.lane.b32.xlu1 %v4619_v56, %s5225_s18  ;;  %v429_v1 = vsel %vm5273_vm2, %v424_v57, %v428_v45  ;;  %v434_v2 = vrot.slane %v433_v58, 4  ;;  %v633_v3 = vshrl.u32 %v350_v55, 16  ;;  %v636_v4 = vshll.u32 %v350_v55, 16  ;;  %v4569_v58 = vld [vmem:[%s5261_s17 + $0x28] sm:$0xf] }
  0x3d   : > { %v1436_v5 = vor.u32 %v1435_v61, %v1432_v59  ;;  %v1446_v6 = vor.u32 %v1445_v63, %v1441_v62  ;;  %v1451_v7 = vrot.slane %v1449_v0, 5  ;;  %v642_v9 = vshll.u32 %v351_v60, 16 }
  0x3e   : > { %v439_v11 = vsel %vm5273_vm2, %v434_v2, %v438_v48  ;;  %v635_v12 = vrot.slane %v633_v3, 4  ;;  %v638_v13 = vrot.slane %v636_v4, 5  ;;  %v646_v14 = vshrl.u32 %v351_v60, 16  ;;  %v4570_v2 = vld [vmem:[%s5261_s17 + $0x2c] sm:$0x1] }
  0x3f   : > { %v4468_v16 = vcombine.low %v429_v1, %v439_v11  ;;  %v1437_v17 = vrot.slane %v1436_v5, 4  ;;  %v1447_v18 = vrot.slane %v1446_v6, 4  ;;  %v644_v19 = vrot.slane %v642_v9, 5 }
  0x40   : > { %v639_v20 = vor.u32 %v638_v13, %v635_v12  ;;  %v648_v21 = vrot.slane %v646_v14, 4  ;;  %v652_v22 = vshll.u32 %v352_v8, 16  ;;  %v1646_v23 = vshrl.u32 %v4592_v10, 16  ;;  %v353_v8 = vld [vmem:[%s5261_s17 + $0x90] sm:$0xf] }
  0x41   : > { %804 = vrot.lane.b32.xlu0 %v4468_v16, %s5225_s18  ;;  %v1442_v24 = vsel %vm5273_vm2, %v1437_v17, %v1441_v62  ;;  %v1452_v25 = vsel %vm5273_vm2, %v1447_v18, %v1451_v7  ;;  %v1649_v28 = vshll.u32 %v4592_v10, 16  ;;  %v1655_v29 = vshll.u32 %v4593_v15, 16  ;;  %v354_v13 = vld [vmem:[%s5261_s17 + $0x94] sm:$0xf] }
  0x42   : > { %v4611_v31 = vcombine.low %v1442_v24, %v1452_v25  ;;  %v640_v32 = vrot.slane %v639_v20, 4  ;;  %v649_v33 = vor.u32 %v648_v21, %v644_v19  ;;  %v654_v34 = vrot.slane %v652_v22, 5  ;;  %v355_v21 = vld [vmem:[%s5261_s17 + $0x98] sm:$0x1] }
  0x43   : > { %v1648_v36 = vrot.slane %v1646_v23, 4  ;;  %v1651_v37 = vrot.slane %v1649_v28, 5  ;;  %v1657_v38 = vrot.slane %v1655_v29, 5  ;;  %v1659_v39 = vshrl.u32 %v4593_v15, 16  ;;  %v4595_v28 = vld [vmem:[%s5261_s17 + $0x90] sm:$0xf] }
  0x44   : > { %1839 = vrot.lane.b32.xlu1 %v4611_v31, %s5225_s18  ;;  %v645_v40 = vsel %vm5273_vm2, %v640_v32, %v644_v19  ;;  %v650_v41 = vrot.slane %v649_v33, 4  ;;  %v1665_v42 = vshll.u32 %v4594_v27, 16  ;;  %v441_v44 = vshrl.u32 %v326_v30, 16  ;;  %v4596_v33 = vld [vmem:[%s5261_s17 + $0x94] sm:$0xf] }
  0x45   : > { %v1652_v45 = vor.u32 %v1651_v37, %v1648_v36  ;;  %v1661_v46 = vrot.slane %v1659_v39, 4  ;;  %v444_v47 = vshll.u32 %v326_v30, 16  ;;  %v450_v48 = vshll.u32 %v327_v35, 16 }
  0x46   : > { %v655_v50 = vsel %vm5273_vm2, %v650_v41, %v654_v34  ;;  %v1667_v51 = vrot.slane %v1665_v42, 5  ;;  %v443_v52 = vrot.slane %v441_v44, 4  ;;  %v454_v53 = vshrl.u32 %v327_v35, 16 }
  0x47   : > { %v4477_v54 = vcombine.low %v645_v40, %v655_v50  ;;  %v1653_v55 = vrot.slane %v1652_v45, 4  ;;  %v1662_v56 = vor.u32 %v1661_v46, %v1657_v38  ;;  %v446_v57 = vrot.slane %v444_v47, 5  ;;  %v4597_v40 = vld [vmem:[%s5261_s17 + $0x98] sm:$0x1]  ;;  %v329_v47 = vld [vmem:[%s5261_s17 + $0x30] sm:$0xf] }
  0x48   : > { %v452_v59 = vrot.slane %v450_v48, 5  ;;  %v456_v60 = vrot.slane %v454_v53, 4  ;;  %v460_v61 = vshll.u32 %v328_v43, 16  ;;  %v1454_v62 = vshrl.u32 %v4568_v49, 16 }
  0x49   : > { %822 = vrot.lane.b32.xlu0 %v4477_v54, %s5225_s18  ;;  %v1658_v63 = vsel %vm5273_vm2, %v1653_v55, %v1657_v38  ;;  %v1663_v0 = vrot.slane %v1662_v56, 4  ;;  %v447_v1 = vor.u32 %v446_v57, %v443_v52  ;;  %v1457_v3 = vshll.u32 %v4568_v49, 16  ;;  %v330_v52 = vld [vmem:[%s5261_s17 + $0x34] sm:$0xf] }
  0x4a   : > { %v457_v4 = vor.u32 %v456_v60, %v452_v59  ;;  %v462_v5 = vrot.slane %v460_v61, 5  ;;  %v1456_v6 = vrot.slane %v1454_v62, 4  ;;  %v1463_v7 = vshll.u32 %v4569_v58, 16 }
  0x4b   : > { %v1668_v9 = vsel %vm5273_vm2, %v1663_v0, %v1667_v51  ;;  %v448_v10 = vrot.slane %v447_v1, 4  ;;  %v1459_v11 = vrot.slane %v1457_v3, 5  ;;  %v1467_v12 = vshrl.u32 %v4569_v58, 16 }
  0x4c   : > { %v4620_v14 = vcombine.low %v1658_v63, %v1668_v9  ;;  %v458_v15 = vrot.slane %v457_v4, 4  ;;  %v1465_v16 = vrot.slane %v1463_v7, 5  ;;  %v1473_v17 = vshll.u32 %v4570_v2, 16  ;;  %v331_v63 = vld [vmem:[%s5261_s17 + $0x38] sm:$0x1] }
  0x4d   : > { %v453_v18 = vsel %vm5273_vm2, %v448_v10, %v452_v59  ;;  %v1460_v19 = vor.u32 %v1459_v11, %v1456_v6  ;;  %v1469_v20 = vrot.slane %v1467_v12, 4  ;;  %v657_v22 = vshrl.u32 %v353_v8, 16  ;;  %v4571_v6 = vld [vmem:[%s5261_s17 + $0x30] sm:$0xf]  ;;  %v4572_v11 = vld [vmem:[%s5261_s17 + $0x34] sm:$0xf] }
  0x4e   : > { %1857 = vrot.lane.b32.xlu1 %v4620_v14, %s5225_s18  ;;  %v463_v23 = vsel %vm5273_vm2, %v458_v15, %v462_v5  ;;  %v1475_v24 = vrot.slane %v1473_v17, 5  ;;  %v660_v25 = vshll.u32 %v353_v8, 16  ;;  %v666_v27 = vshll.u32 %v354_v13, 16 }
  0x4f   : > { %v4469_v29 = vcombine.low %v453_v18, %v463_v23  ;;  %v1461_v30 = vrot.slane %v1460_v19, 4  ;;  %v1470_v31 = vor.u32 %v1469_v20, %v1465_v16  ;;  %v659_v32 = vrot.slane %v657_v22, 4  ;;  %v4573_v18 = vld [vmem:[%s5261_s17 + $0x38] sm:$0x1] }
  0x50   : > { %v662_v34 = vrot.slane %v660_v25, 5  ;;  %v668_v35 = vrot.slane %v666_v27, 5  ;;  %v670_v36 = vshrl.u32 %v354_v13, 16  ;;  %v676_v37 = vshll.u32 %v355_v21, 16  ;;  %v356_v25 = vld [vmem:[%s5261_s17 + $0x9c] sm:$0xf] }
  0x51   : > { %806 = vrot.lane.b32.xlu0 %v4469_v29, %s5225_s18  ;;  %v1466_v38 = vsel %vm5273_vm2, %v1461_v30, %v1465_v16  ;;  %v1471_v39 = vrot.slane %v1470_v31, 4  ;;  %v1670_v41 = vshrl.u32 %v4595_v28, 16  ;;  %v1673_v42 = vshll.u32 %v4595_v28, 16  ;;  %v357_v31 = vld [vmem:[%s5261_s17 + $0xa0] sm:$0xf] }
  0x52   : > { %v663_v43 = vor.u32 %v662_v34, %v659_v32  ;;  %v672_v44 = vrot.slane %v670_v36, 4  ;;  %v678_v45 = vrot.slane %v676_v37, 5  ;;  %v1679_v46 = vshll.u32 %v4596_v33, 16 }
  0x53   : > { %v1476_v48 = vsel %vm5273_vm2, %v1471_v39, %v1475_v24  ;;  %v1672_v49 = vrot.slane %v1670_v41, 4  ;;  %v1675_v50 = vrot.slane %v1673_v42, 5  ;;  %v1683_v51 = vshrl.u32 %v4596_v33, 16 }
  0x54   : > { %v4612_v53 = vcombine.low %v1466_v38, %v1476_v48  ;;  %v664_v54 = vrot.slane %v663_v43, 4  ;;  %v673_v55 = vor.u32 %v672_v44, %v668_v35  ;;  %v1681_v56 = vrot.slane %v1679_v46, 5  ;;  %v358_v43 = vld [vmem:[%s5261_s17 + $0xa4] sm:$0x1] }
  0x55   : > { %v1676_v57 = vor.u32 %v1675_v50, %v1672_v49  ;;  %v1685_v58 = vrot.slane %v1683_v51, 4  ;;  %v1689_v59 = vshll.u32 %v4597_v40, 16  ;;  %v465_v60 = vshrl.u32 %v329_v47, 16  ;;  %v4599_v50 = vld [vmem:[%s5261_s17 + $0xa0] sm:$0xf] }
  0x56   : > { %1841 = vrot.lane.b32.xlu1 %v4612_v53, %s5225_s18  ;;  %v669_v61 = vsel %vm5273_vm2, %v664_v54, %v668_v35  ;;  %v674_v62 = vrot.slane %v673_v55, 4  ;;  %v468_v0 = vshll.u32 %v329_v47, 16  ;;  %v474_v1 = vshll.u32 %v330_v52, 16 }
  0x57   : > { %v1677_v2 = vrot.slane %v1676_v57, 4  ;;  %v1686_v3 = vor.u32 %v1685_v58, %v1681_v56  ;;  %v1691_v4 = vrot.slane %v1689_v59, 5  ;;  %v467_v5 = vrot.slane %v465_v60, 4 }
  0x58   : > { %v679_v7 = vsel %vm5273_vm2, %v674_v62, %v678_v45  ;;  %v470_v8 = vrot.slane %v468_v0, 5  ;;  %v476_v9 = vrot.slane %v474_v1, 5  ;;  %v478_v10 = vshrl.u32 %v330_v52, 16  ;;  %v4598_v45 = vld [vmem:[%s5261_s17 + $0x9c] sm:$0xf] }
  0x59   : > { %v4478_v12 = vcombine.low %v669_v61, %v679_v7  ;;  %v1682_v13 = vsel %vm5273_vm2, %v1677_v2, %v1681_v56  ;;  %v1687_v14 = vrot.slane %v1686_v3, 4  ;;  %v484_v15 = vshll.u32 %v331_v63, 16  ;;  %v4600_v61 = vld [vmem:[%s5261_s17 + $0xa4] sm:$0x1]  ;;  %v332_v0 = vld [vmem:[%s5261_s17 + $0x3c] sm:$0xf] }
  0x5a   : > { %v471_v16 = vor.u32 %v470_v8, %v467_v5  ;;  %v480_v17 = vrot.slane %v478_v10, 4  ;;  %v1478_v19 = vshrl.u32 %v4571_v6, 16  ;;  %v1481_v20 = vshll.u32 %v4571_v6, 16  ;;  %v333_v5 = vld [vmem:[%s5261_s17 + $0x40] sm:$0xf] }
  0x5b   : > { %824 = vrot.lane.b32.xlu0 %v4478_v12, %s5225_s18  ;;  %v1692_v21 = vsel %vm5273_vm2, %v1687_v14, %v1691_v4  ;;  %v486_v22 = vrot.slane %v484_v15, 5  ;;  %v1487_v23 = vshll.u32 %v4572_v11, 16  ;;  %v1491_v24 = vshrl.u32 %v4572_v11, 16  ;;  %v334_v10 = vld [vmem:[%s5261_s17 + $0x44] sm:$0x1] }
  0x5c   : > { %v4621_v27 = vcombine.low %v1682_v13, %v1692_v21  ;;  %v472_v28 = vrot.slane %v471_v16, 4  ;;  %v481_v29 = vor.u32 %v480_v17, %v476_v9  ;;  %v1480_v30 = vrot.slane %v1478_v19, 4  ;;  %v4574_v15 = vld [vmem:[%s5261_s17 + $0x3c] sm:$0xf] }
  0x5d   : > { %v1483_v32 = vrot.slane %v1481_v20, 5  ;;  %v1489_v33 = vrot.slane %v1487_v23, 5  ;;  %v1493_v34 = vrot.slane %v1491_v24, 4  ;;  %v1497_v35 = vshll.u32 %v4573_v18, 16  ;;  %v4575_v20 = vld [vmem:[%s5261_s17 + $0x40] sm:$0xf] }
  0x5e   : > { %1859 = vrot.lane.b32.xlu1 %v4621_v27, %s5225_s18  ;;  %v477_v36 = vsel %vm5273_vm2, %v472_v28, %v476_v9  ;;  %v482_v37 = vrot.slane %v481_v29, 4  ;;  %v681_v38 = vshrl.u32 %v356_v25, 16  ;;  %v684_v39 = vshll.u32 %v356_v25, 16 }
  0x5f   : > { %v1484_v40 = vor.u32 %v1483_v32, %v1480_v30  ;;  %v1494_v41 = vor.u32 %v1493_v34, %v1489_v33  ;;  %v1499_v42 = vrot.slane %v1497_v35, 5  ;;  %v690_v44 = vshll.u32 %v357_v31, 16 }
  0x60   : > { %v487_v46 = vsel %vm5273_vm2, %v482_v37, %v486_v22  ;;  %v683_v47 = vrot.slane %v681_v38, 4  ;;  %v686_v48 = vrot.slane %v684_v39, 5  ;;  %v694_v49 = vshrl.u32 %v357_v31, 16  ;;  %v4576_v37 = vld [vmem:[%s5261_s17 + $0x44] sm:$0x1] }
  0x61   : > { %v4470_v51 = vcombine.low %v477_v36, %v487_v46  ;;  %v1485_v52 = vrot.slane %v1484_v40, 4  ;;  %v1495_v53 = vrot.slane %v1494_v41, 4  ;;  %v692_v54 = vrot.slane %v690_v44, 5  ;;  %v359_v39 = vld [vmem:[%s5261_s17 + $0xa8] sm:$0xf] }
  0x62   : > { %v687_v55 = vor.u32 %v686_v48, %v683_v47  ;;  %v696_v56 = vrot.slane %v694_v49, 4  ;;  %v700_v57 = vshll.u32 %v358_v43, 16  ;;  %v1694_v58 = vshrl.u32 %v4598_v45, 16  ;;  %v360_v44 = vld [vmem:[%s5261_s17 + $0xac] sm:$0xf] }
  0x63   : > { %808 = vrot.lane.b32.xlu0 %v4470_v51, %s5225_s18  ;;  %v1490_v59 = vsel %vm5273_vm2, %v1485_v52, %v1489_v33  ;;  %v1500_v60 = vsel %vm5273_vm2, %v1495_v53, %v1499_v42  ;;  %v1697_v62 = vshll.u32 %v4598_v45, 16  ;;  %v1703_v63 = vshll.u32 %v4599_v50, 16  ;;  %v361_v49 = vld [vmem:[%s5261_s17 + $0xb0] sm:$0x1] }
  0x64   : > { %v4613_v1 = vcombine.low %v1490_v59, %v1500_v60  ;;  %v688_v2 = vrot.slane %v687_v55, 4  ;;  %v697_v3 = vor.u32 %v696_v56, %v692_v54  ;;  %v702_v4 = vrot.slane %v700_v57, 5  ;;  %v4602_v59 = vld [vmem:[%s5261_s17 + $0xac] sm:$0xf] }
  0x65   : > { %v1696_v6 = vrot.slane %v1694_v58, 4  ;;  %v1699_v7 = vrot.slane %v1697_v62, 5  ;;  %v1705_v8 = vrot.slane %v1703_v63, 5  ;;  %v1707_v9 = vshrl.u32 %v4599_v50, 16 }
  0x66   : > { %1843 = vrot.lane.b32.xlu1 %v4613_v1, %s5225_s18  ;;  %v693_v11 = vsel %vm5273_vm2, %v688_v2, %v692_v54  ;;  %v698_v12 = vrot.slane %v697_v3, 4  ;;  %v1713_v13 = vshll.u32 %v4600_v61, 16  ;;  %v489_v14 = vshrl.u32 %v332_v0, 16  ;;  %v4601_v54 = vld [vmem:[%s5261_s17 + $0xa8] sm:$0xf] }
  0x67   : > { %v1700_v16 = vor.u32 %v1699_v7, %v1696_v6  ;;  %v1709_v17 = vrot.slane %v1707_v9, 4  ;;  %v492_v18 = vshll.u32 %v332_v0, 16  ;;  %v498_v19 = vshll.u32 %v333_v5, 16  ;;  %v335_v9 = vld [vmem:[%s5261_s17 + $0x48] sm:$0xf] }
  0x68   : > { %v703_v21 = vsel %vm5273_vm2, %v698_v12, %v702_v4  ;;  %v1715_v22 = vrot.slane %v1713_v13, 5  ;;  %v491_v23 = vrot.slane %v489_v14, 4  ;;  %v502_v24 = vshrl.u32 %v333_v5, 16 }
  0x69   : > { %v4479_v25 = vcombine.low %v693_v11, %v703_v21  ;;  %v1701_v27 = vrot.slane %v1700_v16, 4  ;;  %v1710_v28 = vor.u32 %v1709_v17, %v1705_v8  ;;  %v494_v29 = vrot.slane %v492_v18, 5 }
  0x6a   : > { %v500_v30 = vrot.slane %v498_v19, 5  ;;  %v504_v31 = vrot.slane %v502_v24, 4  ;;  %v508_v32 = vshll.u32 %v334_v10, 16  ;;  %v1502_v33 = vshrl.u32 %v4574_v15, 16 }
  0x6b   : > { %826 = vrot.lane.b32.xlu0 %v4479_v25, %s5225_s18  ;;  %v1706_v34 = vsel %vm5273_vm2, %v1701_v27, %v1705_v8  ;;  %v1711_v35 = vrot.slane %v1710_v28, 4  ;;  %v495_v36 = vor.u32 %v494_v29, %v491_v23  ;;  %v1505_v38 = vshll.u32 %v4574_v15, 16  ;;  %v4603_v8 = vld [vmem:[%s5261_s17 + $0xb0] sm:$0x1] }
  0x6c   : > { %v505_v40 = vor.u32 %v504_v31, %v500_v30  ;;  %v510_v41 = vrot.slane %v508_v32, 5  ;;  %v1504_v42 = vrot.slane %v1502_v33, 4  ;;  %v1511_v43 = vshll.u32 %v4575_v20, 16  ;;  %v337_v28 = vld [vmem:[%s5261_s17 + $0x50] sm:$0x1] }
  0x6d   : > { %v1716_v45 = vsel %vm5273_vm2, %v1711_v35, %v1715_v22  ;;  %v496_v46 = vrot.slane %v495_v36, 4  ;;  %v1507_v47 = vrot.slane %v1505_v38, 5  ;;  %v1515_v48 = vshrl.u32 %v4575_v20, 16  ;;  %v336_v22 = vld [vmem:[%s5261_s17 + $0x4c] sm:$0xf] }
  0x6e   : > { %v4622_v50 = vcombine.low %v1706_v34, %v1716_v45  ;;  %v506_v51 = vrot.slane %v505_v40, 4  ;;  %v1513_v52 = vrot.slane %v1511_v43, 5  ;;  %v1521_v53 = vshll.u32 %v4576_v37, 16  ;;  %v4577_v33 = vld [vmem:[%s5261_s17 + $0x48] sm:$0xf] }
  0x6f   : > { %v501_v55 = vsel %vm5273_vm2, %v496_v46, %v500_v30  ;;  %v1508_v56 = vor.u32 %v1507_v47, %v1504_v42  ;;  %v1517_v57 = vrot.slane %v1515_v48, 4  ;;  %v705_v58 = vshrl.u32 %v359_v39, 16  ;;  %v4578_v38 = vld [vmem:[%s5261_s17 + $0x4c] sm:$0xf]  ;;  %v4579_v47 = vld [vmem:[%s5261_s17 + $0x50] sm:$0x1] }
  0x70   : > { %1861 = vrot.lane.b32.xlu1 %v4622_v50, %s5225_s18  ;;  %v511_v60 = vsel %vm5273_vm2, %v506_v51, %v510_v41  ;;  %v1523_v61 = vrot.slane %v1521_v53, 5  ;;  %v708_v62 = vshll.u32 %v359_v39, 16  ;;  %v714_v63 = vshll.u32 %v360_v44, 16 }
  0x71   : > { %v4471_v0 = vcombine.low %v501_v55, %v511_v60  ;;  %v1509_v1 = vrot.slane %v1508_v56, 4  ;;  %v1518_v2 = vor.u32 %v1517_v57, %v1513_v52  ;;  %v707_v3 = vrot.slane %v705_v58, 4 }
  0x72   : > { %v710_v4 = vrot.slane %v708_v62, 5  ;;  %v716_v5 = vrot.slane %v714_v63, 5  ;;  %v718_v6 = vshrl.u32 %v360_v44, 16  ;;  %v724_v7 = vshll.u32 %v361_v49, 16 }
  0x73   : > { %810 = vrot.lane.b32.xlu0 %v4471_v0, %s5225_s18  ;;  %v1514_v10 = vsel %vm5273_vm2, %v1509_v1, %v1513_v52  ;;  %v1519_v11 = vrot.slane %v1518_v2, 4  ;;  %v1718_v12 = vshrl.u32 %v4601_v54, 16  ;;  %v1721_v13 = vshll.u32 %v4601_v54, 16  ;;  %v362_v52 = vld [vmem:[%s5261_s17 + $0xb4] sm:$0xf] }
  0x74   : > { %v711_v14 = vor.u32 %v710_v4, %v707_v3  ;;  %v720_v15 = vrot.slane %v718_v6, 4  ;;  %v726_v16 = vrot.slane %v724_v7, 5  ;;  %v1727_v17 = vshll.u32 %v4602_v59, 16  ;;  %v363_v1 = vld [vmem:[%s5261_s17 + $0xb8] sm:$0xf] }
  0x75   : > { %v1524_v18 = vsel %vm5273_vm2, %v1519_v11, %v1523_v61  ;;  %v1720_v19 = vrot.slane %v1718_v12, 4  ;;  %v1723_v20 = vrot.slane %v1721_v13, 5  ;;  %v1731_v21 = vshrl.u32 %v4602_v59, 16  ;;  %v364_v13 = vld [vmem:[%s5261_s17 + $0xbc] sm:$0x1] }
  0x76   : > { %v4614_v23 = vcombine.low %v1514_v10, %v1524_v18  ;;  %v712_v24 = vrot.slane %v711_v14, 4  ;;  %v721_v25 = vor.u32 %v720_v15, %v716_v5  ;;  %v1729_v27 = vrot.slane %v1727_v17, 5  ;;  %v4604_v15 = vld [vmem:[%s5261_s17 + $0xb4] sm:$0xf] }
  0x77   : > { %v1724_v29 = vor.u32 %v1723_v20, %v1720_v19  ;;  %v1733_v30 = vrot.slane %v1731_v21, 4  ;;  %v1737_v31 = vshll.u32 %v4603_v8, 16  ;;  %v513_v32 = vshrl.u32 %v335_v9, 16  ;;  %v4605_v20 = vld [vmem:[%s5261_s17 + $0xb8] sm:$0xf] }
  0x78   : > { %1845 = vrot.lane.b32.xlu1 %v4614_v23, %s5225_s18  ;;  %v717_v34 = vsel %vm5273_vm2, %v712_v24, %v716_v5  ;;  %v722_v35 = vrot.slane %v721_v25, 4  ;;  %v516_v36 = vshll.u32 %v335_v9, 16  ;;  %v522_v37 = vshll.u32 %v336_v22, 16  ;;  %v4606_v25 = vld [vmem:[%s5261_s17 + $0xbc] sm:$0x1] }
  0x79   : > { %v1725_v39 = vrot.slane %v1724_v29, 4  ;;  %v1734_v40 = vor.u32 %v1733_v30, %v1729_v27  ;;  %v1739_v41 = vrot.slane %v1737_v31, 5  ;;  %v515_v42 = vrot.slane %v513_v32, 4  ;;  %v338_v31 = vld [vmem:[%s5261_s17 + $0x54] sm:$0xf] }
  0x7a   : > { %v727_v43 = vsel %vm5273_vm2, %v722_v35, %v726_v16  ;;  %v518_v44 = vrot.slane %v516_v36, 5  ;;  %v524_v45 = vrot.slane %v522_v37, 5  ;;  %v526_v46 = vshrl.u32 %v336_v22, 16 }
  0x7b   : > { %v4480_v48 = vcombine.low %v717_v34, %v727_v43  ;;  %v1730_v49 = vsel %vm5273_vm2, %v1725_v39, %v1729_v27  ;;  %v1735_v50 = vrot.slane %v1734_v40, 4  ;;  %v532_v51 = vshll.u32 %v337_v28, 16  ;;  %v339_v40 = vld [vmem:[%s5261_s17 + $0x58] sm:$0xf] }
  0x7c   : > { %v519_v53 = vor.u32 %v518_v44, %v515_v42  ;;  %v528_v54 = vrot.slane %v526_v46, 4  ;;  %v1526_v55 = vshrl.u32 %v4577_v33, 16  ;;  %v1529_v56 = vshll.u32 %v4577_v33, 16  ;;  %v4580_v46 = vld [vmem:[%s5261_s17 + $0x54] sm:$0xf] }
  0x7d   : > { %828 = vrot.lane.b32.xlu0 %v4480_v48, %s5225_s18  ;;  %v1740_v57 = vsel %vm5273_vm2, %v1735_v50, %v1739_v41  ;;  %v534_v58 = vrot.slane %v532_v51, 5  ;;  %v1535_v59 = vshll.u32 %v4578_v38, 16  ;;  %v1539_v60 = vshrl.u32 %v4578_v38, 16 }
  0x7e   : > { %v4623_v61 = vcombine.low %v1730_v49, %v1740_v57  ;;  %v520_v62 = vrot.slane %v519_v53, 4  ;;  %v529_v63 = vor.u32 %v528_v54, %v524_v45  ;;  %v1528_v0 = vrot.slane %v1526_v55, 4 }
  0x7f   : > { %v1531_v2 = vrot.slane %v1529_v56, 5  ;;  %v1537_v3 = vrot.slane %v1535_v59, 5  ;;  %v1541_v4 = vrot.slane %v1539_v60, 4  ;;  %v1545_v5 = vshll.u32 %v4579_v47, 16 }
  0x80   : > { %1863 = vrot.lane.b32.xlu1 %v4623_v61, %s5225_s18  ;;  %v525_v6 = vsel %vm5273_vm2, %v520_v62, %v524_v45  ;;  %v530_v7 = vrot.slane %v529_v63, 4  ;;  %v729_v8 = vshrl.u32 %v362_v52, 16  ;;  %v732_v9 = vshll.u32 %v362_v52, 16  ;;  %v340_v45 = vld [vmem:[%s5261_s17 + $0x5c] sm:$0x1] }
  0x81   : > { %v1532_v10 = vor.u32 %v1531_v2, %v1528_v0  ;;  %v1542_v11 = vor.u32 %v1541_v4, %v1537_v3  ;;  %v1547_v12 = vrot.slane %v1545_v5, 5  ;;  %v738_v14 = vshll.u32 %v363_v1, 16  ;;  %v4581_v63 = vld [vmem:[%s5261_s17 + $0x58] sm:$0xf] }
  0x82   : > { %v535_v16 = vsel %vm5273_vm2, %v530_v7, %v534_v58  ;;  %v731_v17 = vrot.slane %v729_v8, 4  ;;  %v734_v18 = vrot.slane %v732_v9, 5  ;;  %v742_v19 = vshrl.u32 %v363_v1, 16  ;;  %v4582_v7 = vld [vmem:[%s5261_s17 + $0x5c] sm:$0x1] }
  0x83   : > { %v4472_v21 = vcombine.low %v525_v6, %v535_v16  ;;  %v1533_v22 = vrot.slane %v1532_v10, 4  ;;  %v1543_v23 = vrot.slane %v1542_v11, 4  ;;  %v740_v24 = vrot.slane %v738_v14, 5 }
  0x84   : > { %v735_v27 = vor.u32 %v734_v18, %v731_v17  ;;  %v744_v28 = vrot.slane %v742_v19, 4  ;;  %v748_v29 = vshll.u32 %v364_v13, 16  ;;  %v1742_v30 = vshrl.u32 %v4604_v15, 16  ;;  %v4607_v13 = vld [vmem:[%s5261_s17 + $0xc0] sm:$0xf] }
  0x85   : > { %812 = vrot.lane.b32.xlu0 %v4472_v21, %s5225_s18  ;;  %v1538_v32 = vsel %vm5273_vm2, %v1533_v22, %v1537_v3  ;;  %v1548_v33 = vsel %vm5273_vm2, %v1543_v23, %v1547_v12  ;;  %v1745_v34 = vshll.u32 %v4604_v15, 16  ;;  %v1751_v35 = vshll.u32 %v4605_v20, 16  ;;  %v4608_v18 = vld [vmem:[%s5261_s17 + $0xc4] sm:$0xf]  ;;  %v4609_v23 = vld [vmem:[%s5261_s17 + $0xc8] sm:$0x1] }
  0x86   : > { %v4615_v36 = vcombine.low %v1538_v32, %v1548_v33  ;;  %v736_v37 = vrot.slane %v735_v27, 4  ;;  %v745_v38 = vor.u32 %v744_v28, %v740_v24  ;;  %v750_v39 = vrot.slane %v748_v29, 5  ;;  %v4583_v29 = vld [vmem:[%s5261_s17 + $0x60] sm:$0xf] }
  0x87   : > { %v1744_v41 = vrot.slane %v1742_v30, 4  ;;  %v1747_v42 = vrot.slane %v1745_v34, 5  ;;  %v1753_v43 = vrot.slane %v1751_v35, 5  ;;  %v1755_v44 = vshrl.u32 %v4605_v20, 16  ;;  %v4584_v30 = vld [vmem:[%s5261_s17 + $0x64] sm:$0xf] }
  0x88   : > { %1847 = vrot.lane.b32.xlu1 %v4615_v36, %s5225_s18  ;;  %v741_v47 = vsel %vm5273_vm2, %v736_v37, %v740_v24  ;;  %v746_v48 = vrot.slane %v745_v38, 4  ;;  %v1761_v49 = vshll.u32 %v4606_v25, 16  ;;  %v537_v50 = vshrl.u32 %v338_v31, 16 }
  0x89   : > { %v1748_v51 = vor.u32 %v1747_v42, %v1744_v41  ;;  %v1757_v52 = vrot.slane %v1755_v44, 4  ;;  %v540_v53 = vshll.u32 %v338_v31, 16  ;;  %v546_v54 = vshll.u32 %v339_v40, 16  ;;  %v4834_v44 = vld [vmem:[%s5261_s17 + $0x18] sm:$0xf] }
  0x8a   : > { %v751_v55 = vsel %vm5273_vm2, %v746_v48, %v750_v39  ;;  %v1763_v56 = vrot.slane %v1761_v49, 5  ;;  %v539_v57 = vrot.slane %v537_v50, 4  ;;  %v550_v58 = vshrl.u32 %v339_v40, 16  ;;  %v4835_v49 = vld [vmem:[%s5261_s17 + $0x1c] sm:$0xf] }
  0x8b   : > { %v4481_v59 = vcombine.low %v741_v47, %v751_v55  ;;  %v1749_v60 = vrot.slane %v1748_v51, 4  ;;  %v1758_v61 = vor.u32 %v1757_v52, %v1753_v43  ;;  %v542_v62 = vrot.slane %v540_v53, 5 }
  0x8c   : > { %v548_v0 = vrot.slane %v546_v54, 5  ;;  %v552_v1 = vrot.slane %v550_v58, 4  ;;  %v556_v2 = vshll.u32 %v340_v45, 16  ;;  %v1550_v3 = vshrl.u32 %v4580_v46, 16 }
  0x8d   : > { %830 = vrot.lane.b32.xlu0 %v4481_v59, %s5225_s18  ;;  %v1754_v4 = vsel %vm5273_vm2, %v1749_v60, %v1753_v43  ;;  %v1759_v5 = vrot.slane %v1758_v61, 4  ;;  %v543_v6 = vor.u32 %v542_v62, %v539_v57  ;;  %v1553_v8 = vshll.u32 %v4580_v46, 16  ;;  %v4585_v43 = vld [vmem:[%s5261_s17 + $0x68] sm:$0x1] }
  0x8e   : > { %v553_v9 = vor.u32 %v552_v1, %v548_v0  ;;  %v558_v10 = vrot.slane %v556_v2, 5  ;;  %v1552_v11 = vrot.slane %v1550_v3, 4  ;;  %v1559_v12 = vshll.u32 %v4581_v63, 16 }
  0x8f   : > { %v1764_v14 = vsel %vm5273_vm2, %v1759_v5, %v1763_v56  ;;  %v544_v15 = vrot.slane %v543_v6, 4  ;;  %v1555_v16 = vrot.slane %v1553_v8, 5  ;;  %v1563_v17 = vshrl.u32 %v4581_v63, 16 }
  0x90   : > { %v4624_v19 = vcombine.low %v1754_v4, %v1764_v14  ;;  %v554_v20 = vrot.slane %v553_v9, 4  ;;  %v1561_v21 = vrot.slane %v1559_v12, 5  ;;  %v1569_v22 = vshll.u32 %v4582_v7, 16  ;;  %v4836_v4 = vld [vmem:[%s5261_s17 + $0x20] sm:$0x1] }
  0x91   : > { %v549_v24 = vsel %vm5273_vm2, %v544_v15, %v548_v0  ;;  %v1556_v25 = vor.u32 %v1555_v16, %v1552_v11  ;;  %v1565_v27 = vrot.slane %v1563_v17, 4  ;;  %v1766_v28 = vshrl.u32 %v4607_v13, 16  ;;  %v4837_v11 = vld [vmem:[%s5261_s17 + $0x24] sm:$0xf]  ;;  %v4838_v17 = vld [vmem:[%s5261_s17 + $0x28] sm:$0xf] }
  0x92   : > { %1865 = vrot.lane.b32.xlu1 %v4624_v19, %s5225_s18  ;;  %v559_v31 = vsel %vm5273_vm2, %v554_v20, %v558_v10  ;;  %v1571_v32 = vrot.slane %v1569_v22, 5  ;;  %v1769_v33 = vshll.u32 %v4607_v13, 16  ;;  %v1775_v34 = vshll.u32 %v4608_v18, 16  ;;  %v5133_v16 = vld [vmem:[%s7162_s1 + $0x60] sm:$0xff]   ;;  %v4839_v22 = vld [vmem:[%s5261_s17 + $0x2c] sm:$0x1] }
  0x93   : > { %v4473_v35 = vcombine.low %v549_v24, %v559_v31  ;;  %v1557_v36 = vrot.slane %v1556_v25, 4  ;;  %v1566_v37 = vor.u32 %v1565_v27, %v1561_v21  ;;  %v1768_v38 = vrot.slane %v1766_v28, 4  ;;  %v4840_v28 = vld [vmem:[%s5261_s17 + $0x30] sm:$0xf] }
  0x94   : > { %v1771_v39 = vrot.slane %v1769_v33, 5  ;;  %v1777_v40 = vrot.slane %v1775_v34, 5  ;;  %v1779_v41 = vshrl.u32 %v4608_v18, 16  ;;  %v1785_v42 = vshll.u32 %v4609_v23, 16  ;;  %v5530_v23 = vpop.permute.xlu0 %816  ;;  %v5134_v34 = vld [vmem:[%s7162_s1 + $0x68] sm:$0xff]  }
  0x95   : > { %814 = vrot.lane.b32.xlu0 %v4473_v35, %s5225_s18  ;;  %v1562_v45 = vsel %vm5273_vm2, %v1557_v36, %v1561_v21  ;;  %v1567_v46 = vrot.slane %v1566_v37, 4  ;;  %v1574_v47 = vshrl.u32 %v4583_v29, 16  ;;  %v1577_v48 = vshll.u32 %v4583_v29, 16  ;;  %v4841_v35 = vld [vmem:[%s5261_s17 + $0x34] sm:$0xf] }
  0x96   : > { %v1772_v50 = vor.u32 %v1771_v39, %v1768_v38  ;;  %v1781_v51 = vrot.slane %v1779_v41, 4  ;;  %v1787_v52 = vrot.slane %v1785_v42, 5  ;;  %v1583_v53 = vshll.u32 %v4584_v30, 16 }
  0x97   : > { %v1572_v54 = vsel %vm5273_vm2, %v1567_v46, %v1571_v32  ;;  %v1576_v55 = vrot.slane %v1574_v47, 4  ;;  %v1579_v56 = vrot.slane %v1577_v48, 5  ;;  %v1587_v57 = vshrl.u32 %v4584_v30, 16 }
  0x98   : > { %v4616_v58 = vcombine.low %v1562_v45, %v1572_v54  ;;  %v1773_v59 = vrot.slane %v1772_v50, 4  ;;  %v1782_v60 = vor.u32 %v1781_v51, %v1777_v40  ;;  %v1585_v61 = vrot.slane %v1583_v53, 5  ;;  %v4842_v45 = vld [vmem:[%s5261_s17 + $0x38] sm:$0x1]  ;;  %v4843_v50 = vld [vmem:[%s5261_s17 + $0x3c] sm:$0xf] }
  0x99   : > { %v1580_v62 = vor.u32 %v1579_v56, %v1576_v55  ;;  %v1589_v63 = vrot.slane %v1587_v57, 4  ;;  %v1593_v0 = vshll.u32 %v4585_v43, 16  ;;  %v3002_v1 = vshrl.u32 %v4834_v44, 16  ;;  %v4844_v55 = vld [vmem:[%s5261_s17 + $0x40] sm:$0xf]  ;;  %v5552_v56 = vpop.permute.xlu0 %800 }
  0x9a   : > { %1849 = vrot.lane.b32.xlu1 %v4616_v58, %s5225_s18  ;;  %v1778_v2 = vsel %vm5273_vm2, %v1773_v59, %v1777_v40  ;;  %v1783_v3 = vrot.slane %v1782_v60, 4  ;;  %v3005_v5 = vshll.u32 %v4834_v44, 16  ;;  %v3011_v6 = vshll.u32 %v4835_v49, 16  ;;  %v5542_v40 = vpop.permute.xlu1 %818  ;;  %v5135_v58 = vld [vmem:[%s7162_s1 + $0x70] sm:$0xff]  }
  0x9b   : > { %v1581_v7 = vrot.slane %v1580_v62, 4  ;;  %v1590_v8 = vor.u32 %v1589_v63, %v1585_v61  ;;  %v1595_v9 = vrot.slane %v1593_v0, 5  ;;  %v3004_v10 = vrot.slane %v3002_v1, 4 }
  0x9c   : > { %v1788_v12 = vsel %vm5273_vm2, %v1783_v3, %v1787_v52  ;;  %v3007_v13 = vrot.slane %v3005_v5, 5  ;;  %v3013_v14 = vrot.slane %v3011_v6, 5  ;;  %v3015_v15 = vshrl.u32 %v4835_v49, 16 }
  0x9d   : > { %v4625_v18 = vcombine.low %v1778_v2, %v1788_v12  ;;  %v1586_v19 = vsel %vm5273_vm2, %v1581_v7, %v1585_v61  ;;  %v1591_v20 = vrot.slane %v1590_v8, 4  ;;  %v3021_v21 = vshll.u32 %v4836_v4, 16  ;;  %v4845_v2 = vld [vmem:[%s5261_s17 + $0x44] sm:$0x1]  ;;  %v5565_v7 = vld [vmem:[%s5261_s17 + $0x48] sm:$0xf] }
  0x9e   : > { %v3008_v24 = vor.u32 %v3007_v13, %v3004_v10  ;;  %v3017_v25 = vrot.slane %v3015_v15, 4  ;;  %v3026_v27 = vshrl.u32 %v4837_v11, 16  ;;  %v5226_v31 = vmov 0  }
  0x9f   : > { %1867 = vrot.lane.b32.xlu0 %v4625_v18, %s5225_s18  ;;  %v1596_v29 = vsel %vm5273_vm2, %v1591_v20, %v1595_v9  ;;  %v3023_v30 = vrot.slane %v3021_v21, 5  ;;  %5098 = vmatprep.subr.bf16.mxu1 %v5226_v31  ;;  %v3029_v32 = vshll.u32 %v4837_v11, 16  ;;  %v3035_v33 = vshll.u32 %v4838_v17, 16  ;;  %v5567_v8 = vpop.permute.xlu1 %1853 }
  0xa0   : > { %v4617_v36 = vcombine.low %v1586_v19, %v1596_v29  ;;  %v3009_v37 = vrot.slane %v3008_v24, 4  ;;  %v3018_v38 = vor.u32 %v3017_v25, %v3013_v14  ;;  %5110 = vmatpush1.bf16.msra.mxu1 %v5133_v16  ;;  %v3028_v39 = vrot.slane %v3026_v27, 4  ;;  %2366 = vmatprep.subr.bf16.mxu0 %v5226_v31  ;;  %v4847_v24 = vld [vmem:[%s5261_s17 + $0x4c] sm:$0xf]  ;;  %v5591_v29 = vld [vmem:[%s7162_s1 + $0x80] sm:$0xff]  }
  0xa1   : > { %v3031_v41 = vrot.slane %v3029_v32, 5  ;;  %v3037_v42 = vrot.slane %v3035_v33, 5  ;;  %v3039_v43 = vshrl.u32 %v4838_v17, 16  ;;  %v3045_v44 = vshll.u32 %v4839_v22, 16  ;;  %2367 = vmatpush1.bf16.msra.mxu0 %v5133_v16  ;;  %5099 = vmatprep.subr.bf16.mxu1 %v5226_v31  ;;  %v5572_v13 = vpop.permute.xlu0 %802  ;;  %v5136_v17 = vld [vmem:[%s7162_s1 + $0x78] sm:$0xff]   ;;  %v5141_v33 = vld [vmem:[%s5261_s17 + $0x60] sm:$0xff]  }
  0xa2   : > { %1851 = vrot.lane.b32.xlu1 %v4617_v36, %s5225_s18  ;;  %v3014_v46 = vsel %vm5273_vm2, %v3009_v37, %v3013_v14  ;;  %v3019_v47 = vrot.slane %v3018_v38, 4  ;;  %2368 = vmatprep.subr.bf16.mxu0 %v5226_v31  ;;  %v3050_v48 = vshrl.u32 %v4840_v28, 16  ;;  %v3053_v49 = vshll.u32 %v4840_v28, 16  ;;  %v4848_v32 = vld [vmem:[%s5261_s17 + $0x50] sm:$0x1]  ;;  %v5151_v37 = vld [vmem:[%s5261_s17 + $0x78] sm:$0xff]  }
  0xa3   : > { %v3032_v51 = vor.u32 %v3031_v41, %v3028_v39  ;;  %v3041_v52 = vrot.slane %v3039_v43, 4  ;;  %v3047_v53 = vrot.slane %v3045_v44, 5  ;;  %v3059_v54 = vshll.u32 %v4841_v35, 16  ;;  %v5148_v36 = vld [vmem:[%s5261_s17 + $0xc] sm:$0xff]   ;;  %v5153_v38 = vld [vmem:[%s5261_s17 + $0x18] sm:$0xff]   ;;  %v5157_v39 = vld [vmem:[%s5261_s17 + $0x84] sm:$0xff]  }
  0xa4   : > { %v3024_v57 = vsel %vm5273_vm2, %v3019_v47, %v3023_v30  ;;  %5111 = vmatpush1.bf16.msra.mxu1 %v5134_v34  ;;  %v3052_v59 = vrot.slane %v3050_v48, 4  ;;  %v3055_v60 = vrot.slane %v3053_v49, 5  ;;  %v3063_v61 = vshrl.u32 %v4841_v35, 16  ;;  %v5144_v35 = vld [vmem:[%s5261_s17 + $0x6c] sm:$0xff]   ;;  %v5160_v41 = vld [vmem:[%s5261_s17 + $0x24] sm:$0xff]   ;;  %v5171_v48 = vld [vmem:[%s5261_s17 + $0x9c] sm:$0xff]  }
  0xa5   : > { %v4882_v62 = vcombine.low %v3014_v46, %v3024_v57  ;;  %v3033_v63 = vrot.slane %v3032_v51, 4  ;;  %v3042_v0 = vor.u32 %v3041_v52, %v3037_v42  ;;  %2369 = vmatpush1.bf16.msra.mxu0 %v5134_v34  ;;  %5100 = vmatprep.subr.bf16.mxu1 %v5226_v31  ;;  %v5560_v1 = vrot.slane %v3059_v54, 5  ;;  %v5143_v34 = vld [vmem:[%s5261_s17] sm:$0xff]   ;;  %v5167_v43 = vld [vmem:[%s5261_s17 + $0x30] sm:$0xff]   ;;  %v5181_v57 = vld [vmem:[%s5261_s17 + $0x48] sm:$0xff]   ;;  %309 = vst.msk [vmem:[#allocation2 + $0x80] sm:$0xff] %vm300_vm3, %v5141_v33 }
  0xa6   : > { %v3056_v3 = vor.u32 %v3055_v60, %v3052_v59  ;;  %v3065_v4 = vrot.slane %v3063_v61, 4  ;;  %v3069_v5 = vshll.u32 %v4842_v45, 16  ;;  %2370 = vmatprep.subr.bf16.mxu0 %v5226_v31  ;;  %v3074_v6 = vshrl.u32 %v4843_v50, 16  ;;  %v5174_v49 = vld [vmem:[%s5261_s17 + $0x3c] sm:$0xff]   ;;  %v5188_v59 = vld [vmem:[%s5261_s17 + $0x54] sm:$0xff]   ;;  %301 = vst.msk [vmem:[#allocation2] sm:$0xff] %vm300_vm3, %v5143_v34 }
  0xa7   : > { %3433 = vrot.lane.b32.xlu0 %v4882_v62, %s5225_s18  ;;  %v3038_v9 = vsel %vm5273_vm2, %v3033_v63, %v3037_v42  ;;  %v3043_v10 = vrot.slane %v3042_v0, 4  ;;  %v3077_v11 = vshll.u32 %v4843_v50, 16  ;;  %v3083_v12 = vshll.u32 %v4844_v55, 16  ;;  %v5164_v42 = vld [vmem:[%s5261_s17 + $0x90] sm:$0xff]   ;;  %v5178_v50 = vld [vmem:[%s5261_s17 + $0xa8] sm:$0xff]   ;;  %310 = vst.msk [vmem:[#allocation2 + $0x90] sm:$0xff] %vm300_vm3, %v5144_v35 }
  0xa8   : > { %5112 = vmatpush1.bf16.msra.mxu1 %v5135_v58  ;;  %v3057_v14 = vrot.slane %v3056_v3, 4  ;;  %v3066_v15 = vor.u32 %v3065_v4, %v5560_v1  ;;  %v3071_v16 = vrot.slane %v3069_v5, 5  ;;  %v3076_v18 = vrot.slane %v3074_v6, 4  ;;  %v4849_v0 = vld [vmem:[%s5261_s17 + $0x54] sm:$0xf]  ;;  %302 = vst.msk [vmem:[#allocation2 + $0x10] sm:$0xff] %vm300_vm3, %v5148_v36 }
  0xa9   : > { %v3048_v19 = vsel %vm5273_vm2, %v3043_v10, %v3047_v53  ;;  %2371 = vmatpush1.bf16.msra.mxu0 %v5135_v58  ;;  %5101 = vmatprep.subr.bf16.mxu1 %v5226_v31  ;;  %v3079_v20 = vrot.slane %v3077_v11, 5  ;;  %v5581_v21 = vrot.slane %v3083_v12, 5  ;;  %v3087_v22 = vshrl.u32 %v4844_v55, 16  ;;  %v5614_v55 = vpop.permute.xlu1 %1837  ;;  %v5185_v58 = vld [vmem:[%s5261_s17 + $0xb4] sm:$0xff]   ;;  %v5138_v11 = vld [vmem:[%s7162_s1 + $0x88] sm:$0xff]   ;;  %311 = vst.msk [vmem:[#allocation2 + $0xa0] sm:$0xff] %vm300_vm3, %v5151_v37 }
  0xaa   : > { %v4883_v25 = vcombine.low %v3038_v9, %v3048_v19  ;;  %v3062_v27 = vsel %vm5273_vm2, %v3057_v14, %v5560_v1  ;;  %v3067_v28 = vrot.slane %v3066_v15, 4  ;;  %2372 = vmatprep.subr.bf16.mxu0 %v5226_v31  ;;  %v3093_v30 = vshll.u32 %v4845_v2, 16  ;;  %v4850_v1 = vld [vmem:[%s5261_s17 + $0x58] sm:$0xf]  ;;  %v5637_v12 = vld [vmem:[%s5261_s17 + $0x60] sm:$0xf] }
  0xab   : > { %v3080_v44 = vor.u32 %v3079_v20, %v3076_v18  ;;  %v3089_v45 = vrot.slane %v3087_v22, 4  ;;  %v3098_v46 = vshrl.u32 %v5565_v7, 16  ;;  %v3101_v47 = vshll.u32 %v5565_v7, 16  ;;  %v821_v2 = vpop.permute.xlu0 %820  ;;  %v5627_v7 = vld [vmem:[%s5261_s17 + $0x5c] sm:$0x1]  ;;  %303 = vst.msk [vmem:[#allocation2 + $0x20] sm:$0xff] %vm300_vm3, %v5153_v38 }
  0xac   : > { %3435 = vrot.lane.b32.xlu1 %v4883_v25, %s5225_s18  ;;  %v3072_v51 = vsel %vm5273_vm2, %v3067_v28, %v3071_v16  ;;  %5113 = vmatpush1.bf16.msra.mxu1 %v5136_v17  ;;  %v5612_v52 = vrot.slane %v3093_v30, 5  ;;  %v3107_v53 = vshll.u32 %v4847_v24, 16  ;;  %v3111_v54 = vshrl.u32 %v4847_v24, 16  ;;  %312 = vst.msk [vmem:[#allocation2 + $0xb0] sm:$0xff] %vm300_vm3, %v5157_v39  ;;  %304 = vst.msk [vmem:[#allocation2 + $0x30] sm:$0xff] %vm300_vm3, %v5160_v41  ;;  %v5149_v33 = vld [vmem:[%s5261_s17 + $0xc] sm:$0xff]  }
  0xad   : > { %v4884_v60 = vcombine.low %v3062_v27, %v3072_v51  ;;  %2373 = vmatpush1.bf16.msra.mxu0 %v5136_v17  ;;  %5102 = vmatprep.subr.bf16.mxu1 %v5226_v31  ;;  %v3081_v61 = vrot.slane %v3080_v44, 4  ;;  %v3090_v62 = vor.u32 %v3089_v45, %v5581_v21  ;;  %v3100_v63 = vrot.slane %v3098_v46, 4  ;;  %313 = vst.msk [vmem:[#allocation2 + $0xc0] sm:$0xff] %vm300_vm3, %v5164_v42  ;;  %v4853_v22 = vld [vmem:[%s5261_s17 + $0x64] sm:$0xf]  ;;  %v5152_v34 = vld [vmem:[%s5261_s17 + $0x78] sm:$0xff]  }
  0xae   : > { %2374 = vmatprep.subr.bf16.mxu0 %v5226_v31  ;;  %v3103_v3 = vrot.slane %v3101_v47, 5  ;;  %v5624_v4 = vrot.slane %v3107_v53, 5  ;;  %v3113_v5 = vrot.slane %v3111_v54, 4  ;;  %v3117_v6 = vshll.u32 %v4848_v32, 16  ;;  %305 = vst.msk [vmem:[#allocation2 + $0x40] sm:$0xff] %vm300_vm3, %v5167_v43  ;;  %314 = vst.msk [vmem:[#allocation2 + $0xd0] sm:$0xff] %vm300_vm3, %v5171_v48 }
  0xaf   : > { %3437 = vrot.lane.b32.xlu0 %v4884_v60, %s5225_s18  ;;  %v3086_v9 = vsel %vm5273_vm2, %v3081_v61, %v5581_v21  ;;  %v3091_v10 = vrot.slane %v3090_v62, 4  ;;  %v3122_v17 = vshrl.u32 %v4849_v0, 16  ;;  %306 = vst.msk [vmem:[#allocation2 + $0x50] sm:$0xff] %vm300_vm3, %v5174_v49  ;;  %315 = vst.msk [vmem:[#allocation2 + $0xe0] sm:$0xff] %vm300_vm3, %v5178_v50  ;;  %v3125_v19 = vshll.u32 %v4849_v0, 16  ;;  %v5146_v32 = vld [vmem:[%s5261_s17 + $0x6c] sm:$0xff]  }
  0xb0   : > { %5114 = vmatpush1.bf16.msra.mxu1 %v5591_v29  ;;  %v3104_v14 = vor.u32 %v3103_v3, %v3100_v63  ;;  %v3114_v15 = vor.u32 %v3113_v5, %v5624_v4  ;;  %v3119_v16 = vrot.slane %v3117_v6, 5  ;;  %307 = vst.msk [vmem:[#allocation2 + $0x60] sm:$0xff] %vm300_vm3, %v5181_v57  ;;  %316 = vst.msk [vmem:[#allocation2 + $0xf0] sm:$0xff] %vm300_vm3, %v5185_v58  ;;  %v3131_v20 = vshll.u32 %v4850_v1, 16  ;;  %v4854_v38 = vld [vmem:[%s5261_s17 + $0x68] sm:$0x1] }
  0xb1   : > { %308 = vst.msk [vmem:[#allocation2 + $0x70] sm:$0xff] %vm300_vm3, %v5188_v59  ;;  %v3096_v18 = vsel %vm5273_vm2, %v3091_v10, %v5612_v52  ;;  %2375 = vmatpush1.bf16.msra.mxu0 %v5591_v29  ;;  %5103 = vmatprep.subr.bf16.mxu1 %v5226_v31  ;;  %v3135_v21 = vshrl.u32 %v4850_v1, 16  ;;  %v3124_v27 = vrot.slane %v3122_v17, 4  ;;  %v3127_v28 = vrot.slane %v3125_v19, 5  ;;  %v5155_v42 = vld [vmem:[%s5261_s17 + $0x18] sm:$0xff]   ;;  %v5158_v49 = vld [vmem:[%s5261_s17 + $0x84] sm:$0xff]  }
  0xb2   : > { %857 = vst.msk [vmem:[#allocation2 + $0x80] sm:$0xff] %vm848_vm4, %v5530_v23  ;;  %849 = vst.msk [vmem:[#allocation2] sm:$0xff] %vm848_vm4, %v5552_v56  ;;  %v4885_v24 = vcombine.low %v3086_v9, %v3096_v18  ;;  %2376 = vmatprep.subr.bf16.mxu0 %v5226_v31  ;;  %v5139_v23 = vld [vmem:[%s7162_s1 + $0x90] sm:$0xff]   ;;  %v3105_v56 = vrot.slane %v3104_v14, 4  ;;  %v3115_v25 = vrot.slane %v3114_v15, 4  ;;  %v5678_v29 = vrot.slane %v3131_v20, 5 }
  0xb3   : > { %858 = vst.msk [vmem:[#allocation2 + $0x90] sm:$0xff] %vm848_vm4, %v5542_v40  ;;  %850 = vst.msk [vmem:[#allocation2 + $0x10] sm:$0xff] %vm848_vm4, %v5572_v13  ;;  %v5676_v40 = vpop.permute.xlu1 %1855  ;;  %v3137_v13 = vrot.slane %v3135_v21, 4  ;;  %v3141_v30 = vshll.u32 %v5627_v7, 16  ;;  %v805_v35 = vpop.permute.xlu0 %804  ;;  %v3146_v39 = vshrl.u32 %v5637_v12, 16  ;;  %v3149_v41 = vshll.u32 %v5637_v12, 16 }
  0xb4   : > { %859 = vst.msk [vmem:[#allocation2 + $0xa0] sm:$0xff] %vm848_vm4, %v821_v2  ;;  %3439 = vrot.lane.b32.xlu1 %v4885_v24, %s5225_s18  ;;  %5115 = vmatpush1.bf16.msra.mxu1 %v5138_v11  ;;  %v3110_v36 = vsel %vm5273_vm2, %v3105_v56, %v5624_v4  ;;  %v3120_v37 = vsel %vm5273_vm2, %v3115_v25, %v3119_v16  ;;  %851 = vst.msk [vmem:[#allocation2 + $0x20] sm:$0xff] %vm848_vm4, %v805_v35  ;;  %v5698_v47 = vld [vmem:[%s5261_s17 + $0x60] sm:$0xe]  ;;  %v5701_v48 = vld [vmem:[%s5261_s17 + $0x64] sm:$0xf] }
  0xb5   : > { %2377 = vmatpush1.bf16.msra.mxu0 %v5138_v11  ;;  %5104 = vmatprep.subr.bf16.mxu1 %v5226_v31  ;;  %v4886_v43 = vcombine.low %v3110_v36, %v3120_v37  ;;  %v3128_v44 = vor.u32 %v3127_v28, %v3124_v27  ;;  %v3138_v45 = vor.u32 %v3137_v13, %v5678_v29  ;;  %v3143_v46 = vrot.slane %v3141_v30, 5  ;;  %v5708_v50 = vld [vmem:[%s7162_s1 + $0x98] sm:$0xff]   ;;  %v5711_v57 = vld [vmem:[%s5261_s17 + $0x68] sm:$0x1]  ;;  %v5714_v58 = vld [vmem:[%s5261_s17 + $0x6c] sm:$0xe] }
  0xb6   : > { %2378 = vmatprep.subr.bf16.mxu0 %v5226_v31  ;;  %v3148_v51 = vrot.slane %v3146_v39, 4  ;;  %v3151_v52 = vrot.slane %v3149_v41, 5  ;;  %v3155_v53 = vshll.u32 %v4853_v22, 16  ;;  %v3159_v54 = vshrl.u32 %v4853_v22, 16  ;;  %v5717_v59 = vld [vmem:[%s5261_s17 + $0x70] sm:$0xf] }
  0xb7   : > { %v5162_v60 = vld [vmem:[%s5261_s17 + $0x24] sm:$0xff]   ;;  %3441 = vrot.lane.b32.xlu0 %v4886_v43, %s5225_s18  ;;  %v3129_v61 = vrot.slane %v3128_v44, 4  ;;  %v3139_v62 = vrot.slane %v3138_v45, 4  ;;  %v3165_v63 = vshll.u32 %v4854_v38, 16  ;;  %v5722_v0 = vld [vmem:[%s5261_s17 + $0x74] sm:$0x1]  ;;  %v1840_v7 = vpop.permute.xlu1 %1839 }
  0xb8   : > { %5116 = vmatpush1.bf16.msra.mxu1 %v5139_v23  ;;  %v3152_v2 = vor.u32 %v3151_v52, %v3148_v51  ;;  %v3157_v3 = vrot.slane %v3155_v53, 5  ;;  %v3161_v4 = vrot.slane %v3159_v54, 4  ;;  %v4490_v14 = vrot.slane %v5698_v47, 9  ;;  %v5745_v15 = vld [vmem:[%s5261_s17 + $0x78] sm:$0xe]  ;;  %v5145_v43 = vld [vmem:[%s7162_s1 + $0xa8] sm:$0xff]  }
  0xb9   : > { %v5724_v1 = vld [vmem:[#allocation2 + $0x80] sm:$0xff]  ;;  %2379 = vmatpush1.bf16.msra.mxu0 %v5139_v23  ;;  %5105 = vmatprep.subr.bf16.mxu1 %v5226_v31  ;;  %v3134_v9 = vsel %vm5273_vm2, %v3129_v61, %v5678_v29  ;;  %v3144_v10 = vsel %vm5273_vm2, %v3139_v62, %v3143_v46  ;;  %v3167_v11 = vrot.slane %v3165_v63, 5  ;;  %v1022_v21 = vrot.slane %v5701_v48, 5  ;;  %v5759_v22 = vld [vmem:[%s5261_s17 + $0x7c] sm:$0xf] }
  0xba   : > { %v5726_v5 = vld [vmem:[#allocation2] sm:$0xff]  ;;  %v5728_v6 = vld [vmem:[#allocation2 + $0x90] sm:$0xff]  ;;  %1349 = vst.msk [vmem:[#allocation2 + $0x80] sm:$0xff] %vm300_vm3, %v5146_v32  ;;  %2380 = vmatprep.subr.bf16.mxu0 %v5226_v31  ;;  %v4887_v18 = vcombine.low %v3134_v9, %v3144_v10  ;;  %v3153_v19 = vrot.slane %v3152_v2, 4  ;;  %v3162_v20 = vor.u32 %v3161_v4, %v3157_v3  ;;  %v5764_v24 = vld [vmem:[%s5261_s17 + $0x6c] sm:$0xf] }
  0xbb   : > { %1341 = vst.msk [vmem:[#allocation2] sm:$0xff] %vm300_vm3, %v5149_v33  ;;  %1350 = vst.msk [vmem:[#allocation2 + $0x90] sm:$0xff] %vm300_vm3, %v5152_v34  ;;  %v5748_v16 = vld [vmem:[#allocation2 + $0x10] sm:$0xff]  ;;  %v5750_v17 = vld [vmem:[#allocation2 + $0xa0] sm:$0xff]  ;;  %v4682_v23 = vrot.slane %v5714_v58, 9  ;;  %v2055_v56 = vrot.slane %v5717_v59, 5  ;;  %v1023_v30 = vsel %vm5739_vm7, %v4490_v14, %v1022_v21 }
  0xbc   : > { %1893 = vst.msk [vmem:[#allocation2 + $0x80] sm:$0xff] %vm848_vm4, %v5567_v8  ;;  %1885 = vst.msk [vmem:[#allocation2] sm:$0xff] %vm848_vm4, %v5614_v55  ;;  %v5142_v8 = vld [vmem:[%s7162_s1 + $0xa0] sm:$0xff]   ;;  %v1025_v55 = vrot.slane %v5711_v57, 5  ;;  %v2058_v25 = vrot.slane %v5722_v0, 5  ;;  %5117 = vmatpush1.bf16.msra.mxu1 %v5708_v50  ;;  %3443 = vrot.lane.b32.xlu1 %v4887_v18, %s5225_s18  ;;  %v3158_v29 = vsel %vm5273_vm2, %v3153_v19, %v3157_v3  ;;  %v3163_v13 = vrot.slane %v3162_v20, 4 }
  0xbd   : > { %1894 = vst.msk [vmem:[#allocation2 + $0x90] sm:$0xff] %vm848_vm4, %v5676_v40  ;;  %v5776_v27 = vld [vmem:[%s5261_s17 + $0x80] sm:$0x1]  ;;  %v823_v40 = vpop.permute.xlu0 %822  ;;  %v1024_v32 = vrot.slane %v1022_v21, 4  ;;  %v4856_v33 = vld [vmem:[%s5261_s17 + $0x70] sm:$0xf]  ;;  %2381 = vmatpush1.bf16.msra.mxu0 %v5708_v50  ;;  %5106 = vmatprep.subr.bf16.mxu1 %v5226_v31  ;;  %v5807_v46 = vsel %vm5739_vm7, %v4682_v23, %v2055_v56 }
  0xbe   : > { %1342 = vst.msk [vmem:[#allocation2 + $0x10] sm:$0xff] %vm300_vm3, %v5155_v42  ;;  %1351 = vst.msk [vmem:[#allocation2 + $0xa0] sm:$0xff] %vm300_vm3, %v5158_v49  ;;  %v5779_v28 = vld [vmem:[#allocation2 + $0x20] sm:$0xff]  ;;  %v4857_v34 = vld [vmem:[%s5261_s17 + $0x74] sm:$0x1]  ;;  %v2057_v35 = vrot.slane %v2055_v56, 4  ;;  %2382 = vmatprep.subr.bf16.mxu0 %v5226_v31  ;;  %v3168_v37 = vsel %vm5273_vm2, %v3163_v13, %v3167_v11 }
  0xbf   : > { %1886 = vst.msk [vmem:[#allocation2 + $0x10] sm:$0xff] %vm848_vm4, %v1840_v7  ;;  %860 = vst.msk [vmem:[#allocation2 + $0xb0] sm:$0xff] %vm848_vm4, %v823_v40  ;;  %v865_v36 = vld [vmem:[%s5261_s17] sm:$0xe]  ;;  %v1026_v38 = vsel %vm5739_vm7, %v1024_v32, %v1025_v55  ;;  %v4954_v39 = vrot.slane %v5745_v15, 9  ;;  %v3170_v41 = vshrl.u32 %v5764_v24, 16  ;;  %v4888_v44 = vcombine.low %v3158_v29, %v3168_v37 }
  0xc0   : > { %1343 = vst.msk [vmem:[#allocation2 + $0x20] sm:$0xff] %vm300_vm3, %v5162_v60  ;;  %v866_v42 = vld [vmem:[%s5261_s17 + $0x4] sm:$0xf]  ;;  %v4506_v45 = vcombine.low %v1023_v30, %v1026_v38  ;;  %v3651_v47 = vrot.slane %v5759_v22, 5  ;;  %v867_v48 = vld [vmem:[%s5261_s17 + $0x8] sm:$0x1]  ;;  %5118 = vmatpush1.bf16.msra.mxu1 %v5142_v8  ;;  %v5813_v49 = vsel %vm5739_vm7, %v2057_v35, %v2058_v25  ;;  %v1858_v58 = vpop.permute.xlu1 %1857 }
  0xc1   : > { %v3654_v50 = vrot.slane %v5776_v27, 5  ;;  %v3172_v51 = vrot.slane %v3170_v41, 4  ;;  %v3173_v52 = vshll.u32 %v5764_v24, 16  ;;  %v5818_v53 = vld [vmem:[%s5261_s17 + $0xc] sm:$0xe]  ;;  %v5165_v59 = vld [vmem:[%s5261_s17 + $0x90] sm:$0xff]   ;;  %2383 = vmatpush1.bf16.msra.mxu0 %v5142_v8  ;;  %5107 = vmatprep.subr.bf16.mxu1 %v5226_v31  ;;  %v4698_v14 = vcombine.low %v5807_v46, %v5813_v49 }
  0xc2   : > { %v5821_v54 = vld [vmem:[%s5261_s17 + $0x10] sm:$0xf]  ;;  %v5824_v57 = vld [vmem:[%s5261_s17 + $0x14] sm:$0x1]  ;;  %1148 = vst.msk [vmem:[#allocation2 + $0x88] sm:$0xff] %vm300_vm3, %v4506_v45  ;;  %v3179_v60 = vshll.u32 %v4856_v33, 16  ;;  %2384 = vmatprep.subr.bf16.mxu0 %v5226_v31  ;;  %3445 = vrot.lane.b32.xlu0 %v4888_v44, %s5225_s18  ;;  %v5843_v4 = vsel %vm5739_vm7, %v4954_v39, %v3651_v47 }
  0xc3   : > { %v3183_v61 = vshrl.u32 %v4856_v33, 16  ;;  %v3189_v62 = vshll.u32 %v4857_v34, 16  ;;  %v4482_v63 = vrot.slane %v865_v36, 9  ;;  %v5830_v0 = vld [vmem:[%s5261_s17 + $0x18] sm:$0xe]  ;;  %1895 = vst.msk [vmem:[#allocation2 + $0xa0] sm:$0xff] %vm848_vm4, %v1858_v58  ;;  %v807_v21 = vpop.permute.xlu0 %806 }
  0xc4   : > { %v5833_v2 = vld [vmem:[%s5261_s17 + $0x1c] sm:$0xf]  ;;  %v5147_v3 = vld [vmem:[%s7162_s1 + $0xb0] sm:$0xff]   ;;  %v3175_v7 = vrot.slane %v3173_v52, 5  ;;  %v966_v9 = vrot.slane %v866_v42, 5  ;;  %v969_v10 = vrot.slane %v867_v48, 5  ;;  %5119 = vmatpush1.bf16.msra.mxu1 %v5145_v43 }
  0xc5   : > { %v5846_v11 = vld [vmem:[%s5261_s17 + $0x20] sm:$0x1]  ;;  %v3653_v15 = vrot.slane %v3651_v47, 4  ;;  %v3181_v18 = vrot.slane %v3179_v60, 5  ;;  %v3185_v19 = vrot.slane %v3183_v61, 4  ;;  %v3191_v8 = vrot.slane %v3189_v62, 5  ;;  %2385 = vmatpush1.bf16.msra.mxu0 %v5145_v43  ;;  %5108 = vmatprep.subr.bf16.mxu1 %v5226_v31 }
  0xc6   : > { %v892_v20 = vld [vmem:[%s5261_s17 + $0x6c] sm:$0xe]  ;;  %v5851_v22 = vld [vmem:[#allocation2 + $0xb0] sm:$0xff]  ;;  %v3176_v24 = vor.u32 %v3175_v7, %v3172_v51  ;;  %v967_v55 = vsel %vm5739_vm7, %v4482_v63, %v966_v9  ;;  %v968_v23 = vrot.slane %v966_v9, 4  ;;  %852 = vst.msk [vmem:[#allocation2 + $0x30] sm:$0xff] %vm848_vm4, %v807_v21  ;;  %v4674_v29 = vrot.slane %v5818_v53, 9  ;;  %2386 = vmatprep.subr.bf16.mxu0 %v5226_v31 }
  0xc7   : > { %v893_v56 = vld [vmem:[%s5261_s17 + $0x70] sm:$0xf]  ;;  %v5857_v25 = vld [vmem:[%s5261_s17 + $0x74] sm:$0x1]  ;;  %1352 = vst.msk [vmem:[#allocation2 + $0xb0] sm:$0xff] %vm300_vm3, %v5165_v59  ;;  %v3186_v40 = vor.u32 %v3185_v19, %v3181_v18  ;;  %v1999_v13 = vrot.slane %v5821_v54, 5  ;;  %v5884_v45 = vsel %vm5739_vm7, %v3653_v15, %v3654_v50 }
  0xc8   : > { %v2002_v30 = vrot.slane %v5824_v57, 5  ;;  %v3177_v32 = vrot.slane %v3176_v24, 4  ;;  %v970_v33 = vsel %vm5739_vm7, %v968_v23, %v969_v10  ;;  %v4946_v34 = vrot.slane %v5830_v0, 9  ;;  %v5871_v36 = vld [vmem:[%s5261_s17 + $0x78] sm:$0xe]  ;;  %5120 = vmatpush1.bf16.msra.mxu1 %v5147_v3  ;;  %v1842_v51 = vpop.permute.xlu1 %1841  ;;  %v5169_v52 = vld [vmem:[%s5261_s17 + $0x30] sm:$0xff]  }
  0xc9   : > { %v3595_v35 = vrot.slane %v5833_v2, 5  ;;  %v5150_v37 = vld [vmem:[%s7162_s1 + $0xb8] sm:$0xff]   ;;  %v3187_v38 = vrot.slane %v3186_v40, 4  ;;  %v4498_v39 = vcombine.low %v967_v55, %v970_v33  ;;  %v2001_v41 = vrot.slane %v1999_v13, 4  ;;  %v5878_v44 = vld [vmem:[#allocation2 + $0x88] sm:$0xff]  ;;  %2387 = vmatpush1.bf16.msra.mxu0 %v5147_v3  ;;  %5109 = vmatprep.subr.bf16.mxu1 %v5226_v31  ;;  %1887 = vst.msk [vmem:[#allocation2 + $0x20] sm:$0xff] %vm848_vm4, %v1842_v51 }
  0xca   : > { %v3598_v42 = vrot.slane %v5846_v11, 5  ;;  %v4654_v43 = vld [vmem:[%s5261_s17 + $0x7c] sm:$0xf]  ;;  %v3182_v46 = vsel %vm5273_vm2, %v3177_v32, %v3181_v18  ;;  %v4491_v48 = vrot.slane %v892_v20, 9  ;;  %v4655_v49 = vld [vmem:[%s5261_s17 + $0x80] sm:$0x1]  ;;  %v5897_v50 = vsel %vm5739_vm7, %v4674_v29, %v1999_v13  ;;  %2388 = vmatprep.subr.bf16.mxu0 %v5226_v31 }
  0xcb   : > { %v3597_v47 = vrot.slane %v3595_v35, 4  ;;  %2181 = vst.msk [vmem:[#allocation2 + $0x88] sm:$0xff] %vm300_vm3, %v4698_v14  ;;  %v3192_v27 = vsel %vm5273_vm2, %v3187_v38, %v3191_v8  ;;  %1140 = vst.msk [vmem:[#allocation2 + $0x8] sm:$0xff] %vm300_vm3, %v4498_v39  ;;  %v1029_v53 = vrot.slane %v893_v56, 5  ;;  %v1032_v54 = vrot.slane %v5857_v25, 5  ;;  %v5199_v2 = vld [vmem:[%s5261_s17 + $0x18] sm:$0xff]  }
  0xcc   : > { %v4925_v57 = vld [vmem:[%s5261_s17 + $0x84] sm:$0xe]  ;;  %v5902_v58 = vld [vmem:[%s5261_s17 + $0x88] sm:$0xf]  ;;  %v4889_v59 = vcombine.low %v3182_v46, %v3192_v27  ;;  %v2003_v60 = vsel %vm5739_vm7, %v2001_v41, %v2002_v30  ;;  %v5910_v61 = vsel %vm5739_vm7, %v4946_v34, %v3595_v35  ;;  %v4683_v62 = vrot.slane %v5871_v36, 9  ;;  %5121 = vmatpush1.bf16.msra.mxu1 %v5150_v37 }
  0xcd   : > { %v4858_v63 = vld [vmem:[%s5261_s17 + $0x78] sm:$0xf]  ;;  %v4859_v0 = vld [vmem:[%s5261_s17 + $0x7c] sm:$0xf]  ;;  %v5918_v3 = vsel %vm5739_vm7, %v3597_v47, %v3598_v42  ;;  %v5920_v7 = vld [vmem:[#allocation2] sm:$0xff]  ;;  %v1030_v9 = vsel %vm5739_vm7, %v4491_v48, %v1029_v53  ;;  %v1031_v10 = vrot.slane %v1029_v53, 4  ;;  %v4970_v19 = vcombine.low %v5843_v4, %v5884_v45  ;;  %2389 = vmatpush1.bf16.msra.mxu0 %v5150_v37  ;;  %2647 = vmatprep.subr.bf16.mxu1 %v5226_v31  ;;  %v825_v29 = vpop.permute.xlu0 %824 }
  0xce   : > { %v2062_v11 = vrot.slane %v4654_v43, 5  ;;  %v5925_v14 = vld [vmem:[%s5261_s17 + $0x8c] sm:$0x1]  ;;  %v5928_v15 = vld [vmem:[%s5261_s17 + $0x80] sm:$0x1]  ;;  %v5930_v18 = vld [vmem:[#allocation2 + $0x30] sm:$0xff]  ;;  %3447 = vrot.lane.b32.xlu1 %v4889_v59, %s5225_s18  ;;  %v4690_v55 = vcombine.low %v5897_v50, %v2003_v60  ;;  %v4962_v30 = vcombine.low %v5910_v61, %v5918_v3  ;;  %3962 = vmatprep.subr.bf16.mxu0 %v5226_v31 }
  0xcf   : > { %v2065_v20 = vrot.slane %v4655_v49, 5  ;;  %v4955_v21 = vrot.slane %v4925_v57, 9  ;;  %v3658_v24 = vrot.slane %v5902_v58, 5  ;;  %v5937_v8 = vld [vmem:[%s5261_s17 + $0xc] sm:$0xe]  ;;  %1344 = vst.msk [vmem:[#allocation2 + $0x30] sm:$0xff] %vm300_vm3, %v5169_v52  ;;  %v1033_v4 = vsel %vm5739_vm7, %v1031_v10, %v1032_v54 }
  0xd0   : > { %2937 = vst.msk [vmem:[#allocation2] sm:$0xff] %vm300_vm3, %v5199_v2  ;;  %v2064_v23 = vrot.slane %v2062_v11, 4  ;;  %v3194_v56 = vshrl.u32 %v4858_v63, 16  ;;  %v869_v25 = vld [vmem:[%s5261_s17 + $0x10] sm:$0xf]  ;;  %v5154_v13 = vld [vmem:[%s7162_s1] sm:$0xff]   ;;  %v4507_v32 = vcombine.low %v1030_v9, %v1033_v4  ;;  %v5957_v33 = vsel %vm5739_vm7, %v4683_v62, %v2062_v11  ;;  %v1860_v50 = vpop.permute.xlu1 %1859 }
  0xd1   : > { %v5947_v40 = vld [vmem:[%s5261_s17 + $0x14] sm:$0x1]  ;;  %v3197_v34 = vshll.u32 %v4858_v63, 16  ;;  %v5960_v35 = vld [vmem:[%s5261_s17 + $0x18] sm:$0xe]  ;;  %861 = vst.msk [vmem:[#allocation2 + $0xc0] sm:$0xff] %vm848_vm4, %v825_v29  ;;  %v5978_v47 = vsel %vm5739_vm7, %v4955_v21, %v3658_v24 }
  0xd2   : > { %v5963_v36 = vld [vmem:[%s5261_s17 + $0x1c] sm:$0xf]  ;;  %v2205_v37 = vld [vmem:[#allocation2 + $0x80] sm:$0xff]  ;;  %v5968_v38 = vsel %vm5739_vm7, %v2064_v23, %v2065_v20  ;;  %v3196_v39 = vrot.slane %v3194_v56, 4  ;;  %v3203_v41 = vshll.u32 %v4859_v0, 16  ;;  %v3207_v42 = vshrl.u32 %v4859_v0, 16 }
  0xd3   : > { %v5971_v43 = vld [vmem:[%s5261_s17 + $0x20] sm:$0x1]  ;;  %v2206_v45 = vld [vmem:[#allocation2 + $0x88] sm:$0xff]  ;;  %1149 = vst.msk [vmem:[#allocation2 + $0x98] sm:$0xff] %vm300_vm3, %v4507_v32  ;;  %v3661_v48 = vrot.slane %v5925_v14, 5  ;;  %v3199_v49 = vrot.slane %v3197_v34, 5  ;;  %v4699_v62 = vcombine.low %v5957_v33, %v5968_v38 }
  0xd4   : > { %v5973_v46 = vld [vmem:[#allocation2 + $0x8] sm:$0xff]  ;;  %v3213_v51 = vshll.u32 %v5928_v15, 16  ;;  %v5983_v52 = vld [vmem:[%s5261_s17 + $0x24] sm:$0xe]  ;;  %4750 = vmatprep.mubr.msk.bf16.mxu1 %vm300_vm3, %v2206_v45  ;;  %3777 = vst.msk [vmem:[#allocation2 + $0x88] sm:$0xff] %vm300_vm3, %v4970_v19  ;;  %v3660_v53 = vrot.slane %v3658_v24, 4 }
  0xd5   : > { %v5986_v27 = vld [vmem:[%s5261_s17 + $0x28] sm:$0xf]  ;;  %2173 = vst.msk [vmem:[#allocation2 + $0x8] sm:$0xff] %vm300_vm3, %v4690_v55  ;;  %v3205_v57 = vrot.slane %v3203_v41, 5  ;;  %v3209_v58 = vrot.slane %v3207_v42, 4  ;;  %v4483_v59 = vrot.slane %v5937_v8, 9  ;;  %2463 = vmatmul.mubr.bf16.vlgmr.msra.gmra.mrb[0].mxu1 %v2205_v37  ;;  %v3200_v63 = vor.u32 %v3199_v49, %v3196_v39 }
  0xd6   : > { %v5159_v54 = vld [vmem:[%s7162_s1 + $0x8] sm:$0xff]   ;;  %1896 = vst.msk [vmem:[#allocation2 + $0xb0] sm:$0xff] %vm848_vm4, %v1860_v50  ;;  %v973_v0 = vrot.slane %v869_v25, 5  ;;  %v976_v2 = vrot.slane %v5947_v40, 5  ;;  %v6003_v9 = vld [vmem:[%s5261_s17 + $0x78] sm:$0xe]  ;;  %2648 = vmatpush1.bf16.msra.mxu1 %v5154_v13 }
  0xd7   : > { %v5996_v60 = vld [vmem:[%s5261_s17 + $0x2c] sm:$0x1]  ;;  %v5172_v10 = vld [vmem:[%s5261_s17 + $0x9c] sm:$0xff]   ;;  %v5202_v11 = vld [vmem:[%s5261_s17 + $0x24] sm:$0xff]   ;;  %v3210_v14 = vor.u32 %v3209_v58, %v3205_v57  ;;  %v3215_v15 = vrot.slane %v3213_v51, 5  ;;  %v4675_v19 = vrot.slane %v5960_v35, 9  ;;  %2649 = vmatprep.subr.bf16.mxu1 %v5226_v31  ;;  %v6054_v51 = vsel %vm5739_vm7, %v3660_v53, %v3661_v48 }
  0xd8   : > { %v2006_v20 = vrot.slane %v5963_v36, 5  ;;  %v6009_v21 = vld [vmem:[#allocation2 + $0x10] sm:$0xff]  ;;  %v896_v24 = vld [vmem:[%s5261_s17 + $0x7c] sm:$0xf]  ;;  %v3201_v8 = vrot.slane %v3200_v63, 4  ;;  %v974_v55 = vsel %vm5739_vm7, %v4483_v59, %v973_v0  ;;  %v975_v4 = vrot.slane %v973_v0, 4  ;;  %v809_v36 = vpop.permute.xlu0 %808  ;;  %v1844_v0 = vpop.permute.xlu1 %1843 }
  0xd9   : > { %v2009_v23 = vrot.slane %v5971_v43, 5  ;;  %v6017_v56 = vld [vmem:[%s5261_s17 + $0x80] sm:$0x1]  ;;  %v6020_v25 = vld [vmem:[%s5261_s17 + $0x84] sm:$0xe]  ;;  %2938 = vst.msk [vmem:[#allocation2 + $0x10] sm:$0xff] %vm300_vm3, %v5202_v11 }
  0xda   : > { %v6023_v40 = vld [vmem:[%s5261_s17 + $0x88] sm:$0xf]  ;;  %v5156_v29 = vld [vmem:[%s7162_s1 + $0xc0] sm:$0xff]   ;;  %v3211_v13 = vrot.slane %v3210_v14, 4  ;;  %v2008_v32 = vrot.slane %v2006_v20, 4  ;;  %v4947_v33 = vrot.slane %v5983_v52, 9  ;;  %v3206_v38 = vsel %vm5273_vm2, %v3201_v8, %v3205_v57  ;;  %2650 = vmatpush1.bf16.msra.mxu1 %v5159_v54 }
  0xdb   : > { %v3602_v34 = vrot.slane %v5986_v27, 5  ;;  %v5163_v35 = vld [vmem:[%s7162_s1 + $0x10] sm:$0xff]   ;;  %v6034_v37 = vld [vmem:[#allocation2 + $0xc0] sm:$0xff]  ;;  %v977_v39 = vsel %vm5739_vm7, %v975_v4, %v976_v2  ;;  %v3605_v41 = vrot.slane %v5996_v60, 5  ;;  %v4492_v42 = vrot.slane %v6003_v9, 9  ;;  %853 = vst.msk [vmem:[#allocation2 + $0x40] sm:$0xff] %vm848_vm4, %v809_v36  ;;  %2651 = vmatprep.subr.bf16.mxu1 %v5226_v31 }
  0xdc   : > { %v6043_v43 = vld [vmem:[%s5261_s17 + $0x8c] sm:$0x1]  ;;  %v6046_v45 = vld [vmem:[%s5261_s17 + $0x90] sm:$0xe]  ;;  %1353 = vst.msk [vmem:[#allocation2 + $0xc0] sm:$0xff] %vm300_vm3, %v5172_v10  ;;  %v6050_v49 = vld [vmem:[#allocation2 + $0x98] sm:$0xff]  ;;  %v3216_v52 = vsel %vm5273_vm2, %v3211_v13, %v3215_v15  ;;  %v4499_v27 = vcombine.low %v974_v55, %v977_v39  ;;  %v6060_v50 = vsel %vm5739_vm7, %v4675_v19, %v2006_v20  ;;  %v6069_v48 = vsel %vm5739_vm7, %v2008_v32, %v2009_v23 }
  0xdd   : > { %v6063_v57 = vld [vmem:[%s5261_s17 + $0x94] sm:$0xf]  ;;  %v4861_v58 = vld [vmem:[%s5261_s17 + $0x84] sm:$0xf]  ;;  %v2190_v59 = vld [vmem:[#allocation2 + $0x8] sm:$0xff]  ;;  %2182 = vst.msk [vmem:[#allocation2 + $0x98] sm:$0xff] %vm300_vm3, %v4699_v62  ;;  %v4890_v60 = vcombine.low %v3206_v38, %v3216_v52  ;;  %v6086_v2 = vsel %vm5739_vm7, %v4947_v33, %v3602_v34  ;;  %v4691_v8 = vcombine.low %v6060_v50, %v6069_v48 }
  0xde   : > { %v3604_v53 = vrot.slane %v3602_v34, 4  ;;  %v1036_v54 = vrot.slane %v896_v24, 5  ;;  %v6073_v63 = vld [vmem:[%s5261_s17 + $0x98] sm:$0x1]  ;;  %4742 = vmatprep.mubr.msk.bf16.mxu0 %vm300_vm3, %v2190_v59  ;;  %3769 = vst.msk [vmem:[#allocation2 + $0x8] sm:$0xff] %vm300_vm3, %v4962_v30  ;;  %v5161_v62 = vld [vmem:[%s7162_s1 + $0xc8] sm:$0xff]   ;;  %2652 = vmatpush1.bf16.msra.mxu1 %v5163_v35 }
  0xdf   : > { %1141 = vst.msk [vmem:[#allocation2 + $0x18] sm:$0xff] %vm300_vm3, %v4499_v27  ;;  %v1039_v9 = vrot.slane %v6017_v56, 5  ;;  %v4684_v10 = vrot.slane %v6020_v25, 9  ;;  %v2069_v61 = vrot.slane %v6023_v40, 5  ;;  %v6092_v3 = vld [vmem:[%s5261_s17 + $0x88] sm:$0xf]  ;;  %2399 = vmatmul.mubr.bf16.vlgmr.msra.gmra.mrb[0].mxu0 %v5920_v7  ;;  %3449 = vrot.lane.b32.xlu0 %v4890_v60, %s5225_s18  ;;  %v4971_v7 = vcombine.low %v5978_v47, %v6054_v51 }
  0xe0   : > { %1888 = vst.msk [vmem:[#allocation2 + $0x30] sm:$0xff] %vm848_vm4, %v1844_v0  ;;  %v5176_v30 = vld [vmem:[%s5261_s17 + $0x3c] sm:$0xff]   ;;  %v6100_v11 = vsel %vm5739_vm7, %v3604_v53, %v3605_v41  ;;  %v1037_v14 = vsel %vm5739_vm7, %v4492_v42, %v1036_v54  ;;  %v1038_v15 = vrot.slane %v1036_v54, 4  ;;  %v2072_v19 = vrot.slane %v6043_v43, 5  ;;  %v6106_v20 = vld [vmem:[%s5261_s17 + $0x8c] sm:$0x1]  ;;  %3963 = vmatpush1.bf16.msra.mxu0 %v5156_v29  ;;  %2653 = vmatprep.subr.bf16.mxu1 %v5226_v31  ;;  %v827_v43 = vpop.permute.xlu0 %826 }
  0xe1   : > { %v6109_v24 = vld [vmem:[%s5261_s17 + $0x18] sm:$0xe]  ;;  %v2071_v55 = vrot.slane %v2069_v61, 4  ;;  %v4956_v4 = vrot.slane %v6046_v45, 9  ;;  %v872_v56 = vld [vmem:[%s5261_s17 + $0x1c] sm:$0xf]  ;;  %3964 = vmatprep.subr.bf16.mxu0 %v5226_v31  ;;  %v4963_v35 = vcombine.low %v6086_v2, %v6100_v11  ;;  %v6138_v38 = vsel %vm5739_vm7, %v4684_v10, %v2069_v61 }
  0xe2   : > { %v5168_v23 = vld [vmem:[%s7162_s1 + $0x18] sm:$0xff]   ;;  %v6120_v25 = vld [vmem:[#allocation2 + $0x20] sm:$0xff]  ;;  %v1040_v47 = vsel %vm5739_vm7, %v1038_v15, %v1039_v9  ;;  %v3665_v40 = vrot.slane %v6063_v57, 5  ;;  %v3218_v29 = vshrl.u32 %v4861_v58, 16  ;;  %v3221_v13 = vshll.u32 %v4861_v58, 16  ;;  %v5203_v34 = vld [vmem:[%s5261_s17 + $0x30] sm:$0xff]  }
  0xe3   : > { %v6128_v32 = vld [vmem:[%s5261_s17 + $0x20] sm:$0x1]  ;;  %v6131_v33 = vld [vmem:[%s5261_s17 + $0x24] sm:$0xe]  ;;  %v4508_v36 = vcombine.low %v1037_v14, %v1040_v47  ;;  %v3668_v39 = vrot.slane %v6073_v63, 5  ;;  %v5166_v41 = vld [vmem:[%s7162_s1 + $0xd0] sm:$0xff]   ;;  %v6154_v27 = vsel %vm5739_vm7, %v2071_v55, %v2072_v19  ;;  %2654 = vmatpush1.bf16.msra.mxu1 %v5168_v23  ;;  %v1862_v47 = vpop.permute.xlu1 %1861 }
  0xe4   : > { %v6145_v42 = vld [vmem:[%s5261_s17 + $0x28] sm:$0xf]  ;;  %v5173_v45 = vld [vmem:[%s7162_s1 + $0x20] sm:$0xff]   ;;  %v2207_v52 = vld [vmem:[#allocation2 + $0x90] sm:$0xff]  ;;  %v3220_v50 = vrot.slane %v3218_v29, 4  ;;  %v3223_v57 = vrot.slane %v3221_v13, 5  ;;  %3965 = vmatpush1.bf16.msra.mxu0 %v5161_v62  ;;  %v6166_v48 = vsel %vm5739_vm7, %v4956_v4, %v3665_v40  ;;  %v4700_v14 = vcombine.low %v6138_v38, %v6154_v27  ;;  %2655 = vmatprep.subr.bf16.mxu1 %v5226_v31 }
  0xe5   : > { %v6150_v51 = vld [vmem:[#allocation2 + $0x40] sm:$0xff]  ;;  %v3227_v58 = vshll.u32 %v6092_v3, 16  ;;  %v6158_v59 = vld [vmem:[%s5261_s17 + $0x2c] sm:$0x1]  ;;  %862 = vst.msk [vmem:[#allocation2 + $0xd0] sm:$0xff] %vm848_vm4, %v827_v43  ;;  %v2208_v60 = vld [vmem:[#allocation2 + $0x98] sm:$0xff]  ;;  %3966 = vmatprep.subr.bf16.mxu0 %v5226_v31 }
  0xe6   : > { %1345 = vst.msk [vmem:[#allocation2 + $0x40] sm:$0xff] %vm300_vm3, %v5176_v30  ;;  %2939 = vst.msk [vmem:[#allocation2 + $0x20] sm:$0xff] %vm300_vm3, %v5203_v34  ;;  %v3231_v53 = vshrl.u32 %v6092_v3, 16  ;;  %v3237_v54 = vshll.u32 %v6106_v20, 16  ;;  %v4484_v63 = vrot.slane %v6109_v24, 9  ;;  %4751 = vmatprep.mubr.msk.bf16.mxu1 %vm300_vm3, %v2208_v60  ;;  %v6176_v62 = vld [vmem:[#allocation2 + $0x18] sm:$0xff]  ;;  %v3224_v10 = vor.u32 %v3223_v57, %v3220_v50 }
  0xe7   : > { %1150 = vst.msk [vmem:[#allocation2 + $0xa8] sm:$0xff] %vm300_vm3, %v4508_v36  ;;  %v6172_v0 = vld [vmem:[%s5261_s17 + $0x30] sm:$0xe]  ;;  %3778 = vst.msk [vmem:[#allocation2 + $0x98] sm:$0xff] %vm300_vm3, %v4971_v7  ;;  %v3667_v9 = vrot.slane %v3665_v40, 4  ;;  %v6179_v61 = vrot.slane %v3227_v58, 5  ;;  %2471 = vmatmul.mubr.bf16.gmra.mrb[4].mxu1 %v2207_v52 }
  0xe8   : > { %v980_v3 = vrot.slane %v872_v56, 5  ;;  %v6182_v30 = vld [vmem:[%s5261_s17 + $0x34] sm:$0xf]  ;;  %2174 = vst.msk [vmem:[#allocation2 + $0x18] sm:$0xff] %vm300_vm3, %v4691_v8  ;;  %v3233_v15 = vrot.slane %v3231_v53, 4  ;;  %v983_v19 = vrot.slane %v6128_v32, 5  ;;  %3967 = vmatpush1.bf16.msra.mxu0 %v5166_v41  ;;  %2656 = vmatpush1.bf16.msra.mxu1 %v5173_v45 }
  0xe9   : > { %v4676_v20 = vrot.slane %v6131_v33, 9  ;;  %v6190_v24 = vld [vmem:[%s5261_s17 + $0x38] sm:$0x1]  ;;  %v898_v55 = vld [vmem:[%s5261_s17 + $0x84] sm:$0xe]  ;;  %v3225_v8 = vrot.slane %v3224_v10, 4  ;;  %3968 = vmatprep.subr.bf16.mxu0 %v5226_v31  ;;  %2657 = vmatprep.subr.bf16.mxu1 %v5226_v31 }
  0xea   : > { %v5170_v7 = vld [vmem:[%s7162_s1 + $0xd8] sm:$0xff]   ;;  %v981_v4 = vsel %vm5739_vm7, %v4484_v63, %v980_v3  ;;  %v982_v23 = vrot.slane %v980_v3, 4  ;;  %v2013_v56 = vrot.slane %v6145_v42, 5  ;;  %v899_v40 = vld [vmem:[%s5261_s17 + $0x88] sm:$0xf]  ;;  %v3234_v13 = vor.u32 %v3233_v15, %v6179_v61  ;;  %1897 = vst.msk [vmem:[#allocation2 + $0xc0] sm:$0xff] %vm848_vm4, %v1862_v47 }
  0xeb   : > { %v5177_v29 = vld [vmem:[%s7162_s1 + $0x28] sm:$0xff]   ;;  %v3239_v32 = vrot.slane %v3237_v54, 5  ;;  %v2016_v33 = vrot.slane %v6158_v59, 5  ;;  %v3609_v34 = vrot.slane %v6182_v30, 5  ;;  %v5204_v38 = vld [vmem:[%s5261_s17 + $0x3c] sm:$0xff]   ;;  %v6212_v42 = vsel %vm5739_vm7, %v3667_v9, %v3668_v39  ;;  %v6221_v50 = vld [vmem:[#allocation2 + $0x30] sm:$0xff]  ;;  %v811_v54 = vpop.permute.xlu0 %810 }
  0xec   : > { %v900_v36 = vld [vmem:[%s5261_s17 + $0x8c] sm:$0x1]  ;;  %v984_v41 = vsel %vm5739_vm7, %v982_v23, %v983_v19  ;;  %v2015_v43 = vrot.slane %v2013_v56, 4  ;;  %v4948_v52 = vrot.slane %v6172_v0, 9  ;;  %v6219_v27 = vld [vmem:[%s5261_s17 + $0x90] sm:$0xe]  ;;  %v3230_v39 = vsel %vm5273_vm2, %v3225_v8, %v6179_v61  ;;  %3969 = vmatpush1.bf16.msra.mxu0 %v5170_v7  ;;  %2658 = vmatpush1.bf16.msra.mxu1 %v5177_v29 }
  0xed   : > { %v5179_v45 = vld [vmem:[%s5261_s17 + $0xa8] sm:$0xff]   ;;  %v3235_v57 = vrot.slane %v3234_v13, 4  ;;  %v4500_v58 = vcombine.low %v981_v4, %v984_v41  ;;  %v3611_v59 = vrot.slane %v3609_v34, 4  ;;  %v6229_v60 = vld [vmem:[%s5261_s17 + $0x94] sm:$0xf]  ;;  %v5175_v63 = vld [vmem:[%s7162_s1 + $0xe0] sm:$0xff]   ;;  %v6245_v10 = vsel %vm5739_vm7, %v4676_v20, %v2013_v56  ;;  %3970 = vmatprep.subr.bf16.mxu0 %v5226_v31  ;;  %2659 = vmatprep.subr.bf16.mxu1 %v5226_v31 }
  0xee   : > { %v6232_v53 = vld [vmem:[%s5261_s17 + $0x98] sm:$0x1]  ;;  %v5182_v0 = vld [vmem:[%s7162_s1 + $0x30] sm:$0xff]   ;;  %2940 = vst.msk [vmem:[#allocation2 + $0x30] sm:$0xff] %vm300_vm3, %v5204_v38  ;;  %v6241_v9 = vld [vmem:[#allocation2 + $0xa8] sm:$0xff]  ;;  %v3612_v61 = vrot.slane %v6190_v24, 5  ;;  %v6259_v20 = vsel %vm5739_vm7, %v2015_v43, %v2016_v33  ;;  %v6279_v7 = vsel %vm5739_vm7, %v4948_v52, %v3609_v34  ;;  %v1846_v43 = vpop.permute.xlu1 %1845 }
  0xef   : > { %v4493_v3 = vrot.slane %v898_v55, 9  ;;  %v1043_v30 = vrot.slane %v899_v40, 5  ;;  %v6249_v15 = vld [vmem:[%s5261_s17 + $0xa0] sm:$0xf]  ;;  %v4864_v19 = vld [vmem:[%s5261_s17 + $0x90] sm:$0xf]  ;;  %v3240_v8 = vsel %vm5273_vm2, %v3235_v57, %v3239_v32  ;;  %v4692_v34 = vcombine.low %v6245_v10, %v6259_v20 }
  0xf0   : > { %854 = vst.msk [vmem:[#allocation2 + $0x50] sm:$0xff] %vm848_vm4, %v811_v54  ;;  %v1046_v24 = vrot.slane %v900_v36, 5  ;;  %v4685_v55 = vrot.slane %v6219_v27, 9  ;;  %v6263_v4 = vld [vmem:[%s5261_s17 + $0x94] sm:$0xf]  ;;  %v2192_v23 = vld [vmem:[#allocation2 + $0x18] sm:$0xff]  ;;  %v6283_v29 = vsel %vm5739_vm7, %v3611_v59, %v3612_v61  ;;  %3971 = vmatpush1.bf16.msra.mxu0 %v5175_v63  ;;  %2660 = vmatpush1.bf16.msra.mxu1 %v5182_v0 }
  0xf1   : > { %2183 = vst.msk [vmem:[#allocation2 + $0xa8] sm:$0xff] %vm300_vm3, %v4700_v14  ;;  %1142 = vst.msk [vmem:[#allocation2 + $0x28] sm:$0xff] %vm300_vm3, %v4500_v58  ;;  %v4891_v14 = vcombine.low %v3230_v39, %v3240_v8  ;;  %v1044_v56 = vsel %vm5739_vm7, %v4493_v3, %v1043_v30  ;;  %v1045_v47 = vrot.slane %v1043_v30, 4  ;;  %v6268_v40 = vld [vmem:[%s5261_s17 + $0x98] sm:$0x1]  ;;  %4743 = vmatprep.mubr.msk.bf16.mxu0 %vm300_vm3, %v2192_v23  ;;  %v2076_v13 = vrot.slane %v6229_v60, 5 }
  0xf2   : > { %3770 = vst.msk [vmem:[#allocation2 + $0x18] sm:$0xff] %vm300_vm3, %v4963_v35  ;;  %v2079_v32 = vrot.slane %v6232_v53, 5  ;;  %v6288_v33 = vld [vmem:[%s5261_s17 + $0x9c] sm:$0xe]  ;;  %v6291_v36 = vld [vmem:[%s5261_s17 + $0xa4] sm:$0x1]  ;;  %2407 = vmatmul.mubr.bf16.gmra.mrb[4].mxu0 %v6009_v21  ;;  %v4972_v35 = vcombine.low %v6166_v48, %v6212_v42  ;;  %v4964_v60 = vcombine.low %v6279_v7, %v6283_v29  ;;  %3972 = vmatprep.subr.bf16.mxu0 %v5226_v31 }
  0xf3   : > { %v6293_v2 = vld [vmem:[#allocation2 + $0xd0] sm:$0xff]  ;;  %v5180_v11 = vld [vmem:[%s7162_s1 + $0xe8] sm:$0xff]   ;;  %3451 = vrot.lane.b32.xlu1 %v4891_v14, %s5225_s18  ;;  %v1047_v38 = vsel %vm5739_vm7, %v1045_v47, %v1046_v24  ;;  %v3242_v41 = vshrl.u32 %v4864_v19, 16  ;;  %v6307_v52 = vld [vmem:[%s5261_s17 + $0x24] sm:$0xe]  ;;  %v2078_v42 = vrot.slane %v2076_v13, 4  ;;  %v6324_v53 = vsel %vm5739_vm7, %v4685_v55, %v2076_v13  ;;  %2661 = vmatprep.subr.bf16.mxu1 %v5226_v31 }
  0xf4   : > { %1354 = vst.msk [vmem:[#allocation2 + $0xd0] sm:$0xff] %vm300_vm3, %v5179_v45  ;;  %v5183_v21 = vld [vmem:[%s5261_s17 + $0x48] sm:$0xff]   ;;  %v2209_v27 = vld [vmem:[#allocation2 + $0xa0] sm:$0xff]  ;;  %v4509_v48 = vcombine.low %v1044_v56, %v1047_v38  ;;  %v3672_v39 = vrot.slane %v6249_v15, 5  ;;  %v3245_v57 = vshll.u32 %v4864_v19, 16  ;;  %v5187_v45 = vld [vmem:[%s7162_s1 + $0x38] sm:$0xff]   ;;  %v829_v38 = vpop.permute.xlu0 %828  ;;  %3973 = vmatpush1.bf16.msra.mxu0 %v5180_v11 }
  0xf5   : > { %1889 = vst.msk [vmem:[#allocation2 + $0x40] sm:$0xff] %vm848_vm4, %v1846_v43  ;;  %v875_v58 = vld [vmem:[%s5261_s17 + $0x28] sm:$0xf]  ;;  %v6315_v59 = vld [vmem:[%s5261_s17 + $0x2c] sm:$0x1]  ;;  %v3244_v54 = vrot.slane %v3242_v41, 4  ;;  %v6338_v0 = vsel %vm5739_vm7, %v2078_v42, %v2079_v32  ;;  %3974 = vmatprep.subr.bf16.mxu0 %v5226_v31  ;;  %2662 = vmatpush1.bf16.msra.mxu1 %v5187_v45  ;;  %v1864_v45 = vpop.permute.xlu1 %1863 }
  0xf6   : > { %v3251_v63 = vshll.u32 %v6263_v4, 16  ;;  %v6328_v10 = vld [vmem:[%s5261_s17 + $0x30] sm:$0xe]  ;;  %v6331_v61 = vld [vmem:[%s5261_s17 + $0x34] sm:$0xf]  ;;  %1151 = vst.msk [vmem:[#allocation2 + $0xb8] sm:$0xff] %vm300_vm3, %v4509_v48  ;;  %v4701_v47 = vcombine.low %v6324_v53, %v6338_v0  ;;  %2663 = vmatprep.subr.bf16.mxu1 %v5226_v31 }
  0xf7   : > { %v3247_v3 = vrot.slane %v3245_v57, 5  ;;  %v3255_v30 = vshrl.u32 %v6263_v4, 16  ;;  %v3261_v15 = vshll.u32 %v6268_v40, 16  ;;  %v6343_v19 = vld [vmem:[%s5261_s17 + $0x38] sm:$0x1]  ;;  %v6345_v8 = vld [vmem:[#allocation2 + $0x50] sm:$0xff] }
  0xf8   : > { %v5184_v20 = vld [vmem:[%s7162_s1 + $0xf0] sm:$0xff]   ;;  %v2210_v24 = vld [vmem:[#allocation2 + $0xa8] sm:$0xff]  ;;  %v4957_v23 = vrot.slane %v6288_v33, 9  ;;  %v3675_v4 = vrot.slane %v6291_v36, 5  ;;  %v6354_v14 = vrot.slane %v3251_v63, 5  ;;  %v4485_v56 = vrot.slane %v6307_v52, 9 }
  0xf9   : > { %v6350_v55 = vld [vmem:[#allocation2 + $0x28] sm:$0xff]  ;;  %1346 = vst.msk [vmem:[#allocation2 + $0x50] sm:$0xff] %vm300_vm3, %v5183_v21  ;;  %4752 = vmatprep.mubr.msk.bf16.mxu1 %vm300_vm3, %v2210_v24  ;;  %3779 = vst.msk [vmem:[#allocation2 + $0xa8] sm:$0xff] %vm300_vm3, %v4972_v35  ;;  %v3674_v40 = vrot.slane %v3672_v39, 4  ;;  %v3248_v13 = vor.u32 %v3247_v3, %v3244_v54  ;;  %v3257_v32 = vrot.slane %v3255_v30, 4  ;;  %v3263_v35 = vrot.slane %v3261_v15, 5  ;;  %3975 = vmatpush1.bf16.msra.mxu0 %v5184_v20 }
  0xfa   : > { %2175 = vst.msk [vmem:[#allocation2 + $0x28] sm:$0xff] %vm300_vm3, %v4692_v34  ;;  %v6364_v33 = vld [vmem:[%s5261_s17 + $0x3c] sm:$0xe]  ;;  %v6367_v36 = vld [vmem:[%s5261_s17 + $0x40] sm:$0xf]  ;;  %2479 = vmatmul.mubr.bf16.gmra.mrb[8].mxu1 %v2209_v27  ;;  %v987_v34 = vrot.slane %v875_v58, 5  ;;  %v6392_v54 = vsel %vm5739_vm7, %v4957_v23, %v3672_v39  ;;  %3976 = vmatprep.subr.bf16.mxu0 %v5226_v31 }
  0xfb   : > { %v6370_v41 = vld [vmem:[%s5261_s17 + $0x90] sm:$0xe]  ;;  %v990_v43 = vrot.slane %v6315_v59, 5  ;;  %v2020_v52 = vrot.slane %v6331_v61, 5  ;;  %863 = vst.msk [vmem:[#allocation2 + $0xe0] sm:$0xff] %vm848_vm4, %v829_v38  ;;  %v5205_v21 = vld [vmem:[%s5261_s17 + $0x48] sm:$0xff]   ;;  %v3258_v42 = vor.u32 %v3257_v32, %v6354_v14  ;;  %v6400_v3 = vsel %vm5739_vm7, %v3674_v40, %v3675_v4 }
  0xfc   : > { %v3249_v48 = vrot.slane %v3248_v13, 4  ;;  %v4677_v57 = vrot.slane %v6328_v10, 9  ;;  %v2023_v11 = vrot.slane %v6343_v19, 5  ;;  %v6381_v27 = vld [vmem:[%s5261_s17 + $0x44] sm:$0x1]  ;;  %v5189_v59 = vld [vmem:[%s7162_s1 + $0xf8] sm:$0xff]   ;;  %v988_v63 = vsel %vm5739_vm7, %v4485_v56, %v987_v34 }
  0xfd   : > { %v902_v58 = vld [vmem:[%s5261_s17 + $0x94] sm:$0xf]  ;;  %v5191_v53 = vld [vmem:[%s7162_s1 + $0x40] sm:$0xff]   ;;  %v989_v10 = vrot.slane %v987_v34, 4  ;;  %v2022_v61 = vrot.slane %v2020_v52, 4  ;;  %v3259_v30 = vrot.slane %v3258_v42, 4  ;;  %3977 = vmatpush1.bf16.msra.mxu0 %v5189_v59 }
  0xfe   : > { %v903_v0 = vld [vmem:[%s5261_s17 + $0x98] sm:$0x1]  ;;  %v3254_v39 = vsel %vm5273_vm2, %v3249_v48, %v6354_v14  ;;  %v3616_v15 = vrot.slane %v6367_v36, 5  ;;  %1898 = vst.msk [vmem:[#allocation2 + $0xd0] sm:$0xff] %vm848_vm4, %v1864_v45  ;;  %v6408_v19 = vld [vmem:[%s5261_s17 + $0x9c] sm:$0xe]  ;;  %2664 = vmatpush1.bf16.msra.mxu1 %v5191_v53  ;;  %v813_v45 = vpop.permute.xlu0 %812  ;;  %3978 = vmatprep.subr.bf16.mxu0 %v5226_v31 }
  0xff   : > { %v6411_v24 = vld [vmem:[%s5261_s17 + $0xa0] sm:$0xf]  ;;  %v5186_v4 = vld [vmem:[%s5261_s17 + $0xb4] sm:$0xff]   ;;  %v5194_v56 = vld [vmem:[%s7162_s1 + $0x48] sm:$0xff]   ;;  %v991_v40 = vsel %vm5739_vm7, %v989_v10, %v990_v43  ;;  %v4949_v13 = vrot.slane %v6364_v33, 9  ;;  %v4494_v32 = vrot.slane %v6370_v41, 9  ;;  %v3264_v34 = vsel %vm5273_vm2, %v3259_v30, %v3263_v35  ;;  %2665 = vmatprep.subr.bf16.mxu1 %v5226_v31 }
 0x100   : > { %v6413_v23 = vld [vmem:[#allocation2 + $0x40] sm:$0xff]  ;;  %v6419_v14 = vld [vmem:[#allocation2 + $0xb8] sm:$0xff]  ;;  %v1050_v36 = vrot.slane %v902_v58, 5  ;;  %v6429_v20 = vld [vmem:[%s5261_s17 + $0xac] sm:$0xf]  ;;  %v4501_v43 = vcombine.low %v988_v63, %v991_v40  ;;  %v6438_v33 = vsel %vm5739_vm7, %v4677_v57, %v2020_v52  ;;  %v6442_v41 = vsel %vm5739_vm7, %v2022_v61, %v2023_v11  ;;  %855 = vst.msk [vmem:[#allocation2 + $0x60] sm:$0xff] %vm848_vm4, %v813_v45 }
 0x101   : > { %v6426_v38 = vld [vmem:[%s5261_s17 + $0xa4] sm:$0x1]  ;;  %2941 = vst.msk [vmem:[#allocation2 + $0x40] sm:$0xff] %vm300_vm3, %v5205_v21  ;;  %2184 = vst.msk [vmem:[#allocation2 + $0xb8] sm:$0xff] %vm300_vm3, %v4701_v47  ;;  %v6445_v48 = vld [vmem:[%s5261_s17 + $0xa8] sm:$0xe]  ;;  %v4892_v21 = vcombine.low %v3254_v39, %v3264_v34  ;;  %v4973_v39 = vcombine.low %v6392_v54, %v6400_v3  ;;  %v4693_v7 = vcombine.low %v6438_v33, %v6442_v41 }
 0x102   : > { %v6448_v42 = vld [vmem:[%s5261_s17 + $0x9c] sm:$0xf]  ;;  %v5193_v47 = vld [vmem:[%s7162_s1 + $0x100] sm:$0xff]   ;;  %v2194_v35 = vld [vmem:[#allocation2 + $0x28] sm:$0xff]  ;;  %v3618_v58 = vrot.slane %v3616_v15, 4  ;;  %v3619_v52 = vrot.slane %v6381_v27, 5  ;;  %v1051_v53 = vsel %vm5739_vm7, %v4494_v32, %v1050_v36  ;;  %v6485_v54 = vsel %vm5739_vm7, %v4949_v13, %v3616_v15  ;;  %2666 = vmatpush1.bf16.msra.mxu1 %v5194_v56 }
 0x103   : > { %v1052_v57 = vrot.slane %v1050_v36, 4  ;;  %v6455_v63 = vld [vmem:[%s5261_s17 + $0xb0] sm:$0x1]  ;;  %v4868_v11 = vld [vmem:[%s5261_s17 + $0xa0] sm:$0xf]  ;;  %4744 = vmatprep.mubr.msk.bf16.mxu0 %vm300_vm3, %v2194_v35  ;;  %3771 = vst.msk [vmem:[#allocation2 + $0x28] sm:$0xff] %vm300_vm3, %v4964_v60  ;;  %3453 = vrot.lane.b32.xlu0 %v4892_v21, %s5225_s18 }
 0x104   : > { %1143 = vst.msk [vmem:[#allocation2 + $0x38] sm:$0xff] %vm300_vm3, %v4501_v43  ;;  %v1053_v10 = vrot.slane %v903_v0, 5  ;;  %v2083_v27 = vrot.slane %v6411_v24, 5  ;;  %v4869_v61 = vld [vmem:[%s5261_s17 + $0xa4] sm:$0x1]  ;;  %2415 = vmatmul.mubr.bf16.gmra.mrb[8].mxu0 %v6120_v25  ;;  %v4686_v29 = vrot.slane %v6408_v19, 9  ;;  %v6498_v15 = vsel %vm5739_vm7, %v3618_v58, %v3619_v52  ;;  %2667 = vmatprep.subr.bf16.mxu1 %v5226_v31 }
 0x105   : > { %v3679_v60 = vrot.slane %v6429_v20, 5  ;;  %v6478_v0 = vld [vmem:[#allocation2 + $0xe0] sm:$0xff]  ;;  %v5197_v25 = vld [vmem:[%s7162_s1 + $0x50] sm:$0xff]   ;;  %v2086_v19 = vrot.slane %v6426_v38, 5  ;;  %v5196_v40 = vld [vmem:[%s7162_s1 + $0x108] sm:$0xff]   ;;  %v4958_v32 = vrot.slane %v6445_v48, 9  ;;  %v1848_v38 = vpop.permute.xlu1 %1847  ;;  %3979 = vmatpush1.bf16.msra.mxu0 %v5193_v47 }
 0x106   : > { %v2211_v59 = vld [vmem:[#allocation2 + $0xb0] sm:$0xff]  ;;  %v1054_v3 = vsel %vm5739_vm7, %v1052_v57, %v1053_v10  ;;  %v2085_v30 = vrot.slane %v2083_v27, 4  ;;  %1355 = vst.msk [vmem:[#allocation2 + $0xe0] sm:$0xff] %vm300_vm3, %v5186_v4  ;;  %v3266_v36 = vshrl.u32 %v6448_v42, 16  ;;  %v879_v4 = vld [vmem:[%s5261_s17 + $0x38] sm:$0x1]  ;;  %v2084_v58 = vsel %vm5739_vm7, %v4686_v29, %v2083_v27  ;;  %3980 = vmatprep.subr.bf16.mxu0 %v5226_v31  ;;  %2668 = vmatpush1.bf16.msra.mxu1 %v5197_v25 }
 0x107   : > { %v877_v24 = vld [vmem:[%s5261_s17 + $0x30] sm:$0xe]  ;;  %v4510_v13 = vcombine.low %v1051_v53, %v1054_v3  ;;  %v878_v34 = vld [vmem:[%s5261_s17 + $0x34] sm:$0xf]  ;;  %v3682_v56 = vrot.slane %v6455_v63, 5  ;;  %v3269_v43 = vshll.u32 %v6448_v42, 16  ;;  %2669 = vmatprep.subr.bf16.mxu1 %v5226_v31 }
 0x108   : > { %v3275_v33 = vshll.u32 %v4868_v11, 16  ;;  %v3279_v41 = vshrl.u32 %v4868_v11, 16  ;;  %1890 = vst.msk [vmem:[#allocation2 + $0x50] sm:$0xff] %vm848_vm4, %v1848_v38  ;;  %v6509_v35 = vld [vmem:[%s5261_s17 + $0x3c] sm:$0xe]  ;;  %v3681_v52 = vrot.slane %v3679_v60, 4  ;;  %v2087_v47 = vsel %vm5739_vm7, %v2085_v30, %v2086_v19 }
 0x109   : > { %v2212_v21 = vld [vmem:[#allocation2 + $0xb8] sm:$0xff]  ;;  %1152 = vst.msk [vmem:[#allocation2 + $0xc8] sm:$0xff] %vm300_vm3, %v4510_v13  ;;  %v3268_v57 = vrot.slane %v3266_v36, 4  ;;  %v3285_v53 = vshll.u32 %v4869_v61, 16  ;;  %v6517_v42 = vld [vmem:[%s5261_s17 + $0x40] sm:$0xf]  ;;  %3981 = vmatpush1.bf16.msra.mxu0 %v5196_v40 }
 0x10a   : > { %4753 = vmatprep.mubr.msk.bf16.mxu1 %vm300_vm3, %v2212_v21  ;;  %3780 = vst.msk [vmem:[#allocation2 + $0xb8] sm:$0xff] %vm300_vm3, %v4973_v39  ;;  %v3271_v11 = vrot.slane %v3269_v43, 5  ;;  %v3277_v10 = vrot.slane %v3275_v33, 5  ;;  %v3281_v27 = vrot.slane %v3279_v41, 4  ;;  %v5190_v45 = vld [vmem:[%s5261_s17 + $0x54] sm:$0xff]   ;;  %v4486_v13 = vrot.slane %v877_v24, 9  ;;  %v831_v43 = vpop.permute.xlu0 %830  ;;  %3982 = vmatprep.subr.bf16.mxu0 %v5226_v31 }
 0x10b   : > { %v5200_v61 = vld [vmem:[%s7162_s1 + $0x58] sm:$0xff]   ;;  %2487 = vmatmul.mubr.bf16.gmra.mrb[12].mxu1 %v2211_v59  ;;  %v3287_v3 = vrot.slane %v3285_v53, 5  ;;  %v994_v39 = vrot.slane %v878_v34, 5  ;;  %v997_v36 = vrot.slane %v879_v4, 5  ;;  %v4640_v19 = vld [vmem:[%s5261_s17 + $0x44] sm:$0x1]  ;;  %v4702_v4 = vcombine.low %v2084_v58, %v2087_v47 }
 0x10c   : > { %v6528_v29 = vld [vmem:[#allocation2 + $0x38] sm:$0xff]  ;;  %v3272_v30 = vor.u32 %v3271_v11, %v3268_v57  ;;  %v3282_v25 = vor.u32 %v3281_v27, %v3277_v10  ;;  %v4678_v38 = vrot.slane %v6509_v35, 9  ;;  %v2027_v59 = vrot.slane %v6517_v42, 5  ;;  %v5198_v24 = vld [vmem:[%s7162_s1 + $0x110] sm:$0xff]   ;;  %v6542_v41 = vld [vmem:[%s5261_s17 + $0x48] sm:$0xe]  ;;  %2670 = vmatpush1.bf16.msra.mxu1 %v5200_v61 }
 0x10d   : > { %2176 = vst.msk [vmem:[#allocation2 + $0x38] sm:$0xff] %vm300_vm3, %v4693_v7  ;;  %v5206_v34 = vld [vmem:[%s5261_s17 + $0x54] sm:$0xff]   ;;  %v995_v33 = vsel %vm5739_vm7, %v4486_v13, %v994_v39  ;;  %v996_v7 = vrot.slane %v994_v39, 4  ;;  %v6545_v21 = vld [vmem:[%s5261_s17 + $0x4c] sm:$0xf]  ;;  %v6548_v35 = vld [vmem:[#allocation2 + $0x60] sm:$0xff]  ;;  %v4965_v42 = vcombine.low %v6485_v54, %v6498_v15  ;;  %3983 = vmatpush1.bf16.msra.mxu0 %v5198_v24  ;;  %v3680_v15 = vsel %vm5739_vm7, %v4958_v32, %v3679_v60 }
 0x10e   : > { %864 = vst.msk [vmem:[#allocation2 + $0xf0] sm:$0xff] %vm848_vm4, %v831_v43  ;;  %v3273_v40 = vrot.slane %v3272_v30, 4  ;;  %v3283_v57 = vrot.slane %v3282_v25, 4  ;;  %v6552_v53 = vld [vmem:[%s5261_s17 + $0x50] sm:$0x1]  ;;  %v5201_v58 = vld [vmem:[%s7162_s1 + $0x118] sm:$0xff]   ;;  %3984 = vmatprep.subr.bf16.mxu0 %v5226_v31  ;;  %v2028_v20 = vsel %vm5739_vm7, %v4678_v38, %v2027_v59 }
 0x10f   : > { %1347 = vst.msk [vmem:[#allocation2 + $0x60] sm:$0xff] %vm300_vm3, %v5190_v45  ;;  %v998_v47 = vsel %vm5739_vm7, %v996_v7, %v997_v36  ;;  %v2029_v11 = vrot.slane %v2027_v59, 4  ;;  %v2030_v27 = vrot.slane %v4640_v19, 5  ;;  %v5192_v13 = vld [vmem:[%s5261_s17 + $0xc0] sm:$0xff]   ;;  %v3623_v54 = vrot.slane %v6545_v21, 5  ;;  %v1866_v36 = vpop.permute.xlu1 %1865  ;;  %v6582_v19 = vld [vmem:[#allocation2 + $0x50] sm:$0xff]  ;;  %v815_v7 = vpop.permute.xlu0 %814 }
 0x110   : > { %v6563_v39 = vld [vmem:[#allocation2 + $0xc8] sm:$0xff]  ;;  %v3278_v45 = vsel %vm5273_vm2, %v3273_v40, %v3277_v10  ;;  %v3288_v61 = vsel %vm5273_vm2, %v3283_v57, %v3287_v3  ;;  %v4502_v30 = vcombine.low %v995_v33, %v998_v47  ;;  %v3683_v10 = vsel %vm5739_vm7, %v3681_v52, %v3682_v56  ;;  %v904_v25 = vld [vmem:[%s5261_s17 + $0x9c] sm:$0xe]  ;;  %1899 = vst.msk [vmem:[#allocation2 + $0xe0] sm:$0xff] %vm848_vm4, %v1866_v36  ;;  %v905_v63 = vld [vmem:[%s5261_s17 + $0xa0] sm:$0xf] }
 0x111   : > { %2185 = vst.msk [vmem:[#allocation2 + $0xc8] sm:$0xff] %vm300_vm3, %v4702_v4  ;;  %v4893_v3 = vcombine.low %v3278_v45, %v3288_v61  ;;  %v4950_v48 = vrot.slane %v6542_v41, 9  ;;  %v906_v60 = vld [vmem:[%s5261_s17 + $0xa4] sm:$0x1]  ;;  %v4495_v32 = vrot.slane %v904_v25, 9  ;;  %2942 = vst.msk [vmem:[#allocation2 + $0x50] sm:$0xff] %vm300_vm3, %v5206_v34  ;;  %v2031_v31 = vsel %vm5739_vm7, %v2029_v11, %v2030_v27  ;;  %3985 = vmatpush1.bf16.msra.mxu0 %v5201_v58 }
 0x112   : > { %1144 = vst.msk [vmem:[#allocation2 + $0x48] sm:$0xff] %vm300_vm3, %v4502_v30  ;;  %v3626_v52 = vrot.slane %v6552_v53, 5  ;;  %v1057_v38 = vrot.slane %v905_v63, 5  ;;  %v1060_v59 = vrot.slane %v906_v60, 5  ;;  %v4665_v43 = vld [vmem:[%s5261_s17 + $0xa8] sm:$0xe]  ;;  %v4974_v24 = vcombine.low %v3680_v15, %v3683_v10 }
 0x113   : > { %3455 = vrot.lane.b32.xlu1 %v4893_v3, %s5225_s18  ;;  %v3625_v4 = vrot.slane %v3623_v54, 4  ;;  %v4666_v34 = vld [vmem:[%s5261_s17 + $0xac] sm:$0xf]  ;;  %v4667_v33 = vld [vmem:[%s5261_s17 + $0xb0] sm:$0x1]  ;;  %v2213_v21 = vld [vmem:[#allocation2 + $0xc0] sm:$0xff]  ;;  %v4694_v11 = vcombine.low %v2028_v20, %v2031_v31 }
 0x114   : > { %v2196_v56 = vld [vmem:[#allocation2 + $0x38] sm:$0xff]  ;;  %v1058_v40 = vsel %vm5739_vm7, %v4495_v32, %v1057_v38  ;;  %v1059_v57 = vrot.slane %v1057_v38, 4  ;;  %v4687_v53 = vrot.slane %v4665_v43, 9  ;;  %856 = vst.msk [vmem:[#allocation2 + $0x70] sm:$0xff] %vm848_vm4, %v815_v7  ;;  %v6611_v27 = vld [vmem:[%s5261_s17 + $0xb4] sm:$0xe]  ;;  %v1850_v38 = vpop.permute.xlu1 %1849 }
 0x115   : > { %4745 = vmatprep.mubr.msk.bf16.mxu0 %vm300_vm3, %v2196_v56  ;;  %3772 = vst.msk [vmem:[#allocation2 + $0x38] sm:$0xff] %vm300_vm3, %v4965_v42  ;;  %v6602_v41 = vld [vmem:[#allocation2 + $0xf0] sm:$0xff]  ;;  %v2090_v42 = vrot.slane %v4666_v34, 5  ;;  %v5209_v47 = vld [vmem:[%s5261_s17 + $0x78] sm:$0xff]   ;;  %v2093_v30 = vrot.slane %v4667_v33, 5  ;;  %v5195_v15 = vld [vmem:[%s5261_s17 + $0x60] sm:$0xff]   ;;  %v3627_v63 = vsel %vm5739_vm7, %v3625_v4, %v3626_v52 }
 0x116   : > { %7170 = vst [vmem:[#allocation3_spill] sm:$0xff] %v6602_v41  ;;  %2423 = vmatmul.mubr.bf16.gmra.mrb[12].mxu0 %v6221_v50  ;;  %1356 = vst.msk [vmem:[#allocation2 + $0xf0] sm:$0xff] %vm300_vm3, %v5192_v13  ;;  %v6614_v58 = vld [vmem:[%s5261_s17 + $0xb8] sm:$0xf]  ;;  %v6617_v50 = vld [vmem:[%s5261_s17 + $0xbc] sm:$0x1]  ;;  %v1061_v45 = vsel %vm5739_vm7, %v1059_v57, %v1060_v59  ;;  %v3624_v13 = vsel %vm5739_vm7, %v4950_v48, %v3623_v54 }
 0x117   : > { %v2092_v61 = vrot.slane %v2090_v42, 4  ;;  %2945 = vst.msk [vmem:[#allocation2 + $0x80] sm:$0xff] %vm300_vm3, %v5209_v47  ;;  %v4511_v3 = vcombine.low %v1058_v40, %v1061_v45  ;;  %v4870_v36 = vld [vmem:[%s5261_s17 + $0xa8] sm:$0xf]  ;;  %v4871_v25 = vld [vmem:[%s5261_s17 + $0xac] sm:$0xf]  ;;  %v2091_v52 = vsel %vm5739_vm7, %v4687_v53, %v2090_v42  ;;  %v4966_v53 = vcombine.low %v3624_v13, %v3627_v63 }
 0x118   : > { %v2214_v10 = vld [vmem:[#allocation2 + $0xc8] sm:$0xff]  ;;  %v4959_v60 = vrot.slane %v6611_v27, 9  ;;  %v3686_v32 = vrot.slane %v6614_v58, 5  ;;  %v4872_v56 = vld [vmem:[%s5261_s17 + $0xb0] sm:$0x1]  ;;  %v3290_v31 = vshrl.u32 %v4870_v36, 16 }
 0x119   : > { %4754 = vmatprep.mubr.msk.bf16.mxu1 %vm300_vm3, %v2214_v10  ;;  %3781 = vst.msk [vmem:[#allocation2 + $0xc8] sm:$0xff] %vm300_vm3, %v4974_v24  ;;  %v6629_v20 = vld [vmem:[#allocation2 + $0x48] sm:$0xff]  ;;  %1153 = vst.msk [vmem:[#allocation2 + $0xd8] sm:$0xff] %vm300_vm3, %v4511_v3  ;;  %v3689_v54 = vrot.slane %v6617_v50, 5  ;;  %v3293_v48 = vshll.u32 %v4870_v36, 16  ;;  %v3299_v59 = vshll.u32 %v4871_v25, 16  ;;  %v2094_v24 = vsel %vm5739_vm7, %v2092_v61, %v2093_v30  ;;  %v1868_v30 = vpop.permute.xlu0 %1867 }
 0x11a   : > { %2495 = vmatmul.mubr.bf16.gmra.mrb[16].mxu1 %v2213_v21  ;;  %2177 = vst.msk [vmem:[#allocation2 + $0x48] sm:$0xff] %vm300_vm3, %v4694_v11  ;;  %v3303_v43 = vshrl.u32 %v4871_v25, 16  ;;  %v3292_v4 = vrot.slane %v3290_v31, 4  ;;  %v3309_v34 = vshll.u32 %v4872_v56, 16  ;;  %v5207_v57 = vld [vmem:[%s5261_s17 + $0x60] sm:$0xff]   ;;  %v3688_v47 = vrot.slane %v3686_v32, 4 }
 0x11b   : > { %1891 = vst.msk [vmem:[#allocation2 + $0x60] sm:$0xff] %vm848_vm4, %v1850_v38  ;;  %v3295_v33 = vrot.slane %v3293_v48, 5  ;;  %v3301_v7 = vrot.slane %v3299_v59, 5  ;;  %v6644_v40 = vld [vmem:[#allocation2 + $0x70] sm:$0xff]  ;;  %v4703_v42 = vcombine.low %v2091_v52, %v2094_v24  ;;  %v880_v50 = vld [vmem:[%s5261_s17 + $0x3c] sm:$0xe]  ;;  %v3687_v59 = vsel %vm5739_vm7, %v4959_v60, %v3686_v32 }
 0x11c   : > { %v3305_v21 = vrot.slane %v3303_v43, 4  ;;  %v3311_v11 = vrot.slane %v3309_v34, 5  ;;  %1348 = vst.msk [vmem:[#allocation2 + $0x70] sm:$0xff] %vm300_vm3, %v5195_v15  ;;  %v881_v45 = vld [vmem:[%s5261_s17 + $0x40] sm:$0xf]  ;;  %v4487_v10 = vrot.slane %v880_v50, 9  ;;  %v3690_v60 = vsel %vm5739_vm7, %v3688_v47, %v3689_v54 }
 0x11d   : > { %v3296_v27 = vor.u32 %v3295_v33, %v3292_v4  ;;  %v882_v61 = vld [vmem:[%s5261_s17 + $0x44] sm:$0x1]  ;;  %v1001_v3 = vrot.slane %v881_v45, 5  ;;  %v4641_v25 = vld [vmem:[%s5261_s17 + $0x48] sm:$0xe]  ;;  %1900 = vst.msk [vmem:[#allocation2 + $0xf0] sm:$0xff] %vm848_vm4, %v1868_v30  ;;  %v1852_v4 = vpop.permute.xlu1 %1851 }
 0x11e   : > { %v3306_v58 = vor.u32 %v3305_v21, %v3301_v7  ;;  %v1004_v36 = vrot.slane %v882_v61, 5  ;;  %v5210_v56 = vld [vmem:[%s5261_s17 + $0x84] sm:$0xff]   ;;  %v4642_v15 = vld [vmem:[%s5261_s17 + $0x4c] sm:$0xf]  ;;  %v4643_v13 = vld [vmem:[%s5261_s17 + $0x50] sm:$0x1]  ;;  %v4975_v61 = vcombine.low %v3687_v59, %v3690_v60 }
 0x11f   : > { %v3297_v31 = vrot.slane %v3296_v27, 4  ;;  %v1002_v43 = vsel %vm5739_vm7, %v4487_v10, %v1001_v3  ;;  %v1003_v52 = vrot.slane %v1001_v3, 4  ;;  %v2034_v24 = vrot.slane %v4642_v15, 5  ;;  %2946 = vst.msk [vmem:[#allocation2 + $0x90] sm:$0xff] %vm300_vm3, %v5210_v56  ;;  %v4914_v27 = vld [vmem:[%s5261_s17 + $0x58] sm:$0xf] }
 0x120   : > { %v3307_v38 = vrot.slane %v3306_v58, 4  ;;  %v6656_v48 = vld [vmem:[#allocation2 + $0xd8] sm:$0xff]  ;;  %v4679_v21 = vrot.slane %v4641_v25, 9  ;;  %1892 = vst.msk [vmem:[#allocation2 + $0x70] sm:$0xff] %vm848_vm4, %v1852_v4  ;;  %v3630_v50 = vrot.slane %v4914_v27, 5  ;;  %v5211_v45 = vld [vmem:[%s5261_s17 + $0x90] sm:$0xff]  }
 0x121   : > { %v2198_v63 = vld [vmem:[#allocation2 + $0x48] sm:$0xff]  ;;  %2186 = vst.msk [vmem:[#allocation2 + $0xd8] sm:$0xff] %vm300_vm3, %v4703_v42  ;;  %v3302_v32 = vsel %vm5273_vm2, %v3297_v31, %v3301_v7  ;;  %v1005_v54 = vsel %vm5739_vm7, %v1003_v52, %v1004_v36  ;;  %v2036_v47 = vrot.slane %v2034_v24, 4  ;;  %v2037_v7 = vrot.slane %v4643_v13, 5  ;;  %v4913_v42 = vld [vmem:[%s5261_s17 + $0x54] sm:$0xe]  ;;  %v3434_v36 = vpop.permute.xlu0 %3433 }
 0x122   : > { %v6662_v34 = vld [vmem:[#allocation2 + $0x60] sm:$0xff]  ;;  %4746 = vmatprep.mubr.msk.bf16.mxu0 %vm300_vm3, %v2198_v63  ;;  %3773 = vst.msk [vmem:[#allocation2 + $0x48] sm:$0xff] %vm300_vm3, %v4966_v53  ;;  %v3312_v33 = vsel %vm5273_vm2, %v3307_v38, %v3311_v11  ;;  %v4503_v11 = vcombine.low %v1002_v43, %v1005_v54  ;;  %v4915_v58 = vld [vmem:[%s5261_s17 + $0x5c] sm:$0x1]  ;;  %v908_v30 = vld [vmem:[%s5261_s17 + $0xac] sm:$0xf]  ;;  %v2035_v56 = vsel %vm5739_vm7, %v4679_v21, %v2034_v24 }
 0x123   : > { %2943 = vst.msk [vmem:[#allocation2 + $0x60] sm:$0xff] %vm300_vm3, %v5207_v57  ;;  %2431 = vmatmul.mubr.bf16.gmra.mrb[16].mxu0 %v6413_v23  ;;  %v4894_v53 = vcombine.low %v3302_v32, %v3312_v33  ;;  %v907_v57 = vld [vmem:[%s5261_s17 + $0xa8] sm:$0xe]  ;;  %v2215_v23 = vld [vmem:[#allocation2 + $0xd0] sm:$0xff]  ;;  %2947 = vst.msk [vmem:[#allocation2 + $0xa0] sm:$0xff] %vm300_vm3, %v5211_v45  ;;  %v2038_v31 = vsel %vm5739_vm7, %v2036_v47, %v2037_v7  ;;  %v1064_v38 = vrot.slane %v908_v30, 5 }
 0x124   : > { %1145 = vst.msk [vmem:[#allocation2 + $0x58] sm:$0xff] %vm300_vm3, %v4503_v11  ;;  %v909_v10 = vld [vmem:[%s5261_s17 + $0xb0] sm:$0x1]  ;;  %v4496_v3 = vrot.slane %v907_v57, 9  ;;  %v4668_v13 = vld [vmem:[%s5261_s17 + $0xb4] sm:$0xe]  ;;  %v3436_v57 = vpop.permute.xlu1 %3435 }
 0x125   : > { %3457 = vrot.lane.b32.xlu0 %v4894_v53, %s5225_s18  ;;  %v5208_v25 = vld [vmem:[%s5261_s17 + $0x6c] sm:$0xff]   ;;  %v1067_v15 = vrot.slane %v909_v10, 5  ;;  %v4669_v63 = vld [vmem:[%s5261_s17 + $0xb8] sm:$0xf]  ;;  %3481 = vst.msk [vmem:[#allocation2] sm:$0xff] %vm848_vm4, %v3434_v36  ;;  %v4951_v59 = vrot.slane %v4913_v42, 9  ;;  %v4695_v53 = vcombine.low %v2035_v56, %v2038_v31 }
 0x126   : > { %v3632_v43 = vrot.slane %v3630_v50, 4  ;;  %v3633_v52 = vrot.slane %v4915_v58, 5  ;;  %v4670_v4 = vld [vmem:[%s5261_s17 + $0xbc] sm:$0x1]  ;;  %v2097_v60 = vrot.slane %v4669_v63, 5  ;;  %v1065_v24 = vsel %vm5739_vm7, %v4496_v3, %v1064_v38  ;;  %3482 = vst.msk [vmem:[#allocation2 + $0x10] sm:$0xff] %vm848_vm4, %v3436_v57 }
 0x127   : > { %v1066_v33 = vrot.slane %v1064_v38, 4  ;;  %v6701_v21 = vld [vmem:[%s5261_s17 + $0xc0] sm:$0xe]  ;;  %v6704_v27 = vld [vmem:[%s5261_s17 + $0xc4] sm:$0xf]  ;;  %v4688_v54 = vrot.slane %v4668_v13, 9 }
 0x128   : > { %v2216_v32 = vld [vmem:[#allocation2 + $0xd8] sm:$0xff]  ;;  %v2099_v47 = vrot.slane %v2097_v60, 4  ;;  %v2100_v7 = vrot.slane %v4670_v4, 5  ;;  %v6709_v42 = vld [vmem:[%s5261_s17 + $0xc8] sm:$0x1]  ;;  %v6711_v11 = vld [vmem:[#allocation2 + $0x70] sm:$0xff]  ;;  %v3634_v31 = vsel %vm5739_vm7, %v3632_v43, %v3633_v52  ;;  %v3438_v52 = vpop.permute.xlu0 %3437 }
 0x129   : > { %4755 = vmatprep.mubr.msk.bf16.mxu1 %vm300_vm3, %v2216_v32  ;;  %3782 = vst.msk [vmem:[#allocation2 + $0xd8] sm:$0xff] %vm300_vm3, %v4975_v61  ;;  %v1068_v58 = vsel %vm5739_vm7, %v1066_v33, %v1067_v15  ;;  %v7165_v45 = vrot.slane %v6704_v27, 5  ;;  %2944 = vst.msk [vmem:[#allocation2 + $0x70] sm:$0xff] %vm300_vm3, %v5208_v25  ;;  %v3631_v61 = vsel %vm5739_vm7, %v4951_v59, %v3630_v50  ;;  %v4960_v10 = vrot.slane %v6701_v21, 9  ;;  %v4873_v36 = vld [vmem:[%s5261_s17 + $0xb4] sm:$0xf] }
 0x12a   : > { %2503 = vmatmul.mubr.bf16.gmra.mrb[20].mxu1 %v2215_v23  ;;  %v4512_v30 = vcombine.low %v1065_v24, %v1068_v58  ;;  %v3696_v3 = vrot.slane %v6709_v42, 5  ;;  %v4874_v56 = vld [vmem:[%s5261_s17 + $0xb8] sm:$0xf]  ;;  %v4875_v38 = vld [vmem:[%s5261_s17 + $0xbc] sm:$0x1]  ;;  %v3314_v15 = vshrl.u32 %v4873_v36, 16  ;;  %v2098_v50 = vsel %vm5739_vm7, %v4688_v54, %v2097_v60 }
 0x12b   : > { %v6724_v23 = vld [vmem:[#allocation2 + $0x58] sm:$0xff]  ;;  %v3317_v25 = vshll.u32 %v4873_v36, 16  ;;  %v3323_v13 = vshll.u32 %v4874_v56, 16  ;;  %v2101_v63 = vsel %vm5739_vm7, %v2099_v47, %v2100_v7  ;;  %v3327_v59 = vshrl.u32 %v4874_v56, 16  ;;  %3483 = vst.msk [vmem:[#allocation2 + $0x20] sm:$0xff] %vm848_vm4, %v3438_v52 }
 0x12c   : > { %2178 = vst.msk [vmem:[#allocation2 + $0x58] sm:$0xff] %vm300_vm3, %v4695_v53  ;;  %1154 = vst.msk [vmem:[#allocation2 + $0xe8] sm:$0xff] %vm300_vm3, %v4512_v30  ;;  %v3333_v43 = vshll.u32 %v4875_v38, 16  ;;  %v3695_v4 = vrot.slane %v7165_v45, 4  ;;  %v3316_v32 = vrot.slane %v3314_v15, 4  ;;  %v4967_v54 = vcombine.low %v3631_v61, %v3634_v31  ;;  %v5212_v57 = vld [vmem:[%s5261_s17 + $0x9c] sm:$0xff]  }
 0x12d   : > { %v3319_v24 = vrot.slane %v3317_v25, 5  ;;  %v3325_v33 = vrot.slane %v3323_v13, 5  ;;  %v3329_v21 = vrot.slane %v3327_v59, 4  ;;  %v883_v53 = vld [vmem:[%s5261_s17 + $0x48] sm:$0xe]  ;;  %v4704_v30 = vcombine.low %v2098_v50, %v2101_v63  ;;  %v3440_v59 = vpop.permute.xlu1 %3439  ;;  %2948 = vst.msk [vmem:[#allocation2 + $0xb0] sm:$0xff] %vm300_vm3, %v5212_v57 }
 0x12e   : > { %v3335_v60 = vrot.slane %v3333_v43, 5  ;;  %v884_v7 = vld [vmem:[%s5261_s17 + $0x4c] sm:$0xf]  ;;  %v885_v42 = vld [vmem:[%s5261_s17 + $0x50] sm:$0x1]  ;;  %v4488_v58 = vrot.slane %v883_v53, 9 }
 0x12f   : > { %v3320_v47 = vor.u32 %v3319_v24, %v3316_v32  ;;  %v3330_v36 = vor.u32 %v3329_v21, %v3325_v33  ;;  %v1008_v56 = vrot.slane %v884_v7, 5  ;;  %v1011_v38 = vrot.slane %v885_v42, 5  ;;  %v4644_v15 = vld [vmem:[%s5261_s17 + $0x54] sm:$0xe]  ;;  %v4645_v25 = vld [vmem:[%s5261_s17 + $0x58] sm:$0xf] }
 0x130   : > { %v4646_v45 = vld [vmem:[%s5261_s17 + $0x5c] sm:$0x1]  ;;  %v2041_v52 = vrot.slane %v4645_v25, 5  ;;  %v4680_v32 = vrot.slane %v4644_v15, 9  ;;  %3484 = vst.msk [vmem:[#allocation2 + $0x30] sm:$0xff] %vm848_vm4, %v3440_v59  ;;  %v7171_v7 = vrot.slane %v6704_v27, 5 }
 0x131   : > { %v3321_v13 = vrot.slane %v3320_v47, 4  ;;  %v3331_v43 = vrot.slane %v3330_v36, 4  ;;  %v1009_v61 = vsel %vm5739_vm7, %v4488_v58, %v1008_v56  ;;  %v1010_v31 = vrot.slane %v1008_v56, 4  ;;  %v6754_v47 = vld [vmem:[%s5261_s17 + $0x60] sm:$0xe]  ;;  %v3442_v36 = vpop.permute.xlu0 %3441  ;;  %v3787_v12 = vld [vmem:[#allocation2 + $0x10] sm:$0xff] }
 0x132   : > { %v2043_v21 = vrot.slane %v2041_v52, 4  ;;  %v2044_v53 = vrot.slane %v4646_v45, 5  ;;  %v3694_v42 = vsel %vm5739_vm7, %v4960_v10, %v7171_v7  ;;  %v6770_v57 = vld [vmem:[%s5261_s17 + $0x64] sm:$0xf]  ;;  %3485 = vst.msk [vmem:[#allocation2 + $0x40] sm:$0xff] %vm848_vm4, %v3442_v36 }
 0x133   : > { %v2200_v50 = vld [vmem:[#allocation2 + $0x58] sm:$0xff]  ;;  %v6749_v63 = vld [vmem:[#allocation2 + $0xe8] sm:$0xff]  ;;  %v3326_v24 = vsel %vm5273_vm2, %v3321_v13, %v3325_v33  ;;  %v3697_v33 = vsel %vm5739_vm7, %v3695_v4, %v3696_v3  ;;  %v3336_v45 = vsel %vm5273_vm2, %v3331_v43, %v3335_v60  ;;  %v1012_v58 = vsel %vm5739_vm7, %v1010_v31, %v1011_v38  ;;  %v4671_v13 = vld [vmem:[%s5261_s17 + $0xc0] sm:$0xe] }
 0x134   : > { %4747 = vmatprep.mubr.msk.bf16.mxu0 %vm300_vm3, %v2200_v50  ;;  %3774 = vst.msk [vmem:[#allocation2 + $0x58] sm:$0xff] %vm300_vm3, %v4967_v54  ;;  %2187 = vst.msk [vmem:[#allocation2 + $0xe8] sm:$0xff] %vm300_vm3, %v4704_v30  ;;  %v6773_v54 = vld [vmem:[%s5261_s17 + $0x68] sm:$0x1]  ;;  %v4895_v27 = vcombine.low %v3326_v24, %v3336_v45  ;;  %v4504_v10 = vcombine.low %v1009_v61, %v1012_v58  ;;  %v910_v30 = vld [vmem:[%s5261_s17 + $0xb4] sm:$0xe]  ;;  %v4976_v38 = vcombine.low %v3694_v42, %v3697_v33  ;;  %v3444_v58 = vpop.permute.xlu1 %3443 }
 0x135   : > { %2439 = vmatmul.mubr.bf16.gmra.mrb[20].mxu0 %v6582_v19  ;;  %v5213_v3 = vld [vmem:[%s5261_s17 + $0xa8] sm:$0xff]   ;;  %v911_v4 = vld [vmem:[%s5261_s17 + $0xb8] sm:$0xf]  ;;  %v912_v60 = vld [vmem:[%s5261_s17 + $0xbc] sm:$0x1]  ;;  %v4497_v56 = vrot.slane %v910_v30, 9  ;;  %v2042_v19 = vsel %vm5739_vm7, %v4680_v32, %v2041_v52  ;;  %v2045_v61 = vsel %vm5739_vm7, %v2043_v21, %v2044_v53 }
 0x136   : > { %3459 = vrot.lane.b32.xlu1 %v4895_v27, %s5225_s18  ;;  %1146 = vst.msk [vmem:[#allocation2 + $0x68] sm:$0xff] %vm300_vm3, %v4504_v10  ;;  %v1071_v15 = vrot.slane %v911_v4, 5  ;;  %v1074_v25 = vrot.slane %v912_v60, 5  ;;  %v4672_v59 = vld [vmem:[%s5261_s17 + $0xc4] sm:$0xf]  ;;  %2949 = vst.msk [vmem:[#allocation2 + $0xc0] sm:$0xff] %vm300_vm3, %v5213_v3  ;;  %v4696_v36 = vcombine.low %v2042_v19, %v2045_v61 }
 0x137   : > { %v2217_v43 = vld [vmem:[#allocation2 + $0xe0] sm:$0xff]  ;;  %v4952_v31 = vrot.slane %v6754_v47, 9  ;;  %v3637_v50 = vrot.slane %v6770_v57, 5  ;;  %v4673_v24 = vld [vmem:[%s5261_s17 + $0xc8] sm:$0x1]  ;;  %v2104_v7 = vrot.slane %v4672_v59, 5 }
 0x138   : > { %v3640_v52 = vrot.slane %v6773_v54, 5  ;;  %v1072_v32 = vsel %vm5739_vm7, %v4497_v56, %v1071_v15  ;;  %v1073_v42 = vrot.slane %v1071_v15, 4  ;;  %v6797_v33 = vld [vmem:[%s5261_s17 + $0xcc] sm:$0xe]  ;;  %v6800_v45 = vld [vmem:[%s5261_s17 + $0xd0] sm:$0xf] }
 0x139   : > { %v4689_v21 = vrot.slane %v4671_v13, 9  ;;  %v2107_v53 = vrot.slane %v4673_v24, 5  ;;  %v4945_v47 = vld [vmem:[%s5261_s17 + $0xd4] sm:$0x1]  ;;  %3486 = vst.msk [vmem:[#allocation2 + $0x50] sm:$0xff] %vm848_vm4, %v3444_v58  ;;  %v2106_v27 = vrot.slane %v2104_v7, 4  ;;  %v3446_v58 = vpop.permute.xlu0 %3445 }
 0x13a   : > { %v1075_v54 = vsel %vm5739_vm7, %v1073_v42, %v1074_v25  ;;  %v4876_v10 = vld [vmem:[%s5261_s17 + $0xc0] sm:$0xf]  ;;  %v3639_v30 = vrot.slane %v3637_v50, 4  ;;  %v3700_v4 = vrot.slane %v6800_v45, 5  ;;  %v4877_v60 = vld [vmem:[%s5261_s17 + $0xc4] sm:$0xf] }
 0x13b   : > { %v2218_v57 = vld [vmem:[#allocation2 + $0xe8] sm:$0xff]  ;;  %v4513_v3 = vcombine.low %v1072_v32, %v1075_v54  ;;  %v4961_v15 = vrot.slane %v6797_v33, 9  ;;  %v3338_v19 = vshrl.u32 %v4876_v10, 16  ;;  %v3341_v13 = vshll.u32 %v4876_v10, 16  ;;  %3487 = vst.msk [vmem:[#allocation2 + $0x60] sm:$0xff] %vm848_vm4, %v3446_v58  ;;  %v3785_v26 = vld [vmem:[#allocation2] sm:$0xff] }
 0x13c   : > { %4756 = vmatprep.mubr.msk.bf16.mxu1 %vm300_vm3, %v2218_v57  ;;  %3783 = vst.msk [vmem:[#allocation2 + $0xe8] sm:$0xff] %vm300_vm3, %v4976_v38  ;;  %v4878_v56 = vld [vmem:[%s5261_s17 + $0xc8] sm:$0x1]  ;;  %v3347_v59 = vshll.u32 %v4877_v60, 16  ;;  %v2105_v38 = vsel %vm5739_vm7, %v4689_v21, %v2104_v7  ;;  %v3703_v61 = vrot.slane %v4945_v47, 5  ;;  %v3351_v24 = vshrl.u32 %v4877_v60, 16 }
 0x13d   : > { %2511 = vmatmul.mubr.bf16.gmra.mrb[24].mxu1 %v2217_v43  ;;  %v6813_v25 = vld [vmem:[#allocation2 + $0x68] sm:$0xff]  ;;  %1155 = vst.msk [vmem:[#allocation2 + $0xf8] sm:$0xff] %vm300_vm3, %v4513_v3  ;;  %v3357_v32 = vshll.u32 %v4878_v56, 16  ;;  %v2108_v43 = vsel %vm5739_vm7, %v2106_v27, %v2107_v53  ;;  %v3340_v42 = vrot.slane %v3338_v19, 4  ;;  %v3343_v33 = vrot.slane %v3341_v13, 5  ;;  %v5214_v57 = vld [vmem:[%s5261_s17 + $0xb4] sm:$0xff]  }
 0x13e   : > { %2179 = vst.msk [vmem:[#allocation2 + $0x68] sm:$0xff] %vm300_vm3, %v4696_v36  ;;  %v3349_v45 = vrot.slane %v3347_v59, 5  ;;  %v3638_v54 = vsel %vm5739_vm7, %v4952_v31, %v3637_v50  ;;  %v3641_v7 = vsel %vm5739_vm7, %v3639_v30, %v3640_v52  ;;  %v3702_v21 = vrot.slane %v3700_v4, 4  ;;  %v886_v36 = vld [vmem:[%s5261_s17 + $0x54] sm:$0xe]  ;;  %2950 = vst.msk [vmem:[#allocation2 + $0xd0] sm:$0xff] %vm300_vm3, %v5214_v57 }
 0x13f   : > { %v3353_v47 = vrot.slane %v3351_v24, 4  ;;  %v3344_v53 = vor.u32 %v3343_v33, %v3340_v42  ;;  %v3359_v27 = vrot.slane %v3357_v32, 5  ;;  %v887_v10 = vld [vmem:[%s5261_s17 + $0x58] sm:$0xf]  ;;  %v888_v3 = vld [vmem:[%s5261_s17 + $0x5c] sm:$0x1]  ;;  %v4705_v31 = vcombine.low %v2105_v38, %v2108_v43 }
 0x140   : > { %v4489_v60 = vrot.slane %v886_v36, 9  ;;  %v1015_v56 = vrot.slane %v887_v10, 5  ;;  %v1018_v19 = vrot.slane %v888_v3, 5  ;;  %v4647_v52 = vld [vmem:[%s5261_s17 + $0x60] sm:$0xe]  ;;  %v4968_v13 = vcombine.low %v3638_v54, %v3641_v7 }
 0x141   : > { %v3354_v50 = vor.u32 %v3353_v47, %v3349_v45  ;;  %v4648_v30 = vld [vmem:[%s5261_s17 + $0x64] sm:$0xf]  ;;  %v3345_v59 = vrot.slane %v3344_v53, 4  ;;  %v4649_v24 = vld [vmem:[%s5261_s17 + $0x68] sm:$0x1]  ;;  %v3701_v38 = vsel %vm5739_vm7, %v4961_v15, %v3700_v4  ;;  %v3704_v43 = vsel %vm5739_vm7, %v3702_v21, %v3703_v61 }
 0x142   : > { %v2048_v58 = vrot.slane %v4648_v30, 5  ;;  %v1016_v32 = vsel %vm5739_vm7, %v4489_v60, %v1015_v56  ;;  %v1017_v33 = vrot.slane %v1015_v56, 4  ;;  %v5215_v36 = vld [vmem:[%s5261_s17 + $0xc0] sm:$0xff]   ;;  %v4681_v54 = vrot.slane %v4647_v52, 9  ;;  %v4919_v7 = vld [vmem:[%s5261_s17 + $0x6c] sm:$0xe] }
 0x143   : > { %v3355_v42 = vrot.slane %v3354_v50, 4  ;;  %v3350_v57 = vsel %vm5273_vm2, %v3345_v59, %v3349_v45  ;;  %v4920_v47 = vld [vmem:[%s5261_s17 + $0x70] sm:$0xf]  ;;  %v2051_v3 = vrot.slane %v4649_v24, 5  ;;  %2951 = vst.msk [vmem:[#allocation2 + $0xe0] sm:$0xff] %vm300_vm3, %v5215_v36  ;;  %v4953_v60 = vrot.slane %v4919_v7, 9  ;;  %v3448_v24 = vpop.permute.xlu1 %3447 }
 0x144   : > { %v6837_v41 = vld [vmem:[#allocation2 + $0xf8] sm:$0xff]  ;;  %v1019_v4 = vsel %vm5739_vm7, %v1017_v33, %v1018_v19  ;;  %v2050_v15 = vrot.slane %v2048_v58, 4  ;;  %v4921_v21 = vld [vmem:[%s5261_s17 + $0x74] sm:$0x1]  ;;  %v4977_v50 = vcombine.low %v3701_v38, %v3704_v43  ;;  %v2049_v19 = vsel %vm5739_vm7, %v4681_v54, %v2048_v58  ;;  %v4880_v52 = vld [vmem:[%s5261_s17 + $0xd0] sm:$0xf] }
 0x145   : > { %v2202_v53 = vld [vmem:[#allocation2 + $0x68] sm:$0xff]  ;;  %2188 = vst.msk [vmem:[#allocation2 + $0xf8] sm:$0xff] %vm300_vm3, %v4705_v31  ;;  %v3360_v10 = vsel %vm5273_vm2, %v3355_v42, %v3359_v27  ;;  %v4505_v45 = vcombine.low %v1016_v32, %v1019_v4  ;;  %v3644_v27 = vrot.slane %v4920_v47, 5  ;;  %v2219_v56 = vld [vmem:[#allocation2 + $0xf0] sm:$0xff]  ;;  %v3371_v42 = vshll.u32 %v4880_v52, 16 }
 0x146   : > { %4748 = vmatprep.mubr.msk.bf16.mxu0 %vm300_vm3, %v2202_v53  ;;  %3775 = vst.msk [vmem:[#allocation2 + $0x68] sm:$0xff] %vm300_vm3, %v4968_v13  ;;  %v4896_v61 = vcombine.low %v3350_v57, %v3360_v10  ;;  %v4879_v31 = vld [vmem:[%s5261_s17 + $0xcc] sm:$0xf]  ;;  %v4881_v30 = vld [vmem:[%s5261_s17 + $0xd4] sm:$0x1]  ;;  %v3375_v32 = vshrl.u32 %v4880_v52, 16 }
 0x147   : > { %2447 = vmatmul.mubr.bf16.gmra.mrb[24].mxu0 %v6662_v34  ;;  %1147 = vst.msk [vmem:[#allocation2 + $0x78] sm:$0xff] %vm300_vm3, %v4505_v45  ;;  %v3362_v13 = vshrl.u32 %v4879_v31, 16  ;;  %v3365_v59 = vshll.u32 %v4879_v31, 16  ;;  %v2052_v34 = vsel %vm5739_vm7, %v2050_v15, %v2051_v3  ;;  %v3381_v33 = vshll.u32 %v4881_v30, 16  ;;  %v5216_v36 = vld [vmem:[%s5261_s17 + $0xcc] sm:$0xff]  }
 0x148   : > { %3461 = vrot.lane.b32.xlu0 %v4896_v61, %s5225_s18  ;;  %3488 = vst.msk [vmem:[#allocation2 + $0x70] sm:$0xff] %vm848_vm4, %v3448_v24  ;;  %v3646_v57 = vrot.slane %v3644_v27, 4  ;;  %v3647_v7 = vrot.slane %v4921_v21, 5  ;;  %v3373_v47 = vrot.slane %v3371_v42, 5  ;;  %v3377_v58 = vrot.slane %v3375_v32, 4  ;;  %v3802_v24 = vld [vmem:[#allocation2 + $0x88] sm:$0xff] }
 0x149   : > { %v3364_v38 = vrot.slane %v3362_v13, 4  ;;  %v3367_v43 = vrot.slane %v3365_v59, 5  ;;  %2952 = vst.msk [vmem:[#allocation2 + $0xf0] sm:$0xff] %vm300_vm3, %v5216_v36  ;;  %v4697_v53 = vcombine.low %v2049_v19, %v2052_v34  ;;  %v3383_v4 = vrot.slane %v3381_v33, 5  ;;  %v3786_v13 = vld [vmem:[#allocation2 + $0x8] sm:$0xff] }
 0x14a   : > { %v3378_v15 = vor.u32 %v3377_v58, %v3373_v47  ;;  %v3645_v31 = vsel %vm5739_vm7, %v4953_v60, %v3644_v27  ;;  %v3648_v19 = vsel %vm5739_vm7, %v3646_v57, %v3647_v7  ;;  %v3790_v60 = vld [vmem:[#allocation2 + $0x28] sm:$0xff] }
 0x14b   : > { %v3368_v10 = vor.u32 %v3367_v43, %v3364_v38  ;;  %v4969_v52 = vcombine.low %v3645_v31, %v3648_v19  ;;  %v3810_v36 = vld [vmem:[#allocation2 + $0xc8] sm:$0xff] }
 0x14c   : > { %v2220_v54 = vld [vmem:[#allocation2 + $0xf8] sm:$0xff]  ;;  %v3379_v45 = vrot.slane %v3378_v15, 4 }
 0x14d   : > { %4757 = vmatprep.mubr.msk.bf16.mxu1 %vm300_vm3, %v2220_v54  ;;  %3784 = vst.msk [vmem:[#allocation2 + $0xf8] sm:$0xff] %vm300_vm3, %v4977_v50  ;;  %v3369_v3 = vrot.slane %v3368_v10, 4 }
 0x14e   : > { %2519 = vmatmul.mubr.bf16.gmra.mrb[28].mxu1 %v2219_v56  ;;  %v1171_v61 = vld [vmem:[#allocation2 + $0x78] sm:$0xff]  ;;  %v3384_v50 = vsel %vm5273_vm2, %v3379_v45, %v3383_v4 }
 0x14f   : > { %4770 = vmatprep.mubr.msk.bf16.mxu1 %vm300_vm3, %v5973_v46  ;;  %2180 = vst.msk [vmem:[#allocation2 + $0x78] sm:$0xff] %vm300_vm3, %v4697_v53  ;;  %v3374_v21 = vsel %vm5273_vm2, %v3369_v3, %v3373_v47  ;;  %v3812_v47 = vld [vmem:[#allocation2 + $0xd8] sm:$0xff] }
 0x150   : > { %v4897_v56 = vcombine.low %v3374_v21, %v3384_v50 }
 0x151   : > { %v3450_v46 = vpop.permute.xlu0 %3449 }
 0x152   : > { %3463 = vrot.lane.b32.xlu1 %v4897_v56, %s5225_s18  ;;  %3489 = vst.msk [vmem:[#allocation2 + $0x80] sm:$0xff] %vm848_vm4, %v3450_v46 }
 0x154   : > { %v3816_v31 = vld [vmem:[#allocation2 + $0xf8] sm:$0xff] }
 0x156   : > { %2680 = vmatmul.mubr.bf16.vlgmr.msra.gmra.mrb[32].mxu1 %v5726_v5  ;;  %v2204_v30 = vld [vmem:[#allocation2 + $0x78] sm:$0xff] }
 0x157   : > { %4771 = vmatprep.mubr.msk.bf16.mxu1 %vm300_vm3, %v6176_v62  ;;  %4749 = vmatprep.mubr.msk.bf16.mxu0 %vm300_vm3, %v2204_v30  ;;  %3776 = vst.msk [vmem:[#allocation2 + $0x78] sm:$0xff] %vm300_vm3, %v4969_v52  ;;  %v3788_v5 = vld [vmem:[#allocation2 + $0x18] sm:$0xff] }
 0x158   : > { %2455 = vmatmul.mubr.bf16.gmra.mrb[28].mxu0 %v6711_v11  ;;  %v3791_v11 = vld [vmem:[#allocation2 + $0x30] sm:$0xff] }
 0x159   : > { %5014 = vmatprep.mubr.msk.bf16.mxu0 %vm300_vm3, %v3786_v13 }
 0x15e   : > { %2688 = vmatmul.mubr.bf16.gmra.mrb[36].mxu1 %v5748_v16  ;;  %v3789_v16 = vld [vmem:[#allocation2 + $0x20] sm:$0xff]  ;;  %v3800_v59 = vld [vmem:[#allocation2 + $0x78] sm:$0xff] }
 0x15f   : > { %4772 = vmatprep.mubr.msk.bf16.mxu1 %vm300_vm3, %v6350_v55  ;;  %v3792_v55 = vld [vmem:[#allocation2 + $0x38] sm:$0xff] }
 0x160   : > { %3995 = vmatmul.mubr.bf16.vlgmr.msra.gmra.mrb[32].mxu0 %v3785_v26 }
 0x161   : > { %5015 = vmatprep.mubr.msk.bf16.mxu0 %vm300_vm3, %v3788_v5 }
 0x165   : > { %v3452_v62 = vpop.permute.xlu1 %3451 }
 0x166   : > { %2696 = vmatmul.mubr.bf16.gmra.mrb[40].mxu1 %v5779_v28  ;;  %3490 = vst.msk [vmem:[#allocation2 + $0x90] sm:$0xff] %vm848_vm4, %v3452_v62 }
 0x167   : > { %4773 = vmatprep.mubr.msk.bf16.mxu1 %vm300_vm3, %v6528_v29  ;;  %v3794_v29 = vld [vmem:[#allocation2 + $0x48] sm:$0xff] }
 0x168   : > { %4003 = vmatmul.mubr.bf16.gmra.mrb[36].mxu0 %v3787_v12 }
 0x169   : > { %5016 = vmatprep.mubr.msk.bf16.mxu0 %vm300_vm3, %v3790_v60 }
 0x16d   : > { %v3803_v34 = vld [vmem:[#allocation2 + $0x90] sm:$0xff] }
 0x16e   : > { %2704 = vmatmul.mubr.bf16.gmra.mrb[44].mxu1 %v5930_v18  ;;  %v3793_v18 = vld [vmem:[#allocation2 + $0x40] sm:$0xff] }
 0x16f   : > { %4774 = vmatprep.mubr.msk.bf16.mxu1 %vm300_vm3, %v6629_v20  ;;  %v3796_v20 = vld [vmem:[#allocation2 + $0x58] sm:$0xff] }
 0x170   : > { %4011 = vmatmul.mubr.bf16.gmra.mrb[40].mxu0 %v3789_v16 }
 0x171   : > { %5017 = vmatprep.mubr.msk.bf16.mxu0 %vm300_vm3, %v3792_v55 }
 0x175   : > { %v3454_v28 = vpop.permute.xlu0 %3453 }
 0x176   : > { %3491 = vst.msk [vmem:[#allocation2 + $0xa0] sm:$0xff] %vm848_vm4, %v3454_v28  ;;  %2712 = vmatmul.mubr.bf16.gmra.mrb[48].mxu1 %v6150_v51  ;;  %v3795_v51 = vld [vmem:[#allocation2 + $0x50] sm:$0xff] }
 0x177   : > { %4775 = vmatprep.mubr.msk.bf16.mxu1 %vm300_vm3, %v6724_v23  ;;  %v3798_v23 = vld [vmem:[#allocation2 + $0x68] sm:$0xff] }
 0x178   : > { %4019 = vmatmul.mubr.bf16.gmra.mrb[44].mxu0 %v3791_v11 }
 0x179   : > { %5018 = vmatprep.mubr.msk.bf16.mxu0 %vm300_vm3, %v3794_v29 }
 0x17e   : > { %2720 = vmatmul.mubr.bf16.gmra.mrb[52].mxu1 %v6345_v8  ;;  %v3797_v8 = vld [vmem:[#allocation2 + $0x60] sm:$0xff] }
 0x17f   : > { %4776 = vmatprep.mubr.msk.bf16.mxu1 %vm300_vm3, %v6813_v25 }
 0x180   : > { %4027 = vmatmul.mubr.bf16.gmra.mrb[48].mxu0 %v3793_v18 }
 0x181   : > { %5019 = vmatprep.mubr.msk.bf16.mxu0 %vm300_vm3, %v3796_v20 }
 0x185   : > { %v3456_v27 = vpop.permute.xlu1 %3455 }
 0x186   : > { %3492 = vst.msk [vmem:[#allocation2 + $0xb0] sm:$0xff] %vm848_vm4, %v3456_v27  ;;  %2728 = vmatmul.mubr.bf16.gmra.mrb[56].mxu1 %v6548_v35  ;;  %v3799_v35 = vld [vmem:[#allocation2 + $0x70] sm:$0xff] }
 0x187   : > { %4777 = vmatprep.mubr.msk.bf16.mxu1 %vm300_vm3, %v1171_v61 }
 0x188   : > { %4035 = vmatmul.mubr.bf16.gmra.mrb[52].mxu0 %v3795_v51 }
 0x189   : > { %5020 = vmatprep.mubr.msk.bf16.mxu0 %vm300_vm3, %v3798_v23 }
 0x18d   : > { %v3807_v33 = vld [vmem:[#allocation2 + $0xb0] sm:$0xff] }
 0x18e   : > { %2736 = vmatmul.mubr.bf16.gmra.mrb[60].mxu1 %v6644_v40  ;;  %v3801_v40 = vld [vmem:[#allocation2 + $0x80] sm:$0xff] }
 0x18f   : > { %4778 = vmatprep.mubr.msk.bf16.mxu1 %vm300_vm3, %v5878_v44  ;;  %v3804_v44 = vld [vmem:[#allocation2 + $0x98] sm:$0xff] }
 0x190   : > { %4043 = vmatmul.mubr.bf16.gmra.mrb[56].mxu0 %v3797_v8 }
 0x191   : > { %5021 = vmatprep.mubr.msk.bf16.mxu0 %vm300_vm3, %v3800_v59 }
 0x196   : > { %2744 = vmatmul.mubr.bf16.gmra.mrb[64].mxu1 %v5724_v1  ;;  %v3806_v1 = vld [vmem:[#allocation2 + $0xa8] sm:$0xff] }
 0x197   : > { %v3458_v25 = vpop.permute.xlu0 %3457  ;;  %4779 = vmatprep.mubr.msk.bf16.mxu1 %vm300_vm3, %v6050_v49 }
 0x198   : > { %3493 = vst.msk [vmem:[#allocation2 + $0xc0] sm:$0xff] %vm848_vm4, %v3458_v25  ;;  %4051 = vmatmul.mubr.bf16.gmra.mrb[60].mxu0 %v3799_v35 }
 0x199   : > { %5022 = vmatprep.mubr.msk.bf16.mxu0 %vm300_vm3, %v3802_v24 }
 0x19e   : > { %2752 = vmatmul.mubr.bf16.gmra.mrb[68].mxu1 %v5728_v6  ;;  %v3805_v6 = vld [vmem:[#allocation2 + $0xa0] sm:$0xff] }
 0x19f   : > { %4780 = vmatprep.mubr.msk.bf16.mxu1 %vm300_vm3, %v6241_v9  ;;  %v3808_v9 = vld [vmem:[#allocation2 + $0xb8] sm:$0xff]  ;;  %v3809_v7 = vld [vmem:[#allocation2 + $0xc0] sm:$0xff] }
 0x1a0   : > { %4059 = vmatmul.mubr.bf16.gmra.mrb[64].mxu0 %v3801_v40 }
 0x1a1   : > { %5023 = vmatprep.mubr.msk.bf16.mxu0 %vm300_vm3, %v3804_v44 }
 0x1a6   : > { %2760 = vmatmul.mubr.bf16.gmra.mrb[72].mxu1 %v5750_v17 }
 0x1a7   : > { %4781 = vmatprep.mubr.msk.bf16.mxu1 %vm300_vm3, %v6419_v14 }
 0x1a8   : > { %v3460_v49 = vpop.permute.xlu1 %3459  ;;  %4067 = vmatmul.mubr.bf16.gmra.mrb[68].mxu0 %v3803_v34  ;;  %v6938_v42 = vpop.f32.mrb[0].mxu1 }
 0x1a9   : > { %3494 = vst.msk [vmem:[#allocation2 + $0xd0] sm:$0xff] %vm848_vm4, %v3460_v49  ;;  %5024 = vmatprep.mubr.msk.bf16.mxu0 %vm300_vm3, %v3806_v1  ;;  %v2466_v17 = vpop.f32.mrb[1].mxu1 }
 0x1aa   : > { %v6940_v32 = vpop.f32.mrb[2].mxu1 }
 0x1ab   : > { %v2469_v14 = vpop.f32.mrb[3].mxu1 }
 0x1ae   : > { %2768 = vmatmul.mubr.bf16.gmra.mrb[76].mxu1 %v5851_v22 }
 0x1af   : > { %4782 = vmatprep.mubr.msk.bf16.mxu1 %vm300_vm3, %v6563_v39 }
 0x1b0   : > { %4075 = vmatmul.mubr.bf16.gmra.mrb[72].mxu0 %v3805_v6  ;;  %v3811_v53 = vld [vmem:[#allocation2 + $0xd0] sm:$0xff] }
 0x1b1   : > { %5025 = vmatprep.mubr.msk.bf16.mxu0 %vm300_vm3, %v3808_v9 }
 0x1b2   : > { %v6946_v22 = vpop.f32.mrb[0].mxu0 }
 0x1b3   : > { %v2402_v38 = vpop.f32.mrb[1].mxu0 }
 0x1b4   : > { %v6948_v39 = vpop.f32.mrb[2].mxu0 }
 0x1b5   : > { %v2405_v57 = vpop.f32.mrb[3].mxu0 }
 0x1b6   : > { %2776 = vmatmul.mubr.bf16.gmra.mrb[80].mxu1 %v6034_v37 }
 0x1b7   : > { %4783 = vmatprep.mubr.msk.bf16.mxu1 %vm300_vm3, %v6656_v48 }
 0x1b8   : > { %4083 = vmatmul.mubr.bf16.gmra.mrb[76].mxu0 %v3807_v33 }
 0x1b9   : > { %5026 = vmatprep.mubr.msk.bf16.mxu0 %vm300_vm3, %v3810_v36 }
 0x1ba   : > { %v3462_v43 = vpop.permute.xlu0 %3461  ;;  %v6953_v37 = vpop.f32.mrb[4].mxu1 }
 0x1bb   : > { %3495 = vst.msk [vmem:[#allocation2 + $0xe0] sm:$0xff] %vm848_vm4, %v3462_v43  ;;  %v2474_v48 = vpop.f32.mrb[5].mxu1 }
 0x1bc   : > { %v6957_v58 = vpop.f32.mrb[6].mxu1 }
 0x1bd   : > { %v2477_v54 = vpop.f32.mrb[7].mxu1 }
 0x1be   : > { %2784 = vmatmul.mubr.bf16.gmra.mrb[84].mxu1 %v6293_v2  ;;  %v3814_v2 = vld [vmem:[#allocation2 + $0xe8] sm:$0xff] }
 0x1bf   : > { %4784 = vmatprep.mubr.msk.bf16.mxu1 %vm300_vm3, %v6749_v63 }
 0x1c0   : > { %4091 = vmatmul.mubr.bf16.gmra.mrb[80].mxu0 %v3809_v7 }
 0x1c1   : > { %5027 = vmatprep.mubr.msk.bf16.mxu0 %vm300_vm3, %v3812_v47 }
 0x1c2   : > { %v3813_v45 = vld [vmem:[#allocation2 + $0xe0] sm:$0xff] }
 0x1c4   : > { %v3464_v10 = vpop.permute.xlu1 %3463 }
 0x1c5   : > { %3496 = vst.msk [vmem:[#allocation2 + $0xf0] sm:$0xff] %vm848_vm4, %v3464_v10  ;;  %v6964_v4 = vpop.f32.mrb[4].mxu0 }
 0x1c6   : > { %2792 = vmatmul.mubr.bf16.gmra.mrb[88].mxu1 %v6478_v0  ;;  %v2410_v63 = vpop.f32.mrb[5].mxu0  ;;  %v7172_v0 = vld [vmem:[#allocation3_spill] sm:$0xff] }
 0x1c7   : > { %4785 = vmatprep.mubr.msk.bf16.mxu1 %vm300_vm3, %v6837_v41  ;;  %v6966_v15 = vpop.f32.mrb[6].mxu0 }
 0x1c8   : > { %4099 = vmatmul.mubr.bf16.gmra.mrb[84].mxu0 %v3811_v53  ;;  %v2413_v3 = vpop.f32.mrb[7].mxu0 }
 0x1c9   : > { %5028 = vmatprep.mubr.msk.bf16.mxu0 %vm300_vm3, %v3814_v2 }
 0x1cc   : > { %v3815_v56 = vld [vmem:[#allocation2 + $0xf0] sm:$0xff] }
 0x1cd   : > { %v6969_v61 = vpop.f32.mrb[8].mxu1 }
 0x1ce   : > { %2800 = vmatmul.mubr.bf16.gmra.mrb[92].mxu1 %v7172_v0  ;;  %v2482_v21 = vpop.f32.mrb[9].mxu1 }
 0x1cf   : > { %v6972_v19 = vpop.f32.mrb[10].mxu1 }
 0x1d0   : > { %v2485_v50 = vpop.f32.mrb[11].mxu1  ;;  %4107 = vmatmul.mubr.bf16.gmra.mrb[88].mxu0 %v3813_v45 }
 0x1d1   : > { %5029 = vmatprep.mubr.msk.bf16.mxu0 %vm300_vm3, %v3816_v31 }
 0x1d7   : > { %v6975_v41 = vpop.f32.mrb[8].mxu0 }
 0x1d8   : > { %v2418_v52 = vpop.f32.mrb[9].mxu0  ;;  %4115 = vmatmul.mubr.bf16.gmra.mrb[92].mxu0 %v3815_v56 }
 0x1d9   : > { %v6977_v46 = vpop.f32.mrb[10].mxu0 }
 0x1da   : > { %v2421_v30 = vpop.f32.mrb[11].mxu0 }
 0x1de   : > { %v6979_v13 = vpop.f32.mrb[12].mxu1 }
 0x1df   : > { %v2490_v26 = vpop.f32.mrb[13].mxu1 }
 0x1e0   : > { %v6981_v5 = vpop.f32.mrb[14].mxu1 }
 0x1e1   : > { %v2493_v12 = vpop.f32.mrb[15].mxu1 }
 0x1e9   : > { %v6983_v62 = vpop.f32.mrb[12].mxu0 }
 0x1ea   : > { %v2426_v60 = vpop.f32.mrb[13].mxu0 }
 0x1eb   : > { %v6985_v16 = vpop.f32.mrb[14].mxu0 }
 0x1ec   : > { %v2429_v55 = vpop.f32.mrb[15].mxu0 }
 0x1ed   : > { %v6987_v28 = vpop.f32.mrb[16].mxu1 }
 0x1ee   : > { %v2498_v11 = vpop.f32.mrb[17].mxu1 }
 0x1ef   : > { %v6989_v29 = vpop.f32.mrb[18].mxu1 }
 0x1f0   : > { %v2501_v18 = vpop.f32.mrb[19].mxu1 }
 0x1f6   : > { %v6991_v20 = vpop.f32.mrb[16].mxu0 }
 0x1f7   : > { %v2434_v27 = vpop.f32.mrb[17].mxu0 }
 0x1f8   : > { %v6993_v51 = vpop.f32.mrb[18].mxu0 }
 0x1f9   : > { %v2437_v23 = vpop.f32.mrb[19].mxu0 }
 0x1fd   : > { %v6995_v8 = vpop.f32.mrb[20].mxu1 }
 0x1fe   : > { %v2506_v59 = vpop.f32.mrb[21].mxu1 }
 0x1ff   : > { %v6997_v25 = vpop.f32.mrb[22].mxu1 }
 0x200   : > { %v2509_v35 = vpop.f32.mrb[23].mxu1 }
 0x208   : > { %v6999_v24 = vpop.f32.mrb[20].mxu0 }
 0x209   : > { %v2442_v40 = vpop.f32.mrb[21].mxu0 }
 0x20a   : > { %v7001_v44 = vpop.f32.mrb[22].mxu0 }
 0x20b   : > { %v2445_v34 = vpop.f32.mrb[23].mxu0 }
 0x210   : > { %v7003_v1 = vpop.f32.mrb[24].mxu1 }
 0x211   : > { %v2514_v49 = vpop.f32.mrb[25].mxu1 }
 0x212   : > { %v7005_v6 = vpop.f32.mrb[26].mxu1 }
 0x213   : > { %v2517_v9 = vpop.f32.mrb[27].mxu1 }
 0x21a   : > { %v7007_v17 = vpop.f32.mrb[24].mxu0 }
 0x21b   : > { %v2450_v14 = vpop.f32.mrb[25].mxu0 }
 0x21c   : > { %v7009_v33 = vpop.f32.mrb[26].mxu0 }
 0x21d   : > { %v2453_v36 = vpop.f32.mrb[27].mxu0 }
 0x221   : > { %v7011_v38 = vpop.f32.mrb[28].mxu1 }
 0x222   : > { %v2522_v43 = vpop.f32.mrb[29].mxu1 }
 0x223   : > { %v7013_v57 = vpop.f32.mrb[30].mxu1 }
 0x224   : > { %v2525_v7 = vpop.f32.mrb[31].mxu1 }
 0x229   : > { %v2681_v47 = vpop.f32.mrb[32].mxu1 }
 0x22a   : > { %v2682_v48 = vadd.f32 %v2681_v47, %v6946_v22  ;;  %v2683_v54 = vpop.f32.mrb[33].mxu1  ;;  %v7025_v22 = vld [vmem:[%s7163_s2] ss:$0 sm:$0xff] }
 0x22b   : > { %v2684_v53 = vpop.f32.mrb[34].mxu1  ;;  %v7016_v10 = vpop.f32.mrb[28].mxu0 }
 0x22c   : > { %v2685_v2 = vadd.f32 %v2684_v53, %v6948_v39  ;;  %v2686_v63 = vpop.f32.mrb[35].mxu1  ;;  %v2458_v3 = vpop.f32.mrb[29].mxu0 }
 0x22d   : > { %v7019_v45 = vpop.f32.mrb[30].mxu0 }
 0x22e   : > { %v2461_v0 = vpop.f32.mrb[31].mxu0 }
 0x231   : > { %v2689_v21 = vpop.f32.mrb[36].mxu1 }
 0x232   : > { %v2690_v31 = vadd.f32 %v2689_v21, %v6964_v4  ;;  %v2691_v50 = vpop.f32.mrb[37].mxu1 }
 0x233   : > { %v2692_v56 = vpop.f32.mrb[38].mxu1  ;;  %v3996_v52 = vpop.f32.mrb[32].mxu0 }
 0x234   : > { %v2693_v30 = vadd.f32 %v2692_v56, %v6966_v15  ;;  %v2694_v39 = vpop.f32.mrb[39].mxu1  ;;  %v4123_v26 = vadd.f32 %v3996_v52, %v2682_v48  ;;  %v3998_v12 = vpop.f32.mrb[33].mxu0 }
 0x235   : > { %v3999_v60 = vpop.f32.mrb[34].mxu0 }
 0x236   : > { %v4162_v55 = vadd.f32 %v7025_v22, %v4123_v26  ;;  %v4124_v11 = vadd.f32 %v3999_v60, %v2685_v2  ;;  %v4001_v18 = vpop.f32.mrb[35].mxu0 }
 0x238   : > { %v4194_v4 = vmax.f32 %v4162_v55, 0.0  ;;  %v4163_v27 = vadd.f32 %v7025_v22, %v4124_v11 }
 0x239   : > { %v2697_v23 = vpop.f32.mrb[40].mxu1 }
 0x23a   : > { %v2698_v15 = vadd.f32 %v2697_v23, %v6975_v41  ;;  %v2699_v59 = vpop.f32.mrb[41].mxu1  ;;  %v5066_v35 = vpack.c.bf16 %v4194_v4, %v4194_v4  ;;  %v4195_v40 = vmax.f32 %v4163_v27, 0.0 }
 0x23b   : > { %v2700_v34 = vpop.f32.mrb[42].mxu1  ;;  %v4004_v49 = vpop.f32.mrb[36].mxu0 }
 0x23c   : > { %v2701_v9 = vadd.f32 %v2700_v34, %v6977_v46  ;;  %v2702_v14 = vpop.f32.mrb[43].mxu1  ;;  %4355 = vst.msk [vmem:[%s7034_s25] sm:$0xf] %vm4354_vm8, %v5066_v35  ;;  %v5067_v36 = vpack.c.bf16 %v4195_v40, %v4195_v40  ;;  %v4125_v43 = vadd.f32 %v4004_v49, %v2690_v31  ;;  %v4006_v7 = vpop.f32.mrb[37].mxu0 }
 0x23d   : > { %v4007_v47 = vpop.f32.mrb[38].mxu0 }
 0x23e   : > { %4356 = vst.msk [vmem:[%s7034_s25 + $0x4] sm:$0xf] %vm4354_vm8, %v5067_v36  ;;  %v4164_v48 = vadd.f32 %v7025_v22, %v4125_v43  ;;  %v4126_v41 = vadd.f32 %v4007_v47, %v2693_v30  ;;  %v4009_v54 = vpop.f32.mrb[39].mxu0 }
 0x240   : > { %v4196_v53 = vmax.f32 %v4164_v48, 0.0  ;;  %v4165_v2 = vadd.f32 %v7025_v22, %v4126_v41 }
 0x241   : > { %v2705_v63 = vpop.f32.mrb[44].mxu1 }
 0x242   : > { %v2706_v46 = vadd.f32 %v2705_v63, %v6983_v62  ;;  %v2707_v3 = vpop.f32.mrb[45].mxu1  ;;  %v5068_v0 = vpack.c.bf16 %v4196_v53, %v4196_v53  ;;  %v4197_v21 = vmax.f32 %v4165_v2, 0.0 }
 0x243   : > { %v2708_v31 = vpop.f32.mrb[46].mxu1  ;;  %v4012_v50 = vpop.f32.mrb[40].mxu0 }
 0x244   : > { %v2709_v56 = vadd.f32 %v2708_v31, %v6985_v16  ;;  %v2710_v52 = vpop.f32.mrb[47].mxu1  ;;  %4357 = vst.msk [vmem:[%s7034_s25 + $0x8] sm:$0xf] %vm4354_vm8, %v5068_v0  ;;  %v5069_v39 = vpack.c.bf16 %v4197_v21, %v4197_v21  ;;  %v4127_v30 = vadd.f32 %v4012_v50, %v2698_v15  ;;  %v4014_v26 = vpop.f32.mrb[41].mxu0 }
 0x245   : > { %v4015_v12 = vpop.f32.mrb[42].mxu0 }
 0x246   : > { %4358 = vst.msk [vmem:[%s7034_s25 + $0xc] sm:$0xf] %vm4354_vm8, %v5069_v39  ;;  %v4166_v60 = vadd.f32 %v7025_v22, %v4127_v30  ;;  %v4128_v62 = vadd.f32 %v4015_v12, %v2701_v9  ;;  %v4017_v55 = vpop.f32.mrb[43].mxu0 }
 0x248   : > { %v4198_v11 = vmax.f32 %v4166_v60, 0.0  ;;  %v4167_v18 = vadd.f32 %v7025_v22, %v4128_v62 }
 0x249   : > { %v2713_v4 = vpop.f32.mrb[48].mxu1 }
 0x24a   : > { %v2714_v16 = vadd.f32 %v2713_v4, %v6991_v20  ;;  %v2715_v27 = vpop.f32.mrb[49].mxu1  ;;  %v5070_v23 = vpack.c.bf16 %v4198_v11, %v4198_v11  ;;  %v4199_v59 = vmax.f32 %v4167_v18, 0.0 }
 0x24b   : > { %v2716_v15 = vpop.f32.mrb[50].mxu1  ;;  %v4020_v35 = vpop.f32.mrb[44].mxu0 }
 0x24c   : > { %v2717_v40 = vadd.f32 %v2716_v15, %v6993_v51  ;;  %v2718_v34 = vpop.f32.mrb[51].mxu1  ;;  %4359 = vst.msk [vmem:[%s7034_s25 + $0x10] sm:$0xf] %vm4354_vm8, %v5070_v23  ;;  %v5071_v49 = vpack.c.bf16 %v4199_v59, %v4199_v59  ;;  %v4129_v9 = vadd.f32 %v4020_v35, %v2706_v46  ;;  %v4022_v14 = vpop.f32.mrb[45].mxu0 }
 0x24d   : > { %v4023_v36 = vpop.f32.mrb[46].mxu0 }
 0x24e   : > { %4360 = vst.msk [vmem:[%s7034_s25 + $0x14] sm:$0xf] %vm4354_vm8, %v5071_v49  ;;  %v4168_v43 = vadd.f32 %v7025_v22, %v4129_v9  ;;  %v4130_v20 = vadd.f32 %v4023_v36, %v2709_v56  ;;  %v4025_v7 = vpop.f32.mrb[47].mxu0 }
 0x250   : > { %v4200_v47 = vmax.f32 %v4168_v43, 0.0  ;;  %v4169_v48 = vadd.f32 %v7025_v22, %v4130_v20 }
 0x251   : > { %v2721_v41 = vpop.f32.mrb[52].mxu1 }
 0x252   : > { %v2722_v51 = vadd.f32 %v2721_v41, %v6999_v24  ;;  %v2723_v54 = vpop.f32.mrb[53].mxu1  ;;  %v5072_v53 = vpack.c.bf16 %v4200_v47, %v4200_v47  ;;  %v4201_v2 = vmax.f32 %v4169_v48, 0.0 }
 0x253   : > { %v2724_v63 = vpop.f32.mrb[54].mxu1  ;;  %v4028_v46 = vpop.f32.mrb[48].mxu0 }
 0x254   : > { %v2725_v3 = vadd.f32 %v2724_v63, %v7001_v44  ;;  %v2726_v0 = vpop.f32.mrb[55].mxu1  ;;  %4361 = vst.msk [vmem:[%s7034_s25 + $0x18] sm:$0xf] %vm4354_vm8, %v5072_v53  ;;  %v5073_v21 = vpack.c.bf16 %v4201_v2, %v4201_v2  ;;  %v4131_v31 = vadd.f32 %v4028_v46, %v2714_v16  ;;  %v4030_v50 = vpop.f32.mrb[49].mxu0 }
 0x255   : > { %v4031_v56 = vpop.f32.mrb[50].mxu0 }
 0x256   : > { %4362 = vst.msk [vmem:[%s7034_s25 + $0x1c] sm:$0xf] %vm4354_vm8, %v5073_v21  ;;  %v4170_v52 = vadd.f32 %v7025_v22, %v4131_v31  ;;  %v4132_v24 = vadd.f32 %v4031_v56, %v2717_v40  ;;  %v4033_v39 = vpop.f32.mrb[51].mxu0 }
 0x258   : > { %v4202_v30 = vmax.f32 %v4170_v52, 0.0  ;;  %v4171_v26 = vadd.f32 %v7025_v22, %v4132_v24 }
 0x259   : > { %v2729_v12 = vpop.f32.mrb[56].mxu1 }
 0x25a   : > { %v2730_v44 = vadd.f32 %v2729_v12, %v7007_v17  ;;  %v2731_v60 = vpop.f32.mrb[57].mxu1  ;;  %v5074_v62 = vpack.c.bf16 %v4202_v30, %v4202_v30  ;;  %v4203_v55 = vmax.f32 %v4171_v26, 0.0 }
 0x25b   : > { %v2732_v11 = vpop.f32.mrb[58].mxu1  ;;  %v4036_v18 = vpop.f32.mrb[52].mxu0 }
 0x25c   : > { %v2733_v4 = vadd.f32 %v2732_v11, %v7009_v33  ;;  %v2734_v16 = vpop.f32.mrb[59].mxu1  ;;  %4363 = vst.msk [vmem:[%s7034_s25 + $0x20] sm:$0xf] %vm4354_vm8, %v5074_v62  ;;  %v5075_v27 = vpack.c.bf16 %v4203_v55, %v4203_v55  ;;  %v4133_v23 = vadd.f32 %v4036_v18, %v2722_v51  ;;  %v4038_v59 = vpop.f32.mrb[53].mxu0 }
 0x25d   : > { %v4039_v15 = vpop.f32.mrb[54].mxu0 }
 0x25e   : > { %4364 = vst.msk [vmem:[%s7034_s25 + $0x24] sm:$0xf] %vm4354_vm8, %v5075_v27  ;;  %v4172_v35 = vadd.f32 %v7025_v22, %v4133_v23  ;;  %v4134_v17 = vadd.f32 %v4039_v15, %v2725_v3  ;;  %v4041_v40 = vpop.f32.mrb[55].mxu0 }
 0x260   : > { %v4204_v34 = vmax.f32 %v4172_v35, 0.0  ;;  %v4173_v49 = vadd.f32 %v7025_v22, %v4134_v17 }
 0x261   : > { %v2737_v9 = vpop.f32.mrb[60].mxu1 }
 0x262   : > { %v2738_v33 = vadd.f32 %v2737_v9, %v7016_v10  ;;  %v2739_v14 = vpop.f32.mrb[61].mxu1  ;;  %v5076_v36 = vpack.c.bf16 %v4204_v34, %v4204_v34  ;;  %v4205_v43 = vmax.f32 %v4173_v49, 0.0 }
 0x263   : > { %v2740_v20 = vpop.f32.mrb[62].mxu1  ;;  %v4044_v7 = vpop.f32.mrb[56].mxu0 }
 0x264   : > { %v2741_v47 = vadd.f32 %v2740_v20, %v7019_v45  ;;  %v2742_v48 = vpop.f32.mrb[63].mxu1  ;;  %4365 = vst.msk [vmem:[%s7034_s25 + $0x28] sm:$0xf] %vm4354_vm8, %v5076_v36  ;;  %v5077_v41 = vpack.c.bf16 %v4205_v43, %v4205_v43  ;;  %v4135_v51 = vadd.f32 %v4044_v7, %v2730_v44  ;;  %v4046_v54 = vpop.f32.mrb[57].mxu0 }
 0x265   : > { %v4047_v53 = vpop.f32.mrb[58].mxu0 }
 0x266   : > { %4366 = vst.msk [vmem:[%s7034_s25 + $0x2c] sm:$0xf] %vm4354_vm8, %v5077_v41  ;;  %v4174_v2 = vadd.f32 %v7025_v22, %v4135_v51  ;;  %v4136_v10 = vadd.f32 %v4047_v53, %v2733_v4  ;;  %v4049_v63 = vpop.f32.mrb[59].mxu0 }
 0x268   : > { %v4206_v46 = vmax.f32 %v4174_v2, 0.0  ;;  %v4175_v3 = vadd.f32 %v7025_v22, %v4136_v10 }
 0x269   : > { %v2745_v0 = vpop.f32.mrb[64].mxu1 }
 0x26a   : > { %v2746_v45 = vadd.f32 %v2745_v0, %v6938_v42  ;;  %v2747_v21 = vpop.f32.mrb[65].mxu1  ;;  %v5078_v31 = vpack.c.bf16 %v4206_v46, %v4206_v46  ;;  %v4207_v50 = vmax.f32 %v4175_v3, 0.0 }
 0x26b   : > { %v2748_v56 = vpop.f32.mrb[66].mxu1  ;;  %v4052_v52 = vpop.f32.mrb[60].mxu0 }
 0x26c   : > { %v2749_v24 = vadd.f32 %v2748_v56, %v6940_v32  ;;  %v2750_v39 = vpop.f32.mrb[67].mxu1  ;;  %4367 = vst.msk [vmem:[%s7034_s25 + $0x30] sm:$0xf] %vm4354_vm8, %v5078_v31  ;;  %v5079_v30 = vpack.c.bf16 %v4207_v50, %v4207_v50  ;;  %v4137_v26 = vadd.f32 %v4052_v52, %v2738_v33  ;;  %v4054_v12 = vpop.f32.mrb[61].mxu0 }
 0x26d   : > { %v4055_v44 = vpop.f32.mrb[62].mxu0 }
 0x26e   : > { %4368 = vst.msk [vmem:[%s7034_s25 + $0x34] sm:$0xf] %vm4354_vm8, %v5079_v30  ;;  %v4176_v60 = vadd.f32 %v7025_v22, %v4137_v26  ;;  %v4138_v42 = vadd.f32 %v4055_v44, %v2741_v47  ;;  %v4057_v62 = vpop.f32.mrb[63].mxu0 }
 0x270   : > { %v4208_v55 = vmax.f32 %v4176_v60, 0.0  ;;  %v4177_v11 = vadd.f32 %v7025_v22, %v4138_v42 }
 0x271   : > { %v2753_v18 = vpop.f32.mrb[68].mxu1 }
 0x272   : > { %v2754_v32 = vadd.f32 %v2753_v18, %v6953_v37  ;;  %v2755_v4 = vpop.f32.mrb[69].mxu1  ;;  %v5080_v16 = vpack.c.bf16 %v4208_v55, %v4208_v55  ;;  %v4209_v27 = vmax.f32 %v4177_v11, 0.0 }
 0x273   : > { %v2756_v23 = vpop.f32.mrb[70].mxu1  ;;  %v4060_v59 = vpop.f32.mrb[64].mxu0 }
 0x274   : > { %v2757_v15 = vadd.f32 %v2756_v23, %v6957_v58  ;;  %v2758_v35 = vpop.f32.mrb[71].mxu1  ;;  %4369 = vst.msk [vmem:[%s7034_s25 + $0x38] sm:$0xf] %vm4354_vm8, %v5080_v16  ;;  %v5081_v17 = vpack.c.bf16 %v4209_v27, %v4209_v27  ;;  %v4139_v40 = vadd.f32 %v4060_v59, %v2746_v45  ;;  %v4062_v34 = vpop.f32.mrb[65].mxu0 }
 0x275   : > { %v4063_v49 = vpop.f32.mrb[66].mxu0 }
 0x276   : > { %4370 = vst.msk [vmem:[%s7034_s25 + $0x3c] sm:$0xf] %vm4354_vm8, %v5081_v17  ;;  %v4178_v9 = vadd.f32 %v7025_v22, %v4139_v40  ;;  %v4140_v37 = vadd.f32 %v4063_v49, %v2749_v24  ;;  %v4065_v33 = vpop.f32.mrb[67].mxu0 }
 0x278   : > { %v4210_v14 = vmax.f32 %v4178_v9, 0.0  ;;  %v4179_v36 = vadd.f32 %v7025_v22, %v4140_v37 }
 0x279   : > { %v2761_v43 = vpop.f32.mrb[72].mxu1 }
 0x27a   : > { %v2762_v58 = vadd.f32 %v2761_v43, %v6969_v61  ;;  %v2763_v20 = vpop.f32.mrb[73].mxu1  ;;  %v5082_v7 = vpack.c.bf16 %v4210_v14, %v4210_v14  ;;  %v4211_v47 = vmax.f32 %v4179_v36, 0.0 }
 0x27b   : > { %v2764_v48 = vpop.f32.mrb[74].mxu1  ;;  %v4068_v41 = vpop.f32.mrb[68].mxu0 }
 0x27c   : > { %v2765_v51 = vadd.f32 %v2764_v48, %v6972_v19  ;;  %v2766_v54 = vpop.f32.mrb[75].mxu1  ;;  %4371 = vst.msk [vmem:[%s7034_s25 + $0x40] sm:$0xf] %vm4354_vm8, %v5082_v7  ;;  %v5083_v53 = vpack.c.bf16 %v4211_v47, %v4211_v47  ;;  %v4141_v2 = vadd.f32 %v4068_v41, %v2754_v32  ;;  %v4070_v10 = vpop.f32.mrb[69].mxu0 }
 0x27d   : > { %v4071_v63 = vpop.f32.mrb[70].mxu0 }
 0x27e   : > { %4372 = vst.msk [vmem:[%s7034_s25 + $0x44] sm:$0xf] %vm4354_vm8, %v5083_v53  ;;  %v4180_v46 = vadd.f32 %v7025_v22, %v4141_v2  ;;  %v4142_v61 = vadd.f32 %v4071_v63, %v2757_v15  ;;  %v4073_v3 = vpop.f32.mrb[71].mxu0 }
 0x280   : > { %v4212_v0 = vmax.f32 %v4180_v46, 0.0  ;;  %v4181_v45 = vadd.f32 %v7025_v22, %v4142_v61 }
 0x281   : > { %v2769_v21 = vpop.f32.mrb[76].mxu1 }
 0x282   : > { %v2770_v19 = vadd.f32 %v2769_v21, %v6979_v13  ;;  %v2771_v31 = vpop.f32.mrb[77].mxu1  ;;  %v5084_v50 = vpack.c.bf16 %v4212_v0, %v4212_v0  ;;  %v4213_v56 = vmax.f32 %v4181_v45, 0.0 }
 0x283   : > { %v2772_v52 = vpop.f32.mrb[78].mxu1  ;;  %v4076_v24 = vpop.f32.mrb[72].mxu0 }
 0x284   : > { %v2773_v39 = vadd.f32 %v2772_v52, %v6981_v5  ;;  %v2774_v30 = vpop.f32.mrb[79].mxu1  ;;  %4373 = vst.msk [vmem:[%s7034_s25 + $0x48] sm:$0xf] %vm4354_vm8, %v5084_v50  ;;  %v5085_v26 = vpack.c.bf16 %v4213_v56, %v4213_v56  ;;  %v4143_v12 = vadd.f32 %v4076_v24, %v2762_v58  ;;  %v4078_v44 = vpop.f32.mrb[73].mxu0 }
 0x285   : > { %v4079_v60 = vpop.f32.mrb[74].mxu0 }
 0x286   : > { %4374 = vst.msk [vmem:[%s7034_s25 + $0x4c] sm:$0xf] %vm4354_vm8, %v5085_v26  ;;  %v4182_v42 = vadd.f32 %v7025_v22, %v4143_v12  ;;  %v4144_v13 = vadd.f32 %v4079_v60, %v2765_v51  ;;  %v4081_v62 = vpop.f32.mrb[75].mxu0 }
 0x288   : > { %v4214_v55 = vmax.f32 %v4182_v42, 0.0  ;;  %v4183_v11 = vadd.f32 %v7025_v22, %v4144_v13 }
 0x289   : > { %v2777_v18 = vpop.f32.mrb[80].mxu1 }
 0x28a   : > { %v2778_v5 = vadd.f32 %v2777_v18, %v6987_v28  ;;  %v2779_v32 = vpop.f32.mrb[81].mxu1  ;;  %v5086_v4 = vpack.c.bf16 %v4214_v55, %v4214_v55  ;;  %v4215_v16 = vmax.f32 %v4183_v11, 0.0 }
 0x28b   : > { %v2780_v27 = vpop.f32.mrb[82].mxu1  ;;  %v4084_v23 = vpop.f32.mrb[76].mxu0 }
 0x28c   : > { %v2781_v59 = vadd.f32 %v2780_v27, %v6989_v29  ;;  %v2782_v15 = vpop.f32.mrb[83].mxu1  ;;  %4375 = vst.msk [vmem:[%s7034_s25 + $0x50] sm:$0xf] %vm4354_vm8, %v5086_v4  ;;  %v5087_v35 = vpack.c.bf16 %v4215_v16, %v4215_v16  ;;  %v4145_v17 = vadd.f32 %v4084_v23, %v2770_v19  ;;  %v4086_v40 = vpop.f32.mrb[77].mxu0 }
 0x28d   : > { %v4087_v34 = vpop.f32.mrb[78].mxu0 }
 0x28e   : > { %4376 = vst.msk [vmem:[%s7034_s25 + $0x54] sm:$0xf] %vm4354_vm8, %v5087_v35  ;;  %v4184_v49 = vadd.f32 %v7025_v22, %v4145_v17  ;;  %v4146_v28 = vadd.f32 %v4087_v34, %v2773_v39  ;;  %v4089_v9 = vpop.f32.mrb[79].mxu0 }
 0x290   : > { %v4216_v37 = vmax.f32 %v4184_v49, 0.0  ;;  %v4185_v33 = vadd.f32 %v7025_v22, %v4146_v28 }
 0x291   : > { %v2785_v14 = vpop.f32.mrb[84].mxu1 }
 0x292   : > { %v2786_v29 = vadd.f32 %v2785_v14, %v6995_v8  ;;  %v2787_v36 = vpop.f32.mrb[85].mxu1  ;;  %v5088_v43 = vpack.c.bf16 %v4216_v37, %v4216_v37  ;;  %v4217_v58 = vmax.f32 %v4185_v33, 0.0 }
 0x293   : > { %v2788_v20 = vpop.f32.mrb[86].mxu1  ;;  %v4092_v7 = vpop.f32.mrb[80].mxu0 }
 0x294   : > { %v2789_v47 = vadd.f32 %v2788_v20, %v6997_v25  ;;  %v2790_v48 = vpop.f32.mrb[87].mxu1  ;;  %4377 = vst.msk [vmem:[%s7034_s25 + $0x58] sm:$0xf] %vm4354_vm8, %v5088_v43  ;;  %v5089_v41 = vpack.c.bf16 %v4217_v58, %v4217_v58  ;;  %v4147_v51 = vadd.f32 %v4092_v7, %v2778_v5  ;;  %v4094_v54 = vpop.f32.mrb[81].mxu0 }
 0x295   : > { %v4095_v53 = vpop.f32.mrb[82].mxu0 }
 0x296   : > { %4378 = vst.msk [vmem:[%s7034_s25 + $0x5c] sm:$0xf] %vm4354_vm8, %v5089_v41  ;;  %v4186_v2 = vadd.f32 %v7025_v22, %v4147_v51  ;;  %v4148_v8 = vadd.f32 %v4095_v53, %v2781_v59  ;;  %v4097_v10 = vpop.f32.mrb[83].mxu0 }
 0x298   : > { %v4218_v63 = vmax.f32 %v4186_v2, 0.0  ;;  %v4187_v46 = vadd.f32 %v7025_v22, %v4148_v8 }
 0x299   : > { %v2793_v61 = vpop.f32.mrb[88].mxu1 }
 0x29a   : > { %v2794_v25 = vadd.f32 %v2793_v61, %v7003_v1  ;;  %v2795_v3 = vpop.f32.mrb[89].mxu1  ;;  %v5090_v0 = vpack.c.bf16 %v4218_v63, %v4218_v63  ;;  %v4219_v45 = vmax.f32 %v4187_v46, 0.0 }
 0x29b   : > { %v2796_v21 = vpop.f32.mrb[90].mxu1  ;;  %v4100_v19 = vpop.f32.mrb[84].mxu0 }
 0x29c   : > { %v2797_v31 = vadd.f32 %v2796_v21, %v7005_v6  ;;  %v2798_v50 = vpop.f32.mrb[91].mxu1  ;;  %4379 = vst.msk [vmem:[%s7034_s25 + $0x60] sm:$0xf] %vm4354_vm8, %v5090_v0  ;;  %v5091_v56 = vpack.c.bf16 %v4219_v45, %v4219_v45  ;;  %v4149_v52 = vadd.f32 %v4100_v19, %v2786_v29  ;;  %v4102_v24 = vpop.f32.mrb[85].mxu0 }
 0x29d   : > { %v4103_v39 = vpop.f32.mrb[86].mxu0 }
 0x29e   : > { %4380 = vst.msk [vmem:[%s7034_s25 + $0x64] sm:$0xf] %vm4354_vm8, %v5091_v56  ;;  %v4188_v30 = vadd.f32 %v7025_v22, %v4149_v52  ;;  %v4150_v1 = vadd.f32 %v4103_v39, %v2789_v47  ;;  %v4105_v26 = vpop.f32.mrb[87].mxu0 }
 0x2a0   : > { %v4220_v12 = vmax.f32 %v4188_v30, 0.0  ;;  %v4189_v44 = vadd.f32 %v7025_v22, %v4150_v1 }
 0x2a1   : > { %v2801_v60 = vpop.f32.mrb[92].mxu1 }
 0x2a2   : > { %v2802_v6 = vadd.f32 %v2801_v60, %v7011_v38  ;;  %v2803_v42 = vpop.f32.mrb[93].mxu1  ;;  %v5092_v13 = vpack.c.bf16 %v4220_v12, %v4220_v12  ;;  %v4221_v62 = vmax.f32 %v4189_v44, 0.0 }
 0x2a3   : > { %v2804_v55 = vpop.f32.mrb[94].mxu1  ;;  %v4108_v11 = vpop.f32.mrb[88].mxu0 }
 0x2a4   : > { %v2805_v18 = vadd.f32 %v2804_v55, %v7013_v57  ;;  %v2806_v5 = vpop.f32.mrb[95].mxu1  ;;  %4381 = vst.msk [vmem:[%s7034_s25 + $0x68] sm:$0xf] %vm4354_vm8, %v5092_v13  ;;  %v5093_v32 = vpack.c.bf16 %v4221_v62, %v4221_v62  ;;  %v4151_v4 = vadd.f32 %v4108_v11, %v2794_v25  ;;  %v4110_v16 = vpop.f32.mrb[89].mxu0 }
 0x2a5   : > { %v4111_v27 = vpop.f32.mrb[90].mxu0 }
 0x2a6   : > { %4382 = vst.msk [vmem:[%s7034_s25 + $0x6c] sm:$0xf] %vm4354_vm8, %v5093_v32  ;;  %v4190_v38 = vadd.f32 %v7025_v22, %v4151_v4  ;;  %v4152_v23 = vadd.f32 %v4111_v27, %v2797_v31  ;;  %v4113_v59 = vpop.f32.mrb[91].mxu0 }
 0x2a8   : > { %v4222_v15 = vmax.f32 %v4190_v38, 0.0  ;;  %v4191_v35 = vadd.f32 %v7025_v22, %v4152_v23 }
 0x2aa   : > { %v5094_v17 = vpack.c.bf16 %v4222_v15, %v4222_v15  ;;  %v4223_v57 = vmax.f32 %v4191_v35, 0.0 }
 0x2ab   : > { %v4116_v40 = vpop.f32.mrb[92].mxu0 }
 0x2ac   : > { %4383 = vst.msk [vmem:[%s7034_s25 + $0x70] sm:$0xf] %vm4354_vm8, %v5094_v17  ;;  %v5095_v34 = vpack.c.bf16 %v4223_v57, %v4223_v57  ;;  %v4153_v49 = vadd.f32 %v4116_v40, %v2802_v6  ;;  %v4118_v28 = vpop.f32.mrb[93].mxu0 }
 0x2ad   : > { %v4119_v9 = vpop.f32.mrb[94].mxu0 }
 0x2ae   : > { %4384 = vst.msk [vmem:[%s7034_s25 + $0x74] sm:$0xf] %vm4354_vm8, %v5095_v34  ;;  %v4192_v37 = vadd.f32 %v7025_v22, %v4153_v49  ;;  %v4154_v33 = vadd.f32 %v4119_v9, %v2805_v18  ;;  %v4121_v14 = vpop.f32.mrb[95].mxu0 }
 0x2b0   : > { %v4224_v29 = vmax.f32 %v4192_v37, 0.0  ;;  %v4193_v36 = vadd.f32 %v7025_v22, %v4154_v33 }
 0x2b2   : > { %v5096_v43 = vpack.c.bf16 %v4224_v29, %v4224_v29  ;;  %v4225_v58 = vmax.f32 %v4193_v36, 0.0 }
 0x2b4   : > { %4385 = vst.msk [vmem:[%s7034_s25 + $0x78] sm:$0xf] %vm4354_vm8, %v5096_v43  ;;  %v5097_v20 = vpack.c.bf16 %v4225_v58, %v4225_v58 }
 0x2b6   : > { %4386 = vst.msk [vmem:[%s7034_s25 + $0x7c] sm:$0xf] %vm4354_vm8, %v5097_v20 }
 0x2b7 PF: > { %s13_s12 = sadd.s32 1, %s5223_s12  }
 0x2b8   : > { %p10_p4 = scmp.ge.s32.totalorder %s13_s12, 4  }
 0x2ba   :  { %12 = sbr.rel (!%p10_p4) target bundleno = 1 (0x1), region = 66 }

// kernel: basic_block_forward.3
= control target key start
LH: loop header
LB: loop body
LE: loop exit
PB: predicated region body
PF: predicated region fallthrough
CT: control target
= control target key end

     0   :  { %9 = vsyncpa [#allocation4], 0  ;;  %s7532_s0 = inlined_call_operand.vmem [shape: bf16[2,18,18,64], index: 0, kind: input, shape index: {}]   ;;  %s7533_s1 = inlined_call_operand.vmem [shape: bf16[3,192,64], index: 1, kind: input, shape index: {}]   ;;  %s7534_s2 = inlined_call_operand.vmem [shape: f32[1,64], index: 2, kind: input, shape index: {}]   ;;  %s7535_s3 = inlined_call_operand.vmem [shape: f32[2,256,64], index: 3, kind: input, shape index: {}]   ;;  %s7536_s4 = inlined_call_operand.hbm [shape: bf16[2,256,64], index: 4, kind: output, shape index: {}]  }
   0x1   :  { %11 = vsyncpa [#allocation4 + $0x1], 0  ;;  %s5488_s15 = smov 0   ;;  %s5490_s16 = smov 0  }
   0x2   :  { %s5492_s17 = smov 0   ;;  %s5494_s18 = smov 0  }
   0x3 LB: > { %s5509_s19 = sadd.s32 4294967295, %s5457_s18   ;;  %s4584_s20 = sadd.s32 4294967294, %s5457_s18   ;;  %s5457_s18 = sphi %s5494_s18, %s7550_s18   ;;  %s5453_s17 = sphi %s5492_s17, %s7549_s17   ;;  %s5449_s16 = sphi %s5490_s16, %s7548_s16   ;;  %s5445_s15 = sphi %s5488_s15, %s7547_s15  }
   0x4   : > { %s5513_s21 = sadd.s32 1, %s5457_s18   ;;  %s118_s22 = sadd.s32 1, %s5453_s17 }
   0x5   : > { %s115_s23 = ssub.s32 %s5457_s18, %s5513_s21  ;;  %p128_p0 = scmp.ne.s32.totalorder %s5453_s17, %s5449_s16 }
   0x6   : > { %p116_p1 = scmp.eq.s32.totalorder %s115_s23, 0  ;;  %p129_p2 = scmp.eq.s32.totalorder %s5509_s19, 1 }
   0x7   : > { %p134_p3 = scmp.ne.s32.totalorder %s5449_s16, %s5445_s15  ;;  %p135_p4 = scmp.eq.s32.totalorder %s4584_s20, 1 }
   0x8   : > { %s5524_s24 = scalar_select %p116_p1, %s5453_s17, %s118_s22  }
   0x9   : > { %p5526_p5 = por %p129_p2, %p128_p0  ;;  %p5530_p6 = por %p135_p4, %p134_p3 }
   0xa   : > { %p4587_p7 = scmp.ge.s32.totalorder %s5457_s18, 1  ;;  %p175_p8 = scmp.lt.s32.totalorder %s5457_s18, 3 }
   0xc   : > { %p176_p9 = pnand %p4587_p7, %p175_p8 }
   0xe   : > { %179 = sbr.rel (%p176_p9) target bundleno = 720 (0x2d0), region = 36 }
  0x15   : > { %p206_p10 = scmp.lt.s32.totalorder %s5509_s19, 1  ;;  %vm410_vm0 = vsmask.f32 3328  ;;  %vm411_vm1 = vsmask.f32 7440  ;;  %s5459_s6 = smov 64  }
  0x16   : > { %vm5556_vm2 = vmor %vm410_vm0, %vm411_vm1  ;;  %vm345_vm3 = vcmask 523264   ;;  %vm893_vm4 = vcmask 1048064   ;;  %vm1006_vm5 = vcmask 1042432   ;;  %vm1007_vm6 = vcmask 1046532   ;;  %s5243_s22 = sshll.u32 %s5509_s19, 11  ;;  %s5461_s8 = smov [#allocation3]  }
  0x17   : > { %s5538_s27 = scalar_select %p206_p10, %s5509_s19, 1  ;;  %vm6022_vm7 = vmor %vm1006_vm5, %vm1007_vm6  ;;  %vm4463_vm8 = vcmask 519168  }
  0x18   : > { %s7479_s30 = scalar_lea.hbm %s7536_s4, %s5243_s22 }
  0x19   : > { %s5268_s28 = smul.u32 216, %s5538_s27 }
  0x1b   : > { %s5544_s5 = scalar_lea.vmem %s7532_s0, %s5268_s28 }
  0x1c   : > { %v386_v0 = vld [vmem:[%s5544_s5 + $0x60] sm:$0xf]  ;;  %v387_v1 = vld [vmem:[%s5544_s5 + $0x64] sm:$0xf]  ;;  %v388_v2 = vld [vmem:[%s5544_s5 + $0x68] sm:$0x1] }
  0x1d   : > { %v606_v3 = vshrl.u32 %v386_v0, 16  ;;  %v609_v4 = vshll.u32 %v386_v0, 16  ;;  %v615_v5 = vshll.u32 %v387_v1, 16  ;;  %v619_v6 = vshrl.u32 %v387_v1, 16  ;;  %v362_v7 = vld [vmem:[%s5544_s5] sm:$0xf] }
  0x1e   : > { %v625_v8 = vshll.u32 %v388_v2, 16  ;;  %v363_v9 = vld [vmem:[%s5544_s5 + $0x4] sm:$0xf]  ;;  %v364_v10 = vld [vmem:[%s5544_s5 + $0x8] sm:$0x1]  ;;  %v414_v11 = vshrl.u32 %v362_v7, 16 }
  0x1f   : > { %v608_v12 = vrot.slane %v606_v3, 4  ;;  %v611_v13 = vrot.slane %v609_v4, 5  ;;  %v617_v14 = vrot.slane %v615_v5, 5  ;;  %v621_v15 = vrot.slane %v619_v6, 4  ;;  %v389_v16 = vld [vmem:[%s5544_s5 + $0x6c] sm:$0xf] }
  0x20   : > { %v627_v17 = vrot.slane %v625_v8, 5  ;;  %v416_v18 = vrot.slane %v414_v11, 4  ;;  %v417_v19 = vshll.u32 %v362_v7, 16  ;;  %v423_v20 = vshll.u32 %v363_v9, 16  ;;  %v390_v25 = vld [vmem:[%s5544_s5 + $0x70] sm:$0xf] }
  0x21   : > { %v612_v21 = vor.u32 %v611_v13, %v608_v12  ;;  %v622_v22 = vor.u32 %v621_v15, %v617_v14  ;;  %v427_v23 = vshrl.u32 %v363_v9, 16  ;;  %v433_v24 = vshll.u32 %v364_v10, 16  ;;  %v391_v35 = vld [vmem:[%s5544_s5 + $0x74] sm:$0x1]  ;;  %v4728_v40 = vld [vmem:[%s5544_s5 + $0x6c] sm:$0xf] }
  0x22   : > { %v419_v27 = vrot.slane %v417_v19, 5  ;;  %v425_v28 = vrot.slane %v423_v20, 5  ;;  %v630_v29 = vshrl.u32 %v389_v16, 16  ;;  %v633_v30 = vshll.u32 %v389_v16, 16  ;;  %v4729_v45 = vld [vmem:[%s5544_s5 + $0x70] sm:$0xf] }
  0x23   : > { %v613_v31 = vrot.slane %v612_v21, 4  ;;  %v623_v32 = vrot.slane %v622_v22, 4  ;;  %v429_v33 = vrot.slane %v427_v23, 4  ;;  %v435_v34 = vrot.slane %v433_v24, 5  ;;  %v4730_v53 = vld [vmem:[%s5544_s5 + $0x74] sm:$0x1] }
  0x24   : > { %v420_v36 = vor.u32 %v419_v27, %v416_v18  ;;  %v632_v37 = vrot.slane %v630_v29, 4  ;;  %v635_v38 = vrot.slane %v633_v30, 5  ;;  %v639_v39 = vshll.u32 %v390_v25, 16  ;;  %v365_v59 = vld [vmem:[%s5544_s5 + $0xc] sm:$0xf] }
  0x25   : > { %v618_v41 = vsel %vm5556_vm2, %v613_v31, %v617_v14  ;;  %v628_v42 = vsel %vm5556_vm2, %v623_v32, %v627_v17  ;;  %v430_v43 = vor.u32 %v429_v33, %v425_v28  ;;  %v643_v44 = vshrl.u32 %v390_v25, 16  ;;  %v366_v0 = vld [vmem:[%s5544_s5 + $0x10] sm:$0xf]  ;;  %v367_v8 = vld [vmem:[%s5544_s5 + $0x14] sm:$0x1] }
  0x26   : > { %v4616_v46 = vcombine.low %v618_v41, %v628_v42  ;;  %v421_v47 = vrot.slane %v420_v36, 4  ;;  %v636_v48 = vor.u32 %v635_v38, %v632_v37  ;;  %v641_v49 = vrot.slane %v639_v39, 5  ;;  %v4704_v14 = vld [vmem:[%s5544_s5 + $0xc] sm:$0xf]  ;;  %v4705_v19 = vld [vmem:[%s5544_s5 + $0x10] sm:$0xf] }
  0x27   : > { %v431_v50 = vrot.slane %v430_v43, 4  ;;  %v645_v51 = vrot.slane %v643_v44, 4  ;;  %v649_v52 = vshll.u32 %v391_v35, 16  ;;  %v1643_v54 = vshrl.u32 %v4728_v40, 16  ;;  %v4706_v31 = vld [vmem:[%s5544_s5 + $0x14] sm:$0x1] }
  0x28   : > { %861 = vrot.lane.b32.xlu0 %v4616_v46, %s5459_s6  ;;  %v426_v55 = vsel %vm5556_vm2, %v421_v47, %v425_v28  ;;  %v637_v56 = vrot.slane %v636_v48, 4  ;;  %v1646_v57 = vshll.u32 %v4728_v40, 16  ;;  %v1652_v58 = vshll.u32 %v4729_v45, 16  ;;  %v393_v46 = vld [vmem:[%s5544_s5 + $0x7c] sm:$0xf] }
  0x29   : > { %v436_v60 = vsel %vm5556_vm2, %v431_v50, %v435_v34  ;;  %v646_v61 = vor.u32 %v645_v51, %v641_v49  ;;  %v651_v62 = vrot.slane %v649_v52, 5  ;;  %v1645_v63 = vrot.slane %v1643_v54, 4  ;;  %v392_v34 = vld [vmem:[%s5544_s5 + $0x78] sm:$0xf]  ;;  %v394_v52 = vld [vmem:[%s5544_s5 + $0x80] sm:$0x1] }
  0x2a   : > { %v4608_v1 = vcombine.low %v426_v55, %v436_v60  ;;  %v642_v2 = vsel %vm5556_vm2, %v637_v56, %v641_v49  ;;  %v1648_v3 = vrot.slane %v1646_v57, 5  ;;  %v1654_v4 = vrot.slane %v1652_v58, 5 }
  0x2b   : > { %v647_v5 = vrot.slane %v646_v61, 4  ;;  %v1656_v6 = vshrl.u32 %v4729_v45, 16  ;;  %v1662_v7 = vshll.u32 %v4730_v53, 16  ;;  %v438_v9 = vshrl.u32 %v365_v59, 16  ;;  %v4731_v53 = vld [vmem:[%s5544_s5 + $0x78] sm:$0xf] }
  0x2c   : > { %845 = vrot.lane.b32.xlu0 %v4608_v1, %s5459_s6  ;;  %v1649_v10 = vor.u32 %v1648_v3, %v1645_v63  ;;  %v441_v11 = vshll.u32 %v365_v59, 16  ;;  %v447_v12 = vshll.u32 %v366_v0, 16  ;;  %v451_v13 = vshrl.u32 %v366_v0, 16  ;;  %v4732_v1 = vld [vmem:[%s5544_s5 + $0x7c] sm:$0xf] }
  0x2d   : > { %v652_v15 = vsel %vm5556_vm2, %v647_v5, %v651_v62  ;;  %v1658_v16 = vrot.slane %v1656_v6, 4  ;;  %v1664_v17 = vrot.slane %v1662_v7, 5  ;;  %v440_v18 = vrot.slane %v438_v9, 4  ;;  %v4733_v6 = vld [vmem:[%s5544_s5 + $0x80] sm:$0x1] }
  0x2e   : > { %v4617_v20 = vcombine.low %v642_v2, %v652_v15  ;;  %v1650_v21 = vrot.slane %v1649_v10, 4  ;;  %v443_v22 = vrot.slane %v441_v11, 5  ;;  %v449_v23 = vrot.slane %v447_v12, 5  ;;  %v368_v12 = vld [vmem:[%s5544_s5 + $0x18] sm:$0xf] }
  0x2f   : > { %v1659_v24 = vor.u32 %v1658_v16, %v1654_v4  ;;  %v453_v25 = vrot.slane %v451_v13, 4  ;;  %v457_v27 = vshll.u32 %v367_v8, 16  ;;  %v1451_v28 = vshrl.u32 %v4704_v14, 16 }
  0x30   : > { %863 = vrot.lane.b32.xlu1 %v4617_v20, %s5459_s6  ;;  %v1655_v29 = vsel %vm5556_vm2, %v1650_v21, %v1654_v4  ;;  %v444_v30 = vor.u32 %v443_v22, %v440_v18  ;;  %v1454_v32 = vshll.u32 %v4704_v14, 16  ;;  %v1460_v33 = vshll.u32 %v4705_v19, 16  ;;  %v369_v21 = vld [vmem:[%s5544_s5 + $0x1c] sm:$0xf] }
  0x31   : > { %v1660_v35 = vrot.slane %v1659_v24, 4  ;;  %v454_v36 = vor.u32 %v453_v25, %v449_v23  ;;  %v459_v37 = vrot.slane %v457_v27, 5  ;;  %v1453_v38 = vrot.slane %v1451_v28, 4  ;;  %v370_v25 = vld [vmem:[%s5544_s5 + $0x20] sm:$0x1] }
  0x32   : > { %v445_v39 = vrot.slane %v444_v30, 4  ;;  %v1456_v40 = vrot.slane %v1454_v32, 5  ;;  %v1462_v41 = vrot.slane %v1460_v33, 5  ;;  %v1464_v42 = vshrl.u32 %v4705_v19, 16 }
  0x33   : > { %v1665_v43 = vsel %vm5556_vm2, %v1660_v35, %v1664_v17  ;;  %v455_v44 = vrot.slane %v454_v36, 4  ;;  %v1470_v45 = vshll.u32 %v4706_v31, 16  ;;  %v654_v47 = vshrl.u32 %v392_v34, 16  ;;  %v4707_v36 = vld [vmem:[%s5544_s5 + $0x18] sm:$0xf] }
  0x34   : > { %v4760_v48 = vcombine.low %v1655_v29, %v1665_v43  ;;  %v450_v49 = vsel %vm5556_vm2, %v445_v39, %v449_v23  ;;  %v1457_v50 = vor.u32 %v1456_v40, %v1453_v38  ;;  %v1466_v51 = vrot.slane %v1464_v42, 4 }
  0x35   : > { %v460_v54 = vsel %vm5556_vm2, %v455_v44, %v459_v37  ;;  %v1472_v55 = vrot.slane %v1470_v45, 5  ;;  %v656_v56 = vrot.slane %v654_v47, 4  ;;  %v657_v57 = vshll.u32 %v392_v34, 16 }
  0x36   : > { %1898 = vrot.lane.b32.xlu1 %v4760_v48, %s5459_s6  ;;  %v4609_v58 = vcombine.low %v450_v49, %v460_v54  ;;  %v1458_v59 = vrot.slane %v1457_v50, 4  ;;  %v1467_v60 = vor.u32 %v1466_v51, %v1462_v41  ;;  %v663_v61 = vshll.u32 %v393_v46, 16  ;;  %v4709_v49 = vld [vmem:[%s5544_s5 + $0x20] sm:$0x1] }
  0x37   : > { %v659_v62 = vrot.slane %v657_v57, 5  ;;  %v667_v63 = vshrl.u32 %v393_v46, 16  ;;  %v673_v0 = vshll.u32 %v394_v52, 16  ;;  %v1667_v2 = vshrl.u32 %v4731_v53, 16 }
  0x38   : > { %847 = vrot.lane.b32.xlu0 %v4609_v58, %s5459_s6  ;;  %v1463_v3 = vsel %vm5556_vm2, %v1458_v59, %v1462_v41  ;;  %v1468_v4 = vrot.slane %v1467_v60, 4  ;;  %v665_v5 = vrot.slane %v663_v61, 5  ;;  %v1670_v7 = vshll.u32 %v4731_v53, 16  ;;  %v4708_v41 = vld [vmem:[%s5544_s5 + $0x1c] sm:$0xf] }
  0x39   : > { %v660_v8 = vor.u32 %v659_v62, %v656_v56  ;;  %v669_v9 = vrot.slane %v667_v63, 4  ;;  %v675_v10 = vrot.slane %v673_v0, 5  ;;  %v1669_v11 = vrot.slane %v1667_v2, 4  ;;  %v396_v60 = vld [vmem:[%s5544_s5 + $0x88] sm:$0xf] }
  0x3a   : > { %v1473_v13 = vsel %vm5556_vm2, %v1468_v4, %v1472_v55  ;;  %v1672_v14 = vrot.slane %v1670_v7, 5  ;;  %v1676_v15 = vshll.u32 %v4732_v1, 16  ;;  %v1680_v16 = vshrl.u32 %v4732_v1, 16  ;;  %v395_v55 = vld [vmem:[%s5544_s5 + $0x84] sm:$0xf] }
  0x3b   : > { %v4752_v17 = vcombine.low %v1463_v3, %v1473_v13  ;;  %v661_v18 = vrot.slane %v660_v8, 4  ;;  %v670_v19 = vor.u32 %v669_v9, %v665_v5  ;;  %v1686_v20 = vshll.u32 %v4733_v6, 16  ;;  %v397_v8 = vld [vmem:[%s5544_s5 + $0x8c] sm:$0x1] }
  0x3c   : > { %v1673_v22 = vor.u32 %v1672_v14, %v1669_v11  ;;  %v1678_v23 = vrot.slane %v1676_v15, 5  ;;  %v1682_v24 = vrot.slane %v1680_v16, 4  ;;  %v462_v27 = vshrl.u32 %v368_v12, 16  ;;  %v4735_v15 = vld [vmem:[%s5544_s5 + $0x88] sm:$0xf] }
  0x3d   : > { %1882 = vrot.lane.b32.xlu1 %v4752_v17, %s5459_s6  ;;  %v666_v28 = vsel %vm5556_vm2, %v661_v18, %v665_v5  ;;  %v671_v29 = vrot.slane %v670_v19, 4  ;;  %v1688_v30 = vrot.slane %v1686_v20, 5  ;;  %v465_v31 = vshll.u32 %v368_v12, 16 }
  0x3e   : > { %v1674_v32 = vrot.slane %v1673_v22, 4  ;;  %v1683_v33 = vor.u32 %v1682_v24, %v1678_v23  ;;  %v464_v34 = vrot.slane %v462_v27, 4  ;;  %v471_v35 = vshll.u32 %v369_v21, 16  ;;  %v4736_v27 = vld [vmem:[%s5544_s5 + $0x8c] sm:$0x1] }
  0x3f   : > { %v676_v37 = vsel %vm5556_vm2, %v671_v29, %v675_v10  ;;  %v467_v38 = vrot.slane %v465_v31, 5  ;;  %v475_v39 = vshrl.u32 %v369_v21, 16  ;;  %v481_v40 = vshll.u32 %v370_v25, 16  ;;  %v4734_v10 = vld [vmem:[%s5544_s5 + $0x84] sm:$0xf] }
  0x40   : > { %v4618_v42 = vcombine.low %v666_v28, %v676_v37  ;;  %v1679_v43 = vsel %vm5556_vm2, %v1674_v32, %v1678_v23  ;;  %v1684_v44 = vrot.slane %v1683_v33, 4  ;;  %v473_v45 = vrot.slane %v471_v35, 5  ;;  %v372_v35 = vld [vmem:[%s5544_s5 + $0x28] sm:$0xf] }
  0x41   : > { %v468_v46 = vor.u32 %v467_v38, %v464_v34  ;;  %v477_v47 = vrot.slane %v475_v39, 4  ;;  %v483_v48 = vrot.slane %v481_v40, 5  ;;  %v1475_v50 = vshrl.u32 %v4707_v36, 16 }
  0x42   : > { %865 = vrot.lane.b32.xlu0 %v4618_v42, %s5459_s6  ;;  %v1689_v51 = vsel %vm5556_vm2, %v1684_v44, %v1688_v30  ;;  %v1478_v52 = vshll.u32 %v4707_v36, 16  ;;  %v1484_v53 = vshll.u32 %v4708_v41, 16  ;;  %v1488_v54 = vshrl.u32 %v4708_v41, 16  ;;  %v371_v30 = vld [vmem:[%s5544_s5 + $0x24] sm:$0xf] }
  0x43   : > { %v4761_v56 = vcombine.low %v1679_v43, %v1689_v51  ;;  %v469_v57 = vrot.slane %v468_v46, 4  ;;  %v478_v58 = vor.u32 %v477_v47, %v473_v45  ;;  %v1477_v59 = vrot.slane %v1475_v50, 4  ;;  %v373_v43 = vld [vmem:[%s5544_s5 + $0x2c] sm:$0x1] }
  0x44   : > { %v1480_v61 = vrot.slane %v1478_v52, 5  ;;  %v1486_v62 = vrot.slane %v1484_v53, 5  ;;  %v1490_v63 = vrot.slane %v1488_v54, 4  ;;  %v1494_v0 = vshll.u32 %v4709_v49, 16  ;;  %v4710_v49 = vld [vmem:[%s5544_s5 + $0x24] sm:$0xf] }
  0x45   : > { %1900 = vrot.lane.b32.xlu1 %v4761_v56, %s5459_s6  ;;  %v474_v1 = vsel %vm5556_vm2, %v469_v57, %v473_v45  ;;  %v479_v2 = vrot.slane %v478_v58, 4  ;;  %v678_v3 = vshrl.u32 %v395_v55, 16  ;;  %v681_v4 = vshll.u32 %v395_v55, 16  ;;  %v4711_v58 = vld [vmem:[%s5544_s5 + $0x28] sm:$0xf] }
  0x46   : > { %v1481_v5 = vor.u32 %v1480_v61, %v1477_v59  ;;  %v1491_v6 = vor.u32 %v1490_v63, %v1486_v62  ;;  %v1496_v7 = vrot.slane %v1494_v0, 5  ;;  %v687_v9 = vshll.u32 %v396_v60, 16 }
  0x47   : > { %v484_v11 = vsel %vm5556_vm2, %v479_v2, %v483_v48  ;;  %v680_v12 = vrot.slane %v678_v3, 4  ;;  %v683_v13 = vrot.slane %v681_v4, 5  ;;  %v691_v14 = vshrl.u32 %v396_v60, 16  ;;  %v4712_v2 = vld [vmem:[%s5544_s5 + $0x2c] sm:$0x1] }
  0x48   : > { %v4610_v16 = vcombine.low %v474_v1, %v484_v11  ;;  %v1482_v17 = vrot.slane %v1481_v5, 4  ;;  %v1492_v18 = vrot.slane %v1491_v6, 4  ;;  %v689_v19 = vrot.slane %v687_v9, 5 }
  0x49   : > { %v684_v20 = vor.u32 %v683_v13, %v680_v12  ;;  %v693_v21 = vrot.slane %v691_v14, 4  ;;  %v697_v22 = vshll.u32 %v397_v8, 16  ;;  %v1691_v23 = vshrl.u32 %v4734_v10, 16  ;;  %v398_v8 = vld [vmem:[%s5544_s5 + $0x90] sm:$0xf] }
  0x4a   : > { %849 = vrot.lane.b32.xlu0 %v4610_v16, %s5459_s6  ;;  %v1487_v24 = vsel %vm5556_vm2, %v1482_v17, %v1486_v62  ;;  %v1497_v25 = vsel %vm5556_vm2, %v1492_v18, %v1496_v7  ;;  %v1694_v28 = vshll.u32 %v4734_v10, 16  ;;  %v1700_v29 = vshll.u32 %v4735_v15, 16  ;;  %v399_v13 = vld [vmem:[%s5544_s5 + $0x94] sm:$0xf] }
  0x4b   : > { %v4753_v31 = vcombine.low %v1487_v24, %v1497_v25  ;;  %v685_v32 = vrot.slane %v684_v20, 4  ;;  %v694_v33 = vor.u32 %v693_v21, %v689_v19  ;;  %v699_v34 = vrot.slane %v697_v22, 5  ;;  %v400_v21 = vld [vmem:[%s5544_s5 + $0x98] sm:$0x1] }
  0x4c   : > { %v1693_v36 = vrot.slane %v1691_v23, 4  ;;  %v1696_v37 = vrot.slane %v1694_v28, 5  ;;  %v1702_v38 = vrot.slane %v1700_v29, 5  ;;  %v1704_v39 = vshrl.u32 %v4735_v15, 16  ;;  %v4737_v28 = vld [vmem:[%s5544_s5 + $0x90] sm:$0xf] }
  0x4d   : > { %1884 = vrot.lane.b32.xlu1 %v4753_v31, %s5459_s6  ;;  %v690_v40 = vsel %vm5556_vm2, %v685_v32, %v689_v19  ;;  %v695_v41 = vrot.slane %v694_v33, 4  ;;  %v1710_v42 = vshll.u32 %v4736_v27, 16  ;;  %v486_v44 = vshrl.u32 %v371_v30, 16  ;;  %v4738_v33 = vld [vmem:[%s5544_s5 + $0x94] sm:$0xf] }
  0x4e   : > { %v1697_v45 = vor.u32 %v1696_v37, %v1693_v36  ;;  %v1706_v46 = vrot.slane %v1704_v39, 4  ;;  %v489_v47 = vshll.u32 %v371_v30, 16  ;;  %v495_v48 = vshll.u32 %v372_v35, 16 }
  0x4f   : > { %v700_v50 = vsel %vm5556_vm2, %v695_v41, %v699_v34  ;;  %v1712_v51 = vrot.slane %v1710_v42, 5  ;;  %v488_v52 = vrot.slane %v486_v44, 4  ;;  %v499_v53 = vshrl.u32 %v372_v35, 16 }
  0x50   : > { %v4619_v54 = vcombine.low %v690_v40, %v700_v50  ;;  %v1698_v55 = vrot.slane %v1697_v45, 4  ;;  %v1707_v56 = vor.u32 %v1706_v46, %v1702_v38  ;;  %v491_v57 = vrot.slane %v489_v47, 5  ;;  %v4739_v40 = vld [vmem:[%s5544_s5 + $0x98] sm:$0x1]  ;;  %v374_v47 = vld [vmem:[%s5544_s5 + $0x30] sm:$0xf] }
  0x51   : > { %v497_v59 = vrot.slane %v495_v48, 5  ;;  %v501_v60 = vrot.slane %v499_v53, 4  ;;  %v505_v61 = vshll.u32 %v373_v43, 16  ;;  %v1499_v62 = vshrl.u32 %v4710_v49, 16 }
  0x52   : > { %867 = vrot.lane.b32.xlu0 %v4619_v54, %s5459_s6  ;;  %v1703_v63 = vsel %vm5556_vm2, %v1698_v55, %v1702_v38  ;;  %v1708_v0 = vrot.slane %v1707_v56, 4  ;;  %v492_v1 = vor.u32 %v491_v57, %v488_v52  ;;  %v1502_v3 = vshll.u32 %v4710_v49, 16  ;;  %v375_v52 = vld [vmem:[%s5544_s5 + $0x34] sm:$0xf] }
  0x53   : > { %v502_v4 = vor.u32 %v501_v60, %v497_v59  ;;  %v507_v5 = vrot.slane %v505_v61, 5  ;;  %v1501_v6 = vrot.slane %v1499_v62, 4  ;;  %v1508_v7 = vshll.u32 %v4711_v58, 16 }
  0x54   : > { %v1713_v9 = vsel %vm5556_vm2, %v1708_v0, %v1712_v51  ;;  %v493_v10 = vrot.slane %v492_v1, 4  ;;  %v1504_v11 = vrot.slane %v1502_v3, 5  ;;  %v1512_v12 = vshrl.u32 %v4711_v58, 16 }
  0x55   : > { %v4762_v14 = vcombine.low %v1703_v63, %v1713_v9  ;;  %v503_v15 = vrot.slane %v502_v4, 4  ;;  %v1510_v16 = vrot.slane %v1508_v7, 5  ;;  %v1518_v17 = vshll.u32 %v4712_v2, 16  ;;  %v376_v63 = vld [vmem:[%s5544_s5 + $0x38] sm:$0x1] }
  0x56   : > { %v498_v18 = vsel %vm5556_vm2, %v493_v10, %v497_v59  ;;  %v1505_v19 = vor.u32 %v1504_v11, %v1501_v6  ;;  %v1514_v20 = vrot.slane %v1512_v12, 4  ;;  %v702_v22 = vshrl.u32 %v398_v8, 16  ;;  %v4713_v6 = vld [vmem:[%s5544_s5 + $0x30] sm:$0xf]  ;;  %v4714_v11 = vld [vmem:[%s5544_s5 + $0x34] sm:$0xf] }
  0x57   : > { %1902 = vrot.lane.b32.xlu1 %v4762_v14, %s5459_s6  ;;  %v508_v23 = vsel %vm5556_vm2, %v503_v15, %v507_v5  ;;  %v1520_v24 = vrot.slane %v1518_v17, 5  ;;  %v705_v25 = vshll.u32 %v398_v8, 16  ;;  %v711_v27 = vshll.u32 %v399_v13, 16 }
  0x58   : > { %v4611_v29 = vcombine.low %v498_v18, %v508_v23  ;;  %v1506_v30 = vrot.slane %v1505_v19, 4  ;;  %v1515_v31 = vor.u32 %v1514_v20, %v1510_v16  ;;  %v704_v32 = vrot.slane %v702_v22, 4  ;;  %v4715_v18 = vld [vmem:[%s5544_s5 + $0x38] sm:$0x1] }
  0x59   : > { %v707_v34 = vrot.slane %v705_v25, 5  ;;  %v713_v35 = vrot.slane %v711_v27, 5  ;;  %v715_v36 = vshrl.u32 %v399_v13, 16  ;;  %v721_v37 = vshll.u32 %v400_v21, 16  ;;  %v401_v25 = vld [vmem:[%s5544_s5 + $0x9c] sm:$0xf] }
  0x5a   : > { %851 = vrot.lane.b32.xlu0 %v4611_v29, %s5459_s6  ;;  %v1511_v38 = vsel %vm5556_vm2, %v1506_v30, %v1510_v16  ;;  %v1516_v39 = vrot.slane %v1515_v31, 4  ;;  %v1715_v41 = vshrl.u32 %v4737_v28, 16  ;;  %v1718_v42 = vshll.u32 %v4737_v28, 16  ;;  %v402_v31 = vld [vmem:[%s5544_s5 + $0xa0] sm:$0xf] }
  0x5b   : > { %v708_v43 = vor.u32 %v707_v34, %v704_v32  ;;  %v717_v44 = vrot.slane %v715_v36, 4  ;;  %v723_v45 = vrot.slane %v721_v37, 5  ;;  %v1724_v46 = vshll.u32 %v4738_v33, 16 }
  0x5c   : > { %v1521_v48 = vsel %vm5556_vm2, %v1516_v39, %v1520_v24  ;;  %v1717_v49 = vrot.slane %v1715_v41, 4  ;;  %v1720_v50 = vrot.slane %v1718_v42, 5  ;;  %v1728_v51 = vshrl.u32 %v4738_v33, 16 }
  0x5d   : > { %v4754_v53 = vcombine.low %v1511_v38, %v1521_v48  ;;  %v709_v54 = vrot.slane %v708_v43, 4  ;;  %v718_v55 = vor.u32 %v717_v44, %v713_v35  ;;  %v1726_v56 = vrot.slane %v1724_v46, 5  ;;  %v403_v43 = vld [vmem:[%s5544_s5 + $0xa4] sm:$0x1] }
  0x5e   : > { %v1721_v57 = vor.u32 %v1720_v50, %v1717_v49  ;;  %v1730_v58 = vrot.slane %v1728_v51, 4  ;;  %v1734_v59 = vshll.u32 %v4739_v40, 16  ;;  %v510_v60 = vshrl.u32 %v374_v47, 16  ;;  %v4741_v50 = vld [vmem:[%s5544_s5 + $0xa0] sm:$0xf] }
  0x5f   : > { %1886 = vrot.lane.b32.xlu1 %v4754_v53, %s5459_s6  ;;  %v714_v61 = vsel %vm5556_vm2, %v709_v54, %v713_v35  ;;  %v719_v62 = vrot.slane %v718_v55, 4  ;;  %v513_v0 = vshll.u32 %v374_v47, 16  ;;  %v519_v1 = vshll.u32 %v375_v52, 16 }
  0x60   : > { %v1722_v2 = vrot.slane %v1721_v57, 4  ;;  %v1731_v3 = vor.u32 %v1730_v58, %v1726_v56  ;;  %v1736_v4 = vrot.slane %v1734_v59, 5  ;;  %v512_v5 = vrot.slane %v510_v60, 4 }
  0x61   : > { %v724_v7 = vsel %vm5556_vm2, %v719_v62, %v723_v45  ;;  %v515_v8 = vrot.slane %v513_v0, 5  ;;  %v521_v9 = vrot.slane %v519_v1, 5  ;;  %v523_v10 = vshrl.u32 %v375_v52, 16  ;;  %v4740_v45 = vld [vmem:[%s5544_s5 + $0x9c] sm:$0xf] }
  0x62   : > { %v4620_v12 = vcombine.low %v714_v61, %v724_v7  ;;  %v1727_v13 = vsel %vm5556_vm2, %v1722_v2, %v1726_v56  ;;  %v1732_v14 = vrot.slane %v1731_v3, 4  ;;  %v529_v15 = vshll.u32 %v376_v63, 16  ;;  %v4742_v61 = vld [vmem:[%s5544_s5 + $0xa4] sm:$0x1]  ;;  %v377_v0 = vld [vmem:[%s5544_s5 + $0x3c] sm:$0xf] }
  0x63   : > { %v516_v16 = vor.u32 %v515_v8, %v512_v5  ;;  %v525_v17 = vrot.slane %v523_v10, 4  ;;  %v1523_v19 = vshrl.u32 %v4713_v6, 16  ;;  %v1526_v20 = vshll.u32 %v4713_v6, 16  ;;  %v378_v5 = vld [vmem:[%s5544_s5 + $0x40] sm:$0xf] }
  0x64   : > { %869 = vrot.lane.b32.xlu0 %v4620_v12, %s5459_s6  ;;  %v1737_v21 = vsel %vm5556_vm2, %v1732_v14, %v1736_v4  ;;  %v531_v22 = vrot.slane %v529_v15, 5  ;;  %v1532_v23 = vshll.u32 %v4714_v11, 16  ;;  %v1536_v24 = vshrl.u32 %v4714_v11, 16  ;;  %v379_v10 = vld [vmem:[%s5544_s5 + $0x44] sm:$0x1] }
  0x65   : > { %v4763_v27 = vcombine.low %v1727_v13, %v1737_v21  ;;  %v517_v28 = vrot.slane %v516_v16, 4  ;;  %v526_v29 = vor.u32 %v525_v17, %v521_v9  ;;  %v1525_v30 = vrot.slane %v1523_v19, 4  ;;  %v4716_v15 = vld [vmem:[%s5544_s5 + $0x3c] sm:$0xf] }
  0x66   : > { %v1528_v32 = vrot.slane %v1526_v20, 5  ;;  %v1534_v33 = vrot.slane %v1532_v23, 5  ;;  %v1538_v34 = vrot.slane %v1536_v24, 4  ;;  %v1542_v35 = vshll.u32 %v4715_v18, 16  ;;  %v4717_v20 = vld [vmem:[%s5544_s5 + $0x40] sm:$0xf] }
  0x67   : > { %1904 = vrot.lane.b32.xlu1 %v4763_v27, %s5459_s6  ;;  %v522_v36 = vsel %vm5556_vm2, %v517_v28, %v521_v9  ;;  %v527_v37 = vrot.slane %v526_v29, 4  ;;  %v726_v38 = vshrl.u32 %v401_v25, 16  ;;  %v729_v39 = vshll.u32 %v401_v25, 16 }
  0x68   : > { %v1529_v40 = vor.u32 %v1528_v32, %v1525_v30  ;;  %v1539_v41 = vor.u32 %v1538_v34, %v1534_v33  ;;  %v1544_v42 = vrot.slane %v1542_v35, 5  ;;  %v735_v44 = vshll.u32 %v402_v31, 16 }
  0x69   : > { %v532_v46 = vsel %vm5556_vm2, %v527_v37, %v531_v22  ;;  %v728_v47 = vrot.slane %v726_v38, 4  ;;  %v731_v48 = vrot.slane %v729_v39, 5  ;;  %v739_v49 = vshrl.u32 %v402_v31, 16  ;;  %v4718_v37 = vld [vmem:[%s5544_s5 + $0x44] sm:$0x1] }
  0x6a   : > { %v4612_v51 = vcombine.low %v522_v36, %v532_v46  ;;  %v1530_v52 = vrot.slane %v1529_v40, 4  ;;  %v1540_v53 = vrot.slane %v1539_v41, 4  ;;  %v737_v54 = vrot.slane %v735_v44, 5  ;;  %v404_v39 = vld [vmem:[%s5544_s5 + $0xa8] sm:$0xf] }
  0x6b   : > { %v732_v55 = vor.u32 %v731_v48, %v728_v47  ;;  %v741_v56 = vrot.slane %v739_v49, 4  ;;  %v745_v57 = vshll.u32 %v403_v43, 16  ;;  %v1739_v58 = vshrl.u32 %v4740_v45, 16  ;;  %v405_v44 = vld [vmem:[%s5544_s5 + $0xac] sm:$0xf] }
  0x6c   : > { %853 = vrot.lane.b32.xlu0 %v4612_v51, %s5459_s6  ;;  %v1535_v59 = vsel %vm5556_vm2, %v1530_v52, %v1534_v33  ;;  %v1545_v60 = vsel %vm5556_vm2, %v1540_v53, %v1544_v42  ;;  %v1742_v62 = vshll.u32 %v4740_v45, 16  ;;  %v1748_v63 = vshll.u32 %v4741_v50, 16  ;;  %v406_v49 = vld [vmem:[%s5544_s5 + $0xb0] sm:$0x1] }
  0x6d   : > { %v4755_v1 = vcombine.low %v1535_v59, %v1545_v60  ;;  %v733_v2 = vrot.slane %v732_v55, 4  ;;  %v742_v3 = vor.u32 %v741_v56, %v737_v54  ;;  %v747_v4 = vrot.slane %v745_v57, 5  ;;  %v4744_v59 = vld [vmem:[%s5544_s5 + $0xac] sm:$0xf] }
  0x6e   : > { %v1741_v6 = vrot.slane %v1739_v58, 4  ;;  %v1744_v7 = vrot.slane %v1742_v62, 5  ;;  %v1750_v8 = vrot.slane %v1748_v63, 5  ;;  %v1752_v9 = vshrl.u32 %v4741_v50, 16 }
  0x6f   : > { %1888 = vrot.lane.b32.xlu1 %v4755_v1, %s5459_s6  ;;  %v738_v11 = vsel %vm5556_vm2, %v733_v2, %v737_v54  ;;  %v743_v12 = vrot.slane %v742_v3, 4  ;;  %v1758_v13 = vshll.u32 %v4742_v61, 16  ;;  %v534_v14 = vshrl.u32 %v377_v0, 16  ;;  %v4743_v54 = vld [vmem:[%s5544_s5 + $0xa8] sm:$0xf] }
  0x70   : > { %v1745_v16 = vor.u32 %v1744_v7, %v1741_v6  ;;  %v1754_v17 = vrot.slane %v1752_v9, 4  ;;  %v537_v18 = vshll.u32 %v377_v0, 16  ;;  %v543_v19 = vshll.u32 %v378_v5, 16  ;;  %v380_v9 = vld [vmem:[%s5544_s5 + $0x48] sm:$0xf] }
  0x71   : > { %v748_v21 = vsel %vm5556_vm2, %v743_v12, %v747_v4  ;;  %v1760_v22 = vrot.slane %v1758_v13, 5  ;;  %v536_v23 = vrot.slane %v534_v14, 4  ;;  %v547_v24 = vshrl.u32 %v378_v5, 16 }
  0x72   : > { %v4621_v25 = vcombine.low %v738_v11, %v748_v21  ;;  %v1746_v27 = vrot.slane %v1745_v16, 4  ;;  %v1755_v28 = vor.u32 %v1754_v17, %v1750_v8  ;;  %v539_v29 = vrot.slane %v537_v18, 5 }
  0x73   : > { %v545_v30 = vrot.slane %v543_v19, 5  ;;  %v549_v31 = vrot.slane %v547_v24, 4  ;;  %v553_v32 = vshll.u32 %v379_v10, 16  ;;  %v1547_v33 = vshrl.u32 %v4716_v15, 16 }
  0x74   : > { %871 = vrot.lane.b32.xlu0 %v4621_v25, %s5459_s6  ;;  %v1751_v34 = vsel %vm5556_vm2, %v1746_v27, %v1750_v8  ;;  %v1756_v35 = vrot.slane %v1755_v28, 4  ;;  %v540_v36 = vor.u32 %v539_v29, %v536_v23  ;;  %v1550_v38 = vshll.u32 %v4716_v15, 16  ;;  %v4745_v8 = vld [vmem:[%s5544_s5 + $0xb0] sm:$0x1] }
  0x75   : > { %v550_v40 = vor.u32 %v549_v31, %v545_v30  ;;  %v555_v41 = vrot.slane %v553_v32, 5  ;;  %v1549_v42 = vrot.slane %v1547_v33, 4  ;;  %v1556_v43 = vshll.u32 %v4717_v20, 16  ;;  %v382_v28 = vld [vmem:[%s5544_s5 + $0x50] sm:$0x1] }
  0x76   : > { %v1761_v45 = vsel %vm5556_vm2, %v1756_v35, %v1760_v22  ;;  %v541_v46 = vrot.slane %v540_v36, 4  ;;  %v1552_v47 = vrot.slane %v1550_v38, 5  ;;  %v1560_v48 = vshrl.u32 %v4717_v20, 16  ;;  %v381_v22 = vld [vmem:[%s5544_s5 + $0x4c] sm:$0xf] }
  0x77   : > { %v4764_v50 = vcombine.low %v1751_v34, %v1761_v45  ;;  %v551_v51 = vrot.slane %v550_v40, 4  ;;  %v1558_v52 = vrot.slane %v1556_v43, 5  ;;  %v1566_v53 = vshll.u32 %v4718_v37, 16  ;;  %v4719_v33 = vld [vmem:[%s5544_s5 + $0x48] sm:$0xf] }
  0x78   : > { %v546_v55 = vsel %vm5556_vm2, %v541_v46, %v545_v30  ;;  %v1553_v56 = vor.u32 %v1552_v47, %v1549_v42  ;;  %v1562_v57 = vrot.slane %v1560_v48, 4  ;;  %v750_v58 = vshrl.u32 %v404_v39, 16  ;;  %v4720_v38 = vld [vmem:[%s5544_s5 + $0x4c] sm:$0xf]  ;;  %v4721_v47 = vld [vmem:[%s5544_s5 + $0x50] sm:$0x1] }
  0x79   : > { %1906 = vrot.lane.b32.xlu1 %v4764_v50, %s5459_s6  ;;  %v556_v60 = vsel %vm5556_vm2, %v551_v51, %v555_v41  ;;  %v1568_v61 = vrot.slane %v1566_v53, 5  ;;  %v753_v62 = vshll.u32 %v404_v39, 16  ;;  %v759_v63 = vshll.u32 %v405_v44, 16 }
  0x7a   : > { %v4613_v0 = vcombine.low %v546_v55, %v556_v60  ;;  %v1554_v1 = vrot.slane %v1553_v56, 4  ;;  %v1563_v2 = vor.u32 %v1562_v57, %v1558_v52  ;;  %v752_v3 = vrot.slane %v750_v58, 4 }
  0x7b   : > { %v755_v4 = vrot.slane %v753_v62, 5  ;;  %v761_v5 = vrot.slane %v759_v63, 5  ;;  %v763_v6 = vshrl.u32 %v405_v44, 16  ;;  %v769_v7 = vshll.u32 %v406_v49, 16 }
  0x7c   : > { %855 = vrot.lane.b32.xlu0 %v4613_v0, %s5459_s6  ;;  %v1559_v10 = vsel %vm5556_vm2, %v1554_v1, %v1558_v52  ;;  %v1564_v11 = vrot.slane %v1563_v2, 4  ;;  %v1763_v12 = vshrl.u32 %v4743_v54, 16  ;;  %v1766_v13 = vshll.u32 %v4743_v54, 16  ;;  %v407_v52 = vld [vmem:[%s5544_s5 + $0xb4] sm:$0xf] }
  0x7d   : > { %v756_v14 = vor.u32 %v755_v4, %v752_v3  ;;  %v765_v15 = vrot.slane %v763_v6, 4  ;;  %v771_v16 = vrot.slane %v769_v7, 5  ;;  %v1772_v17 = vshll.u32 %v4744_v59, 16  ;;  %v408_v1 = vld [vmem:[%s5544_s5 + $0xb8] sm:$0xf] }
  0x7e   : > { %v1569_v18 = vsel %vm5556_vm2, %v1564_v11, %v1568_v61  ;;  %v1765_v19 = vrot.slane %v1763_v12, 4  ;;  %v1768_v20 = vrot.slane %v1766_v13, 5  ;;  %v1776_v21 = vshrl.u32 %v4744_v59, 16  ;;  %v409_v13 = vld [vmem:[%s5544_s5 + $0xbc] sm:$0x1] }
  0x7f   : > { %v4756_v23 = vcombine.low %v1559_v10, %v1569_v18  ;;  %v757_v24 = vrot.slane %v756_v14, 4  ;;  %v766_v25 = vor.u32 %v765_v15, %v761_v5  ;;  %v1774_v27 = vrot.slane %v1772_v17, 5  ;;  %v4746_v15 = vld [vmem:[%s5544_s5 + $0xb4] sm:$0xf] }
  0x80   : > { %v1769_v29 = vor.u32 %v1768_v20, %v1765_v19  ;;  %v1778_v30 = vrot.slane %v1776_v21, 4  ;;  %v1782_v31 = vshll.u32 %v4745_v8, 16  ;;  %v558_v32 = vshrl.u32 %v380_v9, 16  ;;  %v4747_v20 = vld [vmem:[%s5544_s5 + $0xb8] sm:$0xf] }
  0x81   : > { %1890 = vrot.lane.b32.xlu1 %v4756_v23, %s5459_s6  ;;  %v762_v34 = vsel %vm5556_vm2, %v757_v24, %v761_v5  ;;  %v767_v35 = vrot.slane %v766_v25, 4  ;;  %v561_v36 = vshll.u32 %v380_v9, 16  ;;  %v567_v37 = vshll.u32 %v381_v22, 16  ;;  %v4748_v25 = vld [vmem:[%s5544_s5 + $0xbc] sm:$0x1] }
  0x82   : > { %v1770_v39 = vrot.slane %v1769_v29, 4  ;;  %v1779_v40 = vor.u32 %v1778_v30, %v1774_v27  ;;  %v1784_v41 = vrot.slane %v1782_v31, 5  ;;  %v560_v42 = vrot.slane %v558_v32, 4  ;;  %v383_v31 = vld [vmem:[%s5544_s5 + $0x54] sm:$0xf] }
  0x83   : > { %v772_v43 = vsel %vm5556_vm2, %v767_v35, %v771_v16  ;;  %v563_v44 = vrot.slane %v561_v36, 5  ;;  %v569_v45 = vrot.slane %v567_v37, 5  ;;  %v571_v46 = vshrl.u32 %v381_v22, 16 }
  0x84   : > { %v4622_v48 = vcombine.low %v762_v34, %v772_v43  ;;  %v1775_v49 = vsel %vm5556_vm2, %v1770_v39, %v1774_v27  ;;  %v1780_v50 = vrot.slane %v1779_v40, 4  ;;  %v577_v51 = vshll.u32 %v382_v28, 16  ;;  %v384_v40 = vld [vmem:[%s5544_s5 + $0x58] sm:$0xf] }
  0x85   : > { %v564_v53 = vor.u32 %v563_v44, %v560_v42  ;;  %v573_v54 = vrot.slane %v571_v46, 4  ;;  %v1571_v55 = vshrl.u32 %v4719_v33, 16  ;;  %v1574_v56 = vshll.u32 %v4719_v33, 16  ;;  %v4722_v46 = vld [vmem:[%s5544_s5 + $0x54] sm:$0xf] }
  0x86   : > { %873 = vrot.lane.b32.xlu0 %v4622_v48, %s5459_s6  ;;  %v1785_v57 = vsel %vm5556_vm2, %v1780_v50, %v1784_v41  ;;  %v579_v58 = vrot.slane %v577_v51, 5  ;;  %v1580_v59 = vshll.u32 %v4720_v38, 16  ;;  %v1584_v60 = vshrl.u32 %v4720_v38, 16 }
  0x87   : > { %v4765_v61 = vcombine.low %v1775_v49, %v1785_v57  ;;  %v565_v62 = vrot.slane %v564_v53, 4  ;;  %v574_v63 = vor.u32 %v573_v54, %v569_v45  ;;  %v1573_v0 = vrot.slane %v1571_v55, 4 }
  0x88   : > { %v1576_v2 = vrot.slane %v1574_v56, 5  ;;  %v1582_v3 = vrot.slane %v1580_v59, 5  ;;  %v1586_v4 = vrot.slane %v1584_v60, 4  ;;  %v1590_v5 = vshll.u32 %v4721_v47, 16 }
  0x89   : > { %1908 = vrot.lane.b32.xlu1 %v4765_v61, %s5459_s6  ;;  %v570_v6 = vsel %vm5556_vm2, %v565_v62, %v569_v45  ;;  %v575_v7 = vrot.slane %v574_v63, 4  ;;  %v774_v8 = vshrl.u32 %v407_v52, 16  ;;  %v777_v9 = vshll.u32 %v407_v52, 16  ;;  %v385_v45 = vld [vmem:[%s5544_s5 + $0x5c] sm:$0x1] }
  0x8a   : > { %v1577_v10 = vor.u32 %v1576_v2, %v1573_v0  ;;  %v1587_v11 = vor.u32 %v1586_v4, %v1582_v3  ;;  %v1592_v12 = vrot.slane %v1590_v5, 5  ;;  %v783_v14 = vshll.u32 %v408_v1, 16  ;;  %v4723_v63 = vld [vmem:[%s5544_s5 + $0x58] sm:$0xf] }
  0x8b   : > { %v580_v16 = vsel %vm5556_vm2, %v575_v7, %v579_v58  ;;  %v776_v17 = vrot.slane %v774_v8, 4  ;;  %v779_v18 = vrot.slane %v777_v9, 5  ;;  %v787_v19 = vshrl.u32 %v408_v1, 16  ;;  %v4724_v7 = vld [vmem:[%s5544_s5 + $0x5c] sm:$0x1] }
  0x8c   : > { %v4614_v21 = vcombine.low %v570_v6, %v580_v16  ;;  %v1578_v22 = vrot.slane %v1577_v10, 4  ;;  %v1588_v23 = vrot.slane %v1587_v11, 4  ;;  %v785_v24 = vrot.slane %v783_v14, 5 }
  0x8d   : > { %v780_v27 = vor.u32 %v779_v18, %v776_v17  ;;  %v789_v28 = vrot.slane %v787_v19, 4  ;;  %v793_v29 = vshll.u32 %v409_v13, 16  ;;  %v1787_v30 = vshrl.u32 %v4746_v15, 16  ;;  %v4749_v13 = vld [vmem:[%s5544_s5 + $0xc0] sm:$0xf] }
  0x8e   : > { %857 = vrot.lane.b32.xlu0 %v4614_v21, %s5459_s6  ;;  %v1583_v32 = vsel %vm5556_vm2, %v1578_v22, %v1582_v3  ;;  %v1593_v33 = vsel %vm5556_vm2, %v1588_v23, %v1592_v12  ;;  %v1790_v34 = vshll.u32 %v4746_v15, 16  ;;  %v1796_v35 = vshll.u32 %v4747_v20, 16  ;;  %v4750_v18 = vld [vmem:[%s5544_s5 + $0xc4] sm:$0xf]  ;;  %v4751_v23 = vld [vmem:[%s5544_s5 + $0xc8] sm:$0x1] }
  0x8f   : > { %v4757_v36 = vcombine.low %v1583_v32, %v1593_v33  ;;  %v781_v37 = vrot.slane %v780_v27, 4  ;;  %v790_v38 = vor.u32 %v789_v28, %v785_v24  ;;  %v795_v39 = vrot.slane %v793_v29, 5  ;;  %v4725_v29 = vld [vmem:[%s5544_s5 + $0x60] sm:$0xf] }
  0x90   : > { %v1789_v41 = vrot.slane %v1787_v30, 4  ;;  %v1792_v42 = vrot.slane %v1790_v34, 5  ;;  %v1798_v43 = vrot.slane %v1796_v35, 5  ;;  %v1800_v44 = vshrl.u32 %v4747_v20, 16  ;;  %v4726_v30 = vld [vmem:[%s5544_s5 + $0x64] sm:$0xf] }
  0x91   : > { %1892 = vrot.lane.b32.xlu1 %v4757_v36, %s5459_s6  ;;  %v786_v47 = vsel %vm5556_vm2, %v781_v37, %v785_v24  ;;  %v791_v48 = vrot.slane %v790_v38, 4  ;;  %v1806_v49 = vshll.u32 %v4748_v25, 16  ;;  %v582_v50 = vshrl.u32 %v383_v31, 16 }
  0x92   : > { %v1793_v51 = vor.u32 %v1792_v42, %v1789_v41  ;;  %v1802_v52 = vrot.slane %v1800_v44, 4  ;;  %v585_v53 = vshll.u32 %v383_v31, 16  ;;  %v591_v54 = vshll.u32 %v384_v40, 16  ;;  %v4976_v44 = vld [vmem:[%s5544_s5 + $0x18] sm:$0xf] }
  0x93   : > { %v796_v55 = vsel %vm5556_vm2, %v791_v48, %v795_v39  ;;  %v1808_v56 = vrot.slane %v1806_v49, 5  ;;  %v584_v57 = vrot.slane %v582_v50, 4  ;;  %v595_v58 = vshrl.u32 %v384_v40, 16  ;;  %v4977_v49 = vld [vmem:[%s5544_s5 + $0x1c] sm:$0xf] }
  0x94   : > { %v4623_v59 = vcombine.low %v786_v47, %v796_v55  ;;  %v1794_v60 = vrot.slane %v1793_v51, 4  ;;  %v1803_v61 = vor.u32 %v1802_v52, %v1798_v43  ;;  %v587_v62 = vrot.slane %v585_v53, 5 }
  0x95   : > { %v593_v0 = vrot.slane %v591_v54, 5  ;;  %v597_v1 = vrot.slane %v595_v58, 4  ;;  %v601_v2 = vshll.u32 %v385_v45, 16  ;;  %v1595_v3 = vshrl.u32 %v4722_v46, 16 }
  0x96   : > { %875 = vrot.lane.b32.xlu0 %v4623_v59, %s5459_s6  ;;  %v1799_v4 = vsel %vm5556_vm2, %v1794_v60, %v1798_v43  ;;  %v1804_v5 = vrot.slane %v1803_v61, 4  ;;  %v588_v6 = vor.u32 %v587_v62, %v584_v57  ;;  %v1598_v8 = vshll.u32 %v4722_v46, 16  ;;  %v4727_v43 = vld [vmem:[%s5544_s5 + $0x68] sm:$0x1] }
  0x97   : > { %v598_v9 = vor.u32 %v597_v1, %v593_v0  ;;  %v603_v10 = vrot.slane %v601_v2, 5  ;;  %v1597_v11 = vrot.slane %v1595_v3, 4  ;;  %v1604_v12 = vshll.u32 %v4723_v63, 16 }
  0x98   : > { %v1809_v14 = vsel %vm5556_vm2, %v1804_v5, %v1808_v56  ;;  %v589_v15 = vrot.slane %v588_v6, 4  ;;  %v1600_v16 = vrot.slane %v1598_v8, 5  ;;  %v1608_v17 = vshrl.u32 %v4723_v63, 16 }
  0x99   : > { %v4766_v19 = vcombine.low %v1799_v4, %v1809_v14  ;;  %v599_v20 = vrot.slane %v598_v9, 4  ;;  %v1606_v21 = vrot.slane %v1604_v12, 5  ;;  %v1614_v22 = vshll.u32 %v4724_v7, 16  ;;  %v4978_v4 = vld [vmem:[%s5544_s5 + $0x20] sm:$0x1] }
  0x9a   : > { %v594_v24 = vsel %vm5556_vm2, %v589_v15, %v593_v0  ;;  %v1601_v25 = vor.u32 %v1600_v16, %v1597_v11  ;;  %v1610_v27 = vrot.slane %v1608_v17, 4  ;;  %v1811_v28 = vshrl.u32 %v4749_v13, 16  ;;  %v4979_v11 = vld [vmem:[%s5544_s5 + $0x24] sm:$0xf]  ;;  %v4980_v17 = vld [vmem:[%s5544_s5 + $0x28] sm:$0xf] }
  0x9b   : > { %1910 = vrot.lane.b32.xlu1 %v4766_v19, %s5459_s6  ;;  %v604_v31 = vsel %vm5556_vm2, %v599_v20, %v603_v10  ;;  %v1616_v32 = vrot.slane %v1614_v22, 5  ;;  %v1814_v33 = vshll.u32 %v4749_v13, 16  ;;  %v1820_v34 = vshll.u32 %v4750_v18, 16  ;;  %v5311_v16 = vld [vmem:[%s7533_s1 + $0x60] sm:$0xff]   ;;  %v4981_v22 = vld [vmem:[%s5544_s5 + $0x2c] sm:$0x1] }
  0x9c   : > { %v4615_v35 = vcombine.low %v594_v24, %v604_v31  ;;  %v1602_v36 = vrot.slane %v1601_v25, 4  ;;  %v1611_v37 = vor.u32 %v1610_v27, %v1606_v21  ;;  %v1813_v38 = vrot.slane %v1811_v28, 4  ;;  %v4982_v28 = vld [vmem:[%s5544_s5 + $0x30] sm:$0xf] }
  0x9d   : > { %v1816_v39 = vrot.slane %v1814_v33, 5  ;;  %v1822_v40 = vrot.slane %v1820_v34, 5  ;;  %v1824_v41 = vshrl.u32 %v4750_v18, 16  ;;  %v1830_v42 = vshll.u32 %v4751_v23, 16  ;;  %v5813_v23 = vpop.permute.xlu0 %861  ;;  %v5312_v34 = vld [vmem:[%s7533_s1 + $0x68] sm:$0xff]  }
  0x9e   : > { %859 = vrot.lane.b32.xlu0 %v4615_v35, %s5459_s6  ;;  %v1607_v45 = vsel %vm5556_vm2, %v1602_v36, %v1606_v21  ;;  %v1612_v46 = vrot.slane %v1611_v37, 4  ;;  %v1619_v47 = vshrl.u32 %v4725_v29, 16  ;;  %v1622_v48 = vshll.u32 %v4725_v29, 16  ;;  %v4983_v35 = vld [vmem:[%s5544_s5 + $0x34] sm:$0xf] }
  0x9f   : > { %v1817_v50 = vor.u32 %v1816_v39, %v1813_v38  ;;  %v1826_v51 = vrot.slane %v1824_v41, 4  ;;  %v1832_v52 = vrot.slane %v1830_v42, 5  ;;  %v1628_v53 = vshll.u32 %v4726_v30, 16 }
  0xa0   : > { %v1617_v54 = vsel %vm5556_vm2, %v1612_v46, %v1616_v32  ;;  %v1621_v55 = vrot.slane %v1619_v47, 4  ;;  %v1624_v56 = vrot.slane %v1622_v48, 5  ;;  %v1632_v57 = vshrl.u32 %v4726_v30, 16 }
  0xa1   : > { %v4758_v58 = vcombine.low %v1607_v45, %v1617_v54  ;;  %v1818_v59 = vrot.slane %v1817_v50, 4  ;;  %v1827_v60 = vor.u32 %v1826_v51, %v1822_v40  ;;  %v1630_v61 = vrot.slane %v1628_v53, 5  ;;  %v4984_v45 = vld [vmem:[%s5544_s5 + $0x38] sm:$0x1]  ;;  %v4985_v50 = vld [vmem:[%s5544_s5 + $0x3c] sm:$0xf] }
  0xa2   : > { %v1625_v62 = vor.u32 %v1624_v56, %v1621_v55  ;;  %v1634_v63 = vrot.slane %v1632_v57, 4  ;;  %v1638_v0 = vshll.u32 %v4727_v43, 16  ;;  %v3047_v1 = vshrl.u32 %v4976_v44, 16  ;;  %v4986_v55 = vld [vmem:[%s5544_s5 + $0x40] sm:$0xf]  ;;  %v5835_v56 = vpop.permute.xlu0 %845 }
  0xa3   : > { %1894 = vrot.lane.b32.xlu1 %v4758_v58, %s5459_s6  ;;  %v1823_v2 = vsel %vm5556_vm2, %v1818_v59, %v1822_v40  ;;  %v1828_v3 = vrot.slane %v1827_v60, 4  ;;  %v3050_v5 = vshll.u32 %v4976_v44, 16  ;;  %v3056_v6 = vshll.u32 %v4977_v49, 16  ;;  %v5825_v40 = vpop.permute.xlu1 %863  ;;  %v5313_v58 = vld [vmem:[%s7533_s1 + $0x70] sm:$0xff]  }
  0xa4   : > { %v1626_v7 = vrot.slane %v1625_v62, 4  ;;  %v1635_v8 = vor.u32 %v1634_v63, %v1630_v61  ;;  %v1640_v9 = vrot.slane %v1638_v0, 5  ;;  %v3049_v10 = vrot.slane %v3047_v1, 4 }
  0xa5   : > { %v1833_v12 = vsel %vm5556_vm2, %v1828_v3, %v1832_v52  ;;  %v3052_v13 = vrot.slane %v3050_v5, 5  ;;  %v3058_v14 = vrot.slane %v3056_v6, 5  ;;  %v3060_v15 = vshrl.u32 %v4977_v49, 16 }
  0xa6   : > { %v4767_v18 = vcombine.low %v1823_v2, %v1833_v12  ;;  %v1631_v19 = vsel %vm5556_vm2, %v1626_v7, %v1630_v61  ;;  %v1636_v20 = vrot.slane %v1635_v8, 4  ;;  %v3066_v21 = vshll.u32 %v4978_v4, 16  ;;  %v4987_v2 = vld [vmem:[%s5544_s5 + $0x44] sm:$0x1]  ;;  %v5848_v7 = vld [vmem:[%s5544_s5 + $0x48] sm:$0xf] }
  0xa7   : > { %v3053_v24 = vor.u32 %v3052_v13, %v3049_v10  ;;  %v3062_v25 = vrot.slane %v3060_v15, 4  ;;  %v3071_v27 = vshrl.u32 %v4979_v11, 16  ;;  %v5460_v31 = vmov 0  }
  0xa8   : > { %1912 = vrot.lane.b32.xlu0 %v4767_v18, %s5459_s6  ;;  %v1641_v29 = vsel %vm5556_vm2, %v1636_v20, %v1640_v9  ;;  %v3068_v30 = vrot.slane %v3066_v21, 5  ;;  %5244 = vmatprep.subr.bf16.mxu1 %v5460_v31  ;;  %v3074_v32 = vshll.u32 %v4979_v11, 16  ;;  %v3080_v33 = vshll.u32 %v4980_v17, 16  ;;  %v5850_v8 = vpop.permute.xlu1 %1898 }
  0xa9   : > { %v4759_v36 = vcombine.low %v1631_v19, %v1641_v29  ;;  %v3054_v37 = vrot.slane %v3053_v24, 4  ;;  %v3063_v38 = vor.u32 %v3062_v25, %v3058_v14  ;;  %5256 = vmatpush1.bf16.msra.mxu1 %v5311_v16  ;;  %v3073_v39 = vrot.slane %v3071_v27, 4  ;;  %2411 = vmatprep.subr.bf16.mxu0 %v5460_v31  ;;  %v4989_v24 = vld [vmem:[%s5544_s5 + $0x4c] sm:$0xf]  ;;  %v5874_v29 = vld [vmem:[%s7533_s1 + $0x80] sm:$0xff]  }
  0xaa   : > { %v3076_v41 = vrot.slane %v3074_v32, 5  ;;  %v3082_v42 = vrot.slane %v3080_v33, 5  ;;  %v3084_v43 = vshrl.u32 %v4980_v17, 16  ;;  %v3090_v44 = vshll.u32 %v4981_v22, 16  ;;  %2412 = vmatpush1.bf16.msra.mxu0 %v5311_v16  ;;  %5245 = vmatprep.subr.bf16.mxu1 %v5460_v31  ;;  %v5855_v13 = vpop.permute.xlu0 %847  ;;  %v5314_v17 = vld [vmem:[%s7533_s1 + $0x78] sm:$0xff]   ;;  %v5319_v33 = vld [vmem:[%s5544_s5 + $0x60] sm:$0xff]  }
  0xab   : > { %1896 = vrot.lane.b32.xlu1 %v4759_v36, %s5459_s6  ;;  %v3059_v46 = vsel %vm5556_vm2, %v3054_v37, %v3058_v14  ;;  %v3064_v47 = vrot.slane %v3063_v38, 4  ;;  %2413 = vmatprep.subr.bf16.mxu0 %v5460_v31  ;;  %v3095_v48 = vshrl.u32 %v4982_v28, 16  ;;  %v3098_v49 = vshll.u32 %v4982_v28, 16  ;;  %v4990_v32 = vld [vmem:[%s5544_s5 + $0x50] sm:$0x1]  ;;  %v5329_v37 = vld [vmem:[%s5544_s5 + $0x78] sm:$0xff]  }
  0xac   : > { %v3077_v51 = vor.u32 %v3076_v41, %v3073_v39  ;;  %v3086_v52 = vrot.slane %v3084_v43, 4  ;;  %v3092_v53 = vrot.slane %v3090_v44, 5  ;;  %v3104_v54 = vshll.u32 %v4983_v35, 16  ;;  %v5326_v36 = vld [vmem:[%s5544_s5 + $0xc] sm:$0xff]   ;;  %v5331_v38 = vld [vmem:[%s5544_s5 + $0x18] sm:$0xff]   ;;  %v5335_v39 = vld [vmem:[%s5544_s5 + $0x84] sm:$0xff]  }
  0xad   : > { %v3069_v57 = vsel %vm5556_vm2, %v3064_v47, %v3068_v30  ;;  %5257 = vmatpush1.bf16.msra.mxu1 %v5312_v34  ;;  %v3097_v59 = vrot.slane %v3095_v48, 4  ;;  %v3100_v60 = vrot.slane %v3098_v49, 5  ;;  %v3108_v61 = vshrl.u32 %v4983_v35, 16  ;;  %v5322_v35 = vld [vmem:[%s5544_s5 + $0x6c] sm:$0xff]   ;;  %v5338_v41 = vld [vmem:[%s5544_s5 + $0x24] sm:$0xff]   ;;  %v5349_v48 = vld [vmem:[%s5544_s5 + $0x9c] sm:$0xff]  }
  0xae   : > { %v5024_v62 = vcombine.low %v3059_v46, %v3069_v57  ;;  %v3078_v63 = vrot.slane %v3077_v51, 4  ;;  %v3087_v0 = vor.u32 %v3086_v52, %v3082_v42  ;;  %2414 = vmatpush1.bf16.msra.mxu0 %v5312_v34  ;;  %5246 = vmatprep.subr.bf16.mxu1 %v5460_v31  ;;  %v5843_v1 = vrot.slane %v3104_v54, 5  ;;  %v5321_v34 = vld [vmem:[%s5544_s5] sm:$0xff]   ;;  %v5345_v43 = vld [vmem:[%s5544_s5 + $0x30] sm:$0xff]   ;;  %v5359_v57 = vld [vmem:[%s5544_s5 + $0x48] sm:$0xff]   ;;  %354 = vst.msk [vmem:[#allocation2 + $0x80] sm:$0xff] %vm345_vm3, %v5319_v33 }
  0xaf   : > { %v3101_v3 = vor.u32 %v3100_v60, %v3097_v59  ;;  %v3110_v4 = vrot.slane %v3108_v61, 4  ;;  %v3114_v5 = vshll.u32 %v4984_v45, 16  ;;  %2415 = vmatprep.subr.bf16.mxu0 %v5460_v31  ;;  %v3119_v6 = vshrl.u32 %v4985_v50, 16  ;;  %v5352_v49 = vld [vmem:[%s5544_s5 + $0x3c] sm:$0xff]   ;;  %v5366_v59 = vld [vmem:[%s5544_s5 + $0x54] sm:$0xff]   ;;  %346 = vst.msk [vmem:[#allocation2] sm:$0xff] %vm345_vm3, %v5321_v34 }
  0xb0   : > { %3478 = vrot.lane.b32.xlu0 %v5024_v62, %s5459_s6  ;;  %v3083_v9 = vsel %vm5556_vm2, %v3078_v63, %v3082_v42  ;;  %v3088_v10 = vrot.slane %v3087_v0, 4  ;;  %v3122_v11 = vshll.u32 %v4985_v50, 16  ;;  %v3128_v12 = vshll.u32 %v4986_v55, 16  ;;  %v5342_v42 = vld [vmem:[%s5544_s5 + $0x90] sm:$0xff]   ;;  %v5356_v50 = vld [vmem:[%s5544_s5 + $0xa8] sm:$0xff]   ;;  %355 = vst.msk [vmem:[#allocation2 + $0x90] sm:$0xff] %vm345_vm3, %v5322_v35 }
  0xb1   : > { %5258 = vmatpush1.bf16.msra.mxu1 %v5313_v58  ;;  %v3102_v14 = vrot.slane %v3101_v3, 4  ;;  %v3111_v15 = vor.u32 %v3110_v4, %v5843_v1  ;;  %v3116_v16 = vrot.slane %v3114_v5, 5  ;;  %v3121_v18 = vrot.slane %v3119_v6, 4  ;;  %v4991_v0 = vld [vmem:[%s5544_s5 + $0x54] sm:$0xf]  ;;  %347 = vst.msk [vmem:[#allocation2 + $0x10] sm:$0xff] %vm345_vm3, %v5326_v36 }
  0xb2   : > { %v3093_v19 = vsel %vm5556_vm2, %v3088_v10, %v3092_v53  ;;  %2416 = vmatpush1.bf16.msra.mxu0 %v5313_v58  ;;  %5247 = vmatprep.subr.bf16.mxu1 %v5460_v31  ;;  %v3124_v20 = vrot.slane %v3122_v11, 5  ;;  %v5864_v21 = vrot.slane %v3128_v12, 5  ;;  %v3132_v22 = vshrl.u32 %v4986_v55, 16  ;;  %v5897_v55 = vpop.permute.xlu1 %1882  ;;  %v5363_v58 = vld [vmem:[%s5544_s5 + $0xb4] sm:$0xff]   ;;  %v5316_v11 = vld [vmem:[%s7533_s1 + $0x88] sm:$0xff]   ;;  %356 = vst.msk [vmem:[#allocation2 + $0xa0] sm:$0xff] %vm345_vm3, %v5329_v37 }
  0xb3   : > { %v5025_v25 = vcombine.low %v3083_v9, %v3093_v19  ;;  %v3107_v27 = vsel %vm5556_vm2, %v3102_v14, %v5843_v1  ;;  %v3112_v28 = vrot.slane %v3111_v15, 4  ;;  %2417 = vmatprep.subr.bf16.mxu0 %v5460_v31  ;;  %v3138_v30 = vshll.u32 %v4987_v2, 16  ;;  %v4992_v1 = vld [vmem:[%s5544_s5 + $0x58] sm:$0xf]  ;;  %v5920_v12 = vld [vmem:[%s5544_s5 + $0x60] sm:$0xf] }
  0xb4   : > { %v3125_v44 = vor.u32 %v3124_v20, %v3121_v18  ;;  %v3134_v45 = vrot.slane %v3132_v22, 4  ;;  %v3143_v46 = vshrl.u32 %v5848_v7, 16  ;;  %v3146_v47 = vshll.u32 %v5848_v7, 16  ;;  %v866_v2 = vpop.permute.xlu0 %865  ;;  %v5910_v7 = vld [vmem:[%s5544_s5 + $0x5c] sm:$0x1]  ;;  %348 = vst.msk [vmem:[#allocation2 + $0x20] sm:$0xff] %vm345_vm3, %v5331_v38 }
  0xb5   : > { %3480 = vrot.lane.b32.xlu1 %v5025_v25, %s5459_s6  ;;  %v3117_v51 = vsel %vm5556_vm2, %v3112_v28, %v3116_v16  ;;  %5259 = vmatpush1.bf16.msra.mxu1 %v5314_v17  ;;  %v5895_v52 = vrot.slane %v3138_v30, 5  ;;  %v3152_v53 = vshll.u32 %v4989_v24, 16  ;;  %v3156_v54 = vshrl.u32 %v4989_v24, 16  ;;  %357 = vst.msk [vmem:[#allocation2 + $0xb0] sm:$0xff] %vm345_vm3, %v5335_v39  ;;  %349 = vst.msk [vmem:[#allocation2 + $0x30] sm:$0xff] %vm345_vm3, %v5338_v41  ;;  %v5327_v33 = vld [vmem:[%s5544_s5 + $0xc] sm:$0xff]  }
  0xb6   : > { %v5026_v60 = vcombine.low %v3107_v27, %v3117_v51  ;;  %2418 = vmatpush1.bf16.msra.mxu0 %v5314_v17  ;;  %5248 = vmatprep.subr.bf16.mxu1 %v5460_v31  ;;  %v3126_v61 = vrot.slane %v3125_v44, 4  ;;  %v3135_v62 = vor.u32 %v3134_v45, %v5864_v21  ;;  %v3145_v63 = vrot.slane %v3143_v46, 4  ;;  %358 = vst.msk [vmem:[#allocation2 + $0xc0] sm:$0xff] %vm345_vm3, %v5342_v42  ;;  %v4995_v22 = vld [vmem:[%s5544_s5 + $0x64] sm:$0xf]  ;;  %v5330_v34 = vld [vmem:[%s5544_s5 + $0x78] sm:$0xff]  }
  0xb7   : > { %2419 = vmatprep.subr.bf16.mxu0 %v5460_v31  ;;  %v3148_v3 = vrot.slane %v3146_v47, 5  ;;  %v5907_v4 = vrot.slane %v3152_v53, 5  ;;  %v3158_v5 = vrot.slane %v3156_v54, 4  ;;  %v3162_v6 = vshll.u32 %v4990_v32, 16  ;;  %350 = vst.msk [vmem:[#allocation2 + $0x40] sm:$0xff] %vm345_vm3, %v5345_v43  ;;  %359 = vst.msk [vmem:[#allocation2 + $0xd0] sm:$0xff] %vm345_vm3, %v5349_v48 }
  0xb8   : > { %3482 = vrot.lane.b32.xlu0 %v5026_v60, %s5459_s6  ;;  %v3131_v9 = vsel %vm5556_vm2, %v3126_v61, %v5864_v21  ;;  %v3136_v10 = vrot.slane %v3135_v62, 4  ;;  %v3167_v17 = vshrl.u32 %v4991_v0, 16  ;;  %351 = vst.msk [vmem:[#allocation2 + $0x50] sm:$0xff] %vm345_vm3, %v5352_v49  ;;  %360 = vst.msk [vmem:[#allocation2 + $0xe0] sm:$0xff] %vm345_vm3, %v5356_v50  ;;  %v3170_v19 = vshll.u32 %v4991_v0, 16  ;;  %v5324_v32 = vld [vmem:[%s5544_s5 + $0x6c] sm:$0xff]  }
  0xb9   : > { %5260 = vmatpush1.bf16.msra.mxu1 %v5874_v29  ;;  %v3149_v14 = vor.u32 %v3148_v3, %v3145_v63  ;;  %v3159_v15 = vor.u32 %v3158_v5, %v5907_v4  ;;  %v3164_v16 = vrot.slane %v3162_v6, 5  ;;  %352 = vst.msk [vmem:[#allocation2 + $0x60] sm:$0xff] %vm345_vm3, %v5359_v57  ;;  %361 = vst.msk [vmem:[#allocation2 + $0xf0] sm:$0xff] %vm345_vm3, %v5363_v58  ;;  %v3176_v20 = vshll.u32 %v4992_v1, 16  ;;  %v4996_v38 = vld [vmem:[%s5544_s5 + $0x68] sm:$0x1] }
  0xba   : > { %353 = vst.msk [vmem:[#allocation2 + $0x70] sm:$0xff] %vm345_vm3, %v5366_v59  ;;  %v3141_v18 = vsel %vm5556_vm2, %v3136_v10, %v5895_v52  ;;  %2420 = vmatpush1.bf16.msra.mxu0 %v5874_v29  ;;  %5249 = vmatprep.subr.bf16.mxu1 %v5460_v31  ;;  %v3180_v21 = vshrl.u32 %v4992_v1, 16  ;;  %v3169_v27 = vrot.slane %v3167_v17, 4  ;;  %v3172_v28 = vrot.slane %v3170_v19, 5  ;;  %v5333_v42 = vld [vmem:[%s5544_s5 + $0x18] sm:$0xff]   ;;  %v5336_v49 = vld [vmem:[%s5544_s5 + $0x84] sm:$0xff]  }
  0xbb   : > { %902 = vst.msk [vmem:[#allocation2 + $0x80] sm:$0xff] %vm893_vm4, %v5813_v23  ;;  %894 = vst.msk [vmem:[#allocation2] sm:$0xff] %vm893_vm4, %v5835_v56  ;;  %v5027_v24 = vcombine.low %v3131_v9, %v3141_v18  ;;  %2421 = vmatprep.subr.bf16.mxu0 %v5460_v31  ;;  %v5317_v23 = vld [vmem:[%s7533_s1 + $0x90] sm:$0xff]   ;;  %v3150_v56 = vrot.slane %v3149_v14, 4  ;;  %v3160_v25 = vrot.slane %v3159_v15, 4  ;;  %v5961_v29 = vrot.slane %v3176_v20, 5 }
  0xbc   : > { %903 = vst.msk [vmem:[#allocation2 + $0x90] sm:$0xff] %vm893_vm4, %v5825_v40  ;;  %895 = vst.msk [vmem:[#allocation2 + $0x10] sm:$0xff] %vm893_vm4, %v5855_v13  ;;  %v5959_v40 = vpop.permute.xlu1 %1900  ;;  %v3182_v13 = vrot.slane %v3180_v21, 4  ;;  %v3186_v30 = vshll.u32 %v5910_v7, 16  ;;  %v850_v35 = vpop.permute.xlu0 %849  ;;  %v3191_v39 = vshrl.u32 %v5920_v12, 16  ;;  %v3194_v41 = vshll.u32 %v5920_v12, 16 }
  0xbd   : > { %904 = vst.msk [vmem:[#allocation2 + $0xa0] sm:$0xff] %vm893_vm4, %v866_v2  ;;  %3484 = vrot.lane.b32.xlu1 %v5027_v24, %s5459_s6  ;;  %5261 = vmatpush1.bf16.msra.mxu1 %v5316_v11  ;;  %v3155_v36 = vsel %vm5556_vm2, %v3150_v56, %v5907_v4  ;;  %v3165_v37 = vsel %vm5556_vm2, %v3160_v25, %v3164_v16  ;;  %896 = vst.msk [vmem:[#allocation2 + $0x20] sm:$0xff] %vm893_vm4, %v850_v35  ;;  %v5981_v47 = vld [vmem:[%s5544_s5 + $0x60] sm:$0xe]  ;;  %v5984_v48 = vld [vmem:[%s5544_s5 + $0x64] sm:$0xf] }
  0xbe   : > { %2422 = vmatpush1.bf16.msra.mxu0 %v5316_v11  ;;  %5250 = vmatprep.subr.bf16.mxu1 %v5460_v31  ;;  %v5028_v43 = vcombine.low %v3155_v36, %v3165_v37  ;;  %v3173_v44 = vor.u32 %v3172_v28, %v3169_v27  ;;  %v3183_v45 = vor.u32 %v3182_v13, %v5961_v29  ;;  %v3188_v46 = vrot.slane %v3186_v30, 5  ;;  %v5991_v50 = vld [vmem:[%s7533_s1 + $0x98] sm:$0xff]   ;;  %v5994_v57 = vld [vmem:[%s5544_s5 + $0x68] sm:$0x1]  ;;  %v5997_v58 = vld [vmem:[%s5544_s5 + $0x6c] sm:$0xe] }
  0xbf   : > { %2423 = vmatprep.subr.bf16.mxu0 %v5460_v31  ;;  %v3193_v51 = vrot.slane %v3191_v39, 4  ;;  %v3196_v52 = vrot.slane %v3194_v41, 5  ;;  %v3200_v53 = vshll.u32 %v4995_v22, 16  ;;  %v3204_v54 = vshrl.u32 %v4995_v22, 16  ;;  %v6000_v59 = vld [vmem:[%s5544_s5 + $0x70] sm:$0xf] }
  0xc0   : > { %v5340_v60 = vld [vmem:[%s5544_s5 + $0x24] sm:$0xff]   ;;  %3486 = vrot.lane.b32.xlu0 %v5028_v43, %s5459_s6  ;;  %v3174_v61 = vrot.slane %v3173_v44, 4  ;;  %v3184_v62 = vrot.slane %v3183_v45, 4  ;;  %v3210_v63 = vshll.u32 %v4996_v38, 16  ;;  %v6005_v0 = vld [vmem:[%s5544_s5 + $0x74] sm:$0x1]  ;;  %v1885_v7 = vpop.permute.xlu1 %1884 }
  0xc1   : > { %5262 = vmatpush1.bf16.msra.mxu1 %v5317_v23  ;;  %v3197_v2 = vor.u32 %v3196_v52, %v3193_v51  ;;  %v3202_v3 = vrot.slane %v3200_v53, 5  ;;  %v3206_v4 = vrot.slane %v3204_v54, 4  ;;  %v4632_v14 = vrot.slane %v5981_v47, 9  ;;  %v6028_v15 = vld [vmem:[%s5544_s5 + $0x78] sm:$0xe]  ;;  %v5323_v43 = vld [vmem:[%s7533_s1 + $0xa8] sm:$0xff]  }
  0xc2   : > { %v6007_v1 = vld [vmem:[#allocation2 + $0x80] sm:$0xff]  ;;  %2424 = vmatpush1.bf16.msra.mxu0 %v5317_v23  ;;  %5251 = vmatprep.subr.bf16.mxu1 %v5460_v31  ;;  %v3179_v9 = vsel %vm5556_vm2, %v3174_v61, %v5961_v29  ;;  %v3189_v10 = vsel %vm5556_vm2, %v3184_v62, %v3188_v46  ;;  %v3212_v11 = vrot.slane %v3210_v63, 5  ;;  %v1067_v21 = vrot.slane %v5984_v48, 5  ;;  %v6042_v22 = vld [vmem:[%s5544_s5 + $0x7c] sm:$0xf] }
  0xc3   : > { %v6009_v5 = vld [vmem:[#allocation2] sm:$0xff]  ;;  %v6011_v6 = vld [vmem:[#allocation2 + $0x90] sm:$0xff]  ;;  %1394 = vst.msk [vmem:[#allocation2 + $0x80] sm:$0xff] %vm345_vm3, %v5324_v32  ;;  %2425 = vmatprep.subr.bf16.mxu0 %v5460_v31  ;;  %v5029_v18 = vcombine.low %v3179_v9, %v3189_v10  ;;  %v3198_v19 = vrot.slane %v3197_v2, 4  ;;  %v3207_v20 = vor.u32 %v3206_v4, %v3202_v3  ;;  %v6047_v24 = vld [vmem:[%s5544_s5 + $0x6c] sm:$0xf] }
  0xc4   : > { %1386 = vst.msk [vmem:[#allocation2] sm:$0xff] %vm345_vm3, %v5327_v33  ;;  %1395 = vst.msk [vmem:[#allocation2 + $0x90] sm:$0xff] %vm345_vm3, %v5330_v34  ;;  %v6031_v16 = vld [vmem:[#allocation2 + $0x10] sm:$0xff]  ;;  %v6033_v17 = vld [vmem:[#allocation2 + $0xa0] sm:$0xff]  ;;  %v4824_v23 = vrot.slane %v5997_v58, 9  ;;  %v2100_v56 = vrot.slane %v6000_v59, 5  ;;  %v1068_v30 = vsel %vm6022_vm7, %v4632_v14, %v1067_v21 }
  0xc5   : > { %1938 = vst.msk [vmem:[#allocation2 + $0x80] sm:$0xff] %vm893_vm4, %v5850_v8  ;;  %1930 = vst.msk [vmem:[#allocation2] sm:$0xff] %vm893_vm4, %v5897_v55  ;;  %v5320_v8 = vld [vmem:[%s7533_s1 + $0xa0] sm:$0xff]   ;;  %v1070_v55 = vrot.slane %v5994_v57, 5  ;;  %v2103_v25 = vrot.slane %v6005_v0, 5  ;;  %5263 = vmatpush1.bf16.msra.mxu1 %v5991_v50  ;;  %3488 = vrot.lane.b32.xlu1 %v5029_v18, %s5459_s6  ;;  %v3203_v29 = vsel %vm5556_vm2, %v3198_v19, %v3202_v3  ;;  %v3208_v13 = vrot.slane %v3207_v20, 4 }
  0xc6   : > { %1939 = vst.msk [vmem:[#allocation2 + $0x90] sm:$0xff] %vm893_vm4, %v5959_v40  ;;  %v6059_v27 = vld [vmem:[%s5544_s5 + $0x80] sm:$0x1]  ;;  %v868_v40 = vpop.permute.xlu0 %867  ;;  %v1069_v32 = vrot.slane %v1067_v21, 4  ;;  %v4998_v33 = vld [vmem:[%s5544_s5 + $0x70] sm:$0xf]  ;;  %2426 = vmatpush1.bf16.msra.mxu0 %v5991_v50  ;;  %5252 = vmatprep.subr.bf16.mxu1 %v5460_v31  ;;  %v6090_v46 = vsel %vm6022_vm7, %v4824_v23, %v2100_v56 }
  0xc7   : > { %1387 = vst.msk [vmem:[#allocation2 + $0x10] sm:$0xff] %vm345_vm3, %v5333_v42  ;;  %1396 = vst.msk [vmem:[#allocation2 + $0xa0] sm:$0xff] %vm345_vm3, %v5336_v49  ;;  %v6062_v28 = vld [vmem:[#allocation2 + $0x20] sm:$0xff]  ;;  %v4999_v34 = vld [vmem:[%s5544_s5 + $0x74] sm:$0x1]  ;;  %v2102_v35 = vrot.slane %v2100_v56, 4  ;;  %2427 = vmatprep.subr.bf16.mxu0 %v5460_v31  ;;  %v3213_v37 = vsel %vm5556_vm2, %v3208_v13, %v3212_v11 }
  0xc8   : > { %1931 = vst.msk [vmem:[#allocation2 + $0x10] sm:$0xff] %vm893_vm4, %v1885_v7  ;;  %905 = vst.msk [vmem:[#allocation2 + $0xb0] sm:$0xff] %vm893_vm4, %v868_v40  ;;  %v910_v36 = vld [vmem:[%s5544_s5] sm:$0xe]  ;;  %v1071_v38 = vsel %vm6022_vm7, %v1069_v32, %v1070_v55  ;;  %v5096_v39 = vrot.slane %v6028_v15, 9  ;;  %v3215_v41 = vshrl.u32 %v6047_v24, 16  ;;  %v5030_v44 = vcombine.low %v3203_v29, %v3213_v37 }
  0xc9   : > { %1388 = vst.msk [vmem:[#allocation2 + $0x20] sm:$0xff] %vm345_vm3, %v5340_v60  ;;  %v911_v42 = vld [vmem:[%s5544_s5 + $0x4] sm:$0xf]  ;;  %v4648_v45 = vcombine.low %v1068_v30, %v1071_v38  ;;  %v3696_v47 = vrot.slane %v6042_v22, 5  ;;  %v912_v48 = vld [vmem:[%s5544_s5 + $0x8] sm:$0x1]  ;;  %5264 = vmatpush1.bf16.msra.mxu1 %v5320_v8  ;;  %v6096_v49 = vsel %vm6022_vm7, %v2102_v35, %v2103_v25  ;;  %v1903_v58 = vpop.permute.xlu1 %1902 }
  0xca   : > { %v3699_v50 = vrot.slane %v6059_v27, 5  ;;  %v3217_v51 = vrot.slane %v3215_v41, 4  ;;  %v3218_v52 = vshll.u32 %v6047_v24, 16  ;;  %v6101_v53 = vld [vmem:[%s5544_s5 + $0xc] sm:$0xe]  ;;  %v5343_v59 = vld [vmem:[%s5544_s5 + $0x90] sm:$0xff]   ;;  %2428 = vmatpush1.bf16.msra.mxu0 %v5320_v8  ;;  %5253 = vmatprep.subr.bf16.mxu1 %v5460_v31  ;;  %v4840_v14 = vcombine.low %v6090_v46, %v6096_v49 }
  0xcb   : > { %v6104_v54 = vld [vmem:[%s5544_s5 + $0x10] sm:$0xf]  ;;  %v6107_v57 = vld [vmem:[%s5544_s5 + $0x14] sm:$0x1]  ;;  %1193 = vst.msk [vmem:[#allocation2 + $0x88] sm:$0xff] %vm345_vm3, %v4648_v45  ;;  %v3224_v60 = vshll.u32 %v4998_v33, 16  ;;  %2429 = vmatprep.subr.bf16.mxu0 %v5460_v31  ;;  %3490 = vrot.lane.b32.xlu0 %v5030_v44, %s5459_s6  ;;  %v6126_v4 = vsel %vm6022_vm7, %v5096_v39, %v3696_v47 }
  0xcc   : > { %v3228_v61 = vshrl.u32 %v4998_v33, 16  ;;  %v3234_v62 = vshll.u32 %v4999_v34, 16  ;;  %v4624_v63 = vrot.slane %v910_v36, 9  ;;  %v6113_v0 = vld [vmem:[%s5544_s5 + $0x18] sm:$0xe]  ;;  %1940 = vst.msk [vmem:[#allocation2 + $0xa0] sm:$0xff] %vm893_vm4, %v1903_v58  ;;  %v852_v21 = vpop.permute.xlu0 %851 }
  0xcd   : > { %v6116_v2 = vld [vmem:[%s5544_s5 + $0x1c] sm:$0xf]  ;;  %v5325_v3 = vld [vmem:[%s7533_s1 + $0xb0] sm:$0xff]   ;;  %v3220_v7 = vrot.slane %v3218_v52, 5  ;;  %v1011_v9 = vrot.slane %v911_v42, 5  ;;  %v1014_v10 = vrot.slane %v912_v48, 5  ;;  %5265 = vmatpush1.bf16.msra.mxu1 %v5323_v43 }
  0xce   : > { %v6129_v11 = vld [vmem:[%s5544_s5 + $0x20] sm:$0x1]  ;;  %v3698_v15 = vrot.slane %v3696_v47, 4  ;;  %v3226_v18 = vrot.slane %v3224_v60, 5  ;;  %v3230_v19 = vrot.slane %v3228_v61, 4  ;;  %v3236_v8 = vrot.slane %v3234_v62, 5  ;;  %2430 = vmatpush1.bf16.msra.mxu0 %v5323_v43  ;;  %5254 = vmatprep.subr.bf16.mxu1 %v5460_v31 }
  0xcf   : > { %v937_v20 = vld [vmem:[%s5544_s5 + $0x6c] sm:$0xe]  ;;  %v6134_v22 = vld [vmem:[#allocation2 + $0xb0] sm:$0xff]  ;;  %v3221_v24 = vor.u32 %v3220_v7, %v3217_v51  ;;  %v1012_v55 = vsel %vm6022_vm7, %v4624_v63, %v1011_v9  ;;  %v1013_v23 = vrot.slane %v1011_v9, 4  ;;  %897 = vst.msk [vmem:[#allocation2 + $0x30] sm:$0xff] %vm893_vm4, %v852_v21  ;;  %v4816_v29 = vrot.slane %v6101_v53, 9  ;;  %2431 = vmatprep.subr.bf16.mxu0 %v5460_v31 }
  0xd0   : > { %v938_v56 = vld [vmem:[%s5544_s5 + $0x70] sm:$0xf]  ;;  %v6140_v25 = vld [vmem:[%s5544_s5 + $0x74] sm:$0x1]  ;;  %1397 = vst.msk [vmem:[#allocation2 + $0xb0] sm:$0xff] %vm345_vm3, %v5343_v59  ;;  %v3231_v40 = vor.u32 %v3230_v19, %v3226_v18  ;;  %v2044_v13 = vrot.slane %v6104_v54, 5  ;;  %v6167_v45 = vsel %vm6022_vm7, %v3698_v15, %v3699_v50 }
  0xd1   : > { %v2047_v30 = vrot.slane %v6107_v57, 5  ;;  %v3222_v32 = vrot.slane %v3221_v24, 4  ;;  %v1015_v33 = vsel %vm6022_vm7, %v1013_v23, %v1014_v10  ;;  %v5088_v34 = vrot.slane %v6113_v0, 9  ;;  %v6154_v36 = vld [vmem:[%s5544_s5 + $0x78] sm:$0xe]  ;;  %5266 = vmatpush1.bf16.msra.mxu1 %v5325_v3  ;;  %v1887_v51 = vpop.permute.xlu1 %1886  ;;  %v5347_v52 = vld [vmem:[%s5544_s5 + $0x30] sm:$0xff]  }
  0xd2   : > { %v3640_v35 = vrot.slane %v6116_v2, 5  ;;  %v5328_v37 = vld [vmem:[%s7533_s1 + $0xb8] sm:$0xff]   ;;  %v3232_v38 = vrot.slane %v3231_v40, 4  ;;  %v4640_v39 = vcombine.low %v1012_v55, %v1015_v33  ;;  %v2046_v41 = vrot.slane %v2044_v13, 4  ;;  %v6161_v44 = vld [vmem:[#allocation2 + $0x88] sm:$0xff]  ;;  %2432 = vmatpush1.bf16.msra.mxu0 %v5325_v3  ;;  %5255 = vmatprep.subr.bf16.mxu1 %v5460_v31  ;;  %1932 = vst.msk [vmem:[#allocation2 + $0x20] sm:$0xff] %vm893_vm4, %v1887_v51 }
  0xd3   : > { %v3643_v42 = vrot.slane %v6129_v11, 5  ;;  %v4796_v43 = vld [vmem:[%s5544_s5 + $0x7c] sm:$0xf]  ;;  %v3227_v46 = vsel %vm5556_vm2, %v3222_v32, %v3226_v18  ;;  %v4633_v48 = vrot.slane %v937_v20, 9  ;;  %v4797_v49 = vld [vmem:[%s5544_s5 + $0x80] sm:$0x1]  ;;  %v6180_v50 = vsel %vm6022_vm7, %v4816_v29, %v2044_v13  ;;  %2433 = vmatprep.subr.bf16.mxu0 %v5460_v31 }
  0xd4   : > { %v3642_v47 = vrot.slane %v3640_v35, 4  ;;  %2226 = vst.msk [vmem:[#allocation2 + $0x88] sm:$0xff] %vm345_vm3, %v4840_v14  ;;  %v3237_v27 = vsel %vm5556_vm2, %v3232_v38, %v3236_v8  ;;  %1185 = vst.msk [vmem:[#allocation2 + $0x8] sm:$0xff] %vm345_vm3, %v4640_v39  ;;  %v1074_v53 = vrot.slane %v938_v56, 5  ;;  %v1077_v54 = vrot.slane %v6140_v25, 5  ;;  %v5377_v2 = vld [vmem:[%s5544_s5 + $0x18] sm:$0xff]  }
  0xd5   : > { %v5067_v57 = vld [vmem:[%s5544_s5 + $0x84] sm:$0xe]  ;;  %v6185_v58 = vld [vmem:[%s5544_s5 + $0x88] sm:$0xf]  ;;  %v5031_v59 = vcombine.low %v3227_v46, %v3237_v27  ;;  %v2048_v60 = vsel %vm6022_vm7, %v2046_v41, %v2047_v30  ;;  %v6193_v61 = vsel %vm6022_vm7, %v5088_v34, %v3640_v35  ;;  %v4825_v62 = vrot.slane %v6154_v36, 9  ;;  %5267 = vmatpush1.bf16.msra.mxu1 %v5328_v37 }
  0xd6   : > { %v5000_v63 = vld [vmem:[%s5544_s5 + $0x78] sm:$0xf]  ;;  %v5001_v0 = vld [vmem:[%s5544_s5 + $0x7c] sm:$0xf]  ;;  %v6201_v3 = vsel %vm6022_vm7, %v3642_v47, %v3643_v42  ;;  %v6203_v7 = vld [vmem:[#allocation2] sm:$0xff]  ;;  %v1075_v9 = vsel %vm6022_vm7, %v4633_v48, %v1074_v53  ;;  %v1076_v10 = vrot.slane %v1074_v53, 4  ;;  %v5112_v19 = vcombine.low %v6126_v4, %v6167_v45  ;;  %2434 = vmatpush1.bf16.msra.mxu0 %v5328_v37  ;;  %2692 = vmatprep.subr.bf16.mxu1 %v5460_v31  ;;  %v870_v29 = vpop.permute.xlu0 %869 }
  0xd7   : > { %v2107_v11 = vrot.slane %v4796_v43, 5  ;;  %v6208_v14 = vld [vmem:[%s5544_s5 + $0x8c] sm:$0x1]  ;;  %v6211_v15 = vld [vmem:[%s5544_s5 + $0x80] sm:$0x1]  ;;  %v6213_v18 = vld [vmem:[#allocation2 + $0x30] sm:$0xff]  ;;  %3492 = vrot.lane.b32.xlu1 %v5031_v59, %s5459_s6  ;;  %v4832_v55 = vcombine.low %v6180_v50, %v2048_v60  ;;  %v5104_v30 = vcombine.low %v6193_v61, %v6201_v3  ;;  %4007 = vmatprep.subr.bf16.mxu0 %v5460_v31 }
  0xd8   : > { %v2110_v20 = vrot.slane %v4797_v49, 5  ;;  %v5097_v21 = vrot.slane %v5067_v57, 9  ;;  %v3703_v24 = vrot.slane %v6185_v58, 5  ;;  %v6220_v8 = vld [vmem:[%s5544_s5 + $0xc] sm:$0xe]  ;;  %1389 = vst.msk [vmem:[#allocation2 + $0x30] sm:$0xff] %vm345_vm3, %v5347_v52  ;;  %v1078_v4 = vsel %vm6022_vm7, %v1076_v10, %v1077_v54 }
  0xd9   : > { %2982 = vst.msk [vmem:[#allocation2] sm:$0xff] %vm345_vm3, %v5377_v2  ;;  %v2109_v23 = vrot.slane %v2107_v11, 4  ;;  %v3239_v56 = vshrl.u32 %v5000_v63, 16  ;;  %v914_v25 = vld [vmem:[%s5544_s5 + $0x10] sm:$0xf]  ;;  %v5332_v13 = vld [vmem:[%s7533_s1] sm:$0xff]   ;;  %v4649_v32 = vcombine.low %v1075_v9, %v1078_v4  ;;  %v6240_v33 = vsel %vm6022_vm7, %v4825_v62, %v2107_v11  ;;  %v1905_v50 = vpop.permute.xlu1 %1904 }
  0xda   : > { %v6230_v40 = vld [vmem:[%s5544_s5 + $0x14] sm:$0x1]  ;;  %v3242_v34 = vshll.u32 %v5000_v63, 16  ;;  %v6243_v35 = vld [vmem:[%s5544_s5 + $0x18] sm:$0xe]  ;;  %906 = vst.msk [vmem:[#allocation2 + $0xc0] sm:$0xff] %vm893_vm4, %v870_v29  ;;  %v6261_v47 = vsel %vm6022_vm7, %v5097_v21, %v3703_v24 }
  0xdb   : > { %v6246_v36 = vld [vmem:[%s5544_s5 + $0x1c] sm:$0xf]  ;;  %v2250_v37 = vld [vmem:[#allocation2 + $0x80] sm:$0xff]  ;;  %v6251_v38 = vsel %vm6022_vm7, %v2109_v23, %v2110_v20  ;;  %v3241_v39 = vrot.slane %v3239_v56, 4  ;;  %v3248_v41 = vshll.u32 %v5001_v0, 16  ;;  %v3252_v42 = vshrl.u32 %v5001_v0, 16 }
  0xdc   : > { %v6254_v43 = vld [vmem:[%s5544_s5 + $0x20] sm:$0x1]  ;;  %v2251_v45 = vld [vmem:[#allocation2 + $0x88] sm:$0xff]  ;;  %1194 = vst.msk [vmem:[#allocation2 + $0x98] sm:$0xff] %vm345_vm3, %v4649_v32  ;;  %v3706_v48 = vrot.slane %v6208_v14, 5  ;;  %v3244_v49 = vrot.slane %v3242_v34, 5  ;;  %v4841_v62 = vcombine.low %v6240_v33, %v6251_v38 }
  0xdd   : > { %v6256_v46 = vld [vmem:[#allocation2 + $0x8] sm:$0xff]  ;;  %v3258_v51 = vshll.u32 %v6211_v15, 16  ;;  %v6266_v52 = vld [vmem:[%s5544_s5 + $0x24] sm:$0xe]  ;;  %4892 = vmatprep.mubr.msk.bf16.mxu1 %vm345_vm3, %v2251_v45  ;;  %3822 = vst.msk [vmem:[#allocation2 + $0x88] sm:$0xff] %vm345_vm3, %v5112_v19  ;;  %v3705_v53 = vrot.slane %v3703_v24, 4 }
  0xde   : > { %v6269_v27 = vld [vmem:[%s5544_s5 + $0x28] sm:$0xf]  ;;  %2218 = vst.msk [vmem:[#allocation2 + $0x8] sm:$0xff] %vm345_vm3, %v4832_v55  ;;  %v3250_v57 = vrot.slane %v3248_v41, 5  ;;  %v3254_v58 = vrot.slane %v3252_v42, 4  ;;  %v4625_v59 = vrot.slane %v6220_v8, 9  ;;  %2508 = vmatmul.mubr.bf16.vlgmr.msra.gmra.mrb[0].mxu1 %v2250_v37  ;;  %v3245_v63 = vor.u32 %v3244_v49, %v3241_v39 }
  0xdf   : > { %v5337_v54 = vld [vmem:[%s7533_s1 + $0x8] sm:$0xff]   ;;  %1941 = vst.msk [vmem:[#allocation2 + $0xb0] sm:$0xff] %vm893_vm4, %v1905_v50  ;;  %v1018_v0 = vrot.slane %v914_v25, 5  ;;  %v1021_v2 = vrot.slane %v6230_v40, 5  ;;  %v6286_v9 = vld [vmem:[%s5544_s5 + $0x78] sm:$0xe]  ;;  %2693 = vmatpush1.bf16.msra.mxu1 %v5332_v13 }
  0xe0   : > { %v6279_v60 = vld [vmem:[%s5544_s5 + $0x2c] sm:$0x1]  ;;  %v5350_v10 = vld [vmem:[%s5544_s5 + $0x9c] sm:$0xff]   ;;  %v5380_v11 = vld [vmem:[%s5544_s5 + $0x24] sm:$0xff]   ;;  %v3255_v14 = vor.u32 %v3254_v58, %v3250_v57  ;;  %v3260_v15 = vrot.slane %v3258_v51, 5  ;;  %v4817_v19 = vrot.slane %v6243_v35, 9  ;;  %2694 = vmatprep.subr.bf16.mxu1 %v5460_v31  ;;  %v6337_v51 = vsel %vm6022_vm7, %v3705_v53, %v3706_v48 }
  0xe1   : > { %v2051_v20 = vrot.slane %v6246_v36, 5  ;;  %v6292_v21 = vld [vmem:[#allocation2 + $0x10] sm:$0xff]  ;;  %v941_v24 = vld [vmem:[%s5544_s5 + $0x7c] sm:$0xf]  ;;  %v3246_v8 = vrot.slane %v3245_v63, 4  ;;  %v1019_v55 = vsel %vm6022_vm7, %v4625_v59, %v1018_v0  ;;  %v1020_v4 = vrot.slane %v1018_v0, 4  ;;  %v854_v36 = vpop.permute.xlu0 %853  ;;  %v1889_v0 = vpop.permute.xlu1 %1888 }
  0xe2   : > { %v2054_v23 = vrot.slane %v6254_v43, 5  ;;  %v6300_v56 = vld [vmem:[%s5544_s5 + $0x80] sm:$0x1]  ;;  %v6303_v25 = vld [vmem:[%s5544_s5 + $0x84] sm:$0xe]  ;;  %2983 = vst.msk [vmem:[#allocation2 + $0x10] sm:$0xff] %vm345_vm3, %v5380_v11 }
  0xe3   : > { %v6306_v40 = vld [vmem:[%s5544_s5 + $0x88] sm:$0xf]  ;;  %v5334_v29 = vld [vmem:[%s7533_s1 + $0xc0] sm:$0xff]   ;;  %v3256_v13 = vrot.slane %v3255_v14, 4  ;;  %v2053_v32 = vrot.slane %v2051_v20, 4  ;;  %v5089_v33 = vrot.slane %v6266_v52, 9  ;;  %v3251_v38 = vsel %vm5556_vm2, %v3246_v8, %v3250_v57  ;;  %2695 = vmatpush1.bf16.msra.mxu1 %v5337_v54 }
  0xe4   : > { %v3647_v34 = vrot.slane %v6269_v27, 5  ;;  %v5341_v35 = vld [vmem:[%s7533_s1 + $0x10] sm:$0xff]   ;;  %v6317_v37 = vld [vmem:[#allocation2 + $0xc0] sm:$0xff]  ;;  %v1022_v39 = vsel %vm6022_vm7, %v1020_v4, %v1021_v2  ;;  %v3650_v41 = vrot.slane %v6279_v60, 5  ;;  %v4634_v42 = vrot.slane %v6286_v9, 9  ;;  %898 = vst.msk [vmem:[#allocation2 + $0x40] sm:$0xff] %vm893_vm4, %v854_v36  ;;  %2696 = vmatprep.subr.bf16.mxu1 %v5460_v31 }
  0xe5   : > { %v6326_v43 = vld [vmem:[%s5544_s5 + $0x8c] sm:$0x1]  ;;  %v6329_v45 = vld [vmem:[%s5544_s5 + $0x90] sm:$0xe]  ;;  %1398 = vst.msk [vmem:[#allocation2 + $0xc0] sm:$0xff] %vm345_vm3, %v5350_v10  ;;  %v6333_v49 = vld [vmem:[#allocation2 + $0x98] sm:$0xff]  ;;  %v3261_v52 = vsel %vm5556_vm2, %v3256_v13, %v3260_v15  ;;  %v4641_v27 = vcombine.low %v1019_v55, %v1022_v39  ;;  %v6343_v50 = vsel %vm6022_vm7, %v4817_v19, %v2051_v20  ;;  %v6352_v48 = vsel %vm6022_vm7, %v2053_v32, %v2054_v23 }
  0xe6   : > { %v6346_v57 = vld [vmem:[%s5544_s5 + $0x94] sm:$0xf]  ;;  %v5003_v58 = vld [vmem:[%s5544_s5 + $0x84] sm:$0xf]  ;;  %v2235_v59 = vld [vmem:[#allocation2 + $0x8] sm:$0xff]  ;;  %2227 = vst.msk [vmem:[#allocation2 + $0x98] sm:$0xff] %vm345_vm3, %v4841_v62  ;;  %v5032_v60 = vcombine.low %v3251_v38, %v3261_v52  ;;  %v6369_v2 = vsel %vm6022_vm7, %v5089_v33, %v3647_v34  ;;  %v4833_v8 = vcombine.low %v6343_v50, %v6352_v48 }
  0xe7   : > { %v3649_v53 = vrot.slane %v3647_v34, 4  ;;  %v1081_v54 = vrot.slane %v941_v24, 5  ;;  %v6356_v63 = vld [vmem:[%s5544_s5 + $0x98] sm:$0x1]  ;;  %4884 = vmatprep.mubr.msk.bf16.mxu0 %vm345_vm3, %v2235_v59  ;;  %3814 = vst.msk [vmem:[#allocation2 + $0x8] sm:$0xff] %vm345_vm3, %v5104_v30  ;;  %v5339_v62 = vld [vmem:[%s7533_s1 + $0xc8] sm:$0xff]   ;;  %2697 = vmatpush1.bf16.msra.mxu1 %v5341_v35 }
  0xe8   : > { %1186 = vst.msk [vmem:[#allocation2 + $0x18] sm:$0xff] %vm345_vm3, %v4641_v27  ;;  %v1084_v9 = vrot.slane %v6300_v56, 5  ;;  %v4826_v10 = vrot.slane %v6303_v25, 9  ;;  %v2114_v61 = vrot.slane %v6306_v40, 5  ;;  %v6375_v3 = vld [vmem:[%s5544_s5 + $0x88] sm:$0xf]  ;;  %2444 = vmatmul.mubr.bf16.vlgmr.msra.gmra.mrb[0].mxu0 %v6203_v7  ;;  %3494 = vrot.lane.b32.xlu0 %v5032_v60, %s5459_s6  ;;  %v5113_v7 = vcombine.low %v6261_v47, %v6337_v51 }
  0xe9   : > { %1933 = vst.msk [vmem:[#allocation2 + $0x30] sm:$0xff] %vm893_vm4, %v1889_v0  ;;  %v5354_v30 = vld [vmem:[%s5544_s5 + $0x3c] sm:$0xff]   ;;  %v6383_v11 = vsel %vm6022_vm7, %v3649_v53, %v3650_v41  ;;  %v1082_v14 = vsel %vm6022_vm7, %v4634_v42, %v1081_v54  ;;  %v1083_v15 = vrot.slane %v1081_v54, 4  ;;  %v2117_v19 = vrot.slane %v6326_v43, 5  ;;  %v6389_v20 = vld [vmem:[%s5544_s5 + $0x8c] sm:$0x1]  ;;  %4008 = vmatpush1.bf16.msra.mxu0 %v5334_v29  ;;  %2698 = vmatprep.subr.bf16.mxu1 %v5460_v31  ;;  %v872_v43 = vpop.permute.xlu0 %871 }
  0xea   : > { %v6392_v24 = vld [vmem:[%s5544_s5 + $0x18] sm:$0xe]  ;;  %v2116_v55 = vrot.slane %v2114_v61, 4  ;;  %v5098_v4 = vrot.slane %v6329_v45, 9  ;;  %v917_v56 = vld [vmem:[%s5544_s5 + $0x1c] sm:$0xf]  ;;  %4009 = vmatprep.subr.bf16.mxu0 %v5460_v31  ;;  %v5105_v35 = vcombine.low %v6369_v2, %v6383_v11  ;;  %v6421_v38 = vsel %vm6022_vm7, %v4826_v10, %v2114_v61 }
  0xeb   : > { %v5346_v23 = vld [vmem:[%s7533_s1 + $0x18] sm:$0xff]   ;;  %v6403_v25 = vld [vmem:[#allocation2 + $0x20] sm:$0xff]  ;;  %v1085_v47 = vsel %vm6022_vm7, %v1083_v15, %v1084_v9  ;;  %v3710_v40 = vrot.slane %v6346_v57, 5  ;;  %v3263_v29 = vshrl.u32 %v5003_v58, 16  ;;  %v3266_v13 = vshll.u32 %v5003_v58, 16  ;;  %v5381_v34 = vld [vmem:[%s5544_s5 + $0x30] sm:$0xff]  }
  0xec   : > { %v6411_v32 = vld [vmem:[%s5544_s5 + $0x20] sm:$0x1]  ;;  %v6414_v33 = vld [vmem:[%s5544_s5 + $0x24] sm:$0xe]  ;;  %v4650_v36 = vcombine.low %v1082_v14, %v1085_v47  ;;  %v3713_v39 = vrot.slane %v6356_v63, 5  ;;  %v5344_v41 = vld [vmem:[%s7533_s1 + $0xd0] sm:$0xff]   ;;  %v6437_v27 = vsel %vm6022_vm7, %v2116_v55, %v2117_v19  ;;  %2699 = vmatpush1.bf16.msra.mxu1 %v5346_v23  ;;  %v1907_v47 = vpop.permute.xlu1 %1906 }
  0xed   : > { %v6428_v42 = vld [vmem:[%s5544_s5 + $0x28] sm:$0xf]  ;;  %v5351_v45 = vld [vmem:[%s7533_s1 + $0x20] sm:$0xff]   ;;  %v2252_v52 = vld [vmem:[#allocation2 + $0x90] sm:$0xff]  ;;  %v3265_v50 = vrot.slane %v3263_v29, 4  ;;  %v3268_v57 = vrot.slane %v3266_v13, 5  ;;  %4010 = vmatpush1.bf16.msra.mxu0 %v5339_v62  ;;  %v6449_v48 = vsel %vm6022_vm7, %v5098_v4, %v3710_v40  ;;  %v4842_v14 = vcombine.low %v6421_v38, %v6437_v27  ;;  %2700 = vmatprep.subr.bf16.mxu1 %v5460_v31 }
  0xee   : > { %v6433_v51 = vld [vmem:[#allocation2 + $0x40] sm:$0xff]  ;;  %v3272_v58 = vshll.u32 %v6375_v3, 16  ;;  %v6441_v59 = vld [vmem:[%s5544_s5 + $0x2c] sm:$0x1]  ;;  %907 = vst.msk [vmem:[#allocation2 + $0xd0] sm:$0xff] %vm893_vm4, %v872_v43  ;;  %v2253_v60 = vld [vmem:[#allocation2 + $0x98] sm:$0xff]  ;;  %4011 = vmatprep.subr.bf16.mxu0 %v5460_v31 }
  0xef   : > { %1390 = vst.msk [vmem:[#allocation2 + $0x40] sm:$0xff] %vm345_vm3, %v5354_v30  ;;  %2984 = vst.msk [vmem:[#allocation2 + $0x20] sm:$0xff] %vm345_vm3, %v5381_v34  ;;  %v3276_v53 = vshrl.u32 %v6375_v3, 16  ;;  %v3282_v54 = vshll.u32 %v6389_v20, 16  ;;  %v4626_v63 = vrot.slane %v6392_v24, 9  ;;  %4893 = vmatprep.mubr.msk.bf16.mxu1 %vm345_vm3, %v2253_v60  ;;  %v6459_v62 = vld [vmem:[#allocation2 + $0x18] sm:$0xff]  ;;  %v3269_v10 = vor.u32 %v3268_v57, %v3265_v50 }
  0xf0   : > { %1195 = vst.msk [vmem:[#allocation2 + $0xa8] sm:$0xff] %vm345_vm3, %v4650_v36  ;;  %v6455_v0 = vld [vmem:[%s5544_s5 + $0x30] sm:$0xe]  ;;  %3823 = vst.msk [vmem:[#allocation2 + $0x98] sm:$0xff] %vm345_vm3, %v5113_v7  ;;  %v3712_v9 = vrot.slane %v3710_v40, 4  ;;  %v6462_v61 = vrot.slane %v3272_v58, 5  ;;  %2516 = vmatmul.mubr.bf16.gmra.mrb[4].mxu1 %v2252_v52 }
  0xf1   : > { %v1025_v3 = vrot.slane %v917_v56, 5  ;;  %v6465_v30 = vld [vmem:[%s5544_s5 + $0x34] sm:$0xf]  ;;  %2219 = vst.msk [vmem:[#allocation2 + $0x18] sm:$0xff] %vm345_vm3, %v4833_v8  ;;  %v3278_v15 = vrot.slane %v3276_v53, 4  ;;  %v1028_v19 = vrot.slane %v6411_v32, 5  ;;  %4012 = vmatpush1.bf16.msra.mxu0 %v5344_v41  ;;  %2701 = vmatpush1.bf16.msra.mxu1 %v5351_v45 }
  0xf2   : > { %v4818_v20 = vrot.slane %v6414_v33, 9  ;;  %v6473_v24 = vld [vmem:[%s5544_s5 + $0x38] sm:$0x1]  ;;  %v943_v55 = vld [vmem:[%s5544_s5 + $0x84] sm:$0xe]  ;;  %v3270_v8 = vrot.slane %v3269_v10, 4  ;;  %4013 = vmatprep.subr.bf16.mxu0 %v5460_v31  ;;  %2702 = vmatprep.subr.bf16.mxu1 %v5460_v31 }
  0xf3   : > { %v5348_v7 = vld [vmem:[%s7533_s1 + $0xd8] sm:$0xff]   ;;  %v1026_v4 = vsel %vm6022_vm7, %v4626_v63, %v1025_v3  ;;  %v1027_v23 = vrot.slane %v1025_v3, 4  ;;  %v2058_v56 = vrot.slane %v6428_v42, 5  ;;  %v944_v40 = vld [vmem:[%s5544_s5 + $0x88] sm:$0xf]  ;;  %v3279_v13 = vor.u32 %v3278_v15, %v6462_v61  ;;  %1942 = vst.msk [vmem:[#allocation2 + $0xc0] sm:$0xff] %vm893_vm4, %v1907_v47 }
  0xf4   : > { %v5355_v29 = vld [vmem:[%s7533_s1 + $0x28] sm:$0xff]   ;;  %v3284_v32 = vrot.slane %v3282_v54, 5  ;;  %v2061_v33 = vrot.slane %v6441_v59, 5  ;;  %v3654_v34 = vrot.slane %v6465_v30, 5  ;;  %v5382_v38 = vld [vmem:[%s5544_s5 + $0x3c] sm:$0xff]   ;;  %v6495_v42 = vsel %vm6022_vm7, %v3712_v9, %v3713_v39  ;;  %v6504_v50 = vld [vmem:[#allocation2 + $0x30] sm:$0xff]  ;;  %v856_v54 = vpop.permute.xlu0 %855 }
  0xf5   : > { %v945_v36 = vld [vmem:[%s5544_s5 + $0x8c] sm:$0x1]  ;;  %v1029_v41 = vsel %vm6022_vm7, %v1027_v23, %v1028_v19  ;;  %v2060_v43 = vrot.slane %v2058_v56, 4  ;;  %v5090_v52 = vrot.slane %v6455_v0, 9  ;;  %v6502_v27 = vld [vmem:[%s5544_s5 + $0x90] sm:$0xe]  ;;  %v3275_v39 = vsel %vm5556_vm2, %v3270_v8, %v6462_v61  ;;  %4014 = vmatpush1.bf16.msra.mxu0 %v5348_v7  ;;  %2703 = vmatpush1.bf16.msra.mxu1 %v5355_v29 }
  0xf6   : > { %v5357_v45 = vld [vmem:[%s5544_s5 + $0xa8] sm:$0xff]   ;;  %v3280_v57 = vrot.slane %v3279_v13, 4  ;;  %v4642_v58 = vcombine.low %v1026_v4, %v1029_v41  ;;  %v3656_v59 = vrot.slane %v3654_v34, 4  ;;  %v6512_v60 = vld [vmem:[%s5544_s5 + $0x94] sm:$0xf]  ;;  %v5353_v63 = vld [vmem:[%s7533_s1 + $0xe0] sm:$0xff]   ;;  %v6528_v10 = vsel %vm6022_vm7, %v4818_v20, %v2058_v56  ;;  %4015 = vmatprep.subr.bf16.mxu0 %v5460_v31  ;;  %2704 = vmatprep.subr.bf16.mxu1 %v5460_v31 }
  0xf7   : > { %v6515_v53 = vld [vmem:[%s5544_s5 + $0x98] sm:$0x1]  ;;  %v5360_v0 = vld [vmem:[%s7533_s1 + $0x30] sm:$0xff]   ;;  %2985 = vst.msk [vmem:[#allocation2 + $0x30] sm:$0xff] %vm345_vm3, %v5382_v38  ;;  %v6524_v9 = vld [vmem:[#allocation2 + $0xa8] sm:$0xff]  ;;  %v3657_v61 = vrot.slane %v6473_v24, 5  ;;  %v6542_v20 = vsel %vm6022_vm7, %v2060_v43, %v2061_v33  ;;  %v6562_v7 = vsel %vm6022_vm7, %v5090_v52, %v3654_v34  ;;  %v1891_v43 = vpop.permute.xlu1 %1890 }
  0xf8   : > { %v4635_v3 = vrot.slane %v943_v55, 9  ;;  %v1088_v30 = vrot.slane %v944_v40, 5  ;;  %v6532_v15 = vld [vmem:[%s5544_s5 + $0xa0] sm:$0xf]  ;;  %v5006_v19 = vld [vmem:[%s5544_s5 + $0x90] sm:$0xf]  ;;  %v3285_v8 = vsel %vm5556_vm2, %v3280_v57, %v3284_v32  ;;  %v4834_v34 = vcombine.low %v6528_v10, %v6542_v20 }
  0xf9   : > { %899 = vst.msk [vmem:[#allocation2 + $0x50] sm:$0xff] %vm893_vm4, %v856_v54  ;;  %v1091_v24 = vrot.slane %v945_v36, 5  ;;  %v4827_v55 = vrot.slane %v6502_v27, 9  ;;  %v6546_v4 = vld [vmem:[%s5544_s5 + $0x94] sm:$0xf]  ;;  %v2237_v23 = vld [vmem:[#allocation2 + $0x18] sm:$0xff]  ;;  %v6566_v29 = vsel %vm6022_vm7, %v3656_v59, %v3657_v61  ;;  %4016 = vmatpush1.bf16.msra.mxu0 %v5353_v63  ;;  %2705 = vmatpush1.bf16.msra.mxu1 %v5360_v0 }
  0xfa   : > { %2228 = vst.msk [vmem:[#allocation2 + $0xa8] sm:$0xff] %vm345_vm3, %v4842_v14  ;;  %1187 = vst.msk [vmem:[#allocation2 + $0x28] sm:$0xff] %vm345_vm3, %v4642_v58  ;;  %v5033_v14 = vcombine.low %v3275_v39, %v3285_v8  ;;  %v1089_v56 = vsel %vm6022_vm7, %v4635_v3, %v1088_v30  ;;  %v1090_v47 = vrot.slane %v1088_v30, 4  ;;  %v6551_v40 = vld [vmem:[%s5544_s5 + $0x98] sm:$0x1]  ;;  %4885 = vmatprep.mubr.msk.bf16.mxu0 %vm345_vm3, %v2237_v23  ;;  %v2121_v13 = vrot.slane %v6512_v60, 5 }
  0xfb   : > { %3815 = vst.msk [vmem:[#allocation2 + $0x18] sm:$0xff] %vm345_vm3, %v5105_v35  ;;  %v2124_v32 = vrot.slane %v6515_v53, 5  ;;  %v6571_v33 = vld [vmem:[%s5544_s5 + $0x9c] sm:$0xe]  ;;  %v6574_v36 = vld [vmem:[%s5544_s5 + $0xa4] sm:$0x1]  ;;  %2452 = vmatmul.mubr.bf16.gmra.mrb[4].mxu0 %v6292_v21  ;;  %v5114_v35 = vcombine.low %v6449_v48, %v6495_v42  ;;  %v5106_v60 = vcombine.low %v6562_v7, %v6566_v29  ;;  %4017 = vmatprep.subr.bf16.mxu0 %v5460_v31 }
  0xfc   : > { %v6576_v2 = vld [vmem:[#allocation2 + $0xd0] sm:$0xff]  ;;  %v5358_v11 = vld [vmem:[%s7533_s1 + $0xe8] sm:$0xff]   ;;  %3496 = vrot.lane.b32.xlu1 %v5033_v14, %s5459_s6  ;;  %v1092_v38 = vsel %vm6022_vm7, %v1090_v47, %v1091_v24  ;;  %v3287_v41 = vshrl.u32 %v5006_v19, 16  ;;  %v6590_v52 = vld [vmem:[%s5544_s5 + $0x24] sm:$0xe]  ;;  %v2123_v42 = vrot.slane %v2121_v13, 4  ;;  %v6607_v53 = vsel %vm6022_vm7, %v4827_v55, %v2121_v13  ;;  %2706 = vmatprep.subr.bf16.mxu1 %v5460_v31 }
  0xfd   : > { %1399 = vst.msk [vmem:[#allocation2 + $0xd0] sm:$0xff] %vm345_vm3, %v5357_v45  ;;  %v5361_v21 = vld [vmem:[%s5544_s5 + $0x48] sm:$0xff]   ;;  %v2254_v27 = vld [vmem:[#allocation2 + $0xa0] sm:$0xff]  ;;  %v4651_v48 = vcombine.low %v1089_v56, %v1092_v38  ;;  %v3717_v39 = vrot.slane %v6532_v15, 5  ;;  %v3290_v57 = vshll.u32 %v5006_v19, 16  ;;  %v5365_v45 = vld [vmem:[%s7533_s1 + $0x38] sm:$0xff]   ;;  %v874_v38 = vpop.permute.xlu0 %873  ;;  %4018 = vmatpush1.bf16.msra.mxu0 %v5358_v11 }
  0xfe   : > { %1934 = vst.msk [vmem:[#allocation2 + $0x40] sm:$0xff] %vm893_vm4, %v1891_v43  ;;  %v920_v58 = vld [vmem:[%s5544_s5 + $0x28] sm:$0xf]  ;;  %v6598_v59 = vld [vmem:[%s5544_s5 + $0x2c] sm:$0x1]  ;;  %v3289_v54 = vrot.slane %v3287_v41, 4  ;;  %v6621_v0 = vsel %vm6022_vm7, %v2123_v42, %v2124_v32  ;;  %4019 = vmatprep.subr.bf16.mxu0 %v5460_v31  ;;  %2707 = vmatpush1.bf16.msra.mxu1 %v5365_v45  ;;  %v1909_v45 = vpop.permute.xlu1 %1908 }
  0xff   : > { %v3296_v63 = vshll.u32 %v6546_v4, 16  ;;  %v6611_v10 = vld [vmem:[%s5544_s5 + $0x30] sm:$0xe]  ;;  %v6614_v61 = vld [vmem:[%s5544_s5 + $0x34] sm:$0xf]  ;;  %1196 = vst.msk [vmem:[#allocation2 + $0xb8] sm:$0xff] %vm345_vm3, %v4651_v48  ;;  %v4843_v47 = vcombine.low %v6607_v53, %v6621_v0  ;;  %2708 = vmatprep.subr.bf16.mxu1 %v5460_v31 }
 0x100   : > { %v3292_v3 = vrot.slane %v3290_v57, 5  ;;  %v3300_v30 = vshrl.u32 %v6546_v4, 16  ;;  %v3306_v15 = vshll.u32 %v6551_v40, 16  ;;  %v6626_v19 = vld [vmem:[%s5544_s5 + $0x38] sm:$0x1]  ;;  %v6628_v8 = vld [vmem:[#allocation2 + $0x50] sm:$0xff] }
 0x101   : > { %v5362_v20 = vld [vmem:[%s7533_s1 + $0xf0] sm:$0xff]   ;;  %v2255_v24 = vld [vmem:[#allocation2 + $0xa8] sm:$0xff]  ;;  %v5099_v23 = vrot.slane %v6571_v33, 9  ;;  %v3720_v4 = vrot.slane %v6574_v36, 5  ;;  %v6637_v14 = vrot.slane %v3296_v63, 5  ;;  %v4627_v56 = vrot.slane %v6590_v52, 9 }
 0x102   : > { %v6633_v55 = vld [vmem:[#allocation2 + $0x28] sm:$0xff]  ;;  %1391 = vst.msk [vmem:[#allocation2 + $0x50] sm:$0xff] %vm345_vm3, %v5361_v21  ;;  %4894 = vmatprep.mubr.msk.bf16.mxu1 %vm345_vm3, %v2255_v24  ;;  %3824 = vst.msk [vmem:[#allocation2 + $0xa8] sm:$0xff] %vm345_vm3, %v5114_v35  ;;  %v3719_v40 = vrot.slane %v3717_v39, 4  ;;  %v3293_v13 = vor.u32 %v3292_v3, %v3289_v54  ;;  %v3302_v32 = vrot.slane %v3300_v30, 4  ;;  %v3308_v35 = vrot.slane %v3306_v15, 5  ;;  %4020 = vmatpush1.bf16.msra.mxu0 %v5362_v20 }
 0x103   : > { %2220 = vst.msk [vmem:[#allocation2 + $0x28] sm:$0xff] %vm345_vm3, %v4834_v34  ;;  %v6647_v33 = vld [vmem:[%s5544_s5 + $0x3c] sm:$0xe]  ;;  %v6650_v36 = vld [vmem:[%s5544_s5 + $0x40] sm:$0xf]  ;;  %2524 = vmatmul.mubr.bf16.gmra.mrb[8].mxu1 %v2254_v27  ;;  %v1032_v34 = vrot.slane %v920_v58, 5  ;;  %v6675_v54 = vsel %vm6022_vm7, %v5099_v23, %v3717_v39  ;;  %4021 = vmatprep.subr.bf16.mxu0 %v5460_v31 }
 0x104   : > { %v6653_v41 = vld [vmem:[%s5544_s5 + $0x90] sm:$0xe]  ;;  %v1035_v43 = vrot.slane %v6598_v59, 5  ;;  %v2065_v52 = vrot.slane %v6614_v61, 5  ;;  %908 = vst.msk [vmem:[#allocation2 + $0xe0] sm:$0xff] %vm893_vm4, %v874_v38  ;;  %v5383_v21 = vld [vmem:[%s5544_s5 + $0x48] sm:$0xff]   ;;  %v3303_v42 = vor.u32 %v3302_v32, %v6637_v14  ;;  %v6683_v3 = vsel %vm6022_vm7, %v3719_v40, %v3720_v4 }
 0x105   : > { %v3294_v48 = vrot.slane %v3293_v13, 4  ;;  %v4819_v57 = vrot.slane %v6611_v10, 9  ;;  %v2068_v11 = vrot.slane %v6626_v19, 5  ;;  %v6664_v27 = vld [vmem:[%s5544_s5 + $0x44] sm:$0x1]  ;;  %v5367_v59 = vld [vmem:[%s7533_s1 + $0xf8] sm:$0xff]   ;;  %v1033_v63 = vsel %vm6022_vm7, %v4627_v56, %v1032_v34 }
 0x106   : > { %v947_v58 = vld [vmem:[%s5544_s5 + $0x94] sm:$0xf]  ;;  %v5369_v53 = vld [vmem:[%s7533_s1 + $0x40] sm:$0xff]   ;;  %v1034_v10 = vrot.slane %v1032_v34, 4  ;;  %v2067_v61 = vrot.slane %v2065_v52, 4  ;;  %v3304_v30 = vrot.slane %v3303_v42, 4  ;;  %4022 = vmatpush1.bf16.msra.mxu0 %v5367_v59 }
 0x107   : > { %v948_v0 = vld [vmem:[%s5544_s5 + $0x98] sm:$0x1]  ;;  %v3299_v39 = vsel %vm5556_vm2, %v3294_v48, %v6637_v14  ;;  %v3661_v15 = vrot.slane %v6650_v36, 5  ;;  %1943 = vst.msk [vmem:[#allocation2 + $0xd0] sm:$0xff] %vm893_vm4, %v1909_v45  ;;  %v6691_v19 = vld [vmem:[%s5544_s5 + $0x9c] sm:$0xe]  ;;  %2709 = vmatpush1.bf16.msra.mxu1 %v5369_v53  ;;  %v858_v45 = vpop.permute.xlu0 %857  ;;  %4023 = vmatprep.subr.bf16.mxu0 %v5460_v31 }
 0x108   : > { %v6694_v24 = vld [vmem:[%s5544_s5 + $0xa0] sm:$0xf]  ;;  %v5364_v4 = vld [vmem:[%s5544_s5 + $0xb4] sm:$0xff]   ;;  %v5372_v56 = vld [vmem:[%s7533_s1 + $0x48] sm:$0xff]   ;;  %v1036_v40 = vsel %vm6022_vm7, %v1034_v10, %v1035_v43  ;;  %v5091_v13 = vrot.slane %v6647_v33, 9  ;;  %v4636_v32 = vrot.slane %v6653_v41, 9  ;;  %v3309_v34 = vsel %vm5556_vm2, %v3304_v30, %v3308_v35  ;;  %2710 = vmatprep.subr.bf16.mxu1 %v5460_v31 }
 0x109   : > { %v6696_v23 = vld [vmem:[#allocation2 + $0x40] sm:$0xff]  ;;  %v6702_v14 = vld [vmem:[#allocation2 + $0xb8] sm:$0xff]  ;;  %v1095_v36 = vrot.slane %v947_v58, 5  ;;  %v6712_v20 = vld [vmem:[%s5544_s5 + $0xac] sm:$0xf]  ;;  %v4643_v43 = vcombine.low %v1033_v63, %v1036_v40  ;;  %v6721_v33 = vsel %vm6022_vm7, %v4819_v57, %v2065_v52  ;;  %v6725_v41 = vsel %vm6022_vm7, %v2067_v61, %v2068_v11  ;;  %900 = vst.msk [vmem:[#allocation2 + $0x60] sm:$0xff] %vm893_vm4, %v858_v45 }
 0x10a   : > { %v6709_v38 = vld [vmem:[%s5544_s5 + $0xa4] sm:$0x1]  ;;  %2986 = vst.msk [vmem:[#allocation2 + $0x40] sm:$0xff] %vm345_vm3, %v5383_v21  ;;  %2229 = vst.msk [vmem:[#allocation2 + $0xb8] sm:$0xff] %vm345_vm3, %v4843_v47  ;;  %v6728_v48 = vld [vmem:[%s5544_s5 + $0xa8] sm:$0xe]  ;;  %v5034_v21 = vcombine.low %v3299_v39, %v3309_v34  ;;  %v5115_v39 = vcombine.low %v6675_v54, %v6683_v3  ;;  %v4835_v7 = vcombine.low %v6721_v33, %v6725_v41 }
 0x10b   : > { %v6731_v42 = vld [vmem:[%s5544_s5 + $0x9c] sm:$0xf]  ;;  %v5371_v47 = vld [vmem:[%s7533_s1 + $0x100] sm:$0xff]   ;;  %v2239_v35 = vld [vmem:[#allocation2 + $0x28] sm:$0xff]  ;;  %v3663_v58 = vrot.slane %v3661_v15, 4  ;;  %v3664_v52 = vrot.slane %v6664_v27, 5  ;;  %v1096_v53 = vsel %vm6022_vm7, %v4636_v32, %v1095_v36  ;;  %v6768_v54 = vsel %vm6022_vm7, %v5091_v13, %v3661_v15  ;;  %2711 = vmatpush1.bf16.msra.mxu1 %v5372_v56 }
 0x10c   : > { %v1097_v57 = vrot.slane %v1095_v36, 4  ;;  %v6738_v63 = vld [vmem:[%s5544_s5 + $0xb0] sm:$0x1]  ;;  %v5010_v11 = vld [vmem:[%s5544_s5 + $0xa0] sm:$0xf]  ;;  %4886 = vmatprep.mubr.msk.bf16.mxu0 %vm345_vm3, %v2239_v35  ;;  %3816 = vst.msk [vmem:[#allocation2 + $0x28] sm:$0xff] %vm345_vm3, %v5106_v60  ;;  %3498 = vrot.lane.b32.xlu0 %v5034_v21, %s5459_s6 }
 0x10d   : > { %1188 = vst.msk [vmem:[#allocation2 + $0x38] sm:$0xff] %vm345_vm3, %v4643_v43  ;;  %v1098_v10 = vrot.slane %v948_v0, 5  ;;  %v2128_v27 = vrot.slane %v6694_v24, 5  ;;  %v5011_v61 = vld [vmem:[%s5544_s5 + $0xa4] sm:$0x1]  ;;  %2460 = vmatmul.mubr.bf16.gmra.mrb[8].mxu0 %v6403_v25  ;;  %v4828_v29 = vrot.slane %v6691_v19, 9  ;;  %v6781_v15 = vsel %vm6022_vm7, %v3663_v58, %v3664_v52  ;;  %2712 = vmatprep.subr.bf16.mxu1 %v5460_v31 }
 0x10e   : > { %v3724_v60 = vrot.slane %v6712_v20, 5  ;;  %v6761_v0 = vld [vmem:[#allocation2 + $0xe0] sm:$0xff]  ;;  %v5375_v25 = vld [vmem:[%s7533_s1 + $0x50] sm:$0xff]   ;;  %v2131_v19 = vrot.slane %v6709_v38, 5  ;;  %v5374_v40 = vld [vmem:[%s7533_s1 + $0x108] sm:$0xff]   ;;  %v5100_v32 = vrot.slane %v6728_v48, 9  ;;  %v1893_v38 = vpop.permute.xlu1 %1892  ;;  %4024 = vmatpush1.bf16.msra.mxu0 %v5371_v47 }
 0x10f   : > { %v2256_v59 = vld [vmem:[#allocation2 + $0xb0] sm:$0xff]  ;;  %v1099_v3 = vsel %vm6022_vm7, %v1097_v57, %v1098_v10  ;;  %v2130_v30 = vrot.slane %v2128_v27, 4  ;;  %1400 = vst.msk [vmem:[#allocation2 + $0xe0] sm:$0xff] %vm345_vm3, %v5364_v4  ;;  %v3311_v36 = vshrl.u32 %v6731_v42, 16  ;;  %v924_v4 = vld [vmem:[%s5544_s5 + $0x38] sm:$0x1]  ;;  %v2129_v58 = vsel %vm6022_vm7, %v4828_v29, %v2128_v27  ;;  %4025 = vmatprep.subr.bf16.mxu0 %v5460_v31  ;;  %2713 = vmatpush1.bf16.msra.mxu1 %v5375_v25 }
 0x110   : > { %v922_v24 = vld [vmem:[%s5544_s5 + $0x30] sm:$0xe]  ;;  %v4652_v13 = vcombine.low %v1096_v53, %v1099_v3  ;;  %v923_v34 = vld [vmem:[%s5544_s5 + $0x34] sm:$0xf]  ;;  %v3727_v56 = vrot.slane %v6738_v63, 5  ;;  %v3314_v43 = vshll.u32 %v6731_v42, 16  ;;  %2714 = vmatprep.subr.bf16.mxu1 %v5460_v31 }
 0x111   : > { %v3320_v33 = vshll.u32 %v5010_v11, 16  ;;  %v3324_v41 = vshrl.u32 %v5010_v11, 16  ;;  %1935 = vst.msk [vmem:[#allocation2 + $0x50] sm:$0xff] %vm893_vm4, %v1893_v38  ;;  %v6792_v35 = vld [vmem:[%s5544_s5 + $0x3c] sm:$0xe]  ;;  %v3726_v52 = vrot.slane %v3724_v60, 4  ;;  %v2132_v47 = vsel %vm6022_vm7, %v2130_v30, %v2131_v19 }
 0x112   : > { %v2257_v21 = vld [vmem:[#allocation2 + $0xb8] sm:$0xff]  ;;  %1197 = vst.msk [vmem:[#allocation2 + $0xc8] sm:$0xff] %vm345_vm3, %v4652_v13  ;;  %v3313_v57 = vrot.slane %v3311_v36, 4  ;;  %v3330_v53 = vshll.u32 %v5011_v61, 16  ;;  %v6800_v42 = vld [vmem:[%s5544_s5 + $0x40] sm:$0xf]  ;;  %4026 = vmatpush1.bf16.msra.mxu0 %v5374_v40 }
 0x113   : > { %4895 = vmatprep.mubr.msk.bf16.mxu1 %vm345_vm3, %v2257_v21  ;;  %3825 = vst.msk [vmem:[#allocation2 + $0xb8] sm:$0xff] %vm345_vm3, %v5115_v39  ;;  %v3316_v11 = vrot.slane %v3314_v43, 5  ;;  %v3322_v10 = vrot.slane %v3320_v33, 5  ;;  %v3326_v27 = vrot.slane %v3324_v41, 4  ;;  %v5368_v45 = vld [vmem:[%s5544_s5 + $0x54] sm:$0xff]   ;;  %v4628_v13 = vrot.slane %v922_v24, 9  ;;  %v876_v43 = vpop.permute.xlu0 %875  ;;  %4027 = vmatprep.subr.bf16.mxu0 %v5460_v31 }
 0x114   : > { %v5378_v61 = vld [vmem:[%s7533_s1 + $0x58] sm:$0xff]   ;;  %2532 = vmatmul.mubr.bf16.gmra.mrb[12].mxu1 %v2256_v59  ;;  %v3332_v3 = vrot.slane %v3330_v53, 5  ;;  %v1039_v39 = vrot.slane %v923_v34, 5  ;;  %v1042_v36 = vrot.slane %v924_v4, 5  ;;  %v4782_v19 = vld [vmem:[%s5544_s5 + $0x44] sm:$0x1]  ;;  %v4844_v4 = vcombine.low %v2129_v58, %v2132_v47 }
 0x115   : > { %v6811_v29 = vld [vmem:[#allocation2 + $0x38] sm:$0xff]  ;;  %v3317_v30 = vor.u32 %v3316_v11, %v3313_v57  ;;  %v3327_v25 = vor.u32 %v3326_v27, %v3322_v10  ;;  %v4820_v38 = vrot.slane %v6792_v35, 9  ;;  %v2072_v59 = vrot.slane %v6800_v42, 5  ;;  %v5376_v24 = vld [vmem:[%s7533_s1 + $0x110] sm:$0xff]   ;;  %v6825_v41 = vld [vmem:[%s5544_s5 + $0x48] sm:$0xe]  ;;  %2715 = vmatpush1.bf16.msra.mxu1 %v5378_v61 }
 0x116   : > { %2221 = vst.msk [vmem:[#allocation2 + $0x38] sm:$0xff] %vm345_vm3, %v4835_v7  ;;  %v5384_v34 = vld [vmem:[%s5544_s5 + $0x54] sm:$0xff]   ;;  %v1040_v33 = vsel %vm6022_vm7, %v4628_v13, %v1039_v39  ;;  %v1041_v7 = vrot.slane %v1039_v39, 4  ;;  %v6828_v21 = vld [vmem:[%s5544_s5 + $0x4c] sm:$0xf]  ;;  %v6831_v35 = vld [vmem:[#allocation2 + $0x60] sm:$0xff]  ;;  %v5107_v42 = vcombine.low %v6768_v54, %v6781_v15  ;;  %4028 = vmatpush1.bf16.msra.mxu0 %v5376_v24  ;;  %v3725_v15 = vsel %vm6022_vm7, %v5100_v32, %v3724_v60 }
 0x117   : > { %909 = vst.msk [vmem:[#allocation2 + $0xf0] sm:$0xff] %vm893_vm4, %v876_v43  ;;  %v3318_v40 = vrot.slane %v3317_v30, 4  ;;  %v3328_v57 = vrot.slane %v3327_v25, 4  ;;  %v6835_v53 = vld [vmem:[%s5544_s5 + $0x50] sm:$0x1]  ;;  %v5379_v58 = vld [vmem:[%s7533_s1 + $0x118] sm:$0xff]   ;;  %4029 = vmatprep.subr.bf16.mxu0 %v5460_v31  ;;  %v2073_v20 = vsel %vm6022_vm7, %v4820_v38, %v2072_v59 }
 0x118   : > { %1392 = vst.msk [vmem:[#allocation2 + $0x60] sm:$0xff] %vm345_vm3, %v5368_v45  ;;  %v1043_v47 = vsel %vm6022_vm7, %v1041_v7, %v1042_v36  ;;  %v2074_v11 = vrot.slane %v2072_v59, 4  ;;  %v2075_v27 = vrot.slane %v4782_v19, 5  ;;  %v5370_v13 = vld [vmem:[%s5544_s5 + $0xc0] sm:$0xff]   ;;  %v3668_v54 = vrot.slane %v6828_v21, 5  ;;  %v1911_v36 = vpop.permute.xlu1 %1910  ;;  %v6865_v19 = vld [vmem:[#allocation2 + $0x50] sm:$0xff]  ;;  %v860_v7 = vpop.permute.xlu0 %859 }
 0x119   : > { %v6846_v39 = vld [vmem:[#allocation2 + $0xc8] sm:$0xff]  ;;  %v3323_v45 = vsel %vm5556_vm2, %v3318_v40, %v3322_v10  ;;  %v3333_v61 = vsel %vm5556_vm2, %v3328_v57, %v3332_v3  ;;  %v4644_v30 = vcombine.low %v1040_v33, %v1043_v47  ;;  %v3728_v10 = vsel %vm6022_vm7, %v3726_v52, %v3727_v56  ;;  %v949_v25 = vld [vmem:[%s5544_s5 + $0x9c] sm:$0xe]  ;;  %1944 = vst.msk [vmem:[#allocation2 + $0xe0] sm:$0xff] %vm893_vm4, %v1911_v36  ;;  %v950_v63 = vld [vmem:[%s5544_s5 + $0xa0] sm:$0xf] }
 0x11a   : > { %2230 = vst.msk [vmem:[#allocation2 + $0xc8] sm:$0xff] %vm345_vm3, %v4844_v4  ;;  %v5035_v3 = vcombine.low %v3323_v45, %v3333_v61  ;;  %v5092_v48 = vrot.slane %v6825_v41, 9  ;;  %v951_v60 = vld [vmem:[%s5544_s5 + $0xa4] sm:$0x1]  ;;  %v4637_v32 = vrot.slane %v949_v25, 9  ;;  %2987 = vst.msk [vmem:[#allocation2 + $0x50] sm:$0xff] %vm345_vm3, %v5384_v34  ;;  %v2076_v31 = vsel %vm6022_vm7, %v2074_v11, %v2075_v27  ;;  %4030 = vmatpush1.bf16.msra.mxu0 %v5379_v58 }
 0x11b   : > { %1189 = vst.msk [vmem:[#allocation2 + $0x48] sm:$0xff] %vm345_vm3, %v4644_v30  ;;  %v3671_v52 = vrot.slane %v6835_v53, 5  ;;  %v1102_v38 = vrot.slane %v950_v63, 5  ;;  %v1105_v59 = vrot.slane %v951_v60, 5  ;;  %v4807_v43 = vld [vmem:[%s5544_s5 + $0xa8] sm:$0xe]  ;;  %v5116_v24 = vcombine.low %v3725_v15, %v3728_v10 }
 0x11c   : > { %3500 = vrot.lane.b32.xlu1 %v5035_v3, %s5459_s6  ;;  %v3670_v4 = vrot.slane %v3668_v54, 4  ;;  %v4808_v34 = vld [vmem:[%s5544_s5 + $0xac] sm:$0xf]  ;;  %v4809_v33 = vld [vmem:[%s5544_s5 + $0xb0] sm:$0x1]  ;;  %v2258_v21 = vld [vmem:[#allocation2 + $0xc0] sm:$0xff]  ;;  %v4836_v11 = vcombine.low %v2073_v20, %v2076_v31 }
 0x11d   : > { %v2241_v56 = vld [vmem:[#allocation2 + $0x38] sm:$0xff]  ;;  %v1103_v40 = vsel %vm6022_vm7, %v4637_v32, %v1102_v38  ;;  %v1104_v57 = vrot.slane %v1102_v38, 4  ;;  %v4829_v53 = vrot.slane %v4807_v43, 9  ;;  %901 = vst.msk [vmem:[#allocation2 + $0x70] sm:$0xff] %vm893_vm4, %v860_v7  ;;  %v6894_v27 = vld [vmem:[%s5544_s5 + $0xb4] sm:$0xe]  ;;  %v1895_v38 = vpop.permute.xlu1 %1894 }
 0x11e   : > { %4887 = vmatprep.mubr.msk.bf16.mxu0 %vm345_vm3, %v2241_v56  ;;  %3817 = vst.msk [vmem:[#allocation2 + $0x38] sm:$0xff] %vm345_vm3, %v5107_v42  ;;  %v6885_v41 = vld [vmem:[#allocation2 + $0xf0] sm:$0xff]  ;;  %v2135_v42 = vrot.slane %v4808_v34, 5  ;;  %v5387_v47 = vld [vmem:[%s5544_s5 + $0x78] sm:$0xff]   ;;  %v2138_v30 = vrot.slane %v4809_v33, 5  ;;  %v5373_v15 = vld [vmem:[%s5544_s5 + $0x60] sm:$0xff]   ;;  %v3672_v63 = vsel %vm6022_vm7, %v3670_v4, %v3671_v52 }
 0x11f   : > { %7544 = vst [vmem:[#allocation6_spill] sm:$0xff] %v6885_v41  ;;  %2468 = vmatmul.mubr.bf16.gmra.mrb[12].mxu0 %v6504_v50  ;;  %1401 = vst.msk [vmem:[#allocation2 + $0xf0] sm:$0xff] %vm345_vm3, %v5370_v13  ;;  %v6897_v58 = vld [vmem:[%s5544_s5 + $0xb8] sm:$0xf]  ;;  %v6900_v50 = vld [vmem:[%s5544_s5 + $0xbc] sm:$0x1]  ;;  %v1106_v45 = vsel %vm6022_vm7, %v1104_v57, %v1105_v59  ;;  %v3669_v13 = vsel %vm6022_vm7, %v5092_v48, %v3668_v54 }
 0x120   : > { %v2137_v61 = vrot.slane %v2135_v42, 4  ;;  %2990 = vst.msk [vmem:[#allocation2 + $0x80] sm:$0xff] %vm345_vm3, %v5387_v47  ;;  %v4653_v3 = vcombine.low %v1103_v40, %v1106_v45  ;;  %v5012_v36 = vld [vmem:[%s5544_s5 + $0xa8] sm:$0xf]  ;;  %v5013_v25 = vld [vmem:[%s5544_s5 + $0xac] sm:$0xf]  ;;  %v2136_v52 = vsel %vm6022_vm7, %v4829_v53, %v2135_v42  ;;  %v5108_v53 = vcombine.low %v3669_v13, %v3672_v63 }
 0x121   : > { %v2259_v10 = vld [vmem:[#allocation2 + $0xc8] sm:$0xff]  ;;  %v5101_v60 = vrot.slane %v6894_v27, 9  ;;  %v3731_v32 = vrot.slane %v6897_v58, 5  ;;  %v5014_v56 = vld [vmem:[%s5544_s5 + $0xb0] sm:$0x1]  ;;  %v3335_v31 = vshrl.u32 %v5012_v36, 16 }
 0x122   : > { %4896 = vmatprep.mubr.msk.bf16.mxu1 %vm345_vm3, %v2259_v10  ;;  %3826 = vst.msk [vmem:[#allocation2 + $0xc8] sm:$0xff] %vm345_vm3, %v5116_v24  ;;  %v6912_v20 = vld [vmem:[#allocation2 + $0x48] sm:$0xff]  ;;  %1198 = vst.msk [vmem:[#allocation2 + $0xd8] sm:$0xff] %vm345_vm3, %v4653_v3  ;;  %v3734_v54 = vrot.slane %v6900_v50, 5  ;;  %v3338_v48 = vshll.u32 %v5012_v36, 16  ;;  %v3344_v59 = vshll.u32 %v5013_v25, 16  ;;  %v2139_v24 = vsel %vm6022_vm7, %v2137_v61, %v2138_v30  ;;  %v1913_v30 = vpop.permute.xlu0 %1912 }
 0x123   : > { %2540 = vmatmul.mubr.bf16.gmra.mrb[16].mxu1 %v2258_v21  ;;  %2222 = vst.msk [vmem:[#allocation2 + $0x48] sm:$0xff] %vm345_vm3, %v4836_v11  ;;  %v3348_v43 = vshrl.u32 %v5013_v25, 16  ;;  %v3337_v4 = vrot.slane %v3335_v31, 4  ;;  %v3354_v34 = vshll.u32 %v5014_v56, 16  ;;  %v5385_v57 = vld [vmem:[%s5544_s5 + $0x60] sm:$0xff]   ;;  %v3733_v47 = vrot.slane %v3731_v32, 4 }
 0x124   : > { %1936 = vst.msk [vmem:[#allocation2 + $0x60] sm:$0xff] %vm893_vm4, %v1895_v38  ;;  %v3340_v33 = vrot.slane %v3338_v48, 5  ;;  %v3346_v7 = vrot.slane %v3344_v59, 5  ;;  %v6927_v40 = vld [vmem:[#allocation2 + $0x70] sm:$0xff]  ;;  %v4845_v42 = vcombine.low %v2136_v52, %v2139_v24  ;;  %v925_v50 = vld [vmem:[%s5544_s5 + $0x3c] sm:$0xe]  ;;  %v3732_v59 = vsel %vm6022_vm7, %v5101_v60, %v3731_v32 }
 0x125   : > { %v3350_v21 = vrot.slane %v3348_v43, 4  ;;  %v3356_v11 = vrot.slane %v3354_v34, 5  ;;  %1393 = vst.msk [vmem:[#allocation2 + $0x70] sm:$0xff] %vm345_vm3, %v5373_v15  ;;  %v926_v45 = vld [vmem:[%s5544_s5 + $0x40] sm:$0xf]  ;;  %v4629_v10 = vrot.slane %v925_v50, 9  ;;  %v3735_v60 = vsel %vm6022_vm7, %v3733_v47, %v3734_v54 }
 0x126   : > { %v3341_v27 = vor.u32 %v3340_v33, %v3337_v4  ;;  %v927_v61 = vld [vmem:[%s5544_s5 + $0x44] sm:$0x1]  ;;  %v1046_v3 = vrot.slane %v926_v45, 5  ;;  %v4783_v25 = vld [vmem:[%s5544_s5 + $0x48] sm:$0xe]  ;;  %1945 = vst.msk [vmem:[#allocation2 + $0xf0] sm:$0xff] %vm893_vm4, %v1913_v30  ;;  %v1897_v4 = vpop.permute.xlu1 %1896 }
 0x127   : > { %v3351_v58 = vor.u32 %v3350_v21, %v3346_v7  ;;  %v1049_v36 = vrot.slane %v927_v61, 5  ;;  %v5388_v56 = vld [vmem:[%s5544_s5 + $0x84] sm:$0xff]   ;;  %v4784_v15 = vld [vmem:[%s5544_s5 + $0x4c] sm:$0xf]  ;;  %v4785_v13 = vld [vmem:[%s5544_s5 + $0x50] sm:$0x1]  ;;  %v5117_v61 = vcombine.low %v3732_v59, %v3735_v60 }
 0x128   : > { %v3342_v31 = vrot.slane %v3341_v27, 4  ;;  %v1047_v43 = vsel %vm6022_vm7, %v4629_v10, %v1046_v3  ;;  %v1048_v52 = vrot.slane %v1046_v3, 4  ;;  %v2079_v24 = vrot.slane %v4784_v15, 5  ;;  %2991 = vst.msk [vmem:[#allocation2 + $0x90] sm:$0xff] %vm345_vm3, %v5388_v56  ;;  %v5056_v27 = vld [vmem:[%s5544_s5 + $0x58] sm:$0xf] }
 0x129   : > { %v3352_v38 = vrot.slane %v3351_v58, 4  ;;  %v6939_v48 = vld [vmem:[#allocation2 + $0xd8] sm:$0xff]  ;;  %v4821_v21 = vrot.slane %v4783_v25, 9  ;;  %1937 = vst.msk [vmem:[#allocation2 + $0x70] sm:$0xff] %vm893_vm4, %v1897_v4  ;;  %v3675_v50 = vrot.slane %v5056_v27, 5  ;;  %v5389_v45 = vld [vmem:[%s5544_s5 + $0x90] sm:$0xff]  }
 0x12a   : > { %v2243_v63 = vld [vmem:[#allocation2 + $0x48] sm:$0xff]  ;;  %2231 = vst.msk [vmem:[#allocation2 + $0xd8] sm:$0xff] %vm345_vm3, %v4845_v42  ;;  %v3347_v32 = vsel %vm5556_vm2, %v3342_v31, %v3346_v7  ;;  %v1050_v54 = vsel %vm6022_vm7, %v1048_v52, %v1049_v36  ;;  %v2081_v47 = vrot.slane %v2079_v24, 4  ;;  %v2082_v7 = vrot.slane %v4785_v13, 5  ;;  %v5055_v42 = vld [vmem:[%s5544_s5 + $0x54] sm:$0xe]  ;;  %v3479_v36 = vpop.permute.xlu0 %3478 }
 0x12b   : > { %v6945_v34 = vld [vmem:[#allocation2 + $0x60] sm:$0xff]  ;;  %4888 = vmatprep.mubr.msk.bf16.mxu0 %vm345_vm3, %v2243_v63  ;;  %3818 = vst.msk [vmem:[#allocation2 + $0x48] sm:$0xff] %vm345_vm3, %v5108_v53  ;;  %v3357_v33 = vsel %vm5556_vm2, %v3352_v38, %v3356_v11  ;;  %v4645_v11 = vcombine.low %v1047_v43, %v1050_v54  ;;  %v5057_v58 = vld [vmem:[%s5544_s5 + $0x5c] sm:$0x1]  ;;  %v953_v30 = vld [vmem:[%s5544_s5 + $0xac] sm:$0xf]  ;;  %v2080_v56 = vsel %vm6022_vm7, %v4821_v21, %v2079_v24 }
 0x12c   : > { %2988 = vst.msk [vmem:[#allocation2 + $0x60] sm:$0xff] %vm345_vm3, %v5385_v57  ;;  %2476 = vmatmul.mubr.bf16.gmra.mrb[16].mxu0 %v6696_v23  ;;  %v5036_v53 = vcombine.low %v3347_v32, %v3357_v33  ;;  %v952_v57 = vld [vmem:[%s5544_s5 + $0xa8] sm:$0xe]  ;;  %v2260_v23 = vld [vmem:[#allocation2 + $0xd0] sm:$0xff]  ;;  %2992 = vst.msk [vmem:[#allocation2 + $0xa0] sm:$0xff] %vm345_vm3, %v5389_v45  ;;  %v2083_v31 = vsel %vm6022_vm7, %v2081_v47, %v2082_v7  ;;  %v1109_v38 = vrot.slane %v953_v30, 5 }
 0x12d   : > { %1190 = vst.msk [vmem:[#allocation2 + $0x58] sm:$0xff] %vm345_vm3, %v4645_v11  ;;  %v954_v10 = vld [vmem:[%s5544_s5 + $0xb0] sm:$0x1]  ;;  %v4638_v3 = vrot.slane %v952_v57, 9  ;;  %v4810_v13 = vld [vmem:[%s5544_s5 + $0xb4] sm:$0xe]  ;;  %v3481_v57 = vpop.permute.xlu1 %3480 }
 0x12e   : > { %3502 = vrot.lane.b32.xlu0 %v5036_v53, %s5459_s6  ;;  %v5386_v25 = vld [vmem:[%s5544_s5 + $0x6c] sm:$0xff]   ;;  %v1112_v15 = vrot.slane %v954_v10, 5  ;;  %v4811_v63 = vld [vmem:[%s5544_s5 + $0xb8] sm:$0xf]  ;;  %3526 = vst.msk [vmem:[#allocation2] sm:$0xff] %vm893_vm4, %v3479_v36  ;;  %v5093_v59 = vrot.slane %v5055_v42, 9  ;;  %v4837_v53 = vcombine.low %v2080_v56, %v2083_v31 }
 0x12f   : > { %v3677_v43 = vrot.slane %v3675_v50, 4  ;;  %v3678_v52 = vrot.slane %v5057_v58, 5  ;;  %v4812_v4 = vld [vmem:[%s5544_s5 + $0xbc] sm:$0x1]  ;;  %v2142_v60 = vrot.slane %v4811_v63, 5  ;;  %v1110_v24 = vsel %vm6022_vm7, %v4638_v3, %v1109_v38  ;;  %3527 = vst.msk [vmem:[#allocation2 + $0x10] sm:$0xff] %vm893_vm4, %v3481_v57 }
 0x130   : > { %v1111_v33 = vrot.slane %v1109_v38, 4  ;;  %v6984_v21 = vld [vmem:[%s5544_s5 + $0xc0] sm:$0xe]  ;;  %v6987_v27 = vld [vmem:[%s5544_s5 + $0xc4] sm:$0xf]  ;;  %v4830_v54 = vrot.slane %v4810_v13, 9 }
 0x131   : > { %v2261_v32 = vld [vmem:[#allocation2 + $0xd8] sm:$0xff]  ;;  %v2144_v47 = vrot.slane %v2142_v60, 4  ;;  %v2145_v7 = vrot.slane %v4812_v4, 5  ;;  %v6992_v42 = vld [vmem:[%s5544_s5 + $0xc8] sm:$0x1]  ;;  %v6994_v11 = vld [vmem:[#allocation2 + $0x70] sm:$0xff]  ;;  %v3679_v31 = vsel %vm6022_vm7, %v3677_v43, %v3678_v52  ;;  %v3483_v52 = vpop.permute.xlu0 %3482 }
 0x132   : > { %4897 = vmatprep.mubr.msk.bf16.mxu1 %vm345_vm3, %v2261_v32  ;;  %3827 = vst.msk [vmem:[#allocation2 + $0xd8] sm:$0xff] %vm345_vm3, %v5117_v61  ;;  %v1113_v58 = vsel %vm6022_vm7, %v1111_v33, %v1112_v15  ;;  %v7537_v45 = vrot.slane %v6987_v27, 5  ;;  %2989 = vst.msk [vmem:[#allocation2 + $0x70] sm:$0xff] %vm345_vm3, %v5386_v25  ;;  %v3676_v61 = vsel %vm6022_vm7, %v5093_v59, %v3675_v50  ;;  %v5102_v10 = vrot.slane %v6984_v21, 9  ;;  %v5015_v36 = vld [vmem:[%s5544_s5 + $0xb4] sm:$0xf] }
 0x133   : > { %2548 = vmatmul.mubr.bf16.gmra.mrb[20].mxu1 %v2260_v23  ;;  %v4654_v30 = vcombine.low %v1110_v24, %v1113_v58  ;;  %v3741_v3 = vrot.slane %v6992_v42, 5  ;;  %v5016_v56 = vld [vmem:[%s5544_s5 + $0xb8] sm:$0xf]  ;;  %v5017_v38 = vld [vmem:[%s5544_s5 + $0xbc] sm:$0x1]  ;;  %v3359_v15 = vshrl.u32 %v5015_v36, 16  ;;  %v2143_v50 = vsel %vm6022_vm7, %v4830_v54, %v2142_v60 }
 0x134   : > { %v7007_v23 = vld [vmem:[#allocation2 + $0x58] sm:$0xff]  ;;  %v3362_v25 = vshll.u32 %v5015_v36, 16  ;;  %v3368_v13 = vshll.u32 %v5016_v56, 16  ;;  %v2146_v63 = vsel %vm6022_vm7, %v2144_v47, %v2145_v7  ;;  %v3372_v59 = vshrl.u32 %v5016_v56, 16  ;;  %3528 = vst.msk [vmem:[#allocation2 + $0x20] sm:$0xff] %vm893_vm4, %v3483_v52 }
 0x135   : > { %2223 = vst.msk [vmem:[#allocation2 + $0x58] sm:$0xff] %vm345_vm3, %v4837_v53  ;;  %1199 = vst.msk [vmem:[#allocation2 + $0xe8] sm:$0xff] %vm345_vm3, %v4654_v30  ;;  %v3378_v43 = vshll.u32 %v5017_v38, 16  ;;  %v3740_v4 = vrot.slane %v7537_v45, 4  ;;  %v3361_v32 = vrot.slane %v3359_v15, 4  ;;  %v5109_v54 = vcombine.low %v3676_v61, %v3679_v31  ;;  %v5390_v57 = vld [vmem:[%s5544_s5 + $0x9c] sm:$0xff]  }
 0x136   : > { %v3364_v24 = vrot.slane %v3362_v25, 5  ;;  %v3370_v33 = vrot.slane %v3368_v13, 5  ;;  %v3374_v21 = vrot.slane %v3372_v59, 4  ;;  %v928_v53 = vld [vmem:[%s5544_s5 + $0x48] sm:$0xe]  ;;  %v4846_v30 = vcombine.low %v2143_v50, %v2146_v63  ;;  %v3485_v59 = vpop.permute.xlu1 %3484  ;;  %2993 = vst.msk [vmem:[#allocation2 + $0xb0] sm:$0xff] %vm345_vm3, %v5390_v57 }
 0x137   : > { %v3380_v60 = vrot.slane %v3378_v43, 5  ;;  %v929_v7 = vld [vmem:[%s5544_s5 + $0x4c] sm:$0xf]  ;;  %v930_v42 = vld [vmem:[%s5544_s5 + $0x50] sm:$0x1]  ;;  %v4630_v58 = vrot.slane %v928_v53, 9 }
 0x138   : > { %v3365_v47 = vor.u32 %v3364_v24, %v3361_v32  ;;  %v3375_v36 = vor.u32 %v3374_v21, %v3370_v33  ;;  %v1053_v56 = vrot.slane %v929_v7, 5  ;;  %v1056_v38 = vrot.slane %v930_v42, 5  ;;  %v4786_v15 = vld [vmem:[%s5544_s5 + $0x54] sm:$0xe]  ;;  %v4787_v25 = vld [vmem:[%s5544_s5 + $0x58] sm:$0xf] }
 0x139   : > { %v4788_v45 = vld [vmem:[%s5544_s5 + $0x5c] sm:$0x1]  ;;  %v2086_v52 = vrot.slane %v4787_v25, 5  ;;  %v4822_v32 = vrot.slane %v4786_v15, 9  ;;  %3529 = vst.msk [vmem:[#allocation2 + $0x30] sm:$0xff] %vm893_vm4, %v3485_v59  ;;  %v7545_v7 = vrot.slane %v6987_v27, 5 }
 0x13a   : > { %v3366_v13 = vrot.slane %v3365_v47, 4  ;;  %v3376_v43 = vrot.slane %v3375_v36, 4  ;;  %v1054_v61 = vsel %vm6022_vm7, %v4630_v58, %v1053_v56  ;;  %v1055_v31 = vrot.slane %v1053_v56, 4  ;;  %v7037_v47 = vld [vmem:[%s5544_s5 + $0x60] sm:$0xe]  ;;  %v3487_v36 = vpop.permute.xlu0 %3486  ;;  %v3832_v12 = vld [vmem:[#allocation2 + $0x10] sm:$0xff] }
 0x13b   : > { %v2088_v21 = vrot.slane %v2086_v52, 4  ;;  %v2089_v53 = vrot.slane %v4788_v45, 5  ;;  %v3739_v42 = vsel %vm6022_vm7, %v5102_v10, %v7545_v7  ;;  %v7053_v57 = vld [vmem:[%s5544_s5 + $0x64] sm:$0xf]  ;;  %3530 = vst.msk [vmem:[#allocation2 + $0x40] sm:$0xff] %vm893_vm4, %v3487_v36 }
 0x13c   : > { %v2245_v50 = vld [vmem:[#allocation2 + $0x58] sm:$0xff]  ;;  %v7032_v63 = vld [vmem:[#allocation2 + $0xe8] sm:$0xff]  ;;  %v3371_v24 = vsel %vm5556_vm2, %v3366_v13, %v3370_v33  ;;  %v3742_v33 = vsel %vm6022_vm7, %v3740_v4, %v3741_v3  ;;  %v3381_v45 = vsel %vm5556_vm2, %v3376_v43, %v3380_v60  ;;  %v1057_v58 = vsel %vm6022_vm7, %v1055_v31, %v1056_v38  ;;  %v4813_v13 = vld [vmem:[%s5544_s5 + $0xc0] sm:$0xe] }
 0x13d   : > { %4889 = vmatprep.mubr.msk.bf16.mxu0 %vm345_vm3, %v2245_v50  ;;  %3819 = vst.msk [vmem:[#allocation2 + $0x58] sm:$0xff] %vm345_vm3, %v5109_v54  ;;  %2232 = vst.msk [vmem:[#allocation2 + $0xe8] sm:$0xff] %vm345_vm3, %v4846_v30  ;;  %v7056_v54 = vld [vmem:[%s5544_s5 + $0x68] sm:$0x1]  ;;  %v5037_v27 = vcombine.low %v3371_v24, %v3381_v45  ;;  %v4646_v10 = vcombine.low %v1054_v61, %v1057_v58  ;;  %v955_v30 = vld [vmem:[%s5544_s5 + $0xb4] sm:$0xe]  ;;  %v5118_v38 = vcombine.low %v3739_v42, %v3742_v33  ;;  %v3489_v58 = vpop.permute.xlu1 %3488 }
 0x13e   : > { %2484 = vmatmul.mubr.bf16.gmra.mrb[20].mxu0 %v6865_v19  ;;  %v5391_v3 = vld [vmem:[%s5544_s5 + $0xa8] sm:$0xff]   ;;  %v956_v4 = vld [vmem:[%s5544_s5 + $0xb8] sm:$0xf]  ;;  %v957_v60 = vld [vmem:[%s5544_s5 + $0xbc] sm:$0x1]  ;;  %v4639_v56 = vrot.slane %v955_v30, 9  ;;  %v2087_v19 = vsel %vm6022_vm7, %v4822_v32, %v2086_v52  ;;  %v2090_v61 = vsel %vm6022_vm7, %v2088_v21, %v2089_v53 }
 0x13f   : > { %3504 = vrot.lane.b32.xlu1 %v5037_v27, %s5459_s6  ;;  %1191 = vst.msk [vmem:[#allocation2 + $0x68] sm:$0xff] %vm345_vm3, %v4646_v10  ;;  %v1116_v15 = vrot.slane %v956_v4, 5  ;;  %v1119_v25 = vrot.slane %v957_v60, 5  ;;  %v4814_v59 = vld [vmem:[%s5544_s5 + $0xc4] sm:$0xf]  ;;  %2994 = vst.msk [vmem:[#allocation2 + $0xc0] sm:$0xff] %vm345_vm3, %v5391_v3  ;;  %v4838_v36 = vcombine.low %v2087_v19, %v2090_v61 }
 0x140   : > { %v2262_v43 = vld [vmem:[#allocation2 + $0xe0] sm:$0xff]  ;;  %v5094_v31 = vrot.slane %v7037_v47, 9  ;;  %v3682_v50 = vrot.slane %v7053_v57, 5  ;;  %v4815_v24 = vld [vmem:[%s5544_s5 + $0xc8] sm:$0x1]  ;;  %v2149_v7 = vrot.slane %v4814_v59, 5 }
 0x141   : > { %v3685_v52 = vrot.slane %v7056_v54, 5  ;;  %v1117_v32 = vsel %vm6022_vm7, %v4639_v56, %v1116_v15  ;;  %v1118_v42 = vrot.slane %v1116_v15, 4  ;;  %v7080_v33 = vld [vmem:[%s5544_s5 + $0xcc] sm:$0xe]  ;;  %v7083_v45 = vld [vmem:[%s5544_s5 + $0xd0] sm:$0xf] }
 0x142   : > { %v4831_v21 = vrot.slane %v4813_v13, 9  ;;  %v2152_v53 = vrot.slane %v4815_v24, 5  ;;  %v5087_v47 = vld [vmem:[%s5544_s5 + $0xd4] sm:$0x1]  ;;  %3531 = vst.msk [vmem:[#allocation2 + $0x50] sm:$0xff] %vm893_vm4, %v3489_v58  ;;  %v2151_v27 = vrot.slane %v2149_v7, 4  ;;  %v3491_v58 = vpop.permute.xlu0 %3490 }
 0x143   : > { %v1120_v54 = vsel %vm6022_vm7, %v1118_v42, %v1119_v25  ;;  %v5018_v10 = vld [vmem:[%s5544_s5 + $0xc0] sm:$0xf]  ;;  %v3684_v30 = vrot.slane %v3682_v50, 4  ;;  %v3745_v4 = vrot.slane %v7083_v45, 5  ;;  %v5019_v60 = vld [vmem:[%s5544_s5 + $0xc4] sm:$0xf] }
 0x144   : > { %v2263_v57 = vld [vmem:[#allocation2 + $0xe8] sm:$0xff]  ;;  %v4655_v3 = vcombine.low %v1117_v32, %v1120_v54  ;;  %v5103_v15 = vrot.slane %v7080_v33, 9  ;;  %v3383_v19 = vshrl.u32 %v5018_v10, 16  ;;  %v3386_v13 = vshll.u32 %v5018_v10, 16  ;;  %3532 = vst.msk [vmem:[#allocation2 + $0x60] sm:$0xff] %vm893_vm4, %v3491_v58  ;;  %v3830_v26 = vld [vmem:[#allocation2] sm:$0xff] }
 0x145   : > { %4898 = vmatprep.mubr.msk.bf16.mxu1 %vm345_vm3, %v2263_v57  ;;  %3828 = vst.msk [vmem:[#allocation2 + $0xe8] sm:$0xff] %vm345_vm3, %v5118_v38  ;;  %v5020_v56 = vld [vmem:[%s5544_s5 + $0xc8] sm:$0x1]  ;;  %v3392_v59 = vshll.u32 %v5019_v60, 16  ;;  %v2150_v38 = vsel %vm6022_vm7, %v4831_v21, %v2149_v7  ;;  %v3748_v61 = vrot.slane %v5087_v47, 5  ;;  %v3396_v24 = vshrl.u32 %v5019_v60, 16 }
 0x146   : > { %2556 = vmatmul.mubr.bf16.gmra.mrb[24].mxu1 %v2262_v43  ;;  %v7096_v25 = vld [vmem:[#allocation2 + $0x68] sm:$0xff]  ;;  %1200 = vst.msk [vmem:[#allocation2 + $0xf8] sm:$0xff] %vm345_vm3, %v4655_v3  ;;  %v3402_v32 = vshll.u32 %v5020_v56, 16  ;;  %v2153_v43 = vsel %vm6022_vm7, %v2151_v27, %v2152_v53  ;;  %v3385_v42 = vrot.slane %v3383_v19, 4  ;;  %v3388_v33 = vrot.slane %v3386_v13, 5  ;;  %v5392_v57 = vld [vmem:[%s5544_s5 + $0xb4] sm:$0xff]  }
 0x147   : > { %2224 = vst.msk [vmem:[#allocation2 + $0x68] sm:$0xff] %vm345_vm3, %v4838_v36  ;;  %v3394_v45 = vrot.slane %v3392_v59, 5  ;;  %v3683_v54 = vsel %vm6022_vm7, %v5094_v31, %v3682_v50  ;;  %v3686_v7 = vsel %vm6022_vm7, %v3684_v30, %v3685_v52  ;;  %v3747_v21 = vrot.slane %v3745_v4, 4  ;;  %v931_v36 = vld [vmem:[%s5544_s5 + $0x54] sm:$0xe]  ;;  %2995 = vst.msk [vmem:[#allocation2 + $0xd0] sm:$0xff] %vm345_vm3, %v5392_v57 }
 0x148   : > { %v3398_v47 = vrot.slane %v3396_v24, 4  ;;  %v3389_v53 = vor.u32 %v3388_v33, %v3385_v42  ;;  %v3404_v27 = vrot.slane %v3402_v32, 5  ;;  %v932_v10 = vld [vmem:[%s5544_s5 + $0x58] sm:$0xf]  ;;  %v933_v3 = vld [vmem:[%s5544_s5 + $0x5c] sm:$0x1]  ;;  %v4847_v31 = vcombine.low %v2150_v38, %v2153_v43 }
 0x149   : > { %v4631_v60 = vrot.slane %v931_v36, 9  ;;  %v1060_v56 = vrot.slane %v932_v10, 5  ;;  %v1063_v19 = vrot.slane %v933_v3, 5  ;;  %v4789_v52 = vld [vmem:[%s5544_s5 + $0x60] sm:$0xe]  ;;  %v5110_v13 = vcombine.low %v3683_v54, %v3686_v7 }
 0x14a   : > { %v3399_v50 = vor.u32 %v3398_v47, %v3394_v45  ;;  %v4790_v30 = vld [vmem:[%s5544_s5 + $0x64] sm:$0xf]  ;;  %v3390_v59 = vrot.slane %v3389_v53, 4  ;;  %v4791_v24 = vld [vmem:[%s5544_s5 + $0x68] sm:$0x1]  ;;  %v3746_v38 = vsel %vm6022_vm7, %v5103_v15, %v3745_v4  ;;  %v3749_v43 = vsel %vm6022_vm7, %v3747_v21, %v3748_v61 }
 0x14b   : > { %v2093_v58 = vrot.slane %v4790_v30, 5  ;;  %v1061_v32 = vsel %vm6022_vm7, %v4631_v60, %v1060_v56  ;;  %v1062_v33 = vrot.slane %v1060_v56, 4  ;;  %v5393_v36 = vld [vmem:[%s5544_s5 + $0xc0] sm:$0xff]   ;;  %v4823_v54 = vrot.slane %v4789_v52, 9  ;;  %v5061_v7 = vld [vmem:[%s5544_s5 + $0x6c] sm:$0xe] }
 0x14c   : > { %v3400_v42 = vrot.slane %v3399_v50, 4  ;;  %v3395_v57 = vsel %vm5556_vm2, %v3390_v59, %v3394_v45  ;;  %v5062_v47 = vld [vmem:[%s5544_s5 + $0x70] sm:$0xf]  ;;  %v2096_v3 = vrot.slane %v4791_v24, 5  ;;  %2996 = vst.msk [vmem:[#allocation2 + $0xe0] sm:$0xff] %vm345_vm3, %v5393_v36  ;;  %v5095_v60 = vrot.slane %v5061_v7, 9  ;;  %v3493_v24 = vpop.permute.xlu1 %3492 }
 0x14d   : > { %v7120_v41 = vld [vmem:[#allocation2 + $0xf8] sm:$0xff]  ;;  %v1064_v4 = vsel %vm6022_vm7, %v1062_v33, %v1063_v19  ;;  %v2095_v15 = vrot.slane %v2093_v58, 4  ;;  %v5063_v21 = vld [vmem:[%s5544_s5 + $0x74] sm:$0x1]  ;;  %v5119_v50 = vcombine.low %v3746_v38, %v3749_v43  ;;  %v2094_v19 = vsel %vm6022_vm7, %v4823_v54, %v2093_v58  ;;  %v5022_v52 = vld [vmem:[%s5544_s5 + $0xd0] sm:$0xf] }
 0x14e   : > { %v2247_v53 = vld [vmem:[#allocation2 + $0x68] sm:$0xff]  ;;  %2233 = vst.msk [vmem:[#allocation2 + $0xf8] sm:$0xff] %vm345_vm3, %v4847_v31  ;;  %v3405_v10 = vsel %vm5556_vm2, %v3400_v42, %v3404_v27  ;;  %v4647_v45 = vcombine.low %v1061_v32, %v1064_v4  ;;  %v3689_v27 = vrot.slane %v5062_v47, 5  ;;  %v2264_v56 = vld [vmem:[#allocation2 + $0xf0] sm:$0xff]  ;;  %v3416_v42 = vshll.u32 %v5022_v52, 16 }
 0x14f   : > { %4890 = vmatprep.mubr.msk.bf16.mxu0 %vm345_vm3, %v2247_v53  ;;  %3820 = vst.msk [vmem:[#allocation2 + $0x68] sm:$0xff] %vm345_vm3, %v5110_v13  ;;  %v5038_v61 = vcombine.low %v3395_v57, %v3405_v10  ;;  %v5021_v31 = vld [vmem:[%s5544_s5 + $0xcc] sm:$0xf]  ;;  %v5023_v30 = vld [vmem:[%s5544_s5 + $0xd4] sm:$0x1]  ;;  %v3420_v32 = vshrl.u32 %v5022_v52, 16 }
 0x150   : > { %2492 = vmatmul.mubr.bf16.gmra.mrb[24].mxu0 %v6945_v34  ;;  %1192 = vst.msk [vmem:[#allocation2 + $0x78] sm:$0xff] %vm345_vm3, %v4647_v45  ;;  %v3407_v13 = vshrl.u32 %v5021_v31, 16  ;;  %v3410_v59 = vshll.u32 %v5021_v31, 16  ;;  %v2097_v34 = vsel %vm6022_vm7, %v2095_v15, %v2096_v3  ;;  %v3426_v33 = vshll.u32 %v5023_v30, 16  ;;  %v5394_v36 = vld [vmem:[%s5544_s5 + $0xcc] sm:$0xff]   ;;  %s5210_s5 = sshll.u32 %s5538_s27, 8 }
 0x151   : > { %3506 = vrot.lane.b32.xlu0 %v5038_v61, %s5459_s6  ;;  %3533 = vst.msk [vmem:[#allocation2 + $0x70] sm:$0xff] %vm893_vm4, %v3493_v24  ;;  %v3691_v57 = vrot.slane %v3689_v27, 4  ;;  %v3692_v7 = vrot.slane %v5063_v21, 5  ;;  %v3418_v47 = vrot.slane %v3416_v42, 5  ;;  %v3422_v58 = vrot.slane %v3420_v32, 4  ;;  %v3847_v24 = vld [vmem:[#allocation2 + $0x88] sm:$0xff]  ;;  %s7309_s11 = scalar_lea.vmem %s7535_s3, %s5210_s5 }
 0x152   : > { %v3409_v38 = vrot.slane %v3407_v13, 4  ;;  %v3412_v43 = vrot.slane %v3410_v59, 5  ;;  %2997 = vst.msk [vmem:[#allocation2 + $0xf0] sm:$0xff] %vm345_vm3, %v5394_v36  ;;  %v4839_v53 = vcombine.low %v2094_v19, %v2097_v34  ;;  %v3428_v4 = vrot.slane %v3426_v33, 5  ;;  %v3831_v13 = vld [vmem:[#allocation2 + $0x8] sm:$0xff]  ;;  %s203_s27 = sand.u32 1, %s5449_s16  }
 0x153   : > { %v3423_v15 = vor.u32 %v3422_v58, %v3418_v47  ;;  %v3690_v31 = vsel %vm6022_vm7, %v5095_v60, %v3689_v27  ;;  %v3693_v19 = vsel %vm6022_vm7, %v3691_v57, %v3692_v7  ;;  %v3835_v60 = vld [vmem:[#allocation2 + $0x28] sm:$0xff]  ;;  %s4588_s14 = sshll.u32 %s203_s27, 7  ;;  %s7489_s19 = scalar_lea.sflag [#allocation4], %s203_s27 }
 0x154   : > { %v3413_v10 = vor.u32 %v3412_v43, %v3409_v38  ;;  %v5111_v52 = vcombine.low %v3690_v31, %v3693_v19  ;;  %v3855_v36 = vld [vmem:[#allocation2 + $0xc8] sm:$0xff]  ;;  %s7327_s20 = scalar_lea.vmem [#allocation3], %s4588_s14  ;;  %s5399_s5 = sshll.u32 %s5461_s8, 4  ;;  %s5400_s5 = int_to_ptr.vmem [resolvable:$false] %s5399_s5 }
 0x155   : > { %v2265_v54 = vld [vmem:[#allocation2 + $0xf8] sm:$0xff]  ;;  %v3424_v45 = vrot.slane %v3423_v15, 4  ;;  %s4510_s23 = sshll.u32 %s7327_s20, 4  ;;  %s5401_s9 = scalar_lea.vmem %s5400_s5, 4096  ;;  %s7483_s23 = int_to_ptr.vmem [resolvable:$true] %s4510_s23 }
 0x156   : > { %4899 = vmatprep.mubr.msk.bf16.mxu1 %vm345_vm3, %v2265_v54  ;;  %3829 = vst.msk [vmem:[#allocation2 + $0xf8] sm:$0xff] %vm345_vm3, %v5119_v50  ;;  %v3414_v3 = vrot.slane %v3413_v10, 4  ;;  %s5395_s7 = scalar_lea.vmem %s7483_s23, 2048  ;;  %p5402_p0 = scmp.lt.s32.totalorder %s7483_s23, %s5400_s5 }
 0x157   : > { %2564 = vmatmul.mubr.bf16.gmra.mrb[28].mxu1 %v2264_v56  ;;  %v1216_v61 = vld [vmem:[#allocation2 + $0x78] sm:$0xff]  ;;  %v3429_v50 = vsel %vm5556_vm2, %v3424_v45, %v3428_v4  ;;  %p5396_p11 = scmp.ne.s32.totalorder %s7483_s23, %s5395_s7  ;;  %p5403_p1 = scmp.lt.s32.totalorder %s5401_s9, %s5395_s7 }
 0x158   : > { %4912 = vmatprep.mubr.msk.bf16.mxu1 %vm345_vm3, %v6256_v46  ;;  %2225 = vst.msk [vmem:[#allocation2 + $0x78] sm:$0xff] %vm345_vm3, %v4839_v53  ;;  %v3419_v21 = vsel %vm5556_vm2, %v3414_v3, %v3418_v47  ;;  %v3857_v47 = vld [vmem:[#allocation2 + $0xd8] sm:$0xff] }
 0x159   : > { %v5039_v56 = vcombine.low %v3419_v21, %v3429_v50  ;;  %p5397_p12 = pnand %p5396_p11, %p5526_p5  ;;  %p5404_p2 = por %p5403_p1, %p5402_p0 }
 0x15a   : > { %v3495_v46 = vpop.permute.xlu0 %3494 }
 0x15b   : > { %3508 = vrot.lane.b32.xlu1 %v5039_v56, %s5459_s6  ;;  %3534 = vst.msk [vmem:[#allocation2 + $0x80] sm:$0xff] %vm893_vm4, %v3495_v46  ;;  %p5398_p13 = pneg %p5397_p12 }
 0x15d   : > { %v3861_v31 = vld [vmem:[#allocation2 + $0xf8] sm:$0xff]  ;;  %p5405_p3 = pnand %p5404_p2, %p5398_p13 }
 0x15f   : > { %2725 = vmatmul.mubr.bf16.vlgmr.msra.gmra.mrb[32].mxu1 %v6009_v5  ;;  %v2249_v30 = vld [vmem:[#allocation2 + $0x78] sm:$0xff] }
 0x160   : > { %4913 = vmatprep.mubr.msk.bf16.mxu1 %vm345_vm3, %v6459_v62  ;;  %4891 = vmatprep.mubr.msk.bf16.mxu0 %vm345_vm3, %v2249_v30  ;;  %3821 = vst.msk [vmem:[#allocation2 + $0x78] sm:$0xff] %vm345_vm3, %v5111_v52  ;;  %v3833_v5 = vld [vmem:[#allocation2 + $0x18] sm:$0xff] }
 0x161   : > { %2500 = vmatmul.mubr.bf16.gmra.mrb[28].mxu0 %v6994_v11  ;;  %v3836_v11 = vld [vmem:[#allocation2 + $0x30] sm:$0xff] }
 0x162   : > { %5156 = vmatprep.mubr.msk.bf16.mxu0 %vm345_vm3, %v3831_v13 }
 0x167   : > { %2733 = vmatmul.mubr.bf16.gmra.mrb[36].mxu1 %v6031_v16  ;;  %v3834_v16 = vld [vmem:[#allocation2 + $0x20] sm:$0xff]  ;;  %v3845_v59 = vld [vmem:[#allocation2 + $0x78] sm:$0xff] }
 0x168   : > { %4914 = vmatprep.mubr.msk.bf16.mxu1 %vm345_vm3, %v6633_v55  ;;  %v3837_v55 = vld [vmem:[#allocation2 + $0x38] sm:$0xff] }
 0x169   : > { %4040 = vmatmul.mubr.bf16.vlgmr.msra.gmra.mrb[32].mxu0 %v3830_v26 }
 0x16a   : > { %5157 = vmatprep.mubr.msk.bf16.mxu0 %vm345_vm3, %v3833_v5 }
 0x16e   : > { %v3497_v62 = vpop.permute.xlu1 %3496 }
 0x16f   : > { %2741 = vmatmul.mubr.bf16.gmra.mrb[40].mxu1 %v6062_v28  ;;  %3535 = vst.msk [vmem:[#allocation2 + $0x90] sm:$0xff] %vm893_vm4, %v3497_v62 }
 0x170   : > { %4915 = vmatprep.mubr.msk.bf16.mxu1 %vm345_vm3, %v6811_v29  ;;  %v3839_v29 = vld [vmem:[#allocation2 + $0x48] sm:$0xff] }
 0x171   : > { %4048 = vmatmul.mubr.bf16.gmra.mrb[36].mxu0 %v3832_v12 }
 0x172   : > { %5158 = vmatprep.mubr.msk.bf16.mxu0 %vm345_vm3, %v3835_v60 }
 0x176   : > { %v3848_v34 = vld [vmem:[#allocation2 + $0x90] sm:$0xff] }
 0x177   : > { %2749 = vmatmul.mubr.bf16.gmra.mrb[44].mxu1 %v6213_v18  ;;  %v3838_v18 = vld [vmem:[#allocation2 + $0x40] sm:$0xff] }
 0x178   : > { %4916 = vmatprep.mubr.msk.bf16.mxu1 %vm345_vm3, %v6912_v20  ;;  %v3841_v20 = vld [vmem:[#allocation2 + $0x58] sm:$0xff] }
 0x179   : > { %4056 = vmatmul.mubr.bf16.gmra.mrb[40].mxu0 %v3834_v16 }
 0x17a   : > { %5159 = vmatprep.mubr.msk.bf16.mxu0 %vm345_vm3, %v3837_v55 }
 0x17e   : > { %v3499_v28 = vpop.permute.xlu0 %3498 }
 0x17f   : > { %3536 = vst.msk [vmem:[#allocation2 + $0xa0] sm:$0xff] %vm893_vm4, %v3499_v28  ;;  %2757 = vmatmul.mubr.bf16.gmra.mrb[48].mxu1 %v6433_v51  ;;  %v3840_v51 = vld [vmem:[#allocation2 + $0x50] sm:$0xff] }
 0x180   : > { %4917 = vmatprep.mubr.msk.bf16.mxu1 %vm345_vm3, %v7007_v23  ;;  %v3843_v23 = vld [vmem:[#allocation2 + $0x68] sm:$0xff] }
 0x181   : > { %4064 = vmatmul.mubr.bf16.gmra.mrb[44].mxu0 %v3836_v11 }
 0x182   : > { %5160 = vmatprep.mubr.msk.bf16.mxu0 %vm345_vm3, %v3839_v29 }
 0x187   : > { %2765 = vmatmul.mubr.bf16.gmra.mrb[52].mxu1 %v6628_v8  ;;  %v3842_v8 = vld [vmem:[#allocation2 + $0x60] sm:$0xff] }
 0x188   : > { %4918 = vmatprep.mubr.msk.bf16.mxu1 %vm345_vm3, %v7096_v25 }
 0x189   : > { %4072 = vmatmul.mubr.bf16.gmra.mrb[48].mxu0 %v3838_v18 }
 0x18a   : > { %5161 = vmatprep.mubr.msk.bf16.mxu0 %vm345_vm3, %v3841_v20 }
 0x18e   : > { %v3501_v27 = vpop.permute.xlu1 %3500 }
 0x18f   : > { %3537 = vst.msk [vmem:[#allocation2 + $0xb0] sm:$0xff] %vm893_vm4, %v3501_v27  ;;  %2773 = vmatmul.mubr.bf16.gmra.mrb[56].mxu1 %v6831_v35  ;;  %v3844_v35 = vld [vmem:[#allocation2 + $0x70] sm:$0xff] }
 0x190   : > { %4919 = vmatprep.mubr.msk.bf16.mxu1 %vm345_vm3, %v1216_v61 }
 0x191   : > { %4080 = vmatmul.mubr.bf16.gmra.mrb[52].mxu0 %v3840_v51 }
 0x192   : > { %5162 = vmatprep.mubr.msk.bf16.mxu0 %vm345_vm3, %v3843_v23 }
 0x196   : > { %v3852_v33 = vld [vmem:[#allocation2 + $0xb0] sm:$0xff] }
 0x197   : > { %2781 = vmatmul.mubr.bf16.gmra.mrb[60].mxu1 %v6927_v40  ;;  %v3846_v40 = vld [vmem:[#allocation2 + $0x80] sm:$0xff] }
 0x198   : > { %4920 = vmatprep.mubr.msk.bf16.mxu1 %vm345_vm3, %v6161_v44  ;;  %v3849_v44 = vld [vmem:[#allocation2 + $0x98] sm:$0xff] }
 0x199   : > { %4088 = vmatmul.mubr.bf16.gmra.mrb[56].mxu0 %v3842_v8 }
 0x19a   : > { %5163 = vmatprep.mubr.msk.bf16.mxu0 %vm345_vm3, %v3845_v59 }
 0x19f   : > { %2789 = vmatmul.mubr.bf16.gmra.mrb[64].mxu1 %v6007_v1  ;;  %v3851_v1 = vld [vmem:[#allocation2 + $0xa8] sm:$0xff] }
 0x1a0   : > { %v3503_v25 = vpop.permute.xlu0 %3502  ;;  %4921 = vmatprep.mubr.msk.bf16.mxu1 %vm345_vm3, %v6333_v49 }
 0x1a1   : > { %3538 = vst.msk [vmem:[#allocation2 + $0xc0] sm:$0xff] %vm893_vm4, %v3503_v25  ;;  %4096 = vmatmul.mubr.bf16.gmra.mrb[60].mxu0 %v3844_v35 }
 0x1a2   : > { %5164 = vmatprep.mubr.msk.bf16.mxu0 %vm345_vm3, %v3847_v24 }
 0x1a7   : > { %2797 = vmatmul.mubr.bf16.gmra.mrb[68].mxu1 %v6011_v6  ;;  %v3850_v6 = vld [vmem:[#allocation2 + $0xa0] sm:$0xff] }
 0x1a8   : > { %4922 = vmatprep.mubr.msk.bf16.mxu1 %vm345_vm3, %v6524_v9  ;;  %v3853_v9 = vld [vmem:[#allocation2 + $0xb8] sm:$0xff]  ;;  %v3854_v7 = vld [vmem:[#allocation2 + $0xc0] sm:$0xff] }
 0x1a9   : > { %4104 = vmatmul.mubr.bf16.gmra.mrb[64].mxu0 %v3846_v40 }
 0x1aa   : > { %5165 = vmatprep.mubr.msk.bf16.mxu0 %vm345_vm3, %v3849_v44 }
 0x1af   : > { %2805 = vmatmul.mubr.bf16.gmra.mrb[72].mxu1 %v6033_v17 }
 0x1b0   : > { %4923 = vmatprep.mubr.msk.bf16.mxu1 %vm345_vm3, %v6702_v14 }
 0x1b1   : > { %v3505_v49 = vpop.permute.xlu1 %3504  ;;  %4112 = vmatmul.mubr.bf16.gmra.mrb[68].mxu0 %v3848_v34  ;;  %v7221_v42 = vpop.f32.mrb[0].mxu1 }
 0x1b2   : > { %3539 = vst.msk [vmem:[#allocation2 + $0xd0] sm:$0xff] %vm893_vm4, %v3505_v49  ;;  %5166 = vmatprep.mubr.msk.bf16.mxu0 %vm345_vm3, %v3851_v1  ;;  %v2511_v17 = vpop.f32.mrb[1].mxu1 }
 0x1b3   : > { %v7223_v32 = vpop.f32.mrb[2].mxu1 }
 0x1b4   : > { %v2514_v14 = vpop.f32.mrb[3].mxu1 }
 0x1b7   : > { %2813 = vmatmul.mubr.bf16.gmra.mrb[76].mxu1 %v6134_v22 }
 0x1b8   : > { %4924 = vmatprep.mubr.msk.bf16.mxu1 %vm345_vm3, %v6846_v39 }
 0x1b9   : > { %4120 = vmatmul.mubr.bf16.gmra.mrb[72].mxu0 %v3850_v6  ;;  %v3856_v53 = vld [vmem:[#allocation2 + $0xd0] sm:$0xff] }
 0x1ba   : > { %5167 = vmatprep.mubr.msk.bf16.mxu0 %vm345_vm3, %v3853_v9 }
 0x1bb   : > { %v7229_v22 = vpop.f32.mrb[0].mxu0 }
 0x1bc   : > { %v2447_v38 = vpop.f32.mrb[1].mxu0 }
 0x1bd   : > { %v7231_v39 = vpop.f32.mrb[2].mxu0 }
 0x1be   : > { %v2450_v57 = vpop.f32.mrb[3].mxu0 }
 0x1bf   : > { %2821 = vmatmul.mubr.bf16.gmra.mrb[80].mxu1 %v6317_v37 }
 0x1c0   : > { %4925 = vmatprep.mubr.msk.bf16.mxu1 %vm345_vm3, %v6939_v48 }
 0x1c1   : > { %4128 = vmatmul.mubr.bf16.gmra.mrb[76].mxu0 %v3852_v33 }
 0x1c2   : > { %5168 = vmatprep.mubr.msk.bf16.mxu0 %vm345_vm3, %v3855_v36 }
 0x1c3   : > { %v3507_v43 = vpop.permute.xlu0 %3506  ;;  %v7236_v37 = vpop.f32.mrb[4].mxu1 }
 0x1c4   : > { %3540 = vst.msk [vmem:[#allocation2 + $0xe0] sm:$0xff] %vm893_vm4, %v3507_v43  ;;  %v2519_v48 = vpop.f32.mrb[5].mxu1 }
 0x1c5   : > { %v7240_v58 = vpop.f32.mrb[6].mxu1 }
 0x1c6   : > { %v2522_v54 = vpop.f32.mrb[7].mxu1 }
 0x1c7   : > { %2829 = vmatmul.mubr.bf16.gmra.mrb[84].mxu1 %v6576_v2  ;;  %v3859_v2 = vld [vmem:[#allocation2 + $0xe8] sm:$0xff] }
 0x1c8   : > { %4926 = vmatprep.mubr.msk.bf16.mxu1 %vm345_vm3, %v7032_v63 }
 0x1c9   : > { %4136 = vmatmul.mubr.bf16.gmra.mrb[80].mxu0 %v3854_v7 }
 0x1ca   : > { %5169 = vmatprep.mubr.msk.bf16.mxu0 %vm345_vm3, %v3857_v47 }
 0x1cb   : > { %v3858_v45 = vld [vmem:[#allocation2 + $0xe0] sm:$0xff] }
 0x1cd   : > { %v3509_v10 = vpop.permute.xlu1 %3508 }
 0x1ce   : > { %3541 = vst.msk [vmem:[#allocation2 + $0xf0] sm:$0xff] %vm893_vm4, %v3509_v10  ;;  %v7247_v4 = vpop.f32.mrb[4].mxu0 }
 0x1cf   : > { %2837 = vmatmul.mubr.bf16.gmra.mrb[88].mxu1 %v6761_v0  ;;  %v2455_v63 = vpop.f32.mrb[5].mxu0  ;;  %v7546_v0 = vld [vmem:[#allocation6_spill] sm:$0xff] }
 0x1d0   : > { %4927 = vmatprep.mubr.msk.bf16.mxu1 %vm345_vm3, %v7120_v41  ;;  %v7249_v15 = vpop.f32.mrb[6].mxu0 }
 0x1d1   : > { %4144 = vmatmul.mubr.bf16.gmra.mrb[84].mxu0 %v3856_v53  ;;  %v2458_v3 = vpop.f32.mrb[7].mxu0 }
 0x1d2   : > { %5170 = vmatprep.mubr.msk.bf16.mxu0 %vm345_vm3, %v3859_v2 }
 0x1d5   : > { %v3860_v56 = vld [vmem:[#allocation2 + $0xf0] sm:$0xff] }
 0x1d6   : > { %v7252_v61 = vpop.f32.mrb[8].mxu1 }
 0x1d7   : > { %2845 = vmatmul.mubr.bf16.gmra.mrb[92].mxu1 %v7546_v0  ;;  %v2527_v21 = vpop.f32.mrb[9].mxu1 }
 0x1d8   : > { %v7255_v19 = vpop.f32.mrb[10].mxu1 }
 0x1d9   : > { %v2530_v50 = vpop.f32.mrb[11].mxu1  ;;  %4152 = vmatmul.mubr.bf16.gmra.mrb[88].mxu0 %v3858_v45 }
 0x1da   : > { %5171 = vmatprep.mubr.msk.bf16.mxu0 %vm345_vm3, %v3861_v31 }
 0x1e0   : > { %v7258_v41 = vpop.f32.mrb[8].mxu0 }
 0x1e1   : > { %v2463_v52 = vpop.f32.mrb[9].mxu0  ;;  %4160 = vmatmul.mubr.bf16.gmra.mrb[92].mxu0 %v3860_v56  ;;  %v7314_v56 = vld [vmem:[%s7534_s2] ss:$0 sm:$0xff] }
 0x1e2   : > { %v7260_v46 = vpop.f32.mrb[10].mxu0 }
 0x1e3   : > { %v2466_v30 = vpop.f32.mrb[11].mxu0 }
 0x1e7   : > { %v7262_v13 = vpop.f32.mrb[12].mxu1 }
 0x1e8   : > { %v2535_v26 = vpop.f32.mrb[13].mxu1 }
 0x1e9   : > { %v7264_v5 = vpop.f32.mrb[14].mxu1 }
 0x1ea   : > { %v2538_v12 = vpop.f32.mrb[15].mxu1 }
 0x1eb   : > { %v4239_v12 = vld [vmem:[%s7309_s11] sm:$0xff] }
 0x1f2   : > { %v7266_v62 = vpop.f32.mrb[12].mxu0 }
 0x1f3   : > { %v2471_v60 = vpop.f32.mrb[13].mxu0 }
 0x1f4   : > { %v7268_v16 = vpop.f32.mrb[14].mxu0 }
 0x1f5   : > { %v2474_v55 = vpop.f32.mrb[15].mxu0 }
 0x1f6   : > { %v7270_v28 = vpop.f32.mrb[16].mxu1 }
 0x1f7   : > { %v2543_v11 = vpop.f32.mrb[17].mxu1 }
 0x1f8   : > { %v7272_v29 = vpop.f32.mrb[18].mxu1 }
 0x1f9   : > { %v2546_v18 = vpop.f32.mrb[19].mxu1 }
 0x1ff   : > { %v7274_v20 = vpop.f32.mrb[16].mxu0 }
 0x200   : > { %v2479_v27 = vpop.f32.mrb[17].mxu0 }
 0x201   : > { %v7276_v51 = vpop.f32.mrb[18].mxu0  ;;  %v4240_v27 = vld [vmem:[%s7309_s11 + $0x8] sm:$0xff] }
 0x202   : > { %v2482_v23 = vpop.f32.mrb[19].mxu0 }
 0x206   : > { %v7278_v8 = vpop.f32.mrb[20].mxu1 }
 0x207   : > { %v2551_v59 = vpop.f32.mrb[21].mxu1 }
 0x208   : > { %v7280_v25 = vpop.f32.mrb[22].mxu1 }
 0x209   : > { %v2554_v35 = vpop.f32.mrb[23].mxu1 }
 0x211   : > { %v7282_v24 = vpop.f32.mrb[20].mxu0 }
 0x212   : > { %v2487_v40 = vpop.f32.mrb[21].mxu0 }
 0x213   : > { %v7284_v44 = vpop.f32.mrb[22].mxu0 }
 0x214   : > { %v2490_v34 = vpop.f32.mrb[23].mxu0 }
 0x219   : > { %v7286_v1 = vpop.f32.mrb[24].mxu1 }
 0x21a   : > { %v2559_v49 = vpop.f32.mrb[25].mxu1 }
 0x21b   : > { %v7288_v6 = vpop.f32.mrb[26].mxu1 }
 0x21c   : > { %v2562_v9 = vpop.f32.mrb[27].mxu1 }
 0x223   : > { %v7290_v17 = vpop.f32.mrb[24].mxu0 }
 0x224   : > { %v2495_v14 = vpop.f32.mrb[25].mxu0 }
 0x225   : > { %v7292_v33 = vpop.f32.mrb[26].mxu0 }
 0x226   : > { %v2498_v36 = vpop.f32.mrb[27].mxu0 }
 0x22a   : > { %v7294_v38 = vpop.f32.mrb[28].mxu1 }
 0x22b   : > { %v2567_v43 = vpop.f32.mrb[29].mxu1 }
 0x22c   : > { %v7296_v57 = vpop.f32.mrb[30].mxu1 }
 0x22d   : > { %v2570_v7 = vpop.f32.mrb[31].mxu1 }
 0x232   : > { %v2726_v47 = vpop.f32.mrb[32].mxu1 }
 0x233   : > { %v2727_v48 = vadd.f32 %v2726_v47, %v7229_v22  ;;  %v2728_v54 = vpop.f32.mrb[33].mxu1 }
 0x234   : > { %v2729_v53 = vpop.f32.mrb[34].mxu1  ;;  %v7299_v10 = vpop.f32.mrb[28].mxu0 }
 0x235   : > { %v2730_v2 = vadd.f32 %v2729_v53, %v7231_v39  ;;  %v2731_v63 = vpop.f32.mrb[35].mxu1  ;;  %v2503_v3 = vpop.f32.mrb[29].mxu0  ;;  %v4241_v53 = vld [vmem:[%s7309_s11 + $0x10] sm:$0xff] }
 0x236   : > { %v7302_v45 = vpop.f32.mrb[30].mxu0 }
 0x237   : > { %v2506_v0 = vpop.f32.mrb[31].mxu0 }
 0x23a   : > { %v2734_v21 = vpop.f32.mrb[36].mxu1 }
 0x23b   : > { %v2735_v31 = vadd.f32 %v2734_v21, %v7247_v4  ;;  %v2736_v50 = vpop.f32.mrb[37].mxu1  ;;  %v4242_v21 = vld [vmem:[%s7309_s11 + $0x18] sm:$0xff] }
 0x23c   : > { %v2737_v22 = vpop.f32.mrb[38].mxu1  ;;  %v4041_v39 = vpop.f32.mrb[32].mxu0 }
 0x23d   : > { %v2738_v52 = vadd.f32 %v2737_v22, %v7249_v15  ;;  %v2739_v30 = vpop.f32.mrb[39].mxu1  ;;  %v4168_v4 = vadd.f32 %v4041_v39, %v2727_v48  ;;  %v4043_v26 = vpop.f32.mrb[33].mxu0 }
 0x23e   : > { %v4044_v60 = vpop.f32.mrb[34].mxu0 }
 0x23f   : > { %v4207_v55 = vadd.f32 %v7314_v56, %v4168_v4  ;;  %v4169_v11 = vadd.f32 %v4044_v60, %v2730_v2  ;;  %v4046_v18 = vpop.f32.mrb[35].mxu0 }
 0x241   : > { %v4271_v23 = vadd.f32 %v4239_v12, %v4207_v55  ;;  %v4208_v59 = vadd.f32 %v7314_v56, %v4169_v11 }
 0x242   : > { %v2742_v35 = vpop.f32.mrb[40].mxu1 }
 0x243   : > { %v2743_v15 = vadd.f32 %v2742_v35, %v7258_v41  ;;  %v2744_v40 = vpop.f32.mrb[41].mxu1  ;;  %v4303_v34 = vmax.f32 %v4271_v23, 0.0  ;;  %v4272_v49 = vadd.f32 %v4240_v27, %v4208_v59  ;;  %v4243_v23 = vld [vmem:[%s7309_s11 + $0x20] sm:$0xff] }
 0x244   : > { %v2745_v9 = vpop.f32.mrb[42].mxu1  ;;  %v4049_v14 = vpop.f32.mrb[36].mxu0 }
 0x245   : > { %v2746_v36 = vadd.f32 %v2745_v9, %v7260_v46  ;;  %v2747_v43 = vpop.f32.mrb[43].mxu1  ;;  %v5211_v7 = vpack.c.bf16 %v4303_v34, %v4303_v34  ;;  %v4304_v47 = vmax.f32 %v4272_v49, 0.0  ;;  %v4170_v48 = vadd.f32 %v4049_v14, %v2735_v31  ;;  %v4051_v54 = vpop.f32.mrb[37].mxu0  ;;  %v4244_v49 = vld [vmem:[%s7309_s11 + $0x28] sm:$0xff] }
 0x246   : > { %v4052_v2 = vpop.f32.mrb[38].mxu0 }
 0x247   : > { %4464 = vst.msk [vmem:[%s7327_s20] sm:$0xf] %vm4463_vm8, %v5211_v7  ;;  %v5212_v41 = vpack.c.bf16 %v4304_v47, %v4304_v47  ;;  %v4209_v63 = vadd.f32 %v7314_v56, %v4170_v48  ;;  %v4171_v3 = vadd.f32 %v4052_v2, %v2738_v52  ;;  %v4054_v0 = vpop.f32.mrb[39].mxu0 }
 0x248   : > { %v4245_v0 = vld [vmem:[%s7309_s11 + $0x30] sm:$0xff] }
 0x249   : > { %4465 = vst.msk [vmem:[%s7327_s20 + $0x4] sm:$0xf] %vm4463_vm8, %v5212_v41  ;;  %v4273_v46 = vadd.f32 %v4241_v53, %v4209_v63  ;;  %v4210_v31 = vadd.f32 %v7314_v56, %v4171_v3 }
 0x24a   : > { %v2750_v50 = vpop.f32.mrb[44].mxu1 }
 0x24b   : > { %v2751_v22 = vadd.f32 %v2750_v50, %v7266_v62  ;;  %v2752_v39 = vpop.f32.mrb[45].mxu1  ;;  %v4305_v30 = vmax.f32 %v4273_v46, 0.0  ;;  %v4274_v4 = vadd.f32 %v4242_v21, %v4210_v31 }
 0x24c   : > { %v2753_v26 = vpop.f32.mrb[46].mxu1  ;;  %v4057_v12 = vpop.f32.mrb[40].mxu0  ;;  %v4246_v39 = vld [vmem:[%s7309_s11 + $0x38] sm:$0xff] }
 0x24d   : > { %v2754_v52 = vadd.f32 %v2753_v26, %v7268_v16  ;;  %v2755_v60 = vpop.f32.mrb[47].mxu1  ;;  %v5213_v55 = vpack.c.bf16 %v4305_v30, %v4305_v30  ;;  %v4306_v11 = vmax.f32 %v4274_v4, 0.0  ;;  %v4172_v18 = vadd.f32 %v4057_v12, %v2743_v15  ;;  %v4059_v27 = vpop.f32.mrb[41].mxu0 }
 0x24e   : > { %v4060_v59 = vpop.f32.mrb[42].mxu0 }
 0x24f   : > { %4466 = vst.msk [vmem:[%s7327_s20 + $0x8] sm:$0xf] %vm4463_vm8, %v5213_v55  ;;  %v5214_v35 = vpack.c.bf16 %v4306_v11, %v4306_v11  ;;  %v4211_v62 = vadd.f32 %v7314_v56, %v4172_v18  ;;  %v4173_v40 = vadd.f32 %v4060_v59, %v2746_v36  ;;  %v4062_v34 = vpop.f32.mrb[43].mxu0 }
 0x251   : > { %4467 = vst.msk [vmem:[%s7327_s20 + $0xc] sm:$0xf] %vm4463_vm8, %v5214_v35  ;;  %v4275_v9 = vadd.f32 %v4243_v23, %v4211_v62  ;;  %v4212_v16 = vadd.f32 %v7314_v56, %v4173_v40  ;;  %v4247_v62 = vld [vmem:[%s7309_s11 + $0x40] sm:$0xff] }
 0x252   : > { %v2758_v14 = vpop.f32.mrb[48].mxu1 }
 0x253   : > { %v2759_v15 = vadd.f32 %v2758_v14, %v7274_v20  ;;  %v2760_v43 = vpop.f32.mrb[49].mxu1  ;;  %v4307_v7 = vmax.f32 %v4275_v9, 0.0  ;;  %v4276_v47 = vadd.f32 %v4244_v49, %v4212_v16  ;;  %v4248_v16 = vld [vmem:[%s7309_s11 + $0x48] sm:$0xff] }
 0x254   : > { %v2761_v48 = vpop.f32.mrb[50].mxu1  ;;  %v4065_v54 = vpop.f32.mrb[44].mxu0 }
 0x255   : > { %v2762_v36 = vadd.f32 %v2761_v48, %v7276_v51  ;;  %v2763_v53 = vpop.f32.mrb[51].mxu1  ;;  %v5215_v2 = vpack.c.bf16 %v4307_v7, %v4307_v7  ;;  %v4308_v41 = vmax.f32 %v4276_v47, 0.0  ;;  %v4174_v63 = vadd.f32 %v4065_v54, %v2751_v22  ;;  %v4067_v3 = vpop.f32.mrb[45].mxu0 }
 0x256   : > { %v4068_v21 = vpop.f32.mrb[46].mxu0 }
 0x257   : > { %4468 = vst.msk [vmem:[%s7327_s20 + $0x10] sm:$0xf] %vm4463_vm8, %v5215_v2  ;;  %v5216_v46 = vpack.c.bf16 %v4308_v41, %v4308_v41  ;;  %v4213_v20 = vadd.f32 %v7314_v56, %v4174_v63  ;;  %v4175_v31 = vadd.f32 %v4068_v21, %v2754_v52  ;;  %v4070_v50 = vpop.f32.mrb[47].mxu0  ;;  %v4249_v21 = vld [vmem:[%s7309_s11 + $0x50] sm:$0xff] }
 0x259   : > { %4469 = vst.msk [vmem:[%s7327_s20 + $0x14] sm:$0xf] %vm4463_vm8, %v5216_v46  ;;  %v4277_v30 = vadd.f32 %v4245_v0, %v4213_v20  ;;  %v4214_v51 = vadd.f32 %v7314_v56, %v4175_v31 }
 0x25a   : > { %v2766_v4 = vpop.f32.mrb[52].mxu1 }
 0x25b   : > { %v2767_v22 = vadd.f32 %v2766_v4, %v7282_v24  ;;  %v2768_v26 = vpop.f32.mrb[53].mxu1  ;;  %v4309_v12 = vmax.f32 %v4277_v30, 0.0  ;;  %v4278_v60 = vadd.f32 %v4246_v39, %v4214_v51  ;;  %v4250_v39 = vld [vmem:[%s7309_s11 + $0x58] sm:$0xff] }
 0x25c   : > { %v2769_v55 = vpop.f32.mrb[54].mxu1  ;;  %v4073_v11 = vpop.f32.mrb[48].mxu0 }
 0x25d   : > { %v2770_v52 = vadd.f32 %v2769_v55, %v7284_v44  ;;  %v2771_v18 = vpop.f32.mrb[55].mxu1  ;;  %v5217_v27 = vpack.c.bf16 %v4309_v12, %v4309_v12  ;;  %v4310_v23 = vmax.f32 %v4278_v60, 0.0  ;;  %v4176_v59 = vadd.f32 %v4073_v11, %v2759_v15  ;;  %v4075_v35 = vpop.f32.mrb[49].mxu0 }
 0x25e   : > { %v4076_v40 = vpop.f32.mrb[50].mxu0  ;;  %v4251_v35 = vld [vmem:[%s7309_s11 + $0x60] sm:$0xff] }
 0x25f   : > { %4470 = vst.msk [vmem:[%s7327_s20 + $0x18] sm:$0xf] %vm4463_vm8, %v5217_v27  ;;  %v5218_v34 = vpack.c.bf16 %v4310_v23, %v4310_v23  ;;  %v4215_v24 = vadd.f32 %v7314_v56, %v4176_v59  ;;  %v4177_v49 = vadd.f32 %v4076_v40, %v2762_v36  ;;  %v4078_v9 = vpop.f32.mrb[51].mxu0 }
 0x261   : > { %4471 = vst.msk [vmem:[%s7327_s20 + $0x1c] sm:$0xf] %vm4463_vm8, %v5218_v34  ;;  %v4279_v14 = vadd.f32 %v4247_v62, %v4215_v24  ;;  %v4216_v44 = vadd.f32 %v7314_v56, %v4177_v49  ;;  %v4252_v49 = vld [vmem:[%s7309_s11 + $0x68] sm:$0xff] }
 0x262   : > { %v2774_v43 = vpop.f32.mrb[56].mxu1 }
 0x263   : > { %v2775_v15 = vadd.f32 %v2774_v43, %v7290_v17  ;;  %v2776_v7 = vpop.f32.mrb[57].mxu1  ;;  %v4311_v47 = vmax.f32 %v4279_v14, 0.0  ;;  %v4280_v48 = vadd.f32 %v4248_v16, %v4216_v44 }
 0x264   : > { %v2777_v54 = vpop.f32.mrb[58].mxu1  ;;  %v4081_v53 = vpop.f32.mrb[52].mxu0 }
 0x265   : > { %v2778_v36 = vadd.f32 %v2777_v54, %v7292_v33  ;;  %v2779_v2 = vpop.f32.mrb[59].mxu1  ;;  %v5219_v41 = vpack.c.bf16 %v4311_v47, %v4311_v47  ;;  %v4312_v63 = vmax.f32 %v4280_v48, 0.0  ;;  %v4178_v3 = vadd.f32 %v4081_v53, %v2767_v22  ;;  %v4083_v0 = vpop.f32.mrb[53].mxu0 }
 0x266   : > { %v4084_v46 = vpop.f32.mrb[54].mxu0 }
 0x267   : > { %4472 = vst.msk [vmem:[%s7327_s20 + $0x20] sm:$0xf] %vm4463_vm8, %v5219_v41  ;;  %v5220_v20 = vpack.c.bf16 %v4312_v63, %v4312_v63  ;;  %v4217_v17 = vadd.f32 %v7314_v56, %v4178_v3  ;;  %v4179_v31 = vadd.f32 %v4084_v46, %v2770_v52  ;;  %v4086_v50 = vpop.f32.mrb[55].mxu0  ;;  %v4253_v63 = vld [vmem:[%s7309_s11 + $0x70] sm:$0xff] }
 0x269   : > { %4473 = vst.msk [vmem:[%s7327_s20 + $0x24] sm:$0xf] %vm4463_vm8, %v5220_v20  ;;  %v4281_v30 = vadd.f32 %v4249_v21, %v4217_v17  ;;  %v4218_v33 = vadd.f32 %v7314_v56, %v4179_v31  ;;  %v4254_v20 = vld [vmem:[%s7309_s11 + $0x78] sm:$0xff] }
 0x26a   : > { %v2782_v51 = vpop.f32.mrb[60].mxu1 }
 0x26b   : > { %v2783_v4 = vadd.f32 %v2782_v51, %v7299_v10  ;;  %v2784_v22 = vpop.f32.mrb[61].mxu1  ;;  %v4313_v26 = vmax.f32 %v4281_v30, 0.0  ;;  %v4282_v12 = vadd.f32 %v4250_v39, %v4218_v33 }
 0x26c   : > { %v2785_v60 = vpop.f32.mrb[62].mxu1  ;;  %v4089_v55 = vpop.f32.mrb[56].mxu0 }
 0x26d   : > { %v2786_v11 = vadd.f32 %v2785_v60, %v7302_v45  ;;  %v2787_v52 = vpop.f32.mrb[63].mxu1  ;;  %v5221_v18 = vpack.c.bf16 %v4313_v26, %v4313_v26  ;;  %v4314_v27 = vmax.f32 %v4282_v12, 0.0  ;;  %v4180_v23 = vadd.f32 %v4089_v55, %v2775_v15  ;;  %v4091_v59 = vpop.f32.mrb[57].mxu0 }
 0x26e   : > { %v4092_v62 = vpop.f32.mrb[58].mxu0  ;;  %v4255_v52 = vld [vmem:[%s7309_s11 + $0x80] sm:$0xff] }
 0x26f   : > { %4474 = vst.msk [vmem:[%s7327_s20 + $0x28] sm:$0xf] %vm4463_vm8, %v5221_v18  ;;  %v5222_v40 = vpack.c.bf16 %v4314_v27, %v4314_v27  ;;  %v4219_v10 = vadd.f32 %v7314_v56, %v4180_v23  ;;  %v4181_v34 = vadd.f32 %v4092_v62, %v2778_v36  ;;  %v4094_v24 = vpop.f32.mrb[59].mxu0 }
 0x271   : > { %4475 = vst.msk [vmem:[%s7327_s20 + $0x2c] sm:$0xf] %vm4463_vm8, %v5222_v40  ;;  %v4283_v9 = vadd.f32 %v4251_v35, %v4219_v10  ;;  %v4220_v45 = vadd.f32 %v7314_v56, %v4181_v34  ;;  %v4256_v35 = vld [vmem:[%s7309_s11 + $0x88] sm:$0xff] }
 0x272   : > { %v2790_v16 = vpop.f32.mrb[64].mxu1 }
 0x273   : > { %v2791_v14 = vadd.f32 %v2790_v16, %v7221_v42  ;;  %v2792_v44 = vpop.f32.mrb[65].mxu1  ;;  %v4315_v43 = vmax.f32 %v4283_v9, 0.0  ;;  %v4284_v15 = vadd.f32 %v4252_v49, %v4220_v45 }
 0x274   : > { %v2793_v7 = vpop.f32.mrb[66].mxu1  ;;  %v4097_v47 = vpop.f32.mrb[60].mxu0 }
 0x275   : > { %v2794_v48 = vadd.f32 %v2793_v7, %v7223_v32  ;;  %v2795_v54 = vpop.f32.mrb[67].mxu1  ;;  %v5223_v53 = vpack.c.bf16 %v4315_v43, %v4315_v43  ;;  %v4316_v36 = vmax.f32 %v4284_v15, 0.0  ;;  %v4182_v2 = vadd.f32 %v4097_v47, %v2783_v4  ;;  %v4099_v41 = vpop.f32.mrb[61].mxu0  ;;  %v4257_v47 = vld [vmem:[%s7309_s11 + $0x90] sm:$0xff] }
 0x276   : > { %v4100_v3 = vpop.f32.mrb[62].mxu0 }
 0x277   : > { %4476 = vst.msk [vmem:[%s7327_s20 + $0x30] sm:$0xf] %vm4463_vm8, %v5223_v53  ;;  %v5224_v0 = vpack.c.bf16 %v4316_v36, %v4316_v36  ;;  %v4221_v42 = vadd.f32 %v7314_v56, %v4182_v2  ;;  %v4183_v21 = vadd.f32 %v4100_v3, %v2786_v11  ;;  %v4102_v46 = vpop.f32.mrb[63].mxu0  ;;  %v4258_v2 = vld [vmem:[%s7309_s11 + $0x98] sm:$0xff] }
 0x279   : > { %4477 = vst.msk [vmem:[%s7327_s20 + $0x34] sm:$0xf] %vm4463_vm8, %v5224_v0  ;;  %v4285_v17 = vadd.f32 %v4253_v63, %v4221_v42  ;;  %v4222_v32 = vadd.f32 %v7314_v56, %v4183_v21 }
 0x27a   : > { %v2798_v31 = vpop.f32.mrb[68].mxu1 }
 0x27b   : > { %v2799_v50 = vadd.f32 %v2798_v31, %v7236_v37  ;;  %v2800_v39 = vpop.f32.mrb[69].mxu1  ;;  %v4317_v30 = vmax.f32 %v4285_v17, 0.0  ;;  %v4286_v33 = vadd.f32 %v4254_v20, %v4222_v32 }
 0x27c   : > { %v2801_v51 = vpop.f32.mrb[70].mxu1  ;;  %v4105_v4 = vpop.f32.mrb[64].mxu0 }
 0x27d   : > { %v2802_v22 = vadd.f32 %v2801_v51, %v7240_v58  ;;  %v2803_v26 = vpop.f32.mrb[71].mxu1  ;;  %v5225_v12 = vpack.c.bf16 %v4317_v30, %v4317_v30  ;;  %v4318_v60 = vmax.f32 %v4286_v33, 0.0  ;;  %v4184_v55 = vadd.f32 %v4105_v4, %v2791_v14  ;;  %v4107_v11 = vpop.f32.mrb[65].mxu0  ;;  %v4259_v33 = vld [vmem:[%s7309_s11 + $0xa0] sm:$0xff] }
 0x27e   : > { %v4108_v18 = vpop.f32.mrb[66].mxu0 }
 0x27f   : > { %4478 = vst.msk [vmem:[%s7327_s20 + $0x38] sm:$0xf] %vm4463_vm8, %v5225_v12  ;;  %v5226_v27 = vpack.c.bf16 %v4318_v60, %v4318_v60  ;;  %v4223_v37 = vadd.f32 %v7314_v56, %v4184_v55  ;;  %v4185_v23 = vadd.f32 %v4108_v18, %v2794_v48  ;;  %v4110_v59 = vpop.f32.mrb[67].mxu0  ;;  %v4260_v12 = vld [vmem:[%s7309_s11 + $0xa8] sm:$0xff] }
 0x281   : > { %4479 = vst.msk [vmem:[%s7327_s20 + $0x3c] sm:$0xf] %vm4463_vm8, %v5226_v27  ;;  %v4287_v62 = vadd.f32 %v4255_v52, %v4223_v37  ;;  %v4224_v58 = vadd.f32 %v7314_v56, %v4185_v23 }
 0x282   : > { %v2806_v40 = vpop.f32.mrb[72].mxu1 }
 0x283   : > { %v2807_v10 = vadd.f32 %v2806_v40, %v7252_v61  ;;  %v2808_v34 = vpop.f32.mrb[73].mxu1  ;;  %v4319_v24 = vmax.f32 %v4287_v62, 0.0  ;;  %v4288_v49 = vadd.f32 %v4256_v35, %v4224_v58 }
 0x284   : > { %v2809_v9 = vpop.f32.mrb[74].mxu1  ;;  %v4113_v45 = vpop.f32.mrb[68].mxu0  ;;  %v4261_v34 = vld [vmem:[%s7309_s11 + $0xb0] sm:$0xff] }
 0x285   : > { %v2810_v16 = vadd.f32 %v2809_v9, %v7255_v19  ;;  %v2811_v14 = vpop.f32.mrb[75].mxu1  ;;  %v5227_v44 = vpack.c.bf16 %v4319_v24, %v4319_v24  ;;  %v4320_v43 = vmax.f32 %v4288_v49, 0.0  ;;  %v4186_v15 = vadd.f32 %v4113_v45, %v2799_v50  ;;  %v4115_v7 = vpop.f32.mrb[69].mxu0 }
 0x286   : > { %v4116_v48 = vpop.f32.mrb[70].mxu0 }
 0x287   : > { %4480 = vst.msk [vmem:[%s7327_s20 + $0x40] sm:$0xf] %vm4463_vm8, %v5227_v44  ;;  %v5228_v54 = vpack.c.bf16 %v4320_v43, %v4320_v43  ;;  %v4225_v61 = vadd.f32 %v7314_v56, %v4186_v15  ;;  %v4187_v53 = vadd.f32 %v4116_v48, %v2802_v22  ;;  %v4118_v36 = vpop.f32.mrb[71].mxu0 }
 0x289   : > { %4481 = vst.msk [vmem:[%s7327_s20 + $0x44] sm:$0xf] %vm4463_vm8, %v5228_v54  ;;  %v4289_v41 = vadd.f32 %v4257_v47, %v4225_v61  ;;  %v4226_v19 = vadd.f32 %v7314_v56, %v4187_v53 }
 0x28a   : > { %v2814_v63 = vpop.f32.mrb[76].mxu1 }
 0x28b   : > { %v2815_v3 = vadd.f32 %v2814_v63, %v7262_v13  ;;  %v2816_v0 = vpop.f32.mrb[77].mxu1  ;;  %v4321_v42 = vmax.f32 %v4289_v41, 0.0  ;;  %v4290_v21 = vadd.f32 %v4258_v2, %v4226_v19  ;;  %v4263_v63 = vld [vmem:[%s7309_s11 + $0xc0] sm:$0xff] }
 0x28c   : > { %v2817_v46 = vpop.f32.mrb[78].mxu1  ;;  %v4121_v20 = vpop.f32.mrb[72].mxu0 }
 0x28d   : > { %v2818_v17 = vadd.f32 %v2817_v46, %v7264_v5  ;;  %v2819_v32 = vpop.f32.mrb[79].mxu1  ;;  %v5229_v31 = vpack.c.bf16 %v4321_v42, %v4321_v42  ;;  %v4322_v50 = vmax.f32 %v4290_v21, 0.0  ;;  %v4188_v39 = vadd.f32 %v4121_v20, %v2807_v10  ;;  %v4123_v30 = vpop.f32.mrb[73].mxu0  ;;  %v4264_v46 = vld [vmem:[%s7309_s11 + $0xc8] sm:$0xff] }
 0x28e   : > { %v4124_v51 = vpop.f32.mrb[74].mxu0 }
 0x28f   : > { %4482 = vst.msk [vmem:[%s7327_s20 + $0x48] sm:$0xf] %vm4463_vm8, %v5229_v31  ;;  %v5230_v4 = vpack.c.bf16 %v4322_v50, %v4322_v50  ;;  %v4227_v13 = vadd.f32 %v7314_v56, %v4188_v39  ;;  %v4189_v22 = vadd.f32 %v4124_v51, %v2810_v16  ;;  %v4126_v26 = vpop.f32.mrb[75].mxu0  ;;  %v4262_v16 = vld [vmem:[%s7309_s11 + $0xb8] sm:$0xff] }
 0x291   : > { %4483 = vst.msk [vmem:[%s7327_s20 + $0x4c] sm:$0xf] %vm4463_vm8, %v5230_v4  ;;  %v4291_v60 = vadd.f32 %v4259_v33, %v4227_v13  ;;  %v4228_v5 = vadd.f32 %v7314_v56, %v4189_v22 }
 0x292   : > { %v2822_v55 = vpop.f32.mrb[80].mxu1 }
 0x293   : > { %v2823_v11 = vadd.f32 %v2822_v55, %v7270_v28  ;;  %v2824_v52 = vpop.f32.mrb[81].mxu1  ;;  %v4323_v18 = vmax.f32 %v4291_v60, 0.0  ;;  %v4292_v27 = vadd.f32 %v4260_v12, %v4228_v5  ;;  %v4265_v60 = vld [vmem:[%s7309_s11 + $0xd0] sm:$0xff] }
 0x294   : > { %v2825_v37 = vpop.f32.mrb[82].mxu1  ;;  %v4129_v23 = vpop.f32.mrb[76].mxu0 }
 0x295   : > { %v2826_v59 = vadd.f32 %v2825_v37, %v7272_v29  ;;  %v2827_v35 = vpop.f32.mrb[83].mxu1  ;;  %v5231_v62 = vpack.c.bf16 %v4323_v18, %v4323_v18  ;;  %v4324_v58 = vmax.f32 %v4292_v27, 0.0  ;;  %v4190_v40 = vadd.f32 %v4129_v23, %v2815_v3  ;;  %v4131_v10 = vpop.f32.mrb[77].mxu0  ;;  %v4266_v18 = vld [vmem:[%s7309_s11 + $0xd8] sm:$0xff] }
 0x296   : > { %v4132_v24 = vpop.f32.mrb[78].mxu0 }
 0x297   : > { %4484 = vst.msk [vmem:[%s7327_s20 + $0x50] sm:$0xf] %vm4463_vm8, %v5231_v62  ;;  %v5232_v49 = vpack.c.bf16 %v4324_v58, %v4324_v58  ;;  %v4229_v28 = vadd.f32 %v7314_v56, %v4190_v40  ;;  %v4191_v9 = vadd.f32 %v4132_v24, %v2818_v17  ;;  %v4134_v45 = vpop.f32.mrb[79].mxu0 }
 0x298   : > { %v4267_v45 = vld [vmem:[%s7309_s11 + $0xe0] sm:$0xff] }
 0x299   : > { %4485 = vst.msk [vmem:[%s7327_s20 + $0x54] sm:$0xf] %vm4463_vm8, %v5232_v49  ;;  %v4293_v14 = vadd.f32 %v4261_v34, %v4229_v28  ;;  %v4230_v29 = vadd.f32 %v7314_v56, %v4191_v9 }
 0x29a   : > { %v2830_v44 = vpop.f32.mrb[84].mxu1 }
 0x29b   : > { %v2831_v43 = vadd.f32 %v2830_v44, %v7278_v8  ;;  %v2832_v15 = vpop.f32.mrb[85].mxu1  ;;  %v4325_v7 = vmax.f32 %v4293_v14, 0.0  ;;  %v4294_v47 = vadd.f32 %v4262_v16, %v4230_v29 }
 0x29c   : > { %v2833_v48 = vpop.f32.mrb[86].mxu1  ;;  %v4137_v54 = vpop.f32.mrb[80].mxu0 }
 0x29d   : > { %v2834_v61 = vadd.f32 %v2833_v48, %v7280_v25  ;;  %v2835_v53 = vpop.f32.mrb[87].mxu1  ;;  %v5233_v36 = vpack.c.bf16 %v4325_v7, %v4325_v7  ;;  %v4326_v2 = vmax.f32 %v4294_v47, 0.0  ;;  %v4192_v41 = vadd.f32 %v4137_v54, %v2823_v11  ;;  %v4139_v19 = vpop.f32.mrb[81].mxu0 }
 0x29e   : > { %v4140_v3 = vpop.f32.mrb[82].mxu0 }
 0x29f   : > { %4486 = vst.msk [vmem:[%s7327_s20 + $0x58] sm:$0xf] %vm4463_vm8, %v5233_v36  ;;  %v5234_v0 = vpack.c.bf16 %v4326_v2, %v4326_v2  ;;  %v4231_v8 = vadd.f32 %v7314_v56, %v4192_v41  ;;  %v4193_v42 = vadd.f32 %v4140_v3, %v2826_v59  ;;  %v4142_v21 = vpop.f32.mrb[83].mxu0  ;;  %v4269_v2 = vld [vmem:[%s7309_s11 + $0xf0] sm:$0xff] }
 0x2a1   : > { %4487 = vst.msk [vmem:[%s7327_s20 + $0x5c] sm:$0xf] %vm4463_vm8, %v5234_v0  ;;  %v4295_v20 = vadd.f32 %v4263_v63, %v4231_v8  ;;  %v4232_v25 = vadd.f32 %v7314_v56, %v4193_v42  ;;  %v4270_v8 = vld [vmem:[%s7309_s11 + $0xf8] sm:$0xff] }
 0x2a2   : > { %v2838_v17 = vpop.f32.mrb[88].mxu1 }
 0x2a3   : > { %v2839_v32 = vadd.f32 %v2838_v17, %v7286_v1  ;;  %v2840_v31 = vpop.f32.mrb[89].mxu1  ;;  %v4327_v50 = vmax.f32 %v4295_v20, 0.0  ;;  %v4296_v39 = vadd.f32 %v4264_v46, %v4232_v25 }
 0x2a4   : > { %v2841_v30 = vpop.f32.mrb[90].mxu1  ;;  %v4145_v33 = vpop.f32.mrb[84].mxu0 }
 0x2a5   : > { %v2842_v51 = vadd.f32 %v2841_v30, %v7288_v6  ;;  %v2843_v4 = vpop.f32.mrb[91].mxu1  ;;  %v5235_v13 = vpack.c.bf16 %v4327_v50, %v4327_v50  ;;  %v4328_v22 = vmax.f32 %v4296_v39, 0.0  ;;  %v4194_v26 = vadd.f32 %v4145_v33, %v2831_v43  ;;  %v4147_v12 = vpop.f32.mrb[85].mxu0  ;;  %v4268_v43 = vld [vmem:[%s7309_s11 + $0xe8] sm:$0xff] }
 0x2a6   : > { %v4148_v5 = vpop.f32.mrb[86].mxu0 }
 0x2a7   : > { %4488 = vst.msk [vmem:[%s7327_s20 + $0x60] sm:$0xf] %vm4463_vm8, %v5235_v13  ;;  %v5236_v55 = vpack.c.bf16 %v4328_v22, %v4328_v22  ;;  %v4233_v1 = vadd.f32 %v7314_v56, %v4194_v26  ;;  %v4195_v11 = vadd.f32 %v4148_v5, %v2834_v61  ;;  %v4150_v52 = vpop.f32.mrb[87].mxu0 }
 0x2a9   : > { %4489 = vst.msk [vmem:[%s7327_s20 + $0x64] sm:$0xf] %vm4463_vm8, %v5236_v55  ;;  %v4297_v27 = vadd.f32 %v4265_v60, %v4233_v1  ;;  %v4234_v6 = vadd.f32 %v7314_v56, %v4195_v11 }
 0x2aa   : > { %v2846_v37 = vpop.f32.mrb[92].mxu1 }
 0x2ab   : > { %v2847_v23 = vadd.f32 %v2846_v37, %v7294_v38  ;;  %v2848_v59 = vpop.f32.mrb[93].mxu1  ;;  %v4329_v35 = vmax.f32 %v4297_v27, 0.0  ;;  %v4298_v62 = vadd.f32 %v4266_v18, %v4234_v6 }
 0x2ac   : > { %v2849_v58 = vpop.f32.mrb[94].mxu1  ;;  %v4153_v40 = vpop.f32.mrb[88].mxu0 }
 0x2ad   : > { %v2850_v10 = vadd.f32 %v2849_v58, %v7296_v57  ;;  %v2851_v34 = vpop.f32.mrb[95].mxu1  ;;  %v5237_v24 = vpack.c.bf16 %v4329_v35, %v4329_v35  ;;  %v4330_v49 = vmax.f32 %v4298_v62, 0.0  ;;  %v4196_v28 = vadd.f32 %v4153_v40, %v2839_v32  ;;  %v4155_v9 = vpop.f32.mrb[89].mxu0 }
 0x2ae   : > { %v4156_v16 = vpop.f32.mrb[90].mxu0 }
 0x2af   : > { %4490 = vst.msk [vmem:[%s7327_s20 + $0x68] sm:$0xf] %vm4463_vm8, %v5237_v24  ;;  %v5238_v38 = vpack.c.bf16 %v4330_v49, %v4330_v49  ;;  %v4235_v14 = vadd.f32 %v7314_v56, %v4196_v28  ;;  %v4197_v29 = vadd.f32 %v4156_v16, %v2842_v51  ;;  %v4158_v44 = vpop.f32.mrb[91].mxu0 }
 0x2b1   : > { %4491 = vst.msk [vmem:[%s7327_s20 + $0x6c] sm:$0xf] %vm4463_vm8, %v5238_v38  ;;  %v4299_v57 = vadd.f32 %v4267_v45, %v4235_v14  ;;  %v4236_v15 = vadd.f32 %v7314_v56, %v4197_v29 }
 0x2b3   : > { %v4331_v7 = vmax.f32 %v4299_v57, 0.0  ;;  %v4300_v47 = vadd.f32 %v4268_v43, %v4236_v15 }
 0x2b4   : > { %v4161_v48 = vpop.f32.mrb[92].mxu0 }
 0x2b5   : > { %v5239_v54 = vpack.c.bf16 %v4331_v7, %v4331_v7  ;;  %v4332_v61 = vmax.f32 %v4300_v47, 0.0  ;;  %v4198_v53 = vadd.f32 %v4161_v48, %v2847_v23  ;;  %v4163_v36 = vpop.f32.mrb[93].mxu0 }
 0x2b6   : > { %v4164_v41 = vpop.f32.mrb[94].mxu0 }
 0x2b7   : > { %4492 = vst.msk [vmem:[%s7327_s20 + $0x70] sm:$0xf] %vm4463_vm8, %v5239_v54  ;;  %v5240_v19 = vpack.c.bf16 %v4332_v61, %v4332_v61  ;;  %v4237_v63 = vadd.f32 %v7314_v56, %v4198_v53  ;;  %v4199_v3 = vadd.f32 %v4164_v41, %v2850_v10  ;;  %v4166_v0 = vpop.f32.mrb[95].mxu0 }
 0x2b9   : > { %4493 = vst.msk [vmem:[%s7327_s20 + $0x74] sm:$0xf] %vm4463_vm8, %v5240_v19  ;;  %v4301_v42 = vadd.f32 %v4269_v2, %v4237_v63  ;;  %v4238_v21 = vadd.f32 %v7314_v56, %v4199_v3 }
 0x2bb   : > { %v4333_v46 = vmax.f32 %v4301_v42, 0.0  ;;  %v4302_v20 = vadd.f32 %v4270_v8, %v4238_v21 }
 0x2bd   : > { %v5241_v25 = vpack.c.bf16 %v4333_v46, %v4333_v46  ;;  %v4334_v17 = vmax.f32 %v4302_v20, 0.0 }
 0x2bf   : > { %4494 = vst.msk [vmem:[%s7327_s20 + $0x78] sm:$0xf] %vm4463_vm8, %v5241_v25  ;;  %v5242_v32 = vpack.c.bf16 %v4334_v17, %v4334_v17 }
 0x2c1   : > { %4495 = vst.msk [vmem:[%s7327_s20 + $0x7c] sm:$0xf] %vm4463_vm8, %v5242_v32 }
 0x2c2   : > { %5408 = shalt.err (!%p5405_p3)
}
 0x2c3   : > { %s5409_s10 = scalar_lea.hbm %s7479_s30, 2048  ;;  %s5413_s13 = scalar_lea.hbm %s7536_s4, 4096 }
 0x2c4   : > { %p5410_p4 = scmp.ne.s32.totalorder %s7479_s30, %s5409_s10  ;;  %p5414_p9 = scmp.lt.u32.totalorder %s7479_s30, %s7536_s4 }
 0x2c5   : > { %p5415_p10 = scmp.lt.u32.totalorder %s5413_s13, %s5409_s10  ;;  %p5417_p12 = scmp.lt.u32.totalorder %s5409_s10, %s7479_s30 }
 0x2c6   : > { %p5411_p7 = pnand %p5410_p4, %p5526_p5 }
 0x2c7   : > { %p5416_p11 = por %p5415_p10, %p5414_p9 }
 0x2c8   : > { %p5412_p8 = pneg %p5411_p7 }
 0x2c9   : > { %p5418_p13 = por %p5417_p12, %p5416_p11 }
 0x2cb   : > { %p5419_p0 = pnand %p5418_p13, %p5412_p8 }
 0x2cd   : > { %5422 = shalt.err (!%p5419_p0)
}
 0x2ce   : > { %s5462_s20 = smov 4  }
 0x2cf   : > { %5269 = dma.vmem_to_hbm [thread:$0]  (%p5526_p5), %s7483_s23, 2048, %s7479_s30, %s7489_s19, %s5459_s6, %s5459_s6, %s5462_s20  }
 0x2d0 PF: > { %p5275_p1 = scmp.ge.s32.totalorder %s5457_s18, 2  ;;  %s4525_s22 = sand.u32 1, %s5445_s15  }
 0x2d1   : > { %s4526_s28 = scalar_lea.sflag [#allocation4], %s4525_s22 }
 0x2d2   : > { %p5272_p2 = pnand %p5275_p1, %p5530_p6 }
 0x2d4   : > { %5440 = dma.done.wait (!%p5272_p2), %s4526_s28, 2048  }
 0x2d5   : > { %5442 = vsyncadd (!%p5272_p2), %s4526_s28, 4294965248  ;;  %p14_p3 = scmp.ge.s32.totalorder %s5513_s21, 4   ;;  %s7547_s15 = smov %s5449_s16 }
 0x2d6   : > { %s7548_s16 = smov %s5453_s17  ;;  %s7549_s17 = smov %s5524_s24 }
 0x2d7   : > { %s7550_s18 = smov %s5513_s21  ;;  %16 = sbr.rel (!%p14_p3) target bundleno = 3 (0x3), region = 78 }
 0x2de   :  { %4531 = vsyncpa [#allocation4], 1 }
 0x2df   :  { %4533 = vsyncpa [#allocation4 + $0x1], 1 }

</bundles_post_ra>
